<compile_context>
chip_gen: v7x
topology: tpu7x:2x2x1
jax: 0.10.0
libtpu: 0.0.40
codegen_flags: <defaults>
</compile_context>

<pallas_src>
import numpy as np
import jax
import jax.numpy as jnp
from jax.experimental import pallas as pl
from jax.experimental.pallas import tpu as pltpu

_VMEM_LIMIT = 32 * 1024 * 1024   # explicit scoped-VMEM budget (safe on v5e/v6e/v7x)


def _round_up(x, m):
    return ((x + m - 1) // m) * m


def _pick_tile(dim, target, multiple):
    """Largest divisor of `dim` that is <= target and a multiple of `multiple`,
    falling back to the full dim (always legal as a block dim)."""
    if dim <= target:
        return dim
    t = (target // multiple) * multiple
    while t >= multiple:
        if dim % t == 0:
            return t
        t -= multiple
    return dim


def _pick_time_chunk(T, target=64):
    if T <= target:
        return T
    for t in range(target, 0, -1):
        if T % t == 0:
            return t
    return T


# ----------------------------------------------------------------------------
# Input projection / decoder:  out = sum_i x_i @ w_i + b   (tiled over M, N)
# Several input streams (the per-direction hidden-state arrays of the previous
# layer) are consumed directly -> no wrapper-side concat of the LSTM outputs.
# ----------------------------------------------------------------------------
def _make_proj_kernel(n):
    def kernel(*refs):
        x_refs = refs[:n]
        w_refs = refs[n:2 * n]
        b_ref = refs[2 * n]
        o_ref = refs[2 * n + 1]
        acc = jnp.dot(x_refs[0][...], w_refs[0][...],
                      preferred_element_type=jnp.float32)
        for i in range(1, n):
            acc = acc + jnp.dot(x_refs[i][...], w_refs[i][...],
                                preferred_element_type=jnp.float32)
        o_ref[...] = (acc + b_ref[...]).astype(o_ref.dtype)
    return kernel


def input_projection(x_list, w_list, b, *, out_dtype):
    assert len(x_list) == len(w_list)
    M = x_list[0].shape[0]
    N = w_list[0].shape[1]
    tm = _pick_tile(M, 512, 8)
    tn = _pick_tile(N, 512, 128)
    in_specs = ([pl.BlockSpec((tm, x.shape[1]), lambda i, j: (i, 0)) for x in x_list]
                + [pl.BlockSpec((w.shape[0], tn), lambda i, j: (0, j)) for w in w_list]
                + [pl.BlockSpec((1, tn), lambda i, j: (0, j))])
    return pl.pallas_call(
        _make_proj_kernel(len(x_list)),
        out_shape=jax.ShapeDtypeStruct((M, N), out_dtype),
        grid=(M // tm, N // tn),
        in_specs=in_specs,
        out_specs=pl.BlockSpec((tm, tn), lambda i, j: (i, j)),
        compiler_params=pltpu.CompilerParams(
            dimension_semantics=("parallel", "parallel"),
            vmem_limit_bytes=_VMEM_LIMIT),
    )(*x_list, *w_list, b)


# ----------------------------------------------------------------------------
# Fused bidirectional LSTM recurrence, time-chunked.
#   xg      : (T, Bp, D*4Hp) bf16  precomputed x_t @ W_ih^T + b (original time order)
#   whh_bd  : (D*Hp, D*4Hp)  bf16  block-diagonal pre-transposed recurrent weights
#   outputs : D arrays (T, Bp, Hp) bf16 (hidden states in original time order)
# Reverse direction is handled by mirrored time-chunk index_maps + reversed
# in-chunk indexing; both directions share one per-step block-diagonal matmul.
# PyTorch gate order i, f, g, o.  h/c carried in f32 VMEM scratch across chunks.
# ----------------------------------------------------------------------------
def lstm_recurrence(xg, whh_bd, *, D, Hp, Tc, out_dtype=jnp.bfloat16):
    T, Bp, G_all = xg.shape
    G = 4 * Hp
    assert G_all == D * G and T % Tc == 0
    nchunks = T // Tc

    def cell(gates, c_prev):
        i_g = jax.nn.sigmoid(gates[:, 0 * Hp:1 * Hp])
        f_g = jax.nn.sigmoid(gates[:, 1 * Hp:2 * Hp])
        g_g = jnp.tanh(gates[:, 2 * Hp:3 * Hp])
        o_g = jax.nn.sigmoid(gates[:, 3 * Hp:4 * Hp])
        c_new = f_g * c_prev + i_g * g_g
        h_new = o_g * jnp.tanh(c_new)
        return h_new, c_new

    def kernel(*refs):
        xg_refs = refs[:D]
        whh_ref = refs[D]
        out_refs = refs[D + 1:2 * D + 1]
        h_scr, c_scr = refs[2 * D + 1:]

        @pl.when(pl.program_id(0) == 0)
        def _():
            h_scr[...] = jnp.zeros_like(h_scr)
            c_scr[...] = jnp.zeros_like(c_scr)

        whh = whh_ref[...]                       # loaded once (block index constant)

        def step(s, carry):
            h, c = carry                         # (Bp, D*Hp) f32
            hh = jnp.dot(h.astype(whh.dtype), whh,
                         preferred_element_type=jnp.float32)    # (Bp, D*4Hp)
            hs, cs = [], []
            for d in range(D):
                t_loc = s if d == 0 else Tc - 1 - s   # reverse dir runs chunk backwards
                gates = hh[:, d * G:(d + 1) * G] + xg_refs[d][t_loc].astype(jnp.float32)
                h_d, c_d = cell(gates, c[:, d * Hp:(d + 1) * Hp])
                out_refs[d][t_loc] = h_d.astype(out_dtype)
                hs.append(h_d)
                cs.append(c_d)
            h_new = hs[0] if D == 1 else jnp.concatenate(hs, axis=-1)
            c_new = cs[0] if D == 1 else jnp.concatenate(cs, axis=-1)
            return h_new, c_new

        h, c = jax.lax.fori_loop(0, Tc, step, (h_scr[...], c_scr[...]),
                                 unroll=min(Tc, 8))
        h_scr[...] = h
        c_scr[...] = c

    in_specs = [pl.BlockSpec((Tc, Bp, G), lambda c: (c, 0, 0))]
    if D == 2:
        in_specs.append(pl.BlockSpec((Tc, Bp, G), lambda c: (nchunks - 1 - c, 0, 1)))
    in_specs.append(pl.BlockSpec((D * Hp, D * G), lambda c: (0, 0)))

    out_specs = [pl.BlockSpec((Tc, Bp, Hp), lambda c: (c, 0, 0))]
    if D == 2:
        out_specs.append(pl.BlockSpec((Tc, Bp, Hp), lambda c: (nchunks - 1 - c, 0, 0)))

    out_shape = [jax.ShapeDtypeStruct((T, Bp, Hp), out_dtype) for _ in range(D)]

    return pl.pallas_call(
        kernel,
        out_shape=out_shape,
        grid=(nchunks,),
        in_specs=in_specs,
        out_specs=out_specs,
        scratch_shapes=[pltpu.VMEM((Bp, D * Hp), jnp.float32),
                        pltpu.VMEM((Bp, D * Hp), jnp.float32)],
        compiler_params=pltpu.CompilerParams(
            dimension_semantics=("arbitrary",),
            vmem_limit_bytes=_VMEM_LIMIT),
    )(*([xg] * D), whh_bd)


# ----------------------------------------------------------------------------
# Full model forward (mirrors LSTM.forward in the PyTorch module).
# ----------------------------------------------------------------------------
def lstm_model_forward(inputs, packed):
    D = packed["num_dirs"]
    Hp = packed["Hp"]
    emb = packed["embedding"][inputs]                     # (B, S, E) gather: plain-JAX glue
    x = jnp.transpose(emb, (1, 0, 2))                     # (T, B, E)  == permute([1,0,2])
    T, B, _ = x.shape
    Bp = _round_up(max(B, 8), 8)                          # sublane-aligned batch
    if Bp != B:
        x = jnp.pad(x, ((0, 0), (0, Bp - B), (0, 0)))
    x = x.astype(jnp.bfloat16)
    Tc = _pick_time_chunk(T)

    feats = [x]                                           # per-input-stream features
    for lay in packed["layers"]:
        x2d = [f.reshape(T * Bp, f.shape[-1]) for f in feats]
        xg2d = input_projection(x2d, lay["w_ih_t"], lay["b"],
                                out_dtype=jnp.bfloat16)    # (T*Bp, D*4Hp) bf16
        xg = xg2d.reshape(T, Bp, D * 4 * Hp)               # free reshape (contiguous)
        feats = lstm_recurrence(xg, lay["w_hh_bd"], D=D, Hp=Hp, Tc=Tc)

    # encoding = cat([output[0], output[-1]], dim=1); tiny (B x 2*D*Hp) concat.
    enc = jnp.concatenate([f[0] for f in feats] + [f[T - 1] for f in feats], axis=1)
    logits = input_projection([enc], [packed["dec_w_t"]], packed["dec_b"],
                              out_dtype=jnp.float32)       # (Bp, Lpad) lane-dense store
    return logits[:B, :packed["labels"]]


# ----------------------------------------------------------------------------
# Pure-JAX reference (PyTorch semantics, f32) — correctness check only.
# ----------------------------------------------------------------------------
def _ref_lstm_dir(x, w_ih, w_hh, b, *, reverse):
    T, B, _ = x.shape
    H = w_hh.shape[1]
    xs = x[::-1] if reverse else x

    def step(carry, x_t):
        h, c = carry
        gates = x_t @ w_ih.T + h @ w_hh.T + b
        i, f, g, o = jnp.split(gates, 4, axis=-1)
        i, f, o = jax.nn.sigmoid(i), jax.nn.sigmoid(f), jax.nn.sigmoid(o)
        g = jnp.tanh(g)
        c = f * c + i * g
        h = o * jnp.tanh(c)
        return (h, c), h

    init = (jnp.zeros((B, H), jnp.float32), jnp.zeros((B, H), jnp.float32))
    _, ys = jax.lax.scan(step, init, xs)
    return ys[::-1] if reverse else ys


def reference_forward(inputs, raw):
    emb = raw["embedding"][inputs]
    x = jnp.transpose(emb, (1, 0, 2))
    num_dirs = 2 if raw["bidirectional"] else 1
    for l in range(raw["num_layers"]):
        outs = []
        for d in range(num_dirs):
            p = raw["lstm"][(l, d)]
            outs.append(_ref_lstm_dir(x, p["w_ih"], p["w_hh"],
                                      p["b_ih"] + p["b_hh"], reverse=(d == 1)))
        x = jnp.concatenate(outs, axis=-1) if num_dirs > 1 else outs[0]
    enc = jnp.concatenate([x[0], x[-1]], axis=1)
    return enc @ raw["dec_w"].T + raw["dec_b"]


# ----------------------------------------------------------------------------
# Parameter init (PyTorch layout) + kernel-friendly packing.
# ----------------------------------------------------------------------------
def init_params(key, vocab, embed, hidden, num_layers, bidirectional, labels):
    num_dirs = 2 if bidirectional else 1
    keys = iter(jax.random.split(key, 64))
    k = 1.0 / np.sqrt(hidden)

    raw = {"num_layers": num_layers, "bidirectional": bidirectional,
           "hidden": hidden, "labels": labels}
    raw["embedding"] = jax.random.normal(next(keys), (vocab, embed), jnp.float32)

    lstm = {}
    for l in range(num_layers):
        in_size = embed if l == 0 else hidden * num_dirs
        for d in range(num_dirs):
            lstm[(l, d)] = {
                "w_ih": jax.random.uniform(next(keys), (4 * hidden, in_size),
                                           jnp.float32, -k, k),
                "w_hh": jax.random.uniform(next(keys), (4 * hidden, hidden),
                                           jnp.float32, -k, k),
                "b_ih": jax.random.uniform(next(keys), (4 * hidden,), jnp.float32, -k, k),
                "b_hh": jax.random.uniform(next(keys), (4 * hidden,), jnp.float32, -k, k),
            }
    raw["lstm"] = lstm

    dec_in = hidden * 2 * num_dirs
    kd = 1.0 / np.sqrt(dec_in)
    raw["dec_w"] = jax.random.uniform(next(keys), (labels, dec_in), jnp.float32, -kd, kd)
    raw["dec_b"] = jax.random.uniform(next(keys), (labels,), jnp.float32, -kd, kd)
    return raw


def pack_params(raw):
    H = raw["hidden"]
    D = 2 if raw["bidirectional"] else 1
    Hp = _round_up(H, 128)                       # lane-aligned per-gate width

    def pad_gate_rows(w):                        # (4H, C) -> (4Hp, C), gate order i,f,g,o
        C = w.shape[1]
        w4 = w.reshape(4, H, C)
        return jnp.zeros((4, Hp, C), w.dtype).at[:, :H, :].set(w4).reshape(4 * Hp, C)

    def pad_gate_vec(b):                         # (4H,) -> (4Hp,)
        b4 = b.reshape(4, H)
        return jnp.zeros((4, Hp), b.dtype).at[:, :H].set(b4).reshape(4 * Hp)

    packed = {"num_layers": raw["num_layers"], "num_dirs": D, "hidden": H, "Hp": Hp,
              "labels": raw["labels"], "embedding": raw["embedding"]}

    layers = []
    for l in range(raw["num_layers"]):
        per_dir_wih, biases, whh_t = [], [], []
        for d in range(D):
            p = raw["lstm"][(l, d)]
            per_dir_wih.append(pad_gate_rows(p["w_ih"]))            # (4Hp, In)
            biases.append(pad_gate_vec(p["b_ih"] + p["b_hh"]))      # (4Hp,)
            whh = pad_gate_rows(p["w_hh"])                           # (4Hp, H)
            whh = jnp.zeros((4 * Hp, Hp), whh.dtype).at[:, :H].set(whh)
            whh_t.append(whh.T)                                      # (Hp, 4Hp)

        if l == 0:
            # single input stream of width E
            w_ih_t = [jnp.concatenate([w.T for w in per_dir_wih],
                                      axis=1).astype(jnp.bfloat16)]  # (E, D*4Hp)
        else:
            # D input streams (previous layer's per-direction hidden states)
            w_ih_t = []
            for e in range(D):
                parts = []
                for d in range(D):
                    blk = per_dir_wih[d][:, e * H:(e + 1) * H]       # (4Hp, H)
                    blk = jnp.zeros((4 * Hp, Hp), blk.dtype).at[:, :H].set(blk)
                    parts.append(blk.T)                              # (Hp, 4Hp)
                w_ih_t.append(jnp.concatenate(parts, axis=1).astype(jnp.bfloat16))

        b = jnp.concatenate(biases).reshape(1, D * 4 * Hp).astype(jnp.float32)

        bd = jnp.zeros((D * Hp, D * 4 * Hp), jnp.float32)            # block-diag W_hh^T
        for d in range(D):
            bd = bd.at[d * Hp:(d + 1) * Hp, d * 4 * Hp:(d + 1) * 4 * Hp].set(whh_t[d])

        layers.append({"w_ih_t": w_ih_t, "b": b,
                       "w_hh_bd": bd.astype(jnp.bfloat16)})
    packed["layers"] = layers

    labels = raw["labels"]
    Lpad = _round_up(labels, 128)                # lane-dense decoder output
    n_blk = 2 * D                                # [out0_f, out0_r, outT_f, outT_r]
    dec_w_t = jnp.zeros((n_blk * Hp, Lpad), jnp.float32)
    for j in range(n_blk):
        dec_w_t = dec_w_t.at[j * Hp:j * Hp + H, :labels].set(
            raw["dec_w"][:, j * H:(j + 1) * H].T)
    packed["dec_w_t"] = dec_w_t.astype(jnp.bfloat16)
    packed["dec_b"] = jnp.zeros((1, Lpad), jnp.float32).at[0, :labels].set(raw["dec_b"])
    return packed


if __name__ == "__main__":
    vocab_size, embed_size, num_hiddens = 50, 32, 32
    num_layers, bidirectional, labels = 2, True, 3
    batch, seq = 4, 8

    key = jax.random.PRNGKey(0)
    k_params, k_in = jax.random.split(key)
    raw = init_params(k_params, vocab_size, embed_size, num_hiddens,
                      num_layers, bidirectional, labels)
    packed = pack_params(raw)
    inputs = jax.random.randint(k_in, (batch, seq), 0, vocab_size, dtype=jnp.int32)

    forward = jax.jit(lambda tok: lstm_model_forward(tok, packed))
    out = jax.block_until_ready(forward(inputs))

    ref = reference_forward(inputs, raw)
    # bf16 weights + bf16 stored pre-activations / hidden states vs f32 reference.
    np.testing.assert_allclose(np.asarray(out, dtype=np.float32), np.asarray(ref),
                               rtol=3e-2, atol=3e-2)
    print("KERNEL_OK")
</pallas_src>

<mosaic_0001>
module attributes {stable_mosaic.version = 11 : i64} {
  func.func @kernel(%arg0: i32, %arg1: i32, %arg2: memref<64x32xbf16, #tpu.memory_space<vmem>>, %arg3: memref<32x512xbf16, #tpu.memory_space<vmem>>, %arg4: memref<1x512xf32, #tpu.memory_space<vmem>>, %arg5: memref<64x512xbf16, #tpu.memory_space<vmem>>) attributes {dimension_semantics = [#tpu.dimension_semantics<parallel>, #tpu.dimension_semantics<parallel>], iteration_bounds = array<i64: 1, 2>, scalar_prefetch = 0 : i64, scratch_operands = 0 : i64, tpu.core_type = #tpu.core_type<tc>, window_params = [{transform_indices = @transform_0, window_bounds = array<i64: 64, 32>}, {transform_indices = @transform_1, window_bounds = array<i64: 32, 512>}, {transform_indices = @transform_2, window_bounds = array<i64: 1, 512>}, {transform_indices = @transform_3, window_bounds = array<i64: 64, 512>}]} {
    %c0 = arith.constant 0 : index
    %c0_0 = arith.constant 0 : index
    %0 = vector.load %arg2[%c0, %c0_0] : memref<64x32xbf16, #tpu.memory_space<vmem>>, vector<64x32xbf16>
    %c0_1 = arith.constant 0 : index
    %c0_2 = arith.constant 0 : index
    %1 = vector.load %arg3[%c0_1, %c0_2] : memref<32x512xbf16, #tpu.memory_space<vmem>>, vector<32x512xbf16>
    %cst = arith.constant dense<0.000000e+00> : vector<64x512xf32>
    %2 = tpu.matmul %0, %1, %cst {dimension_numbers = #tpu.dot_dimension_numbers<[1], [0], [0], [1], [0, 0, 1, 1], [], []>} : vector<64x32xbf16>, vector<32x512xbf16>, vector<64x512xf32> -> vector<64x512xf32>
    %c0_3 = arith.constant 0 : index
    %c0_4 = arith.constant 0 : index
    %3 = vector.load %arg4[%c0_3, %c0_4] : memref<1x512xf32, #tpu.memory_space<vmem>>, vector<1x512xf32>
    %4 = vector.broadcast %3 : vector<1x512xf32> to vector<64x512xf32>
    %5 = arith.addf %2, %4 : vector<64x512xf32>
    %6 = arith.truncf %5 : vector<64x512xf32> to vector<64x512xbf16>
    %c0_5 = arith.constant 0 : index
    %c0_6 = arith.constant 0 : index
    %7 = vector.load %arg5[%c0_5, %c0_6] : memref<64x512xbf16, #tpu.memory_space<vmem>>, vector<64x512xbf16>
    tpu.vector_store %arg5[%c0_5, %c0_6], %6 {strides = array<i32>} : memref<64x512xbf16, #tpu.memory_space<vmem>>, vector<64x512xbf16>,
    return
  }
  func.func @transform_0(%arg0: i32, %arg1: i32) -> (i32, i32) {
    %c0_i32 = arith.constant 0 : i32
    %c0_i32_0 = arith.constant 0 : i32
    return %arg0, %c0_i32 : i32, i32
  }
  func.func @transform_1(%arg0: i32, %arg1: i32) -> (i32, i32) {
    %c0_i32 = arith.constant 0 : i32
    %c0_i32_0 = arith.constant 0 : i32
    return %c0_i32, %arg1 : i32, i32
  }
  func.func @transform_2(%arg0: i32, %arg1: i32) -> (i32, i32) {
    %c0_i32 = arith.constant 0 : i32
    %c0_i32_0 = arith.constant 0 : i32
    return %c0_i32, %arg1 : i32, i32
  }
  func.func @transform_3(%arg0: i32, %arg1: i32) -> (i32, i32) {
    %c0_i32 = arith.constant 0 : i32
    return %arg0, %arg1 : i32, i32
  }
}

module attributes {stable_mosaic.version = 11 : i64} {
  func.func @kernel(%arg0: i32, %arg1: memref<8x8x512xbf16, #tpu.memory_space<vmem>>, %arg2: memref<8x8x512xbf16, #tpu.memory_space<vmem>>, %arg3: memref<256x1024xbf16, #tpu.memory_space<vmem>>, %arg4: memref<8x8x128xbf16, #tpu.memory_space<vmem>>, %arg5: memref<8x8x128xbf16, #tpu.memory_space<vmem>>, %arg6: memref<8x256xf32, #tpu.memory_space<vmem>>, %arg7: memref<8x256xf32, #tpu.memory_space<vmem>>) attributes {dimension_semantics = [#tpu.dimension_semantics<arbitrary>], iteration_bounds = array<i64: 1>, scalar_prefetch = 0 : i64, scratch_operands = 2 : i64, tpu.core_type = #tpu.core_type<tc>, window_params = [{transform_indices = @transform_0, window_bounds = array<i64: 8, 8, 512>}, {transform_indices = @transform_1, window_bounds = array<i64: 8, 8, 512>}, {pipeline_mode = #tpu.pipeline_mode<synchronous>, transform_indices = @transform_2, window_bounds = array<i64: 256, 1024>}, {transform_indices = @transform_3, window_bounds = array<i64: 8, 8, 128>}, {transform_indices = @transform_4, window_bounds = array<i64: 8, 8, 128>}]} {
    %c0_i32 = arith.constant 0 : i32
    %0 = arith.cmpi eq, %arg0, %c0_i32 : i32
    %1 = arith.extui %0 : i1 to i32
    %c0_i32_0 = arith.constant 0 : i32
    %2 = arith.cmpi ne, %1, %c0_i32_0 : i32
    scf.if %2 {
      %cst_138 = arith.constant 0.000000e+00 : f32
      %640 = vector.broadcast %cst_138 : f32 to vector<8x256xf32>
      %c0_139 = arith.constant 0 : index
      %c0_140 = arith.constant 0 : index
      %641 = vector.load %arg6[%c0_139, %c0_140] : memref<8x256xf32, #tpu.memory_space<vmem>>, vector<8x256xf32>
      tpu.vector_store %arg6[%c0_139, %c0_140], %640 {strides = array<i32>} : memref<8x256xf32, #tpu.memory_space<vmem>>, vector<8x256xf32>,
      %cst_141 = arith.constant 0.000000e+00 : f32
      %642 = vector.broadcast %cst_141 : f32 to vector<8x256xf32>
      %c0_142 = arith.constant 0 : index
      %c0_143 = arith.constant 0 : index
      %643 = vector.load %arg7[%c0_142, %c0_143] : memref<8x256xf32, #tpu.memory_space<vmem>>, vector<8x256xf32>
      tpu.vector_store %arg7[%c0_142, %c0_143], %642 {strides = array<i32>} : memref<8x256xf32, #tpu.memory_space<vmem>>, vector<8x256xf32>,
    } else {
    }
    %c0 = arith.constant 0 : index
    %c0_1 = arith.constant 0 : index
    %3 = vector.load %arg3[%c0, %c0_1] : memref<256x1024xbf16, #tpu.memory_space<vmem>>, vector<256x1024xbf16>
    %c0_2 = arith.constant 0 : index
    %c0_3 = arith.constant 0 : index
    %4 = vector.load %arg6[%c0_2, %c0_3] : memref<8x256xf32, #tpu.memory_space<vmem>>, vector<8x256xf32>
    %c0_4 = arith.constant 0 : index
    %c0_5 = arith.constant 0 : index
    %5 = vector.load %arg7[%c0_4, %c0_5] : memref<8x256xf32, #tpu.memory_space<vmem>>, vector<8x256xf32>
    %c0_i32_6 = arith.constant 0 : i32
    %6 = arith.truncf %4 : vector<8x256xf32> to vector<8x256xbf16>
    %cst = arith.constant dense<0.000000e+00> : vector<8x1024xf32>
    %7 = tpu.matmul %6, %3, %cst {dimension_numbers = #tpu.dot_dimension_numbers<[1], [0], [0], [1], [0, 0, 1, 1], [], []>} : vector<8x256xbf16>, vector<256x1024xbf16>, vector<8x1024xf32> -> vector<8x1024xf32>
    %8 = vector.extract_strided_slice %7 {offsets = [0, 0], sizes = [8, 512], strides = [1, 1]} : vector<8x1024xf32> to vector<8x512xf32>
    %9 = arith.index_cast %c0_i32_6 : i32 to index
    %c0_7 = arith.constant 0 : index
    %c0_8 = arith.constant 0 : index
    %10 = vector.load %arg1[%9, %c0_7, %c0_8] : memref<8x8x512xbf16, #tpu.memory_space<vmem>>, vector<1x8x512xbf16>
    %11 = vector.shape_cast %10 : vector<1x8x512xbf16> to vector<8x512xbf16>
    %12 = arith.extf %11 : vector<8x512xbf16> to vector<8x512xf32>
    %13 = arith.addf %8, %12 : vector<8x512xf32>
    %14 = vector.extract_strided_slice %5 {offsets = [0, 0], sizes = [8, 128], strides = [1, 1]} : vector<8x256xf32> to vector<8x128xf32>
    %15 = vector.extract_strided_slice %13 {offsets = [0, 0], sizes = [8, 128], strides = [1, 1]} : vector<8x512xf32> to vector<8x128xf32>
    %16 = arith.negf %15 : vector<8x128xf32>
    %17 = math.exp %16 : vector<8x128xf32>
    %cst_9 = arith.constant 1.000000e+00 : f32
    %18 = vector.broadcast %cst_9 : f32 to vector<8x128xf32>
    %19 = arith.addf %18, %17 : vector<8x128xf32>
    %20 = arith.divf %18, %19 : vector<8x128xf32>
    %21 = vector.extract_strided_slice %13 {offsets = [0, 128], sizes = [8, 128], strides = [1, 1]} : vector<8x512xf32> to vector<8x128xf32>
    %22 = arith.negf %21 : vector<8x128xf32>
    %23 = math.exp %22 : vector<8x128xf32>
    %cst_10 = arith.constant 1.000000e+00 : f32
    %24 = vector.broadcast %cst_10 : f32 to vector<8x128xf32>
    %25 = arith.addf %24, %23 : vector<8x128xf32>
    %26 = arith.divf %24, %25 : vector<8x128xf32>
    %27 = vector.extract_strided_slice %13 {offsets = [0, 256], sizes = [8, 128], strides = [1, 1]} : vector<8x512xf32> to vector<8x128xf32>
    %28 = math.tanh %27 : vector<8x128xf32>
    %29 = vector.extract_strided_slice %13 {offsets = [0, 384], sizes = [8, 128], strides = [1, 1]} : vector<8x512xf32> to vector<8x128xf32>
    %30 = arith.negf %29 : vector<8x128xf32>
    %31 = math.exp %30 : vector<8x128xf32>
    %cst_11 = arith.constant 1.000000e+00 : f32
    %32 = vector.broadcast %cst_11 : f32 to vector<8x128xf32>
    %33 = arith.addf %32, %31 : vector<8x128xf32>
    %34 = arith.divf %32, %33 : vector<8x128xf32>
    %35 = arith.mulf %26, %14 : vector<8x128xf32>
    %36 = arith.mulf %20, %28 : vector<8x128xf32>
    %37 = arith.addf %35, %36 : vector<8x128xf32>
    %38 = math.tanh %37 : vector<8x128xf32>
    %39 = arith.mulf %34, %38 : vector<8x128xf32>
    %40 = arith.truncf %39 : vector<8x128xf32> to vector<8x128xbf16>
    %41 = arith.index_cast %c0_i32_6 : i32 to index
    %c0_12 = arith.constant 0 : index
    %c0_13 = arith.constant 0 : index
    %42 = vector.load %arg4[%41, %c0_12, %c0_13] : memref<8x8x128xbf16, #tpu.memory_space<vmem>>, vector<1x8x128xbf16>
    %43 = vector.shape_cast %42 : vector<1x8x128xbf16> to vector<8x128xbf16>
    %44 = vector.shape_cast %40 : vector<8x128xbf16> to vector<1x8x128xbf16>
    tpu.vector_store %arg4[%41, %c0_12, %c0_13], %44 {strides = array<i32>} : memref<8x8x128xbf16, #tpu.memory_space<vmem>>, vector<1x8x128xbf16>,
    %c7_i32 = arith.constant 7 : i32
    %45 = arith.subi %c7_i32, %c0_i32_6 : i32
    %46 = vector.extract_strided_slice %7 {offsets = [0, 512], sizes = [8, 512], strides = [1, 1]} : vector<8x1024xf32> to vector<8x512xf32>
    %47 = arith.index_cast %45 : i32 to index
    %c0_14 = arith.constant 0 : index
    %c0_15 = arith.constant 0 : index
    %48 = vector.load %arg2[%47, %c0_14, %c0_15] : memref<8x8x512xbf16, #tpu.memory_space<vmem>>, vector<1x8x512xbf16>
    %49 = vector.shape_cast %48 : vector<1x8x512xbf16> to vector<8x512xbf16>
    %50 = arith.extf %49 : vector<8x512xbf16> to vector<8x512xf32>
    %51 = arith.addf %46, %50 : vector<8x512xf32>
    %52 = vector.extract_strided_slice %5 {offsets = [0, 128], sizes = [8, 128], strides = [1, 1]} : vector<8x256xf32> to vector<8x128xf32>
    %53 = vector.extract_strided_slice %51 {offsets = [0, 0], sizes = [8, 128], strides = [1, 1]} : vector<8x512xf32> to vector<8x128xf32>
    %54 = arith.negf %53 : vector<8x128xf32>
    %55 = math.exp %54 : vector<8x128xf32>
    %cst_16 = arith.constant 1.000000e+00 : f32
    %56 = vector.broadcast %cst_16 : f32 to vector<8x128xf32>
    %57 = arith.addf %56, %55 : vector<8x128xf32>
    %58 = arith.divf %56, %57 : vector<8x128xf32>
    %59 = vector.extract_strided_slice %51 {offsets = [0, 128], sizes = [8, 128], strides = [1, 1]} : vector<8x512xf32> to vector<8x128xf32>
    %60 = arith.negf %59 : vector<8x128xf32>
    %61 = math.exp %60 : vector<8x128xf32>
    %cst_17 = arith.constant 1.000000e+00 : f32
    %62 = vector.broadcast %cst_17 : f32 to vector<8x128xf32>
    %63 = arith.addf %62, %61 : vector<8x128xf32>
    %64 = arith.divf %62, %63 : vector<8x128xf32>
    %65 = vector.extract_strided_slice %51 {offsets = [0, 256], sizes = [8, 128], strides = [1, 1]} : vector<8x512xf32> to vector<8x128xf32>
    %66 = math.tanh %65 : vector<8x128xf32>
    %67 = vector.extract_strided_slice %51 {offsets = [0, 384], sizes = [8, 128], strides = [1, 1]} : vector<8x512xf32> to vector<8x128xf32>
    %68 = arith.negf %67 : vector<8x128xf32>
    %69 = math.exp %68 : vector<8x128xf32>
    %cst_18 = arith.constant 1.000000e+00 : f32
    %70 = vector.broadcast %cst_18 : f32 to vector<8x128xf32>
    %71 = arith.addf %70, %69 : vector<8x128xf32>
    %72 = arith.divf %70, %71 : vector<8x128xf32>
    %73 = arith.mulf %64, %52 : vector<8x128xf32>
    %74 = arith.mulf %58, %66 : vector<8x128xf32>
    %75 = arith.addf %73, %74 : vector<8x128xf32>
    %76 = math.tanh %75 : vector<8x128xf32>
    %77 = arith.mulf %72, %76 : vector<8x128xf32>
    %78 = arith.truncf %77 : vector<8x128xf32> to vector<8x128xbf16>
    %79 = arith.index_cast %45 : i32 to index
    %c0_19 = arith.constant 0 : index
    %c0_20 = arith.constant 0 : index
    %80 = vector.load %arg5[%79, %c0_19, %c0_20] : memref<8x8x128xbf16, #tpu.memory_space<vmem>>, vector<1x8x128xbf16>
    %81 = vector.shape_cast %80 : vector<1x8x128xbf16> to vector<8x128xbf16>
    %82 = vector.shape_cast %78 : vector<8x128xbf16> to vector<1x8x128xbf16>
    tpu.vector_store %arg5[%79, %c0_19, %c0_20], %82 {strides = array<i32>} : memref<8x8x128xbf16, #tpu.memory_space<vmem>>, vector<1x8x128xbf16>,
    %83 = tpu.concatenate %39, %77 in 1 : vector<8x128xf32>, vector<8x128xf32> -> vector<8x256xf32>
    %84 = tpu.concatenate %37, %75 in 1 : vector<8x128xf32>, vector<8x128xf32> -> vector<8x256xf32>
    %c1_i32 = arith.constant 1 : i32
    %85 = arith.truncf %83 : vector<8x256xf32> to vector<8x256xbf16>
    %cst_21 = arith.constant dense<0.000000e+00> : vector<8x1024xf32>
    %86 = tpu.matmul %85, %3, %cst_21 {dimension_numbers = #tpu.dot_dimension_numbers<[1], [0], [0], [1], [0, 0, 1, 1], [], []>} : vector<8x256xbf16>, vector<256x1024xbf16>, vector<8x1024xf32> -> vector<8x1024xf32>
    %87 = vector.extract_strided_slice %86 {offsets = [0, 0], sizes = [8, 512], strides = [1, 1]} : vector<8x1024xf32> to vector<8x512xf32>
    %88 = arith.index_cast %c1_i32 : i32 to index
    %c0_22 = arith.constant 0 : index
    %c0_23 = arith.constant 0 : index
    %89 = vector.load %arg1[%88, %c0_22, %c0_23] : memref<8x8x512xbf16, #tpu.memory_space<vmem>>, vector<1x8x512xbf16>
    %90 = vector.shape_cast %89 : vector<1x8x512xbf16> to vector<8x512xbf16>
    %91 = arith.extf %90 : vector<8x512xbf16> to vector<8x512xf32>
    %92 = arith.addf %87, %91 : vector<8x512xf32>
    %93 = vector.extract_strided_slice %84 {offsets = [0, 0], sizes = [8, 128], strides = [1, 1]} : vector<8x256xf32> to vector<8x128xf32>
    %94 = vector.extract_strided_slice %92 {offsets = [0, 0], sizes = [8, 128], strides = [1, 1]} : vector<8x512xf32> to vector<8x128xf32>
    %95 = arith.negf %94 : vector<8x128xf32>
    %96 = math.exp %95 : vector<8x128xf32>
    %cst_24 = arith.constant 1.000000e+00 : f32
    %97 = vector.broadcast %cst_24 : f32 to vector<8x128xf32>
    %98 = arith.addf %97, %96 : vector<8x128xf32>
    %99 = arith.divf %97, %98 : vector<8x128xf32>
    %100 = vector.extract_strided_slice %92 {offsets = [0, 128], sizes = [8, 128], strides = [1, 1]} : vector<8x512xf32> to vector<8x128xf32>
    %101 = arith.negf %100 : vector<8x128xf32>
    %102 = math.exp %101 : vector<8x128xf32>
    %cst_25 = arith.constant 1.000000e+00 : f32
    %103 = vector.broadcast %cst_25 : f32 to vector<8x128xf32>
    %104 = arith.addf %103, %102 : vector<8x128xf32>
    %105 = arith.divf %103, %104 : vector<8x128xf32>
    %106 = vector.extract_strided_slice %92 {offsets = [0, 256], sizes = [8, 128], strides = [1, 1]} : vector<8x512xf32> to vector<8x128xf32>
    %107 = math.tanh %106 : vector<8x128xf32>
    %108 = vector.extract_strided_slice %92 {offsets = [0, 384], sizes = [8, 128], strides = [1, 1]} : vector<8x512xf32> to vector<8x128xf32>
    %109 = arith.negf %108 : vector<8x128xf32>
    %110 = math.exp %109 : vector<8x128xf32>
    %cst_26 = arith.constant 1.000000e+00 : f32
    %111 = vector.broadcast %cst_26 : f32 to vector<8x128xf32>
    %112 = arith.addf %111, %110 : vector<8x128xf32>
    %113 = arith.divf %111, %112 : vector<8x128xf32>
    %114 = arith.mulf %105, %93 : vector<8x128xf32>
    %115 = arith.mulf %99, %107 : vector<8x128xf32>
    %116 = arith.addf %114, %115 : vector<8x128xf32>
    %117 = math.tanh %116 : vector<8x128xf32>
    %118 = arith.mulf %113, %117 : vector<8x128xf32>
    %119 = arith.truncf %118 : vector<8x128xf32> to vector<8x128xbf16>
    %120 = arith.index_cast %c1_i32 : i32 to index
    %c0_27 = arith.constant 0 : index
    %c0_28 = arith.constant 0 : index
    %121 = vector.load %arg4[%120, %c0_27, %c0_28] : memref<8x8x128xbf16, #tpu.memory_space<vmem>>, vector<1x8x128xbf16>
    %122 = vector.shape_cast %121 : vector<1x8x128xbf16> to vector<8x128xbf16>
    %123 = vector.shape_cast %119 : vector<8x128xbf16> to vector<1x8x128xbf16>
    tpu.vector_store %arg4[%120, %c0_27, %c0_28], %123 {strides = array<i32>} : memref<8x8x128xbf16, #tpu.memory_space<vmem>>, vector<1x8x128xbf16>,
    %c7_i32_29 = arith.constant 7 : i32
    %124 = arith.subi %c7_i32_29, %c1_i32 : i32
    %125 = vector.extract_strided_slice %86 {offsets = [0, 512], sizes = [8, 512], strides = [1, 1]} : vector<8x1024xf32> to vector<8x512xf32>
    %126 = arith.index_cast %124 : i32 to index
    %c0_30 = arith.constant 0 : index
    %c0_31 = arith.constant 0 : index
    %127 = vector.load %arg2[%126, %c0_30, %c0_31] : memref<8x8x512xbf16, #tpu.memory_space<vmem>>, vector<1x8x512xbf16>
    %128 = vector.shape_cast %127 : vector<1x8x512xbf16> to vector<8x512xbf16>
    %129 = arith.extf %128 : vector<8x512xbf16> to vector<8x512xf32>
    %130 = arith.addf %125, %129 : vector<8x512xf32>
    %131 = vector.extract_strided_slice %84 {offsets = [0, 128], sizes = [8, 128], strides = [1, 1]} : vector<8x256xf32> to vector<8x128xf32>
    %132 = vector.extract_strided_slice %130 {offsets = [0, 0], sizes = [8, 128], strides = [1, 1]} : vector<8x512xf32> to vector<8x128xf32>
    %133 = arith.negf %132 : vector<8x128xf32>
    %134 = math.exp %133 : vector<8x128xf32>
    %cst_32 = arith.constant 1.000000e+00 : f32
    %135 = vector.broadcast %cst_32 : f32 to vector<8x128xf32>
    %136 = arith.addf %135, %134 : vector<8x128xf32>
    %137 = arith.divf %135, %136 : vector<8x128xf32>
    %138 = vector.extract_strided_slice %130 {offsets = [0, 128], sizes = [8, 128], strides = [1, 1]} : vector<8x512xf32> to vector<8x128xf32>
    %139 = arith.negf %138 : vector<8x128xf32>
    %140 = math.exp %139 : vector<8x128xf32>
    %cst_33 = arith.constant 1.000000e+00 : f32
    %141 = vector.broadcast %cst_33 : f32 to vector<8x128xf32>
    %142 = arith.addf %141, %140 : vector<8x128xf32>
    %143 = arith.divf %141, %142 : vector<8x128xf32>
    %144 = vector.extract_strided_slice %130 {offsets = [0, 256], sizes = [8, 128], strides = [1, 1]} : vector<8x512xf32> to vector<8x128xf32>
    %145 = math.tanh %144 : vector<8x128xf32>
    %146 = vector.extract_strided_slice %130 {offsets = [0, 384], sizes = [8, 128], strides = [1, 1]} : vector<8x512xf32> to vector<8x128xf32>
    %147 = arith.negf %146 : vector<8x128xf32>
    %148 = math.exp %147 : vector<8x128xf32>
    %cst_34 = arith.constant 1.000000e+00 : f32
    %149 = vector.broadcast %cst_34 : f32 to vector<8x128xf32>
    %150 = arith.addf %149, %148 : vector<8x128xf32>
    %151 = arith.divf %149, %150 : vector<8x128xf32>
    %152 = arith.mulf %143, %131 : vector<8x128xf32>
    %153 = arith.mulf %137, %145 : vector<8x128xf32>
    %154 = arith.addf %152, %153 : vector<8x128xf32>
    %155 = math.tanh %154 : vector<8x128xf32>
    %156 = arith.mulf %151, %155 : vector<8x128xf32>
    %157 = arith.truncf %156 : vector<8x128xf32> to vector<8x128xbf16>
    %158 = arith.index_cast %124 : i32 to index
    %c0_35 = arith.constant 0 : index
    %c0_36 = arith.constant 0 : index
    %159 = vector.load %arg5[%158, %c0_35, %c0_36] : memref<8x8x128xbf16, #tpu.memory_space<vmem>>, vector<1x8x128xbf16>
    %160 = vector.shape_cast %159 : vector<1x8x128xbf16> to vector<8x128xbf16>
    %161 = vector.shape_cast %157 : vector<8x128xbf16> to vector<1x8x128xbf16>
    tpu.vector_store %arg5[%158, %c0_35, %c0_36], %161 {strides = array<i32>} : memref<8x8x128xbf16, #tpu.memory_space<vmem>>, vector<1x8x128xbf16>,
    %162 = tpu.concatenate %118, %156 in 1 : vector<8x128xf32>, vector<8x128xf32> -> vector<8x256xf32>
    %163 = tpu.concatenate %116, %154 in 1 : vector<8x128xf32>, vector<8x128xf32> -> vector<8x256xf32>
    %c2_i32 = arith.constant 2 : i32
    %164 = arith.truncf %162 : vector<8x256xf32> to vector<8x256xbf16>
    %cst_37 = arith.constant dense<0.000000e+00> : vector<8x1024xf32>
    %165 = tpu.matmul %164, %3, %cst_37 {dimension_numbers = #tpu.dot_dimension_numbers<[1], [0], [0], [1], [0, 0, 1, 1], [], []>} : vector<8x256xbf16>, vector<256x1024xbf16>, vector<8x1024xf32> -> vector<8x1024xf32>
    %166 = vector.extract_strided_slice %165 {offsets = [0, 0], sizes = [8, 512], strides = [1, 1]} : vector<8x1024xf32> to vector<8x512xf32>
    %167 = arith.index_cast %c2_i32 : i32 to index
    %c0_38 = arith.constant 0 : index
    %c0_39 = arith.constant 0 : index
    %168 = vector.load %arg1[%167, %c0_38, %c0_39] : memref<8x8x512xbf16, #tpu.memory_space<vmem>>, vector<1x8x512xbf16>
    %169 = vector.shape_cast %168 : vector<1x8x512xbf16> to vector<8x512xbf16>
    %170 = arith.extf %169 : vector<8x512xbf16> to vector<8x512xf32>
    %171 = arith.addf %166, %170 : vector<8x512xf32>
    %172 = vector.extract_strided_slice %163 {offsets = [0, 0], sizes = [8, 128], strides = [1, 1]} : vector<8x256xf32> to vector<8x128xf32>
    %173 = vector.extract_strided_slice %171 {offsets = [0, 0], sizes = [8, 128], strides = [1, 1]} : vector<8x512xf32> to vector<8x128xf32>
    %174 = arith.negf %173 : vector<8x128xf32>
    %175 = math.exp %174 : vector<8x128xf32>
    %cst_40 = arith.constant 1.000000e+00 : f32
    %176 = vector.broadcast %cst_40 : f32 to vector<8x128xf32>
    %177 = arith.addf %176, %175 : vector<8x128xf32>
    %178 = arith.divf %176, %177 : vector<8x128xf32>
    %179 = vector.extract_strided_slice %171 {offsets = [0, 128], sizes = [8, 128], strides = [1, 1]} : vector<8x512xf32> to vector<8x128xf32>
    %180 = arith.negf %179 : vector<8x128xf32>
    %181 = math.exp %180 : vector<8x128xf32>
    %cst_41 = arith.constant 1.000000e+00 : f32
    %182 = vector.broadcast %cst_41 : f32 to vector<8x128xf32>
    %183 = arith.addf %182, %181 : vector<8x128xf32>
    %184 = arith.divf %182, %183 : vector<8x128xf32>
    %185 = vector.extract_strided_slice %171 {offsets = [0, 256], sizes = [8, 128], strides = [1, 1]} : vector<8x512xf32> to vector<8x128xf32>
    %186 = math.tanh %185 : vector<8x128xf32>
    %187 = vector.extract_strided_slice %171 {offsets = [0, 384], sizes = [8, 128], strides = [1, 1]} : vector<8x512xf32> to vector<8x128xf32>
    %188 = arith.negf %187 : vector<8x128xf32>
    %189 = math.exp %188 : vector<8x128xf32>
    %cst_42 = arith.constant 1.000000e+00 : f32
    %190 = vector.broadcast %cst_42 : f32 to vector<8x128xf32>
    %191 = arith.addf %190, %189 : vector<8x128xf32>
    %192 = arith.divf %190, %191 : vector<8x128xf32>
    %193 = arith.mulf %184, %172 : vector<8x128xf32>
    %194 = arith.mulf %178, %186 : vector<8x128xf32>
    %195 = arith.addf %193, %194 : vector<8x128xf32>
    %196 = math.tanh %195 : vector<8x128xf32>
    %197 = arith.mulf %192, %196 : vector<8x128xf32>
    %198 = arith.truncf %197 : vector<8x128xf32> to vector<8x128xbf16>
    %199 = arith.index_cast %c2_i32 : i32 to index
    %c0_43 = arith.constant 0 : index
    %c0_44 = arith.constant 0 : index
    %200 = vector.load %arg4[%199, %c0_43, %c0_44] : memref<8x8x128xbf16, #tpu.memory_space<vmem>>, vector<1x8x128xbf16>
    %201 = vector.shape_cast %200 : vector<1x8x128xbf16> to vector<8x128xbf16>
    %202 = vector.shape_cast %198 : vector<8x128xbf16> to vector<1x8x128xbf16>
    tpu.vector_store %arg4[%199, %c0_43, %c0_44], %202 {strides = array<i32>} : memref<8x8x128xbf16, #tpu.memory_space<vmem>>, vector<1x8x128xbf16>,
    %c7_i32_45 = arith.constant 7 : i32
    %203 = arith.subi %c7_i32_45, %c2_i32 : i32
    %204 = vector.extract_strided_slice %165 {offsets = [0, 512], sizes = [8, 512], strides = [1, 1]} : vector<8x1024xf32> to vector<8x512xf32>
    %205 = arith.index_cast %203 : i32 to index
    %c0_46 = arith.constant 0 : index
    %c0_47 = arith.constant 0 : index
    %206 = vector.load %arg2[%205, %c0_46, %c0_47] : memref<8x8x512xbf16, #tpu.memory_space<vmem>>, vector<1x8x512xbf16>
    %207 = vector.shape_cast %206 : vector<1x8x512xbf16> to vector<8x512xbf16>
    %208 = arith.extf %207 : vector<8x512xbf16> to vector<8x512xf32>
    %209 = arith.addf %204, %208 : vector<8x512xf32>
    %210 = vector.extract_strided_slice %163 {offsets = [0, 128], sizes = [8, 128], strides = [1, 1]} : vector<8x256xf32> to vector<8x128xf32>
    %211 = vector.extract_strided_slice %209 {offsets = [0, 0], sizes = [8, 128], strides = [1, 1]} : vector<8x512xf32> to vector<8x128xf32>
    %212 = arith.negf %211 : vector<8x128xf32>
    %213 = math.exp %212 : vector<8x128xf32>
    %cst_48 = arith.constant 1.000000e+00 : f32
    %214 = vector.broadcast %cst_48 : f32 to vector<8x128xf32>
    %215 = arith.addf %214, %213 : vector<8x128xf32>
    %216 = arith.divf %214, %215 : vector<8x128xf32>
    %217 = vector.extract_strided_slice %209 {offsets = [0, 128], sizes = [8, 128], strides = [1, 1]} : vector<8x512xf32> to vector<8x128xf32>
    %218 = arith.negf %217 : vector<8x128xf32>
    %219 = math.exp %218 : vector<8x128xf32>
    %cst_49 = arith.constant 1.000000e+00 : f32
    %220 = vector.broadcast %cst_49 : f32 to vector<8x128xf32>
    %221 = arith.addf %220, %219 : vector<8x128xf32>
    %222 = arith.divf %220, %221 : vector<8x128xf32>
    %223 = vector.extract_strided_slice %209 {offsets = [0, 256], sizes = [8, 128], strides = [1, 1]} : vector<8x512xf32> to vector<8x128xf32>
    %224 = math.tanh %223 : vector<8x128xf32>
    %225 = vector.extract_strided_slice %209 {offsets = [0, 384], sizes = [8, 128], strides = [1, 1]} : vector<8x512xf32> to vector<8x128xf32>
    %226 = arith.negf %225 : vector<8x128xf32>
    %227 = math.exp %226 : vector<8x128xf32>
    %cst_50 = arith.constant 1.000000e+00 : f32
    %228 = vector.broadcast %cst_50 : f32 to vector<8x128xf32>
    %229 = arith.addf %228, %227 : vector<8x128xf32>
    %230 = arith.divf %228, %229 : vector<8x128xf32>
    %231 = arith.mulf %222, %210 : vector<8x128xf32>
    %232 = arith.mulf %216, %224 : vector<8x128xf32>
    %233 = arith.addf %231, %232 : vector<8x128xf32>
    %234 = math.tanh %233 : vector<8x128xf32>
    %235 = arith.mulf %230, %234 : vector<8x128xf32>
    %236 = arith.truncf %235 : vector<8x128xf32> to vector<8x128xbf16>
    %237 = arith.index_cast %203 : i32 to index
    %c0_51 = arith.constant 0 : index
    %c0_52 = arith.constant 0 : index
    %238 = vector.load %arg5[%237, %c0_51, %c0_52] : memref<8x8x128xbf16, #tpu.memory_space<vmem>>, vector<1x8x128xbf16>
    %239 = vector.shape_cast %238 : vector<1x8x128xbf16> to vector<8x128xbf16>
    %240 = vector.shape_cast %236 : vector<8x128xbf16> to vector<1x8x128xbf16>
    tpu.vector_store %arg5[%237, %c0_51, %c0_52], %240 {strides = array<i32>} : memref<8x8x128xbf16, #tpu.memory_space<vmem>>, vector<1x8x128xbf16>,
    %241 = tpu.concatenate %197, %235 in 1 : vector<8x128xf32>, vector<8x128xf32> -> vector<8x256xf32>
    %242 = tpu.concatenate %195, %233 in 1 : vector<8x128xf32>, vector<8x128xf32> -> vector<8x256xf32>
    %c3_i32 = arith.constant 3 : i32
    %243 = arith.truncf %241 : vector<8x256xf32> to vector<8x256xbf16>
    %cst_53 = arith.constant dense<0.000000e+00> : vector<8x1024xf32>
    %244 = tpu.matmul %243, %3, %cst_53 {dimension_numbers = #tpu.dot_dimension_numbers<[1], [0], [0], [1], [0, 0, 1, 1], [], []>} : vector<8x256xbf16>, vector<256x1024xbf16>, vector<8x1024xf32> -> vector<8x1024xf32>
    %245 = vector.extract_strided_slice %244 {offsets = [0, 0], sizes = [8, 512], strides = [1, 1]} : vector<8x1024xf32> to vector<8x512xf32>
    %246 = arith.index_cast %c3_i32 : i32 to index
    %c0_54 = arith.constant 0 : index
    %c0_55 = arith.constant 0 : index
    %247 = vector.load %arg1[%246, %c0_54, %c0_55] : memref<8x8x512xbf16, #tpu.memory_space<vmem>>, vector<1x8x512xbf16>
    %248 = vector.shape_cast %247 : vector<1x8x512xbf16> to vector<8x512xbf16>
    %249 = arith.extf %248 : vector<8x512xbf16> to vector<8x512xf32>
    %250 = arith.addf %245, %249 : vector<8x512xf32>
    %251 = vector.extract_strided_slice %242 {offsets = [0, 0], sizes = [8, 128], strides = [1, 1]} : vector<8x256xf32> to vector<8x128xf32>
    %252 = vector.extract_strided_slice %250 {offsets = [0, 0], sizes = [8, 128], strides = [1, 1]} : vector<8x512xf32> to vector<8x128xf32>
    %253 = arith.negf %252 : vector<8x128xf32>
    %254 = math.exp %253 : vector<8x128xf32>
    %cst_56 = arith.constant 1.000000e+00 : f32
    %255 = vector.broadcast %cst_56 : f32 to vector<8x128xf32>
    %256 = arith.addf %255, %254 : vector<8x128xf32>
    %257 = arith.divf %255, %256 : vector<8x128xf32>
    %258 = vector.extract_strided_slice %250 {offsets = [0, 128], sizes = [8, 128], strides = [1, 1]} : vector<8x512xf32> to vector<8x128xf32>
    %259 = arith.negf %258 : vector<8x128xf32>
    %260 = math.exp %259 : vector<8x128xf32>
    %cst_57 = arith.constant 1.000000e+00 : f32
    %261 = vector.broadcast %cst_57 : f32 to vector<8x128xf32>
    %262 = arith.addf %261, %260 : vector<8x128xf32>
    %263 = arith.divf %261, %262 : vector<8x128xf32>
    %264 = vector.extract_strided_slice %250 {offsets = [0, 256], sizes = [8, 128], strides = [1, 1]} : vector<8x512xf32> to vector<8x128xf32>
    %265 = math.tanh %264 : vector<8x128xf32>
    %266 = vector.extract_strided_slice %250 {offsets = [0, 384], sizes = [8, 128], strides = [1, 1]} : vector<8x512xf32> to vector<8x128xf32>
    %267 = arith.negf %266 : vector<8x128xf32>
    %268 = math.exp %267 : vector<8x128xf32>
    %cst_58 = arith.constant 1.000000e+00 : f32
    %269 = vector.broadcast %cst_58 : f32 to vector<8x128xf32>
    %270 = arith.addf %269, %268 : vector<8x128xf32>
    %271 = arith.divf %269, %270 : vector<8x128xf32>
    %272 = arith.mulf %263, %251 : vector<8x128xf32>
    %273 = arith.mulf %257, %265 : vector<8x128xf32>
    %274 = arith.addf %272, %273 : vector<8x128xf32>
    %275 = math.tanh %274 : vector<8x128xf32>
    %276 = arith.mulf %271, %275 : vector<8x128xf32>
    %277 = arith.truncf %276 : vector<8x128xf32> to vector<8x128xbf16>
    %278 = arith.index_cast %c3_i32 : i32 to index
    %c0_59 = arith.constant 0 : index
    %c0_60 = arith.constant 0 : index
    %279 = vector.load %arg4[%278, %c0_59, %c0_60] : memref<8x8x128xbf16, #tpu.memory_space<vmem>>, vector<1x8x128xbf16>
    %280 = vector.shape_cast %279 : vector<1x8x128xbf16> to vector<8x128xbf16>
    %281 = vector.shape_cast %277 : vector<8x128xbf16> to vector<1x8x128xbf16>
    tpu.vector_store %arg4[%278, %c0_59, %c0_60], %281 {strides = array<i32>} : memref<8x8x128xbf16, #tpu.memory_space<vmem>>, vector<1x8x128xbf16>,
    %c7_i32_61 = arith.constant 7 : i32
    %282 = arith.subi %c7_i32_61, %c3_i32 : i32
    %283 = vector.extract_strided_slice %244 {offsets = [0, 512], sizes = [8, 512], strides = [1, 1]} : vector<8x1024xf32> to vector<8x512xf32>
    %284 = arith.index_cast %282 : i32 to index
    %c0_62 = arith.constant 0 : index
    %c0_63 = arith.constant 0 : index
    %285 = vector.load %arg2[%284, %c0_62, %c0_63] : memref<8x8x512xbf16, #tpu.memory_space<vmem>>, vector<1x8x512xbf16>
    %286 = vector.shape_cast %285 : vector<1x8x512xbf16> to vector<8x512xbf16>
    %287 = arith.extf %286 : vector<8x512xbf16> to vector<8x512xf32>
    %288 = arith.addf %283, %287 : vector<8x512xf32>
    %289 = vector.extract_strided_slice %242 {offsets = [0, 128], sizes = [8, 128], strides = [1, 1]} : vector<8x256xf32> to vector<8x128xf32>
    %290 = vector.extract_strided_slice %288 {offsets = [0, 0], sizes = [8, 128], strides = [1, 1]} : vector<8x512xf32> to vector<8x128xf32>
    %291 = arith.negf %290 : vector<8x128xf32>
    %292 = math.exp %291 : vector<8x128xf32>
    %cst_64 = arith.constant 1.000000e+00 : f32
    %293 = vector.broadcast %cst_64 : f32 to vector<8x128xf32>
    %294 = arith.addf %293, %292 : vector<8x128xf32>
    %295 = arith.divf %293, %294 : vector<8x128xf32>
    %296 = vector.extract_strided_slice %288 {offsets = [0, 128], sizes = [8, 128], strides = [1, 1]} : vector<8x512xf32> to vector<8x128xf32>
    %297 = arith.negf %296 : vector<8x128xf32>
    %298 = math.exp %297 : vector<8x128xf32>
    %cst_65 = arith.constant 1.000000e+00 : f32
    %299 = vector.broadcast %cst_65 : f32 to vector<8x128xf32>
    %300 = arith.addf %299, %298 : vector<8x128xf32>
    %301 = arith.divf %299, %300 : vector<8x128xf32>
    %302 = vector.extract_strided_slice %288 {offsets = [0, 256], sizes = [8, 128], strides = [1, 1]} : vector<8x512xf32> to vector<8x128xf32>
    %303 = math.tanh %302 : vector<8x128xf32>
    %304 = vector.extract_strided_slice %288 {offsets = [0, 384], sizes = [8, 128], strides = [1, 1]} : vector<8x512xf32> to vector<8x128xf32>
    %305 = arith.negf %304 : vector<8x128xf32>
    %306 = math.exp %305 : vector<8x128xf32>
    %cst_66 = arith.constant 1.000000e+00 : f32
    %307 = vector.broadcast %cst_66 : f32 to vector<8x128xf32>
    %308 = arith.addf %307, %306 : vector<8x128xf32>
    %309 = arith.divf %307, %308 : vector<8x128xf32>
    %310 = arith.mulf %301, %289 : vector<8x128xf32>
    %311 = arith.mulf %295, %303 : vector<8x128xf32>
    %312 = arith.addf %310, %311 : vector<8x128xf32>
    %313 = math.tanh %312 : vector<8x128xf32>
    %314 = arith.mulf %309, %313 : vector<8x128xf32>
    %315 = arith.truncf %314 : vector<8x128xf32> to vector<8x128xbf16>
    %316 = arith.index_cast %282 : i32 to index
    %c0_67 = arith.constant 0 : index
    %c0_68 = arith.constant 0 : index
    %317 = vector.load %arg5[%316, %c0_67, %c0_68] : memref<8x8x128xbf16, #tpu.memory_space<vmem>>, vector<1x8x128xbf16>
    %318 = vector.shape_cast %317 : vector<1x8x128xbf16> to vector<8x128xbf16>
    %319 = vector.shape_cast %315 : vector<8x128xbf16> to vector<1x8x128xbf16>
    tpu.vector_store %arg5[%316, %c0_67, %c0_68], %319 {strides = array<i32>} : memref<8x8x128xbf16, #tpu.memory_space<vmem>>, vector<1x8x128xbf16>,
    %320 = tpu.concatenate %276, %314 in 1 : vector<8x128xf32>, vector<8x128xf32> -> vector<8x256xf32>
    %321 = tpu.concatenate %274, %312 in 1 : vector<8x128xf32>, vector<8x128xf32> -> vector<8x256xf32>
    %c4_i32 = arith.constant 4 : i32
    %322 = arith.truncf %320 : vector<8x256xf32> to vector<8x256xbf16>
    %cst_69 = arith.constant dense<0.000000e+00> : vector<8x1024xf32>
    %323 = tpu.matmul %322, %3, %cst_69 {dimension_numbers = #tpu.dot_dimension_numbers<[1], [0], [0], [1], [0, 0, 1, 1], [], []>} : vector<8x256xbf16>, vector<256x1024xbf16>, vector<8x1024xf32> -> vector<8x1024xf32>
    %324 = vector.extract_strided_slice %323 {offsets = [0, 0], sizes = [8, 512], strides = [1, 1]} : vector<8x1024xf32> to vector<8x512xf32>
    %325 = arith.index_cast %c4_i32 : i32 to index
    %c0_70 = arith.constant 0 : index
    %c0_71 = arith.constant 0 : index
    %326 = vector.load %arg1[%325, %c0_70, %c0_71] : memref<8x8x512xbf16, #tpu.memory_space<vmem>>, vector<1x8x512xbf16>
    %327 = vector.shape_cast %326 : vector<1x8x512xbf16> to vector<8x512xbf16>
    %328 = arith.extf %327 : vector<8x512xbf16> to vector<8x512xf32>
    %329 = arith.addf %324, %328 : vector<8x512xf32>
    %330 = vector.extract_strided_slice %321 {offsets = [0, 0], sizes = [8, 128], strides = [1, 1]} : vector<8x256xf32> to vector<8x128xf32>
    %331 = vector.extract_strided_slice %329 {offsets = [0, 0], sizes = [8, 128], strides = [1, 1]} : vector<8x512xf32> to vector<8x128xf32>
    %332 = arith.negf %331 : vector<8x128xf32>
    %333 = math.exp %332 : vector<8x128xf32>
    %cst_72 = arith.constant 1.000000e+00 : f32
    %334 = vector.broadcast %cst_72 : f32 to vector<8x128xf32>
    %335 = arith.addf %334, %333 : vector<8x128xf32>
    %336 = arith.divf %334, %335 : vector<8x128xf32>
    %337 = vector.extract_strided_slice %329 {offsets = [0, 128], sizes = [8, 128], strides = [1, 1]} : vector<8x512xf32> to vector<8x128xf32>
    %338 = arith.negf %337 : vector<8x128xf32>
    %339 = math.exp %338 : vector<8x128xf32>
    %cst_73 = arith.constant 1.000000e+00 : f32
    %340 = vector.broadcast %cst_73 : f32 to vector<8x128xf32>
    %341 = arith.addf %340, %339 : vector<8x128xf32>
    %342 = arith.divf %340, %341 : vector<8x128xf32>
    %343 = vector.extract_strided_slice %329 {offsets = [0, 256], sizes = [8, 128], strides = [1, 1]} : vector<8x512xf32> to vector<8x128xf32>
    %344 = math.tanh %343 : vector<8x128xf32>
    %345 = vector.extract_strided_slice %329 {offsets = [0, 384], sizes = [8, 128], strides = [1, 1]} : vector<8x512xf32> to vector<8x128xf32>
    %346 = arith.negf %345 : vector<8x128xf32>
    %347 = math.exp %346 : vector<8x128xf32>
    %cst_74 = arith.constant 1.000000e+00 : f32
    %348 = vector.broadcast %cst_74 : f32 to vector<8x128xf32>
    %349 = arith.addf %348, %347 : vector<8x128xf32>
    %350 = arith.divf %348, %349 : vector<8x128xf32>
    %351 = arith.mulf %342, %330 : vector<8x128xf32>
    %352 = arith.mulf %336, %344 : vector<8x128xf32>
    %353 = arith.addf %351, %352 : vector<8x128xf32>
    %354 = math.tanh %353 : vector<8x128xf32>
    %355 = arith.mulf %350, %354 : vector<8x128xf32>
    %356 = arith.truncf %355 : vector<8x128xf32> to vector<8x128xbf16>
    %357 = arith.index_cast %c4_i32 : i32 to index
    %c0_75 = arith.constant 0 : index
    %c0_76 = arith.constant 0 : index
    %358 = vector.load %arg4[%357, %c0_75, %c0_76] : memref<8x8x128xbf16, #tpu.memory_space<vmem>>, vector<1x8x128xbf16>
    %359 = vector.shape_cast %358 : vector<1x8x128xbf16> to vector<8x128xbf16>
    %360 = vector.shape_cast %356 : vector<8x128xbf16> to vector<1x8x128xbf16>
    tpu.vector_store %arg4[%357, %c0_75, %c0_76], %360 {strides = array<i32>} : memref<8x8x128xbf16, #tpu.memory_space<vmem>>, vector<1x8x128xbf16>,
    %c7_i32_77 = arith.constant 7 : i32
    %361 = arith.subi %c7_i32_77, %c4_i32 : i32
    %362 = vector.extract_strided_slice %323 {offsets = [0, 512], sizes = [8, 512], strides = [1, 1]} : vector<8x1024xf32> to vector<8x512xf32>
    %363 = arith.index_cast %361 : i32 to index
    %c0_78 = arith.constant 0 : index
    %c0_79 = arith.constant 0 : index
    %364 = vector.load %arg2[%363, %c0_78, %c0_79] : memref<8x8x512xbf16, #tpu.memory_space<vmem>>, vector<1x8x512xbf16>
    %365 = vector.shape_cast %364 : vector<1x8x512xbf16> to vector<8x512xbf16>
    %366 = arith.extf %365 : vector<8x512xbf16> to vector<8x512xf32>
    %367 = arith.addf %362, %366 : vector<8x512xf32>
    %368 = vector.extract_strided_slice %321 {offsets = [0, 128], sizes = [8, 128], strides = [1, 1]} : vector<8x256xf32> to vector<8x128xf32>
    %369 = vector.extract_strided_slice %367 {offsets = [0, 0], sizes = [8, 128], strides = [1, 1]} : vector<8x512xf32> to vector<8x128xf32>
    %370 = arith.negf %369 : vector<8x128xf32>
    %371 = math.exp %370 : vector<8x128xf32>
    %cst_80 = arith.constant 1.000000e+00 : f32
    %372 = vector.broadcast %cst_80 : f32 to vector<8x128xf32>
    %373 = arith.addf %372, %371 : vector<8x128xf32>
    %374 = arith.divf %372, %373 : vector<8x128xf32>
    %375 = vector.extract_strided_slice %367 {offsets = [0, 128], sizes = [8, 128], strides = [1, 1]} : vector<8x512xf32> to vector<8x128xf32>
    %376 = arith.negf %375 : vector<8x128xf32>
    %377 = math.exp %376 : vector<8x128xf32>
    %cst_81 = arith.constant 1.000000e+00 : f32
    %378 = vector.broadcast %cst_81 : f32 to vector<8x128xf32>
    %379 = arith.addf %378, %377 : vector<8x128xf32>
    %380 = arith.divf %378, %379 : vector<8x128xf32>
    %381 = vector.extract_strided_slice %367 {offsets = [0, 256], sizes = [8, 128], strides = [1, 1]} : vector<8x512xf32> to vector<8x128xf32>
    %382 = math.tanh %381 : vector<8x128xf32>
    %383 = vector.extract_strided_slice %367 {offsets = [0, 384], sizes = [8, 128], strides = [1, 1]} : vector<8x512xf32> to vector<8x128xf32>
    %384 = arith.negf %383 : vector<8x128xf32>
    %385 = math.exp %384 : vector<8x128xf32>
    %cst_82 = arith.constant 1.000000e+00 : f32
    %386 = vector.broadcast %cst_82 : f32 to vector<8x128xf32>
    %387 = arith.addf %386, %385 : vector<8x128xf32>
    %388 = arith.divf %386, %387 : vector<8x128xf32>
    %389 = arith.mulf %380, %368 : vector<8x128xf32>
    %390 = arith.mulf %374, %382 : vector<8x128xf32>
    %391 = arith.addf %389, %390 : vector<8x128xf32>
    %392 = math.tanh %391 : vector<8x128xf32>
    %393 = arith.mulf %388, %392 : vector<8x128xf32>
    %394 = arith.truncf %393 : vector<8x128xf32> to vector<8x128xbf16>
    %395 = arith.index_cast %361 : i32 to index
    %c0_83 = arith.constant 0 : index
    %c0_84 = arith.constant 0 : index
    %396 = vector.load %arg5[%395, %c0_83, %c0_84] : memref<8x8x128xbf16, #tpu.memory_space<vmem>>, vector<1x8x128xbf16>
    %397 = vector.shape_cast %396 : vector<1x8x128xbf16> to vector<8x128xbf16>
    %398 = vector.shape_cast %394 : vector<8x128xbf16> to vector<1x8x128xbf16>
    tpu.vector_store %arg5[%395, %c0_83, %c0_84], %398 {strides = array<i32>} : memref<8x8x128xbf16, #tpu.memory_space<vmem>>, vector<1x8x128xbf16>,
    %399 = tpu.concatenate %355, %393 in 1 : vector<8x128xf32>, vector<8x128xf32> -> vector<8x256xf32>
    %400 = tpu.concatenate %353, %391 in 1 : vector<8x128xf32>, vector<8x128xf32> -> vector<8x256xf32>
    %c5_i32 = arith.constant 5 : i32
    %401 = arith.truncf %399 : vector<8x256xf32> to vector<8x256xbf16>
    %cst_85 = arith.constant dense<0.000000e+00> : vector<8x1024xf32>
    %402 = tpu.matmul %401, %3, %cst_85 {dimension_numbers = #tpu.dot_dimension_numbers<[1], [0], [0], [1], [0, 0, 1, 1], [], []>} : vector<8x256xbf16>, vector<256x1024xbf16>, vector<8x1024xf32> -> vector<8x1024xf32>
    %403 = vector.extract_strided_slice %402 {offsets = [0, 0], sizes = [8, 512], strides = [1, 1]} : vector<8x1024xf32> to vector<8x512xf32>
    %404 = arith.index_cast %c5_i32 : i32 to index
    %c0_86 = arith.constant 0 : index
    %c0_87 = arith.constant 0 : index
    %405 = vector.load %arg1[%404, %c0_86, %c0_87] : memref<8x8x512xbf16, #tpu.memory_space<vmem>>, vector<1x8x512xbf16>
    %406 = vector.shape_cast %405 : vector<1x8x512xbf16> to vector<8x512xbf16>
    %407 = arith.extf %406 : vector<8x512xbf16> to vector<8x512xf32>
    %408 = arith.addf %403, %407 : vector<8x512xf32>
    %409 = vector.extract_strided_slice %400 {offsets = [0, 0], sizes = [8, 128], strides = [1, 1]} : vector<8x256xf32> to vector<8x128xf32>
    %410 = vector.extract_strided_slice %408 {offsets = [0, 0], sizes = [8, 128], strides = [1, 1]} : vector<8x512xf32> to vector<8x128xf32>
    %411 = arith.negf %410 : vector<8x128xf32>
    %412 = math.exp %411 : vector<8x128xf32>
    %cst_88 = arith.constant 1.000000e+00 : f32
    %413 = vector.broadcast %cst_88 : f32 to vector<8x128xf32>
    %414 = arith.addf %413, %412 : vector<8x128xf32>
    %415 = arith.divf %413, %414 : vector<8x128xf32>
    %416 = vector.extract_strided_slice %408 {offsets = [0, 128], sizes = [8, 128], strides = [1, 1]} : vector<8x512xf32> to vector<8x128xf32>
    %417 = arith.negf %416 : vector<8x128xf32>
    %418 = math.exp %417 : vector<8x128xf32>
    %cst_89 = arith.constant 1.000000e+00 : f32
    %419 = vector.broadcast %cst_89 : f32 to vector<8x128xf32>
    %420 = arith.addf %419, %418 : vector<8x128xf32>
    %421 = arith.divf %419, %420 : vector<8x128xf32>
    %422 = vector.extract_strided_slice %408 {offsets = [0, 256], sizes = [8, 128], strides = [1, 1]} : vector<8x512xf32> to vector<8x128xf32>
    %423 = math.tanh %422 : vector<8x128xf32>
    %424 = vector.extract_strided_slice %408 {offsets = [0, 384], sizes = [8, 128], strides = [1, 1]} : vector<8x512xf32> to vector<8x128xf32>
    %425 = arith.negf %424 : vector<8x128xf32>
    %426 = math.exp %425 : vector<8x128xf32>
    %cst_90 = arith.constant 1.000000e+00 : f32
    %427 = vector.broadcast %cst_90 : f32 to vector<8x128xf32>
    %428 = arith.addf %427, %426 : vector<8x128xf32>
    %429 = arith.divf %427, %428 : vector<8x128xf32>
    %430 = arith.mulf %421, %409 : vector<8x128xf32>
    %431 = arith.mulf %415, %423 : vector<8x128xf32>
    %432 = arith.addf %430, %431 : vector<8x128xf32>
    %433 = math.tanh %432 : vector<8x128xf32>
    %434 = arith.mulf %429, %433 : vector<8x128xf32>
    %435 = arith.truncf %434 : vector<8x128xf32> to vector<8x128xbf16>
    %436 = arith.index_cast %c5_i32 : i32 to index
    %c0_91 = arith.constant 0 : index
    %c0_92 = arith.constant 0 : index
    %437 = vector.load %arg4[%436, %c0_91, %c0_92] : memref<8x8x128xbf16, #tpu.memory_space<vmem>>, vector<1x8x128xbf16>
    %438 = vector.shape_cast %437 : vector<1x8x128xbf16> to vector<8x128xbf16>
    %439 = vector.shape_cast %435 : vector<8x128xbf16> to vector<1x8x128xbf16>
    tpu.vector_store %arg4[%436, %c0_91, %c0_92], %439 {strides = array<i32>} : memref<8x8x128xbf16, #tpu.memory_space<vmem>>, vector<1x8x128xbf16>,
    %c7_i32_93 = arith.constant 7 : i32
    %440 = arith.subi %c7_i32_93, %c5_i32 : i32
    %441 = vector.extract_strided_slice %402 {offsets = [0, 512], sizes = [8, 512], strides = [1, 1]} : vector<8x1024xf32> to vector<8x512xf32>
    %442 = arith.index_cast %440 : i32 to index
    %c0_94 = arith.constant 0 : index
    %c0_95 = arith.constant 0 : index
    %443 = vector.load %arg2[%442, %c0_94, %c0_95] : memref<8x8x512xbf16, #tpu.memory_space<vmem>>, vector<1x8x512xbf16>
    %444 = vector.shape_cast %443 : vector<1x8x512xbf16> to vector<8x512xbf16>
    %445 = arith.extf %444 : vector<8x512xbf16> to vector<8x512xf32>
    %446 = arith.addf %441, %445 : vector<8x512xf32>
    %447 = vector.extract_strided_slice %400 {offsets = [0, 128], sizes = [8, 128], strides = [1, 1]} : vector<8x256xf32> to vector<8x128xf32>
    %448 = vector.extract_strided_slice %446 {offsets = [0, 0], sizes = [8, 128], strides = [1, 1]} : vector<8x512xf32> to vector<8x128xf32>
    %449 = arith.negf %448 : vector<8x128xf32>
    %450 = math.exp %449 : vector<8x128xf32>
    %cst_96 = arith.constant 1.000000e+00 : f32
    %451 = vector.broadcast %cst_96 : f32 to vector<8x128xf32>
    %452 = arith.addf %451, %450 : vector<8x128xf32>
    %453 = arith.divf %451, %452 : vector<8x128xf32>
    %454 = vector.extract_strided_slice %446 {offsets = [0, 128], sizes = [8, 128], strides = [1, 1]} : vector<8x512xf32> to vector<8x128xf32>
    %455 = arith.negf %454 : vector<8x128xf32>
    %456 = math.exp %455 : vector<8x128xf32>
    %cst_97 = arith.constant 1.000000e+00 : f32
    %457 = vector.broadcast %cst_97 : f32 to vector<8x128xf32>
    %458 = arith.addf %457, %456 : vector<8x128xf32>
    %459 = arith.divf %457, %458 : vector<8x128xf32>
    %460 = vector.extract_strided_slice %446 {offsets = [0, 256], sizes = [8, 128], strides = [1, 1]} : vector<8x512xf32> to vector<8x128xf32>
    %461 = math.tanh %460 : vector<8x128xf32>
    %462 = vector.extract_strided_slice %446 {offsets = [0, 384], sizes = [8, 128], strides = [1, 1]} : vector<8x512xf32> to vector<8x128xf32>
    %463 = arith.negf %462 : vector<8x128xf32>
    %464 = math.exp %463 : vector<8x128xf32>
    %cst_98 = arith.constant 1.000000e+00 : f32
    %465 = vector.broadcast %cst_98 : f32 to vector<8x128xf32>
    %466 = arith.addf %465, %464 : vector<8x128xf32>
    %467 = arith.divf %465, %466 : vector<8x128xf32>
    %468 = arith.mulf %459, %447 : vector<8x128xf32>
    %469 = arith.mulf %453, %461 : vector<8x128xf32>
    %470 = arith.addf %468, %469 : vector<8x128xf32>
    %471 = math.tanh %470 : vector<8x128xf32>
    %472 = arith.mulf %467, %471 : vector<8x128xf32>
    %473 = arith.truncf %472 : vector<8x128xf32> to vector<8x128xbf16>
    %474 = arith.index_cast %440 : i32 to index
    %c0_99 = arith.constant 0 : index
    %c0_100 = arith.constant 0 : index
    %475 = vector.load %arg5[%474, %c0_99, %c0_100] : memref<8x8x128xbf16, #tpu.memory_space<vmem>>, vector<1x8x128xbf16>
    %476 = vector.shape_cast %475 : vector<1x8x128xbf16> to vector<8x128xbf16>
    %477 = vector.shape_cast %473 : vector<8x128xbf16> to vector<1x8x128xbf16>
    tpu.vector_store %arg5[%474, %c0_99, %c0_100], %477 {strides = array<i32>} : memref<8x8x128xbf16, #tpu.memory_space<vmem>>, vector<1x8x128xbf16>,
    %478 = tpu.concatenate %434, %472 in 1 : vector<8x128xf32>, vector<8x128xf32> -> vector<8x256xf32>
    %479 = tpu.concatenate %432, %470 in 1 : vector<8x128xf32>, vector<8x128xf32> -> vector<8x256xf32>
    %c6_i32 = arith.constant 6 : i32
    %480 = arith.truncf %478 : vector<8x256xf32> to vector<8x256xbf16>
    %cst_101 = arith.constant dense<0.000000e+00> : vector<8x1024xf32>
    %481 = tpu.matmul %480, %3, %cst_101 {dimension_numbers = #tpu.dot_dimension_numbers<[1], [0], [0], [1], [0, 0, 1, 1], [], []>} : vector<8x256xbf16>, vector<256x1024xbf16>, vector<8x1024xf32> -> vector<8x1024xf32>
    %482 = vector.extract_strided_slice %481 {offsets = [0, 0], sizes = [8, 512], strides = [1, 1]} : vector<8x1024xf32> to vector<8x512xf32>
    %483 = arith.index_cast %c6_i32 : i32 to index
    %c0_102 = arith.constant 0 : index
    %c0_103 = arith.constant 0 : index
    %484 = vector.load %arg1[%483, %c0_102, %c0_103] : memref<8x8x512xbf16, #tpu.memory_space<vmem>>, vector<1x8x512xbf16>
    %485 = vector.shape_cast %484 : vector<1x8x512xbf16> to vector<8x512xbf16>
    %486 = arith.extf %485 : vector<8x512xbf16> to vector<8x512xf32>
    %487 = arith.addf %482, %486 : vector<8x512xf32>
    %488 = vector.extract_strided_slice %479 {offsets = [0, 0], sizes = [8, 128], strides = [1, 1]} : vector<8x256xf32> to vector<8x128xf32>
    %489 = vector.extract_strided_slice %487 {offsets = [0, 0], sizes = [8, 128], strides = [1, 1]} : vector<8x512xf32> to vector<8x128xf32>
    %490 = arith.negf %489 : vector<8x128xf32>
    %491 = math.exp %490 : vector<8x128xf32>
    %cst_104 = arith.constant 1.000000e+00 : f32
    %492 = vector.broadcast %cst_104 : f32 to vector<8x128xf32>
    %493 = arith.addf %492, %491 : vector<8x128xf32>
    %494 = arith.divf %492, %493 : vector<8x128xf32>
    %495 = vector.extract_strided_slice %487 {offsets = [0, 128], sizes = [8, 128], strides = [1, 1]} : vector<8x512xf32> to vector<8x128xf32>
    %496 = arith.negf %495 : vector<8x128xf32>
    %497 = math.exp %496 : vector<8x128xf32>
    %cst_105 = arith.constant 1.000000e+00 : f32
    %498 = vector.broadcast %cst_105 : f32 to vector<8x128xf32>
    %499 = arith.addf %498, %497 : vector<8x128xf32>
    %500 = arith.divf %498, %499 : vector<8x128xf32>
    %501 = vector.extract_strided_slice %487 {offsets = [0, 256], sizes = [8, 128], strides = [1, 1]} : vector<8x512xf32> to vector<8x128xf32>
    %502 = math.tanh %501 : vector<8x128xf32>
    %503 = vector.extract_strided_slice %487 {offsets = [0, 384], sizes = [8, 128], strides = [1, 1]} : vector<8x512xf32> to vector<8x128xf32>
    %504 = arith.negf %503 : vector<8x128xf32>
    %505 = math.exp %504 : vector<8x128xf32>
    %cst_106 = arith.constant 1.000000e+00 : f32
    %506 = vector.broadcast %cst_106 : f32 to vector<8x128xf32>
    %507 = arith.addf %506, %505 : vector<8x128xf32>
    %508 = arith.divf %506, %507 : vector<8x128xf32>
    %509 = arith.mulf %500, %488 : vector<8x128xf32>
    %510 = arith.mulf %494, %502 : vector<8x128xf32>
    %511 = arith.addf %509, %510 : vector<8x128xf32>
    %512 = math.tanh %511 : vector<8x128xf32>
    %513 = arith.mulf %508, %512 : vector<8x128xf32>
    %514 = arith.truncf %513 : vector<8x128xf32> to vector<8x128xbf16>
    %515 = arith.index_cast %c6_i32 : i32 to index
    %c0_107 = arith.constant 0 : index
    %c0_108 = arith.constant 0 : index
    %516 = vector.load %arg4[%515, %c0_107, %c0_108] : memref<8x8x128xbf16, #tpu.memory_space<vmem>>, vector<1x8x128xbf16>
    %517 = vector.shape_cast %516 : vector<1x8x128xbf16> to vector<8x128xbf16>
    %518 = vector.shape_cast %514 : vector<8x128xbf16> to vector<1x8x128xbf16>
    tpu.vector_store %arg4[%515, %c0_107, %c0_108], %518 {strides = array<i32>} : memref<8x8x128xbf16, #tpu.memory_space<vmem>>, vector<1x8x128xbf16>,
    %c7_i32_109 = arith.constant 7 : i32
    %519 = arith.subi %c7_i32_109, %c6_i32 : i32
    %520 = vector.extract_strided_slice %481 {offsets = [0, 512], sizes = [8, 512], strides = [1, 1]} : vector<8x1024xf32> to vector<8x512xf32>
    %521 = arith.index_cast %519 : i32 to index
    %c0_110 = arith.constant 0 : index
    %c0_111 = arith.constant 0 : index
    %522 = vector.load %arg2[%521, %c0_110, %c0_111] : memref<8x8x512xbf16, #tpu.memory_space<vmem>>, vector<1x8x512xbf16>
    %523 = vector.shape_cast %522 : vector<1x8x512xbf16> to vector<8x512xbf16>
    %524 = arith.extf %523 : vector<8x512xbf16> to vector<8x512xf32>
    %525 = arith.addf %520, %524 : vector<8x512xf32>
    %526 = vector.extract_strided_slice %479 {offsets = [0, 128], sizes = [8, 128], strides = [1, 1]} : vector<8x256xf32> to vector<8x128xf32>
    %527 = vector.extract_strided_slice %525 {offsets = [0, 0], sizes = [8, 128], strides = [1, 1]} : vector<8x512xf32> to vector<8x128xf32>
    %528 = arith.negf %527 : vector<8x128xf32>
    %529 = math.exp %528 : vector<8x128xf32>
    %cst_112 = arith.constant 1.000000e+00 : f32
    %530 = vector.broadcast %cst_112 : f32 to vector<8x128xf32>
    %531 = arith.addf %530, %529 : vector<8x128xf32>
    %532 = arith.divf %530, %531 : vector<8x128xf32>
    %533 = vector.extract_strided_slice %525 {offsets = [0, 128], sizes = [8, 128], strides = [1, 1]} : vector<8x512xf32> to vector<8x128xf32>
    %534 = arith.negf %533 : vector<8x128xf32>
    %535 = math.exp %534 : vector<8x128xf32>
    %cst_113 = arith.constant 1.000000e+00 : f32
    %536 = vector.broadcast %cst_113 : f32 to vector<8x128xf32>
    %537 = arith.addf %536, %535 : vector<8x128xf32>
    %538 = arith.divf %536, %537 : vector<8x128xf32>
    %539 = vector.extract_strided_slice %525 {offsets = [0, 256], sizes = [8, 128], strides = [1, 1]} : vector<8x512xf32> to vector<8x128xf32>
    %540 = math.tanh %539 : vector<8x128xf32>
    %541 = vector.extract_strided_slice %525 {offsets = [0, 384], sizes = [8, 128], strides = [1, 1]} : vector<8x512xf32> to vector<8x128xf32>
    %542 = arith.negf %541 : vector<8x128xf32>
    %543 = math.exp %542 : vector<8x128xf32>
    %cst_114 = arith.constant 1.000000e+00 : f32
    %544 = vector.broadcast %cst_114 : f32 to vector<8x128xf32>
    %545 = arith.addf %544, %543 : vector<8x128xf32>
    %546 = arith.divf %544, %545 : vector<8x128xf32>
    %547 = arith.mulf %538, %526 : vector<8x128xf32>
    %548 = arith.mulf %532, %540 : vector<8x128xf32>
    %549 = arith.addf %547, %548 : vector<8x128xf32>
    %550 = math.tanh %549 : vector<8x128xf32>
    %551 = arith.mulf %546, %550 : vector<8x128xf32>
    %552 = arith.truncf %551 : vector<8x128xf32> to vector<8x128xbf16>
    %553 = arith.index_cast %519 : i32 to index
    %c0_115 = arith.constant 0 : index
    %c0_116 = arith.constant 0 : index
    %554 = vector.load %arg5[%553, %c0_115, %c0_116] : memref<8x8x128xbf16, #tpu.memory_space<vmem>>, vector<1x8x128xbf16>
    %555 = vector.shape_cast %554 : vector<1x8x128xbf16> to vector<8x128xbf16>
    %556 = vector.shape_cast %552 : vector<8x128xbf16> to vector<1x8x128xbf16>
    tpu.vector_store %arg5[%553, %c0_115, %c0_116], %556 {strides = array<i32>} : memref<8x8x128xbf16, #tpu.memory_space<vmem>>, vector<1x8x128xbf16>,
    %557 = tpu.concatenate %513, %551 in 1 : vector<8x128xf32>, vector<8x128xf32> -> vector<8x256xf32>
    %558 = tpu.concatenate %511, %549 in 1 : vector<8x128xf32>, vector<8x128xf32> -> vector<8x256xf32>
    %c7_i32_117 = arith.constant 7 : i32
    %559 = arith.truncf %557 : vector<8x256xf32> to vector<8x256xbf16>
    %cst_118 = arith.constant dense<0.000000e+00> : vector<8x1024xf32>
    %560 = tpu.matmul %559, %3, %cst_118 {dimension_numbers = #tpu.dot_dimension_numbers<[1], [0], [0], [1], [0, 0, 1, 1], [], []>} : vector<8x256xbf16>, vector<256x1024xbf16>, vector<8x1024xf32> -> vector<8x1024xf32>
    %561 = vector.extract_strided_slice %560 {offsets = [0, 0], sizes = [8, 512], strides = [1, 1]} : vector<8x1024xf32> to vector<8x512xf32>
    %562 = arith.index_cast %c7_i32_117 : i32 to index
    %c0_119 = arith.constant 0 : index
    %c0_120 = arith.constant 0 : index
    %563 = vector.load %arg1[%562, %c0_119, %c0_120] : memref<8x8x512xbf16, #tpu.memory_space<vmem>>, vector<1x8x512xbf16>
    %564 = vector.shape_cast %563 : vector<1x8x512xbf16> to vector<8x512xbf16>
    %565 = arith.extf %564 : vector<8x512xbf16> to vector<8x512xf32>
    %566 = arith.addf %561, %565 : vector<8x512xf32>
    %567 = vector.extract_strided_slice %558 {offsets = [0, 0], sizes = [8, 128], strides = [1, 1]} : vector<8x256xf32> to vector<8x128xf32>
    %568 = vector.extract_strided_slice %566 {offsets = [0, 0], sizes = [8, 128], strides = [1, 1]} : vector<8x512xf32> to vector<8x128xf32>
    %569 = arith.negf %568 : vector<8x128xf32>
    %570 = math.exp %569 : vector<8x128xf32>
    %cst_121 = arith.constant 1.000000e+00 : f32
    %571 = vector.broadcast %cst_121 : f32 to vector<8x128xf32>
    %572 = arith.addf %571, %570 : vector<8x128xf32>
    %573 = arith.divf %571, %572 : vector<8x128xf32>
    %574 = vector.extract_strided_slice %566 {offsets = [0, 128], sizes = [8, 128], strides = [1, 1]} : vector<8x512xf32> to vector<8x128xf32>
    %575 = arith.negf %574 : vector<8x128xf32>
    %576 = math.exp %575 : vector<8x128xf32>
    %cst_122 = arith.constant 1.000000e+00 : f32
    %577 = vector.broadcast %cst_122 : f32 to vector<8x128xf32>
    %578 = arith.addf %577, %576 : vector<8x128xf32>
    %579 = arith.divf %577, %578 : vector<8x128xf32>
    %580 = vector.extract_strided_slice %566 {offsets = [0, 256], sizes = [8, 128], strides = [1, 1]} : vector<8x512xf32> to vector<8x128xf32>
    %581 = math.tanh %580 : vector<8x128xf32>
    %582 = vector.extract_strided_slice %566 {offsets = [0, 384], sizes = [8, 128], strides = [1, 1]} : vector<8x512xf32> to vector<8x128xf32>
    %583 = arith.negf %582 : vector<8x128xf32>
    %584 = math.exp %583 : vector<8x128xf32>
    %cst_123 = arith.constant 1.000000e+00 : f32
    %585 = vector.broadcast %cst_123 : f32 to vector<8x128xf32>
    %586 = arith.addf %585, %584 : vector<8x128xf32>
    %587 = arith.divf %585, %586 : vector<8x128xf32>
    %588 = arith.mulf %579, %567 : vector<8x128xf32>
    %589 = arith.mulf %573, %581 : vector<8x128xf32>
    %590 = arith.addf %588, %589 : vector<8x128xf32>
    %591 = math.tanh %590 : vector<8x128xf32>
    %592 = arith.mulf %587, %591 : vector<8x128xf32>
    %593 = arith.truncf %592 : vector<8x128xf32> to vector<8x128xbf16>
    %594 = arith.index_cast %c7_i32_117 : i32 to index
    %c0_124 = arith.constant 0 : index
    %c0_125 = arith.constant 0 : index
    %595 = vector.load %arg4[%594, %c0_124, %c0_125] : memref<8x8x128xbf16, #tpu.memory_space<vmem>>, vector<1x8x128xbf16>
    %596 = vector.shape_cast %595 : vector<1x8x128xbf16> to vector<8x128xbf16>
    %597 = vector.shape_cast %593 : vector<8x128xbf16> to vector<1x8x128xbf16>
    tpu.vector_store %arg4[%594, %c0_124, %c0_125], %597 {strides = array<i32>} : memref<8x8x128xbf16, #tpu.memory_space<vmem>>, vector<1x8x128xbf16>,
    %c7_i32_126 = arith.constant 7 : i32
    %598 = arith.subi %c7_i32_126, %c7_i32_117 : i32
    %599 = vector.extract_strided_slice %560 {offsets = [0, 512], sizes = [8, 512], strides = [1, 1]} : vector<8x1024xf32> to vector<8x512xf32>
    %600 = arith.index_cast %598 : i32 to index
    %c0_127 = arith.constant 0 : index
    %c0_128 = arith.constant 0 : index
    %601 = vector.load %arg2[%600, %c0_127, %c0_128] : memref<8x8x512xbf16, #tpu.memory_space<vmem>>, vector<1x8x512xbf16>
    %602 = vector.shape_cast %601 : vector<1x8x512xbf16> to vector<8x512xbf16>
    %603 = arith.extf %602 : vector<8x512xbf16> to vector<8x512xf32>
    %604 = arith.addf %599, %603 : vector<8x512xf32>
    %605 = vector.extract_strided_slice %558 {offsets = [0, 128], sizes = [8, 128], strides = [1, 1]} : vector<8x256xf32> to vector<8x128xf32>
    %606 = vector.extract_strided_slice %604 {offsets = [0, 0], sizes = [8, 128], strides = [1, 1]} : vector<8x512xf32> to vector<8x128xf32>
    %607 = arith.negf %606 : vector<8x128xf32>
    %608 = math.exp %607 : vector<8x128xf32>
    %cst_129 = arith.constant 1.000000e+00 : f32
    %609 = vector.broadcast %cst_129 : f32 to vector<8x128xf32>
    %610 = arith.addf %609, %608 : vector<8x128xf32>
    %611 = arith.divf %609, %610 : vector<8x128xf32>
    %612 = vector.extract_strided_slice %604 {offsets = [0, 128], sizes = [8, 128], strides = [1, 1]} : vector<8x512xf32> to vector<8x128xf32>
    %613 = arith.negf %612 : vector<8x128xf32>
    %614 = math.exp %613 : vector<8x128xf32>
    %cst_130 = arith.constant 1.000000e+00 : f32
    %615 = vector.broadcast %cst_130 : f32 to vector<8x128xf32>
    %616 = arith.addf %615, %614 : vector<8x128xf32>
    %617 = arith.divf %615, %616 : vector<8x128xf32>
    %618 = vector.extract_strided_slice %604 {offsets = [0, 256], sizes = [8, 128], strides = [1, 1]} : vector<8x512xf32> to vector<8x128xf32>
    %619 = math.tanh %618 : vector<8x128xf32>
    %620 = vector.extract_strided_slice %604 {offsets = [0, 384], sizes = [8, 128], strides = [1, 1]} : vector<8x512xf32> to vector<8x128xf32>
    %621 = arith.negf %620 : vector<8x128xf32>
    %622 = math.exp %621 : vector<8x128xf32>
    %cst_131 = arith.constant 1.000000e+00 : f32
    %623 = vector.broadcast %cst_131 : f32 to vector<8x128xf32>
    %624 = arith.addf %623, %622 : vector<8x128xf32>
    %625 = arith.divf %623, %624 : vector<8x128xf32>
    %626 = arith.mulf %617, %605 : vector<8x128xf32>
    %627 = arith.mulf %611, %619 : vector<8x128xf32>
    %628 = arith.addf %626, %627 : vector<8x128xf32>
    %629 = math.tanh %628 : vector<8x128xf32>
    %630 = arith.mulf %625, %629 : vector<8x128xf32>
    %631 = arith.truncf %630 : vector<8x128xf32> to vector<8x128xbf16>
    %632 = arith.index_cast %598 : i32 to index
    %c0_132 = arith.constant 0 : index
    %c0_133 = arith.constant 0 : index
    %633 = vector.load %arg5[%632, %c0_132, %c0_133] : memref<8x8x128xbf16, #tpu.memory_space<vmem>>, vector<1x8x128xbf16>
    %634 = vector.shape_cast %633 : vector<1x8x128xbf16> to vector<8x128xbf16>
    %635 = vector.shape_cast %631 : vector<8x128xbf16> to vector<1x8x128xbf16>
    tpu.vector_store %arg5[%632, %c0_132, %c0_133], %635 {strides = array<i32>} : memref<8x8x128xbf16, #tpu.memory_space<vmem>>, vector<1x8x128xbf16>,
    %636 = tpu.concatenate %592, %630 in 1 : vector<8x128xf32>, vector<8x128xf32> -> vector<8x256xf32>
    %637 = tpu.concatenate %590, %628 in 1 : vector<8x128xf32>, vector<8x128xf32> -> vector<8x256xf32>
    %c8_i32 = arith.constant 8 : i32
    %c0_134 = arith.constant 0 : index
    %c0_135 = arith.constant 0 : index
    %638 = vector.load %arg6[%c0_134, %c0_135] : memref<8x256xf32, #tpu.memory_space<vmem>>, vector<8x256xf32>
    tpu.vector_store %arg6[%c0_134, %c0_135], %636 {strides = array<i32>} : memref<8x256xf32, #tpu.memory_space<vmem>>, vector<8x256xf32>,
    %c0_136 = arith.constant 0 : index
    %c0_137 = arith.constant 0 : index
    %639 = vector.load %arg7[%c0_136, %c0_137] : memref<8x256xf32, #tpu.memory_space<vmem>>, vector<8x256xf32>
    tpu.vector_store %arg7[%c0_136, %c0_137], %637 {strides = array<i32>} : memref<8x256xf32, #tpu.memory_space<vmem>>, vector<8x256xf32>,
    return
  }
  func.func @transform_0(%arg0: i32) -> (i32, i32, i32) {
    %c0_i32 = arith.constant 0 : i32
    %c0_i32_0 = arith.constant 0 : i32
    %c0_i32_1 = arith.constant 0 : i32
    return %arg0, %c0_i32, %c0_i32_0 : i32, i32, i32
  }
  func.func @transform_1(%arg0: i32) -> (i32, i32, i32) {
    %c0_i32 = arith.constant 0 : i32
    %0 = arith.subi %c0_i32, %arg0 : i32
    %c0_i32_0 = arith.constant 0 : i32
    %c1_i32 = arith.constant 1 : i32
    %c0_i32_1 = arith.constant 0 : i32
    return %0, %c0_i32_0, %c1_i32 : i32, i32, i32
  }
  func.func @transform_2(%arg0: i32) -> (i32, i32) {
    %c0_i32 = arith.constant 0 : i32
    %c0_i32_0 = arith.constant 0 : i32
    %c0_i32_1 = arith.constant 0 : i32
    return %c0_i32, %c0_i32_0 : i32, i32
  }
  func.func @transform_3(%arg0: i32) -> (i32, i32, i32) {
    %c0_i32 = arith.constant 0 : i32
    %c0_i32_0 = arith.constant 0 : i32
    %c0_i32_1 = arith.constant 0 : i32
    return %arg0, %c0_i32, %c0_i32_0 : i32, i32, i32
  }
  func.func @transform_4(%arg0: i32) -> (i32, i32, i32) {
    %c0_i32 = arith.constant 0 : i32
    %0 = arith.subi %c0_i32, %arg0 : i32
    %c0_i32_0 = arith.constant 0 : i32
    %c0_i32_1 = arith.constant 0 : i32
    %c0_i32_2 = arith.constant 0 : i32
    return %0, %c0_i32_0, %c0_i32_1 : i32, i32, i32
  }
}

module attributes {stable_mosaic.version = 11 : i64} {
  func.func @kernel(%arg0: i32, %arg1: i32, %arg2: memref<64x128xbf16, #tpu.memory_space<vmem>>, %arg3: memref<64x128xbf16, #tpu.memory_space<vmem>>, %arg4: memref<128x512xbf16, #tpu.memory_space<vmem>>, %arg5: memref<128x512xbf16, #tpu.memory_space<vmem>>, %arg6: memref<1x512xf32, #tpu.memory_space<vmem>>, %arg7: memref<64x512xbf16, #tpu.memory_space<vmem>>) attributes {dimension_semantics = [#tpu.dimension_semantics<parallel>, #tpu.dimension_semantics<parallel>], iteration_bounds = array<i64: 1, 2>, scalar_prefetch = 0 : i64, scratch_operands = 0 : i64, tpu.core_type = #tpu.core_type<tc>, window_params = [{transform_indices = @transform_0, window_bounds = array<i64: 64, 128>}, {transform_indices = @transform_1, window_bounds = array<i64: 64, 128>}, {transform_indices = @transform_2, window_bounds = array<i64: 128, 512>}, {transform_indices = @transform_3, window_bounds = array<i64: 128, 512>}, {transform_indices = @transform_4, window_bounds = array<i64: 1, 512>}, {transform_indices = @transform_5, window_bounds = array<i64: 64, 512>}]} {
    %c0 = arith.constant 0 : index
    %c0_0 = arith.constant 0 : index
    %0 = vector.load %arg2[%c0, %c0_0] : memref<64x128xbf16, #tpu.memory_space<vmem>>, vector<64x128xbf16>
    %c0_1 = arith.constant 0 : index
    %c0_2 = arith.constant 0 : index
    %1 = vector.load %arg4[%c0_1, %c0_2] : memref<128x512xbf16, #tpu.memory_space<vmem>>, vector<128x512xbf16>
    %cst = arith.constant dense<0.000000e+00> : vector<64x512xf32>
    %2 = tpu.matmul %0, %1, %cst {dimension_numbers = #tpu.dot_dimension_numbers<[1], [0], [0], [1], [0, 0, 1, 1], [], []>} : vector<64x128xbf16>, vector<128x512xbf16>, vector<64x512xf32> -> vector<64x512xf32>
    %c0_3 = arith.constant 0 : index
    %c0_4 = arith.constant 0 : index
    %3 = vector.load %arg3[%c0_3, %c0_4] : memref<64x128xbf16, #tpu.memory_space<vmem>>, vector<64x128xbf16>
    %c0_5 = arith.constant 0 : index
    %c0_6 = arith.constant 0 : index
    %4 = vector.load %arg5[%c0_5, %c0_6] : memref<128x512xbf16, #tpu.memory_space<vmem>>, vector<128x512xbf16>
    %cst_7 = arith.constant dense<0.000000e+00> : vector<64x512xf32>
    %5 = tpu.matmul %3, %4, %cst_7 {dimension_numbers = #tpu.dot_dimension_numbers<[1], [0], [0], [1], [0, 0, 1, 1], [], []>} : vector<64x128xbf16>, vector<128x512xbf16>, vector<64x512xf32> -> vector<64x512xf32>
    %6 = arith.addf %2, %5 : vector<64x512xf32>
    %c0_8 = arith.constant 0 : index
    %c0_9 = arith.constant 0 : index
    %7 = vector.load %arg6[%c0_8, %c0_9] : memref<1x512xf32, #tpu.memory_space<vmem>>, vector<1x512xf32>
    %8 = vector.broadcast %7 : vector<1x512xf32> to vector<64x512xf32>
    %9 = arith.addf %6, %8 : vector<64x512xf32>
    %10 = arith.truncf %9 : vector<64x512xf32> to vector<64x512xbf16>
    %c0_10 = arith.constant 0 : index
    %c0_11 = arith.constant 0 : index
    %11 = vector.load %arg7[%c0_10, %c0_11] : memref<64x512xbf16, #tpu.memory_space<vmem>>, vector<64x512xbf16>
    tpu.vector_store %arg7[%c0_10, %c0_11], %10 {strides = array<i32>} : memref<64x512xbf16, #tpu.memory_space<vmem>>, vector<64x512xbf16>,
    return
  }
  func.func @transform_0(%arg0: i32, %arg1: i32) -> (i32, i32) {
    %c0_i32 = arith.constant 0 : i32
    %c0_i32_0 = arith.constant 0 : i32
    return %arg0, %c0_i32 : i32, i32
  }
  func.func @transform_1(%arg0: i32, %arg1: i32) -> (i32, i32) {
    %c0_i32 = arith.constant 0 : i32
    %c0_i32_0 = arith.constant 0 : i32
    return %arg0, %c0_i32 : i32, i32
  }
  func.func @transform_2(%arg0: i32, %arg1: i32) -> (i32, i32) {
    %c0_i32 = arith.constant 0 : i32
    %c0_i32_0 = arith.constant 0 : i32
    return %c0_i32, %arg1 : i32, i32
  }
  func.func @transform_3(%arg0: i32, %arg1: i32) -> (i32, i32) {
    %c0_i32 = arith.constant 0 : i32
    %c0_i32_0 = arith.constant 0 : i32
    return %c0_i32, %arg1 : i32, i32
  }
  func.func @transform_4(%arg0: i32, %arg1: i32) -> (i32, i32) {
    %c0_i32 = arith.constant 0 : i32
    %c0_i32_0 = arith.constant 0 : i32
    return %c0_i32, %arg1 : i32, i32
  }
  func.func @transform_5(%arg0: i32, %arg1: i32) -> (i32, i32) {
    %c0_i32 = arith.constant 0 : i32
    return %arg0, %arg1 : i32, i32
  }
}

module attributes {stable_mosaic.version = 11 : i64} {
  func.func @kernel(%arg0: i32, %arg1: i32, %arg2: memref<8x512xbf16, #tpu.memory_space<vmem>>, %arg3: memref<512x128xbf16, #tpu.memory_space<vmem>>, %arg4: memref<1x128xf32, #tpu.memory_space<vmem>>, %arg5: memref<8x128xf32, #tpu.memory_space<vmem>>) attributes {dimension_semantics = [#tpu.dimension_semantics<parallel>, #tpu.dimension_semantics<parallel>], iteration_bounds = array<i64: 1, 1>, scalar_prefetch = 0 : i64, scratch_operands = 0 : i64, tpu.core_type = #tpu.core_type<tc>, window_params = [{transform_indices = @transform_0, window_bounds = array<i64: 8, 512>}, {transform_indices = @transform_1, window_bounds = array<i64: 512, 128>}, {transform_indices = @transform_2, window_bounds = array<i64: 1, 128>}, {transform_indices = @transform_3, window_bounds = array<i64: 8, 128>}]} {
    %c0 = arith.constant 0 : index
    %c0_0 = arith.constant 0 : index
    %0 = vector.load %arg2[%c0, %c0_0] : memref<8x512xbf16, #tpu.memory_space<vmem>>, vector<8x512xbf16>
    %c0_1 = arith.constant 0 : index
    %c0_2 = arith.constant 0 : index
    %1 = vector.load %arg3[%c0_1, %c0_2] : memref<512x128xbf16, #tpu.memory_space<vmem>>, vector<512x128xbf16>
    %cst = arith.constant dense<0.000000e+00> : vector<8x128xf32>
    %2 = tpu.matmul %0, %1, %cst {dimension_numbers = #tpu.dot_dimension_numbers<[1], [0], [0], [1], [0, 0, 1, 1], [], []>} : vector<8x512xbf16>, vector<512x128xbf16>, vector<8x128xf32> -> vector<8x128xf32>
    %c0_3 = arith.constant 0 : index
    %c0_4 = arith.constant 0 : index
    %3 = vector.load %arg4[%c0_3, %c0_4] : memref<1x128xf32, #tpu.memory_space<vmem>>, vector<1x128xf32>
    %4 = vector.broadcast %3 : vector<1x128xf32> to vector<8x128xf32>
    %5 = arith.addf %2, %4 : vector<8x128xf32>
    %c0_5 = arith.constant 0 : index
    %c0_6 = arith.constant 0 : index
    %6 = vector.load %arg5[%c0_5, %c0_6] : memref<8x128xf32, #tpu.memory_space<vmem>>, vector<8x128xf32>
    tpu.vector_store %arg5[%c0_5, %c0_6], %5 {strides = array<i32>} : memref<8x128xf32, #tpu.memory_space<vmem>>, vector<8x128xf32>,
    return
  }
  func.func @transform_0(%arg0: i32, %arg1: i32) -> (i32, i32) {
    %c0_i32 = arith.constant 0 : i32
    %c0_i32_0 = arith.constant 0 : i32
    return %arg0, %c0_i32 : i32, i32
  }
  func.func @transform_1(%arg0: i32, %arg1: i32) -> (i32, i32) {
    %c0_i32 = arith.constant 0 : i32
    %c0_i32_0 = arith.constant 0 : i32
    return %c0_i32, %arg1 : i32, i32
  }
  func.func @transform_2(%arg0: i32, %arg1: i32) -> (i32, i32) {
    %c0_i32 = arith.constant 0 : i32
    %c0_i32_0 = arith.constant 0 : i32
    return %c0_i32, %arg1 : i32, i32
  }
  func.func @transform_3(%arg0: i32, %arg1: i32) -> (i32, i32) {
    %c0_i32 = arith.constant 0 : i32
    return %arg0, %arg1 : i32, i32
  }
}

</mosaic_0001>

<bundles_post_ra>
// kernel: _lambda_.5
= control target key start
LH: loop header
LB: loop body
LE: loop exit
PB: predicated region body
PF: predicated region fallthrough
CT: control target
= control target key end

     0   :  { %s968_s12 = smov 0   ;;  %s970_s13 = smov 0   ;;  %s1142_s0 = inlined_call_operand.vmem [shape: bf16[64,32], index: 0, kind: input, shape index: {}]   ;;  %s1143_s1 = inlined_call_operand.vmem [shape: bf16[32,1024], index: 1, kind: input, shape index: {}]   ;;  %s1144_s2 = inlined_call_operand.vmem [shape: f32[1,1024], index: 2, kind: input, shape index: {}]   ;;  %s1145_s3 = inlined_call_operand.vmem [shape: bf16[64,1024], index: 3, kind: output, shape index: {}]  }
   0x1   :  { %s972_s14 = smov 0   ;;  %s974_s15 = smov 0  }
   0x2   :  { %s976_s16 = smov 0  }
   0x3 LB: > { %s22_s17 = sadd.s32 1, %s941_s15  ;;  %s779_s18 = sadd.s32 4294967295, %s945_s16   ;;  %s945_s16 = sphi %s976_s16, %s13_s16   ;;  %s941_s15 = sphi %s974_s15, %s1150_s15   ;;  %s937_s14 = sphi %s972_s14, %s1149_s14   ;;  %s933_s13 = sphi %s970_s13, %s1148_s13   ;;  %s929_s12 = sphi %s968_s12, %s1147_s12  }
   0x4   : > { %p23_p0 = scmp.ge.s32.totalorder %s22_s17, 2  ;;  %p65_p1 = scmp.ne.s32.totalorder %s933_s13, %s929_s12 }
   0x5   : > { %p66_p2 = scmp.eq.s32.totalorder %s945_s16, 0  ;;  %p123_p4 = scmp.eq.s32.totalorder %s779_s18, 1 }
   0x6   : > { %s1152_s17 = smov (%p23_p0, %s22_s17), 0  ;;  %s58_s20 = sadd.s32 1, %s933_s13 }
   0x7   : > { %p67_p3 = por %p66_p2, %p65_p1  ;;  %s55_s19 = ssub.s32 %s941_s15, %s1152_s17 }
   0x8   : > { %p56_p5 = scmp.eq.s32.totalorder %s55_s19, 0  ;;  %p1003_p6 = por %p123_p4, %p65_p1 }
   0x9   : > { %p783_p7 = scmp.ge.s32.totalorder %s945_s16, 2 }
   0xa   : > { %s1008_s22 = scalar_select %p56_p5, %s933_s13, %s58_s20  }
   0xb   : > { %154 = sbr.rel (%p783_p7) target bundleno = 26 (0x1a), region = 20 }
  0x12   : > { %157 = sbr.rel (!%p67_p3) target bundleno = 26 (0x1a), region = 24  ;;  %s159_s23 = sand.u32 (%p67_p3), 1, %s933_s13  }
  0x13   : > { %s832_s24 = sshll.u32 (%p67_p3), %s941_s15, 4  ;;  %s784_s25 = sshll.u32 (%p67_p3), %s159_s23, 6 }
  0x14   : > { %s164_s28 = scalar_lea.vmem (%p67_p3), %s1143_s1, %s832_s24  ;;  %s161_s29 = scalar_lea.vmem (%p67_p3), [#allocation2], %s784_s25 }
  0x15   : > { %v177_v0 = vld [vmem:[%s164_s28] sm:$0xff] (%p67_p3)  ;;  %v179_v1 = vld [vmem:[%s164_s28 + $0x8] sm:$0xff] (%p67_p3) }
  0x16   : > { %v181_v2 = vld [vmem:[%s164_s28 + $0x20] sm:$0xff] (%p67_p3)  ;;  %178 = vst [vmem:[%s161_s29] sm:$0xff] (%p67_p3), %v177_v0  ;;  %180 = vst [vmem:[%s161_s29 + $0x8] sm:$0xff] (%p67_p3), %v179_v1  ;;  %v183_v3 = vld [vmem:[%s164_s28 + $0x28] sm:$0xff] (%p67_p3) }
  0x17   : > { %182 = vst [vmem:[%s161_s29 + $0x10] sm:$0xff] (%p67_p3), %v181_v2  ;;  %v185_v4 = vld [vmem:[%s164_s28 + $0x40] sm:$0xff] (%p67_p3)  ;;  %v187_v5 = vld [vmem:[%s164_s28 + $0x48] sm:$0xff] (%p67_p3)  ;;  %184 = vst [vmem:[%s161_s29 + $0x18] sm:$0xff] (%p67_p3), %v183_v3 }
  0x18   : > { %186 = vst [vmem:[%s161_s29 + $0x20] sm:$0xff] (%p67_p3), %v185_v4  ;;  %188 = vst [vmem:[%s161_s29 + $0x28] sm:$0xff] (%p67_p3), %v187_v5  ;;  %v189_v6 = vld [vmem:[%s164_s28 + $0x60] sm:$0xff] (%p67_p3)  ;;  %v191_v7 = vld [vmem:[%s164_s28 + $0x68] sm:$0xff] (%p67_p3) }
  0x19   : > { %190 = vst [vmem:[%s161_s29 + $0x30] sm:$0xff] %v189_v6  ;;  %192 = vst [vmem:[%s161_s29 + $0x38] sm:$0xff] %v191_v7 }
  0x1a PF: > { %p787_p8 = scmp.ge.s32.totalorder %s945_s16, 1  ;;  %p205_p9 = scmp.lt.s32.totalorder %s945_s16, 3 }
  0x1c   : > { %p206_p10 = pnand %p787_p8, %p205_p9 }
  0x1d   : > { %s212_s30 = sand.u32 (!%p206_p10), 1, %s929_s12   ;;  %v947_v8 = vmov (!%p206_p10), 0   ;;  %v903_v17 = vld [vmem:[%s1142_s0] sm:$0xff] (!%p206_p10)   ;;  %vm356_vm0 = vcmask (!%p206_p10), 261120   ;;  %v904_v18 = vld [vmem:[%s1142_s0 + $0x8] sm:$0xff] (!%p206_p10)   ;;  %v905_v19 = vld [vmem:[%s1142_s0 + $0x10] sm:$0xff] (!%p206_p10)   ;;  %v276_v21 = vlaneseq (!%p206_p10) }
  0x1e   : > { %209 = sbr.rel (%p206_p10) target bundleno = 293 (0x125), region = 51  ;;  %s788_s4 = sshll.u32 (!%p206_p10), %s212_s30, 6  ;;  %401 = vmatprep.mubr.bf16.mxu0 (!%p206_p10), %v947_v8  ;;  %474 = vmatprep.mubr.bf16.mxu1 (!%p206_p10), %v947_v8  ;;  %v906_v20 = vld [vmem:[%s1142_s0 + $0x18] sm:$0xff] (!%p206_p10)  }
  0x1f   : > { %s214_s5 = scalar_lea.vmem (!%p206_p10), [#allocation2], %s788_s4  ;;  %s790_s20 = sshll.u32 (!%p206_p10), %s937_s14, 2  ;;  %v277_v22 = vshrl.u32 (!%p206_p10), %v276_v21, 7 }
  0x20   : > { %v891_v9 = vld [vmem:[%s214_s5 + $0x4] ss:$16 sps:$4 sm:$0xff] (!%p206_p10)   ;;  %v893_v10 = vld [vmem:[%s214_s5 + $0xc] ss:$16 sps:$4 sm:$0xff] (!%p206_p10)   ;;  %v895_v11 = vld [vmem:[%s214_s5] ss:$16 sps:$4 sm:$0xff] (!%p206_p10)  }
  0x21   : > { %369 = vmatprep.subr.bf16.mxu0 (!%p206_p10), %v891_v9  ;;  %v896_v12 = vld [vmem:[%s214_s5 + $0x8] ss:$16 sps:$4 sm:$0xff] (!%p206_p10)   ;;  %442 = vmatprep.subr.bf16.mxu1 (!%p206_p10), %v893_v10  ;;  %v897_v13 = vld [vmem:[%s214_s5 + $0x24] ss:$16 sps:$4 sm:$0xff] (!%p206_p10)   ;;  %v899_v14 = vld [vmem:[%s214_s5 + $0x2c] ss:$16 sps:$4 sm:$0xff] (!%p206_p10)  }
  0x22   : > { %370 = vmatpush1.bf16.msra.mxu0 (!%p206_p10), %v895_v11  ;;  %443 = vmatpush1.bf16.msra.mxu1 (!%p206_p10), %v896_v12  ;;  %v901_v15 = vld [vmem:[%s214_s5 + $0x20] ss:$16 sps:$4 sm:$0xff] (!%p206_p10)   ;;  %v902_v16 = vld [vmem:[%s214_s5 + $0x28] ss:$16 sps:$4 sm:$0xff] (!%p206_p10)   ;;  %p251_p11 = scmp.lt.s32.totalorder (!%p206_p10), %s790_s20, 7  ;;  %v278_v23 = vsub.s32 (!%p206_p10), 0, %v277_v22 }
  0x23   : > { %371 = vmatprep.subr.bf16.mxu0 (!%p206_p10), %v897_v13  ;;  %444 = vmatprep.subr.bf16.mxu1 (!%p206_p10), %v899_v14  ;;  %v286_v24 = vsub.s32 (!%p206_p10), 2, %v277_v22  ;;  %v282_v26 = vsub.s32 (!%p206_p10), 1, %v277_v22  ;;  %v290_v27 = vsub.s32 (!%p206_p10), 3, %v277_v22  ;;  %s789_s26 = sshll.u32 (!%p206_p10), %s212_s30, 7 }
  0x24   : > { %s1063_s12 = scalar_lea.vmem (!%p206_p10), [#allocation3], %s789_s26 }
  0x25   : > { %s1154_s20 = smov (!%p251_p11, %s790_s20), 7  ;;  %s849_s27 = sshll.u32 (%p1003_p6), %s937_s14, 4 }
  0x26   : > { %372 = vmatpush1.bf16.msra.mxu0 %v901_v15  ;;  %445 = vmatpush1.bf16.msra.mxu1 %v902_v16  ;;  %s253_s25 = scalar_lea.vmem %s1144_s2, %s1154_s20  ;;  %s639_s30 = scalar_lea.vmem (%p1003_p6), %s1145_s3, %s849_s27 }
  0x27   : > { %v274_v25 = vld [vmem:[%s253_s25] sm:$0xf] }
  0x28   : > { %v1045_v28 = vrot.slane %v274_v25, %v278_v23  ;;  %v1047_v29 = vrot.slane %v274_v25, %v286_v24  ;;  %v1049_v30 = vrot.slane %v274_v25, %v282_v26  ;;  %v1051_v31 = vrot.slane %v274_v25, %v290_v27 }
  0x29   : > { %803 = vmatmul.mubr.msk.bf16.vlgmr.msra.gmra.mrb[0].mxu0 %vm356_vm0, %v903_v17  ;;  %807 = vmatmul.mubr.msk.bf16.vlgmr.msra.gmra.mrb[0].mxu1 %vm356_vm0, %v903_v17 }
  0x2a   : > { %411 = vmatprep.mubr.bf16.mxu0 %v947_v8  ;;  %484 = vmatprep.mubr.bf16.mxu1 %v947_v8 }
  0x31   : > { %804 = vmatmul.mubr.msk.bf16.gmra.mrb[4].mxu0 %vm356_vm0, %v904_v18  ;;  %808 = vmatmul.mubr.msk.bf16.gmra.mrb[4].mxu1 %vm356_vm0, %v904_v18 }
  0x32   : > { %421 = vmatprep.mubr.bf16.mxu0 %v947_v8  ;;  %494 = vmatprep.mubr.bf16.mxu1 %v947_v8 }
  0x39   : > { %805 = vmatmul.mubr.msk.bf16.gmra.mrb[8].mxu0 %vm356_vm0, %v905_v19  ;;  %809 = vmatmul.mubr.msk.bf16.gmra.mrb[8].mxu1 %vm356_vm0, %v905_v19 }
  0x3a   : > { %431 = vmatprep.mubr.bf16.mxu0 %v947_v8  ;;  %504 = vmatprep.mubr.bf16.mxu1 %v947_v8 }
  0x41   : > { %806 = vmatmul.mubr.msk.bf16.gmra.mrb[12].mxu0 %vm356_vm0, %v906_v20  ;;  %810 = vmatmul.mubr.msk.bf16.gmra.mrb[12].mxu1 %vm356_vm0, %v906_v20 }
  0xfc   : > { %v403_v32 = vpop.f32.mrb[0].mxu0  ;;  %v476_v33 = vpop.f32.mrb[0].mxu1 }
  0xfd   : > { %v404_v34 = vadd.f32 %v403_v32, %v1045_v28  ;;  %v477_v35 = vadd.f32 %v476_v33, %v1047_v29  ;;  %v405_v36 = vpop.f32.mrb[1].mxu0  ;;  %v478_v37 = vpop.f32.mrb[1].mxu1 }
  0xfe   : > { %v406_v38 = vadd.f32 %v405_v36, %v1049_v30  ;;  %v479_v39 = vadd.f32 %v478_v37, %v1051_v31  ;;  %v407_v40 = vpop.f32.mrb[2].mxu0  ;;  %v480_v41 = vpop.f32.mrb[2].mxu1 }
  0xff   : > { %v408_v42 = vadd.f32 %v407_v40, %v1045_v28  ;;  %v481_v43 = vadd.f32 %v480_v41, %v1047_v29  ;;  %v409_v44 = vpop.f32.mrb[3].mxu0  ;;  %v482_v45 = vpop.f32.mrb[3].mxu1 }
 0x100   : > { %v833_v46 = vpack.c.bf16 %v406_v38, %v404_v34  ;;  %v834_v47 = vpack.c.bf16 %v479_v39, %v477_v35  ;;  %v410_v48 = vadd.f32 %v409_v44, %v1049_v30  ;;  %v483_v49 = vadd.f32 %v482_v45, %v1051_v31 }
 0x102   : > { %611 = vst [vmem:[%s1063_s12] sm:$0xff] %v833_v46  ;;  %612 = vst [vmem:[%s1063_s12 + $0x8] sm:$0xff] %v834_v47  ;;  %v835_v50 = vpack.c.bf16 %v410_v48, %v408_v42  ;;  %v836_v51 = vpack.c.bf16 %v483_v49, %v481_v43 }
 0x104   : > { %613 = vst [vmem:[%s1063_s12 + $0x10] sm:$0xff] %v835_v50  ;;  %614 = vst [vmem:[%s1063_s12 + $0x18] sm:$0xff] %v836_v51  ;;  %v413_v52 = vpop.f32.mrb[4].mxu0  ;;  %v486_v53 = vpop.f32.mrb[4].mxu1 }
 0x105   : > { %v414_v54 = vadd.f32 %v413_v52, %v1045_v28  ;;  %v487_v55 = vadd.f32 %v486_v53, %v1047_v29  ;;  %v415_v56 = vpop.f32.mrb[5].mxu0  ;;  %v488_v57 = vpop.f32.mrb[5].mxu1 }
 0x106   : > { %v416_v58 = vadd.f32 %v415_v56, %v1049_v30  ;;  %v489_v59 = vadd.f32 %v488_v57, %v1051_v31  ;;  %v417_v60 = vpop.f32.mrb[6].mxu0  ;;  %v490_v61 = vpop.f32.mrb[6].mxu1 }
 0x107   : > { %v418_v62 = vadd.f32 %v417_v60, %v1045_v28  ;;  %v491_v63 = vadd.f32 %v490_v61, %v1047_v29  ;;  %v419_v0 = vpop.f32.mrb[7].mxu0  ;;  %v492_v1 = vpop.f32.mrb[7].mxu1 }
 0x108   : > { %v837_v2 = vpack.c.bf16 %v416_v58, %v414_v54  ;;  %v838_v3 = vpack.c.bf16 %v489_v59, %v487_v55  ;;  %v420_v4 = vadd.f32 %v419_v0, %v1049_v30  ;;  %v493_v5 = vadd.f32 %v492_v1, %v1051_v31 }
 0x10a   : > { %615 = vst [vmem:[%s1063_s12 + $0x20] sm:$0xff] %v837_v2  ;;  %616 = vst [vmem:[%s1063_s12 + $0x28] sm:$0xff] %v838_v3  ;;  %v839_v6 = vpack.c.bf16 %v420_v4, %v418_v62  ;;  %v840_v7 = vpack.c.bf16 %v493_v5, %v491_v63 }
 0x10c   : > { %617 = vst [vmem:[%s1063_s12 + $0x30] sm:$0xff] %v839_v6  ;;  %618 = vst [vmem:[%s1063_s12 + $0x38] sm:$0xff] %v840_v7  ;;  %v423_v8 = vpop.f32.mrb[8].mxu0  ;;  %v496_v9 = vpop.f32.mrb[8].mxu1 }
 0x10d   : > { %v424_v10 = vadd.f32 %v423_v8, %v1045_v28  ;;  %v497_v11 = vadd.f32 %v496_v9, %v1047_v29  ;;  %v425_v12 = vpop.f32.mrb[9].mxu0  ;;  %v498_v13 = vpop.f32.mrb[9].mxu1 }
 0x10e   : > { %v426_v14 = vadd.f32 %v425_v12, %v1049_v30  ;;  %v499_v15 = vadd.f32 %v498_v13, %v1051_v31  ;;  %v427_v16 = vpop.f32.mrb[10].mxu0  ;;  %v500_v17 = vpop.f32.mrb[10].mxu1 }
 0x10f   : > { %v428_v18 = vadd.f32 %v427_v16, %v1045_v28  ;;  %v501_v19 = vadd.f32 %v500_v17, %v1047_v29  ;;  %v429_v20 = vpop.f32.mrb[11].mxu0  ;;  %v502_v21 = vpop.f32.mrb[11].mxu1 }
 0x110   : > { %v841_v22 = vpack.c.bf16 %v426_v14, %v424_v10  ;;  %v842_v23 = vpack.c.bf16 %v499_v15, %v497_v11  ;;  %v430_v24 = vadd.f32 %v429_v20, %v1049_v30  ;;  %v503_v25 = vadd.f32 %v502_v21, %v1051_v31 }
 0x111   : > { %v660_v52 = vld [vmem:[%s1063_s12 + $0x20] sm:$0xff] (%p1003_p6)  ;;  %v662_v53 = vld [vmem:[%s1063_s12 + $0x28] sm:$0xff] (%p1003_p6) }
 0x112   : > { %619 = vst [vmem:[%s1063_s12 + $0x40] sm:$0xff] %v841_v22  ;;  %620 = vst [vmem:[%s1063_s12 + $0x48] sm:$0xff] %v842_v23  ;;  %v843_v26 = vpack.c.bf16 %v430_v24, %v428_v18  ;;  %v844_v27 = vpack.c.bf16 %v503_v25, %v501_v19 }
 0x113   : > { %661 = vst [vmem:[%s639_s30 + $0x40] sm:$0xff] (%p1003_p6), %v660_v52  ;;  %663 = vst [vmem:[%s639_s30 + $0x48] sm:$0xff] (%p1003_p6), %v662_v53  ;;  %v664_v54 = vld [vmem:[%s1063_s12 + $0x30] sm:$0xff] (%p1003_p6)  ;;  %v666_v55 = vld [vmem:[%s1063_s12 + $0x38] sm:$0xff] (%p1003_p6) }
 0x114   : > { %621 = vst [vmem:[%s1063_s12 + $0x50] sm:$0xff] %v843_v26  ;;  %622 = vst [vmem:[%s1063_s12 + $0x58] sm:$0xff] %v844_v27  ;;  %v433_v32 = vpop.f32.mrb[12].mxu0  ;;  %v506_v33 = vpop.f32.mrb[12].mxu1 }
 0x115   : > { %v434_v34 = vadd.f32 %v433_v32, %v1045_v28  ;;  %v507_v35 = vadd.f32 %v506_v33, %v1047_v29  ;;  %v435_v36 = vpop.f32.mrb[13].mxu0  ;;  %v508_v37 = vpop.f32.mrb[13].mxu1  ;;  %665 = vst [vmem:[%s639_s30 + $0x60] sm:$0xff] (%p1003_p6), %v664_v54  ;;  %667 = vst [vmem:[%s639_s30 + $0x68] sm:$0xff] (%p1003_p6), %v666_v55 }
 0x116   : > { %v436_v38 = vadd.f32 %v435_v36, %v1049_v30  ;;  %v509_v39 = vadd.f32 %v508_v37, %v1051_v31  ;;  %v437_v40 = vpop.f32.mrb[14].mxu0  ;;  %v510_v41 = vpop.f32.mrb[14].mxu1  ;;  %633 = sbr.rel (!%p1003_p6) target bundleno = 293 (0x125), region = 59 }
 0x117   : > { %v438_v42 = vadd.f32 %v437_v40, %v1045_v28  ;;  %v511_v43 = vadd.f32 %v510_v41, %v1047_v29  ;;  %v439_v44 = vpop.f32.mrb[15].mxu0  ;;  %v512_v45 = vpop.f32.mrb[15].mxu1  ;;  %v652_v28 = vld [vmem:[%s1063_s12] sm:$0xff] (%p1003_p6)  ;;  %v654_v29 = vld [vmem:[%s1063_s12 + $0x8] sm:$0xff] (%p1003_p6) }
 0x118   : > { %v845_v46 = vpack.c.bf16 %v436_v38, %v434_v34  ;;  %v846_v47 = vpack.c.bf16 %v509_v39, %v507_v35  ;;  %v440_v48 = vadd.f32 %v439_v44, %v1049_v30  ;;  %v513_v49 = vadd.f32 %v512_v45, %v1051_v31  ;;  %v656_v30 = vld [vmem:[%s1063_s12 + $0x10] sm:$0xff] (%p1003_p6)  ;;  %v658_v31 = vld [vmem:[%s1063_s12 + $0x18] sm:$0xff] (%p1003_p6)  ;;  %653 = vst [vmem:[%s639_s30] sm:$0xff] (%p1003_p6), %v652_v28 }
 0x119   : > { %655 = vst [vmem:[%s639_s30 + $0x8] sm:$0xff] (%p1003_p6), %v654_v29  ;;  %657 = vst [vmem:[%s639_s30 + $0x20] sm:$0xff] (%p1003_p6), %v656_v30  ;;  %v668_v56 = vld [vmem:[%s1063_s12 + $0x40] sm:$0xff] (%p1003_p6)  ;;  %v670_v57 = vld [vmem:[%s1063_s12 + $0x48] sm:$0xff] (%p1003_p6) }
 0x11a   : > { %623 = vst [vmem:[%s1063_s12 + $0x60] sm:$0xff] %v845_v46  ;;  %624 = vst [vmem:[%s1063_s12 + $0x68] sm:$0xff] %v846_v47  ;;  %v847_v50 = vpack.c.bf16 %v440_v48, %v438_v42  ;;  %v848_v51 = vpack.c.bf16 %v513_v49, %v511_v43 }
 0x11b   : > { %659 = vst [vmem:[%s639_s30 + $0x28] sm:$0xff] (%p1003_p6), %v658_v31  ;;  %669 = vst [vmem:[%s639_s30 + $0x80] sm:$0xff] (%p1003_p6), %v668_v56  ;;  %v672_v58 = vld [vmem:[%s1063_s12 + $0x50] sm:$0xff] (%p1003_p6)  ;;  %v674_v59 = vld [vmem:[%s1063_s12 + $0x58] sm:$0xff] (%p1003_p6) }
 0x11c   : > { %625 = vst [vmem:[%s1063_s12 + $0x70] sm:$0xff] %v847_v50  ;;  %626 = vst [vmem:[%s1063_s12 + $0x78] sm:$0xff] %v848_v51 }
 0x11d   : > { %671 = vst [vmem:[%s639_s30 + $0x88] sm:$0xff] %v670_v57  ;;  %673 = vst [vmem:[%s639_s30 + $0xa0] sm:$0xff] %v672_v58 }
 0x11e   : > { %675 = vst [vmem:[%s639_s30 + $0xa8] sm:$0xff] %v674_v59 }
 0x121   : > { %v676_v60 = vld [vmem:[%s1063_s12 + $0x60] sm:$0xff]  ;;  %v678_v61 = vld [vmem:[%s1063_s12 + $0x68] sm:$0xff] }
 0x122   : > { %677 = vst [vmem:[%s639_s30 + $0xc0] sm:$0xff] %v676_v60  ;;  %679 = vst [vmem:[%s639_s30 + $0xc8] sm:$0xff] %v678_v61 }
 0x123   : > { %v680_v62 = vld [vmem:[%s1063_s12 + $0x70] sm:$0xff]  ;;  %v682_v63 = vld [vmem:[%s1063_s12 + $0x78] sm:$0xff] }
 0x124   : > { %681 = vst [vmem:[%s639_s30 + $0xe0] sm:$0xff] %v680_v62  ;;  %683 = vst [vmem:[%s639_s30 + $0xe8] sm:$0xff] %v682_v63 }
 0x125 PF: > { %s13_s16 = sadd.s32 1, %s945_s16   ;;  %s1147_s12 = smov %s933_s13 }
 0x126   : > { %p10_p12 = scmp.ge.s32.totalorder %s13_s16, 4   ;;  %s1148_s13 = smov %s1008_s22 }
 0x127   : > { %s1149_s14 = smov %s941_s15  ;;  %s1150_s15 = smov %s1152_s17 }
 0x128   :  { %12 = sbr.rel (!%p10_p12) target bundleno = 3 (0x3), region = 119 }

// kernel: _lambda_.7
= control target key start
LH: loop header
LB: loop body
LE: loop exit
PB: predicated region body
PF: predicated region fallthrough
CT: control target
= control target key end

     0   :  { %s1953_s18 = smov 0   ;;  %s1955_s19 = smov 0   ;;  %s2368_s0 = inlined_call_operand.vmem [shape: bf16[64,128], index: 0, kind: input, shape index: {}]   ;;  %s2369_s1 = inlined_call_operand.vmem [shape: bf16[64,128], index: 1, kind: input, shape index: {}]   ;;  %s2370_s2 = inlined_call_operand.vmem [shape: bf16[128,1024], index: 2, kind: input, shape index: {}]   ;;  %s2371_s3 = inlined_call_operand.vmem [shape: bf16[128,1024], index: 3, kind: input, shape index: {}]   ;;  %s2372_s4 = inlined_call_operand.vmem [shape: f32[1,1024], index: 4, kind: input, shape index: {}]   ;;  %s2373_s5 = inlined_call_operand.vmem [shape: bf16[64,1024], index: 5, kind: output, shape index: {}]  }
   0x1   :  { %s1957_s20 = smov 0   ;;  %s1959_s21 = smov 0  }
   0x2   :  { %s1961_s22 = smov 0  }
   0x3 LB: > { %s24_s23 = sadd.s32 1, %s1916_s21  ;;  %s1576_s24 = sadd.s32 4294967295, %s1920_s22   ;;  %s1920_s22 = sphi %s1961_s22, %s15_s22   ;;  %s1916_s21 = sphi %s1959_s21, %s2379_s21   ;;  %s1912_s20 = sphi %s1957_s20, %s2378_s20   ;;  %s1908_s19 = sphi %s1955_s19, %s2377_s19   ;;  %s1904_s18 = sphi %s1953_s18, %s2376_s18  }
   0x4   : > { %p25_p0 = scmp.ge.s32.totalorder %s24_s23, 2  ;;  %p93_p1 = scmp.ne.s32.totalorder %s1908_s19, %s1904_s18 }
   0x5   : > { %p94_p2 = scmp.eq.s32.totalorder %s1920_s22, 0  ;;  %p177_p4 = scmp.eq.s32.totalorder %s1576_s24, 1 }
   0x6   : > { %s2381_s23 = smov (%p25_p0, %s24_s23), 0  ;;  %s86_s27 = sadd.s32 1, %s1908_s19 }
   0x7   : > { %p1985_p3 = por %p94_p2, %p93_p1  ;;  %s83_s26 = ssub.s32 %s1916_s21, %s2381_s23 }
   0x8   : > { %p84_p5 = scmp.eq.s32.totalorder %s83_s26, 0  ;;  %p1992_p6 = por %p177_p4, %p93_p1 }
   0x9   : > { %p1581_p7 = scmp.ge.s32.totalorder %s1920_s22, 2 }
   0xa   : > { %s1997_s29 = scalar_select %p84_p5, %s1908_s19, %s86_s27  }
   0xb   : > { %217 = sbr.rel (%p1581_p7) target bundleno = 58 (0x3a), region = 24 }
  0x12   : > { %220 = sbr.rel (!%p1985_p3) target bundleno = 38 (0x26), region = 28  ;;  %s222_s30 = sand.u32 (%p1985_p3), 1, %s1908_s19  }
  0x13   : > { %s1686_s6 = sshll.u32 (%p1985_p3), %s1916_s21, 4  ;;  %s1582_s7 = sshll.u32 (%p1985_p3), %s222_s30, 8 }
  0x14   : > { %s2007_s10 = scalar_lea.vmem (%p1985_p3), %s2370_s2, %s1686_s6  ;;  %s2012_s11 = scalar_lea.vmem (%p1985_p3), [#allocation2], %s1582_s7 }
  0x15   : > { %v240_v0 = vld [vmem:[%s2007_s10] sm:$0xff] (%p1985_p3)  ;;  %v242_v1 = vld [vmem:[%s2007_s10 + $0x8] sm:$0xff] (%p1985_p3) }
  0x16   : > { %v244_v2 = vld [vmem:[%s2007_s10 + $0x20] sm:$0xff] (%p1985_p3)  ;;  %241 = vst [vmem:[%s2012_s11] sm:$0xff] (%p1985_p3), %v240_v0  ;;  %243 = vst [vmem:[%s2012_s11 + $0x8] sm:$0xff] (%p1985_p3), %v242_v1  ;;  %v246_v3 = vld [vmem:[%s2007_s10 + $0x28] sm:$0xff] (%p1985_p3) }
  0x17   : > { %245 = vst [vmem:[%s2012_s11 + $0x10] sm:$0xff] (%p1985_p3), %v244_v2  ;;  %v248_v4 = vld [vmem:[%s2007_s10 + $0x40] sm:$0xff] (%p1985_p3)  ;;  %v250_v5 = vld [vmem:[%s2007_s10 + $0x48] sm:$0xff] (%p1985_p3)  ;;  %247 = vst [vmem:[%s2012_s11 + $0x18] sm:$0xff] (%p1985_p3), %v246_v3 }
  0x18   : > { %249 = vst [vmem:[%s2012_s11 + $0x20] sm:$0xff] (%p1985_p3), %v248_v4  ;;  %251 = vst [vmem:[%s2012_s11 + $0x28] sm:$0xff] (%p1985_p3), %v250_v5  ;;  %v252_v6 = vld [vmem:[%s2007_s10 + $0x60] sm:$0xff] (%p1985_p3)  ;;  %v254_v7 = vld [vmem:[%s2007_s10 + $0x68] sm:$0xff] (%p1985_p3) }
  0x19   : > { %v256_v8 = vld [vmem:[%s2007_s10 + $0x80] sm:$0xff]  ;;  %253 = vst [vmem:[%s2012_s11 + $0x30] sm:$0xff] %v252_v6  ;;  %255 = vst [vmem:[%s2012_s11 + $0x38] sm:$0xff] %v254_v7  ;;  %v258_v9 = vld [vmem:[%s2007_s10 + $0x88] sm:$0xff] }
  0x1a   : > { %257 = vst [vmem:[%s2012_s11 + $0x40] sm:$0xff] %v256_v8  ;;  %v260_v10 = vld [vmem:[%s2007_s10 + $0xa0] sm:$0xff]  ;;  %v262_v11 = vld [vmem:[%s2007_s10 + $0xa8] sm:$0xff]  ;;  %259 = vst [vmem:[%s2012_s11 + $0x48] sm:$0xff] %v258_v9 }
  0x1b   : > { %261 = vst [vmem:[%s2012_s11 + $0x50] sm:$0xff] %v260_v10  ;;  %263 = vst [vmem:[%s2012_s11 + $0x58] sm:$0xff] %v262_v11  ;;  %v264_v12 = vld [vmem:[%s2007_s10 + $0xc0] sm:$0xff]  ;;  %v266_v13 = vld [vmem:[%s2007_s10 + $0xc8] sm:$0xff] }
  0x1c   : > { %v268_v14 = vld [vmem:[%s2007_s10 + $0xe0] sm:$0xff]  ;;  %265 = vst [vmem:[%s2012_s11 + $0x60] sm:$0xff] %v264_v12  ;;  %267 = vst [vmem:[%s2012_s11 + $0x68] sm:$0xff] %v266_v13  ;;  %v270_v15 = vld [vmem:[%s2007_s10 + $0xe8] sm:$0xff] }
  0x1d   : > { %269 = vst [vmem:[%s2012_s11 + $0x70] sm:$0xff] %v268_v14  ;;  %v272_v16 = vld [vmem:[%s2007_s10 + $0x100] sm:$0xff]  ;;  %v274_v17 = vld [vmem:[%s2007_s10 + $0x108] sm:$0xff]  ;;  %271 = vst [vmem:[%s2012_s11 + $0x78] sm:$0xff] %v270_v15 }
  0x1e   : > { %273 = vst [vmem:[%s2012_s11 + $0x80] sm:$0xff] %v272_v16  ;;  %275 = vst [vmem:[%s2012_s11 + $0x88] sm:$0xff] %v274_v17  ;;  %v276_v18 = vld [vmem:[%s2007_s10 + $0x120] sm:$0xff]  ;;  %v278_v19 = vld [vmem:[%s2007_s10 + $0x128] sm:$0xff] }
  0x1f   : > { %v280_v20 = vld [vmem:[%s2007_s10 + $0x140] sm:$0xff]  ;;  %277 = vst [vmem:[%s2012_s11 + $0x90] sm:$0xff] %v276_v18  ;;  %279 = vst [vmem:[%s2012_s11 + $0x98] sm:$0xff] %v278_v19  ;;  %v282_v21 = vld [vmem:[%s2007_s10 + $0x148] sm:$0xff] }
  0x20   : > { %281 = vst [vmem:[%s2012_s11 + $0xa0] sm:$0xff] %v280_v20  ;;  %v284_v22 = vld [vmem:[%s2007_s10 + $0x160] sm:$0xff]  ;;  %v286_v23 = vld [vmem:[%s2007_s10 + $0x168] sm:$0xff]  ;;  %283 = vst [vmem:[%s2012_s11 + $0xa8] sm:$0xff] %v282_v21 }
  0x21   : > { %285 = vst [vmem:[%s2012_s11 + $0xb0] sm:$0xff] %v284_v22  ;;  %287 = vst [vmem:[%s2012_s11 + $0xb8] sm:$0xff] %v286_v23  ;;  %v288_v24 = vld [vmem:[%s2007_s10 + $0x180] sm:$0xff]  ;;  %v290_v25 = vld [vmem:[%s2007_s10 + $0x188] sm:$0xff] }
  0x22   : > { %v292_v26 = vld [vmem:[%s2007_s10 + $0x1a0] sm:$0xff]  ;;  %289 = vst [vmem:[%s2012_s11 + $0xc0] sm:$0xff] %v288_v24  ;;  %291 = vst [vmem:[%s2012_s11 + $0xc8] sm:$0xff] %v290_v25  ;;  %v294_v27 = vld [vmem:[%s2007_s10 + $0x1a8] sm:$0xff] }
  0x23   : > { %293 = vst [vmem:[%s2012_s11 + $0xd0] sm:$0xff] %v292_v26  ;;  %v296_v28 = vld [vmem:[%s2007_s10 + $0x1c0] sm:$0xff]  ;;  %v298_v29 = vld [vmem:[%s2007_s10 + $0x1c8] sm:$0xff]  ;;  %295 = vst [vmem:[%s2012_s11 + $0xd8] sm:$0xff] %v294_v27 }
  0x24   : > { %297 = vst [vmem:[%s2012_s11 + $0xe0] sm:$0xff] %v296_v28  ;;  %299 = vst [vmem:[%s2012_s11 + $0xe8] sm:$0xff] %v298_v29  ;;  %v300_v30 = vld [vmem:[%s2007_s10 + $0x1e0] sm:$0xff]  ;;  %v302_v31 = vld [vmem:[%s2007_s10 + $0x1e8] sm:$0xff] }
  0x25   : > { %301 = vst [vmem:[%s2012_s11 + $0xf0] sm:$0xff] %v300_v30  ;;  %303 = vst [vmem:[%s2012_s11 + $0xf8] sm:$0xff] %v302_v31 }
  0x26 PF: > { %309 = sbr.rel (!%p1985_p3) target bundleno = 58 (0x3a), region = 51  ;;  %s311_s12 = sand.u32 (%p1985_p3), 1, %s1908_s19  }
  0x27   : > { %s1687_s13 = sshll.u32 (%p1985_p3), %s1916_s21, 4  ;;  %s1585_s14 = sshll.u32 (%p1985_p3), %s311_s12, 8 }
  0x28   : > { %s2082_s17 = scalar_lea.vmem (%p1985_p3), %s2371_s3, %s1687_s13  ;;  %s2087_s24 = scalar_lea.vmem (%p1985_p3), [#allocation3], %s1585_s14 }
  0x29   : > { %v329_v32 = vld [vmem:[%s2082_s17] sm:$0xff] (%p1985_p3)  ;;  %v331_v33 = vld [vmem:[%s2082_s17 + $0x8] sm:$0xff] (%p1985_p3) }
  0x2a   : > { %v333_v34 = vld [vmem:[%s2082_s17 + $0x20] sm:$0xff] (%p1985_p3)  ;;  %330 = vst [vmem:[%s2087_s24] sm:$0xff] (%p1985_p3), %v329_v32  ;;  %332 = vst [vmem:[%s2087_s24 + $0x8] sm:$0xff] (%p1985_p3), %v331_v33  ;;  %v335_v35 = vld [vmem:[%s2082_s17 + $0x28] sm:$0xff] (%p1985_p3) }
  0x2b   : > { %334 = vst [vmem:[%s2087_s24 + $0x10] sm:$0xff] (%p1985_p3), %v333_v34  ;;  %v337_v36 = vld [vmem:[%s2082_s17 + $0x40] sm:$0xff] (%p1985_p3)  ;;  %v339_v37 = vld [vmem:[%s2082_s17 + $0x48] sm:$0xff] (%p1985_p3)  ;;  %336 = vst [vmem:[%s2087_s24 + $0x18] sm:$0xff] (%p1985_p3), %v335_v35 }
  0x2c   : > { %338 = vst [vmem:[%s2087_s24 + $0x20] sm:$0xff] (%p1985_p3), %v337_v36  ;;  %340 = vst [vmem:[%s2087_s24 + $0x28] sm:$0xff] (%p1985_p3), %v339_v37  ;;  %v341_v38 = vld [vmem:[%s2082_s17 + $0x60] sm:$0xff] (%p1985_p3)  ;;  %v343_v39 = vld [vmem:[%s2082_s17 + $0x68] sm:$0xff] (%p1985_p3) }
  0x2d   : > { %v345_v40 = vld [vmem:[%s2082_s17 + $0x80] sm:$0xff]  ;;  %342 = vst [vmem:[%s2087_s24 + $0x30] sm:$0xff] %v341_v38  ;;  %344 = vst [vmem:[%s2087_s24 + $0x38] sm:$0xff] %v343_v39  ;;  %v347_v41 = vld [vmem:[%s2082_s17 + $0x88] sm:$0xff] }
  0x2e   : > { %346 = vst [vmem:[%s2087_s24 + $0x40] sm:$0xff] %v345_v40  ;;  %v349_v42 = vld [vmem:[%s2082_s17 + $0xa0] sm:$0xff]  ;;  %v351_v43 = vld [vmem:[%s2082_s17 + $0xa8] sm:$0xff]  ;;  %348 = vst [vmem:[%s2087_s24 + $0x48] sm:$0xff] %v347_v41 }
  0x2f   : > { %350 = vst [vmem:[%s2087_s24 + $0x50] sm:$0xff] %v349_v42  ;;  %352 = vst [vmem:[%s2087_s24 + $0x58] sm:$0xff] %v351_v43  ;;  %v353_v44 = vld [vmem:[%s2082_s17 + $0xc0] sm:$0xff]  ;;  %v355_v45 = vld [vmem:[%s2082_s17 + $0xc8] sm:$0xff] }
  0x30   : > { %v357_v46 = vld [vmem:[%s2082_s17 + $0xe0] sm:$0xff]  ;;  %354 = vst [vmem:[%s2087_s24 + $0x60] sm:$0xff] %v353_v44  ;;  %356 = vst [vmem:[%s2087_s24 + $0x68] sm:$0xff] %v355_v45  ;;  %v359_v47 = vld [vmem:[%s2082_s17 + $0xe8] sm:$0xff] }
  0x31   : > { %358 = vst [vmem:[%s2087_s24 + $0x70] sm:$0xff] %v357_v46  ;;  %v361_v48 = vld [vmem:[%s2082_s17 + $0x100] sm:$0xff]  ;;  %v363_v49 = vld [vmem:[%s2082_s17 + $0x108] sm:$0xff]  ;;  %360 = vst [vmem:[%s2087_s24 + $0x78] sm:$0xff] %v359_v47 }
  0x32   : > { %362 = vst [vmem:[%s2087_s24 + $0x80] sm:$0xff] %v361_v48  ;;  %364 = vst [vmem:[%s2087_s24 + $0x88] sm:$0xff] %v363_v49  ;;  %v365_v50 = vld [vmem:[%s2082_s17 + $0x120] sm:$0xff]  ;;  %v367_v51 = vld [vmem:[%s2082_s17 + $0x128] sm:$0xff] }
  0x33   : > { %v369_v52 = vld [vmem:[%s2082_s17 + $0x140] sm:$0xff]  ;;  %366 = vst [vmem:[%s2087_s24 + $0x90] sm:$0xff] %v365_v50  ;;  %368 = vst [vmem:[%s2087_s24 + $0x98] sm:$0xff] %v367_v51  ;;  %v371_v53 = vld [vmem:[%s2082_s17 + $0x148] sm:$0xff] }
  0x34   : > { %370 = vst [vmem:[%s2087_s24 + $0xa0] sm:$0xff] %v369_v52  ;;  %v373_v54 = vld [vmem:[%s2082_s17 + $0x160] sm:$0xff]  ;;  %v375_v55 = vld [vmem:[%s2082_s17 + $0x168] sm:$0xff]  ;;  %372 = vst [vmem:[%s2087_s24 + $0xa8] sm:$0xff] %v371_v53 }
  0x35   : > { %374 = vst [vmem:[%s2087_s24 + $0xb0] sm:$0xff] %v373_v54  ;;  %376 = vst [vmem:[%s2087_s24 + $0xb8] sm:$0xff] %v375_v55  ;;  %v377_v56 = vld [vmem:[%s2082_s17 + $0x180] sm:$0xff]  ;;  %v379_v57 = vld [vmem:[%s2082_s17 + $0x188] sm:$0xff] }
  0x36   : > { %v381_v58 = vld [vmem:[%s2082_s17 + $0x1a0] sm:$0xff]  ;;  %378 = vst [vmem:[%s2087_s24 + $0xc0] sm:$0xff] %v377_v56  ;;  %380 = vst [vmem:[%s2087_s24 + $0xc8] sm:$0xff] %v379_v57  ;;  %v383_v59 = vld [vmem:[%s2082_s17 + $0x1a8] sm:$0xff] }
  0x37   : > { %382 = vst [vmem:[%s2087_s24 + $0xd0] sm:$0xff] %v381_v58  ;;  %v385_v60 = vld [vmem:[%s2082_s17 + $0x1c0] sm:$0xff]  ;;  %v387_v61 = vld [vmem:[%s2082_s17 + $0x1c8] sm:$0xff]  ;;  %384 = vst [vmem:[%s2087_s24 + $0xd8] sm:$0xff] %v383_v59 }
  0x38   : > { %386 = vst [vmem:[%s2087_s24 + $0xe0] sm:$0xff] %v385_v60  ;;  %388 = vst [vmem:[%s2087_s24 + $0xe8] sm:$0xff] %v387_v61  ;;  %v389_v62 = vld [vmem:[%s2082_s17 + $0x1e0] sm:$0xff]  ;;  %v391_v63 = vld [vmem:[%s2082_s17 + $0x1e8] sm:$0xff] }
  0x39   : > { %390 = vst [vmem:[%s2087_s24 + $0xf0] sm:$0xff] %v389_v62  ;;  %392 = vst [vmem:[%s2087_s24 + $0xf8] sm:$0xff] %v391_v63 }
  0x3a PF: > { %p1588_p8 = scmp.ge.s32.totalorder %s1920_s22, 1  ;;  %p405_p9 = scmp.lt.s32.totalorder %s1920_s22, 3 }
  0x3c   : > { %p406_p10 = pnand %p1588_p8, %p405_p9 }
  0x3d   : > { %s412_s25 = sand.u32 (!%p406_p10), 1, %s1904_s18   ;;  %v1922_v0 = vmov (!%p406_p10), 0   ;;  %v1826_v35 = vld [vmem:[%s2369_s1] sm:$0xff] (!%p406_p10)   ;;  %v1839_v44 = vld [vmem:[%s2369_s1 + $0x8] sm:$0xff] (!%p406_p10)   ;;  %v1852_v53 = vld [vmem:[%s2369_s1 + $0x10] sm:$0xff] (!%p406_p10)   ;;  %s1592_s6 = sshll.u32 (!%p406_p10), %s1912_s20, 2 }
  0x3e   : > { %409 = sbr.rel (%p406_p10) target bundleno = 381 (0x17d), region = 78  ;;  %s2155_s26 = sshll.u32 (!%p406_p10), %s412_s25, 8  ;;  %781 = vmatprep.mubr.bf16.mxu0 (!%p406_p10), %v1922_v0  ;;  %854 = vmatprep.mubr.bf16.mxu1 (!%p406_p10), %v1922_v0  ;;  %v1865_v62 = vld [vmem:[%s2369_s1 + $0x18] sm:$0xff] (!%p406_p10)  }
  0x3f   : > { %s2160_s27 = scalar_lea.vmem (!%p406_p10), [#allocation3], %s2155_s26  ;;  %s2189_s30 = scalar_lea.vmem (!%p406_p10), [#allocation2], %s2155_s26 }
  0x40   : > { %v1778_v1 = vld [vmem:[%s2160_s27 + $0x4] ss:$16 sps:$4 sm:$0xff] (!%p406_p10)   ;;  %v1780_v2 = vld [vmem:[%s2160_s27 + $0xc] ss:$16 sps:$4 sm:$0xff] (!%p406_p10)   ;;  %v1782_v3 = vld [vmem:[%s2160_s27] ss:$16 sps:$4 sm:$0xff] (!%p406_p10)  }
  0x41   : > { %749 = vmatprep.subr.bf16.mxu0 (!%p406_p10), %v1778_v1  ;;  %v1783_v4 = vld [vmem:[%s2160_s27 + $0x8] ss:$16 sps:$4 sm:$0xff] (!%p406_p10)   ;;  %822 = vmatprep.subr.bf16.mxu1 (!%p406_p10), %v1780_v2  ;;  %v1784_v5 = vld [vmem:[%s2160_s27 + $0x24] ss:$16 sps:$4 sm:$0xff] (!%p406_p10)   ;;  %v1786_v6 = vld [vmem:[%s2160_s27 + $0x2c] ss:$16 sps:$4 sm:$0xff] (!%p406_p10)  }
  0x42   : > { %750 = vmatpush1.bf16.msra.mxu0 (!%p406_p10), %v1782_v3  ;;  %823 = vmatpush1.bf16.msra.mxu1 (!%p406_p10), %v1783_v4  ;;  %v1788_v7 = vld [vmem:[%s2160_s27 + $0x20] ss:$16 sps:$4 sm:$0xff] (!%p406_p10)   ;;  %v1789_v8 = vld [vmem:[%s2160_s27 + $0x28] ss:$16 sps:$4 sm:$0xff] (!%p406_p10)   ;;  %v1790_v9 = vld [vmem:[%s2160_s27 + $0x44] ss:$16 sps:$4 sm:$0xff] (!%p406_p10)  }
  0x43   : > { %751 = vmatprep.subr.bf16.mxu0 (!%p406_p10), %v1784_v5  ;;  %824 = vmatprep.subr.bf16.mxu1 (!%p406_p10), %v1786_v6  ;;  %v1792_v10 = vld [vmem:[%s2160_s27 + $0x4c] ss:$16 sps:$4 sm:$0xff] (!%p406_p10)   ;;  %v1794_v11 = vld [vmem:[%s2160_s27 + $0x40] ss:$16 sps:$4 sm:$0xff] (!%p406_p10)   ;;  %v1795_v12 = vld [vmem:[%s2160_s27 + $0x48] ss:$16 sps:$4 sm:$0xff] (!%p406_p10)  }
  0x44   : > { %v1796_v13 = vld [vmem:[%s2160_s27 + $0x64] ss:$16 sps:$4 sm:$0xff] (!%p406_p10)   ;;  %v1798_v14 = vld [vmem:[%s2160_s27 + $0x6c] ss:$16 sps:$4 sm:$0xff] (!%p406_p10)   ;;  %v1800_v15 = vld [vmem:[%s2160_s27 + $0x60] ss:$16 sps:$4 sm:$0xff] (!%p406_p10)  }
  0x45   : > { %v1801_v16 = vld [vmem:[%s2160_s27 + $0x68] ss:$16 sps:$4 sm:$0xff]   ;;  %v1802_v17 = vld [vmem:[%s2160_s27 + $0x84] ss:$16 sps:$4 sm:$0xff]   ;;  %v1804_v18 = vld [vmem:[%s2160_s27 + $0x8c] ss:$16 sps:$4 sm:$0xff]  }
  0x46   : > { %752 = vmatpush1.bf16.msra.mxu0 %v1788_v7  ;;  %825 = vmatpush1.bf16.msra.mxu1 %v1789_v8  ;;  %v1806_v19 = vld [vmem:[%s2160_s27 + $0x80] ss:$16 sps:$4 sm:$0xff]   ;;  %v1807_v20 = vld [vmem:[%s2160_s27 + $0x88] ss:$16 sps:$4 sm:$0xff]   ;;  %v1808_v21 = vld [vmem:[%s2160_s27 + $0xa4] ss:$16 sps:$4 sm:$0xff]  }
  0x47   : > { %753 = vmatprep.subr.bf16.mxu0 %v1790_v9  ;;  %826 = vmatprep.subr.bf16.mxu1 %v1792_v10  ;;  %v1810_v22 = vld [vmem:[%s2160_s27 + $0xac] ss:$16 sps:$4 sm:$0xff]   ;;  %v1812_v23 = vld [vmem:[%s2160_s27 + $0xa0] ss:$16 sps:$4 sm:$0xff]   ;;  %v1813_v24 = vld [vmem:[%s2160_s27 + $0xa8] ss:$16 sps:$4 sm:$0xff]   ;;  %v1227_v10 = vlaneseq }
  0x48   : > { %v1814_v25 = vld [vmem:[%s2160_s27 + $0xc4] ss:$16 sps:$4 sm:$0xff]   ;;  %v1816_v26 = vld [vmem:[%s2160_s27 + $0xcc] ss:$16 sps:$4 sm:$0xff]   ;;  %v1818_v27 = vld [vmem:[%s2160_s27 + $0xc0] ss:$16 sps:$4 sm:$0xff]  }
  0x49   : > { %v1819_v28 = vld [vmem:[%s2160_s27 + $0xc8] ss:$16 sps:$4 sm:$0xff]   ;;  %v1820_v29 = vld [vmem:[%s2160_s27 + $0xe4] ss:$16 sps:$4 sm:$0xff]   ;;  %v1822_v30 = vld [vmem:[%s2160_s27 + $0xec] ss:$16 sps:$4 sm:$0xff]  }
  0x4a   : > { %754 = vmatpush1.bf16.msra.mxu0 %v1794_v11  ;;  %827 = vmatpush1.bf16.msra.mxu1 %v1795_v12  ;;  %v1824_v31 = vld [vmem:[%s2160_s27 + $0xe0] ss:$16 sps:$4 sm:$0xff]   ;;  %v1825_v32 = vld [vmem:[%s2160_s27 + $0xe8] ss:$16 sps:$4 sm:$0xff]   ;;  %v1829_v33 = vld [vmem:[%s2189_s30 + $0x4] ss:$16 sps:$4 sm:$0xff]  }
  0x4b   : > { %755 = vmatprep.subr.bf16.mxu0 %v1796_v13  ;;  %828 = vmatprep.subr.bf16.mxu1 %v1798_v14  ;;  %v1832_v34 = vld [vmem:[%s2189_s30 + $0xc] ss:$16 sps:$4 sm:$0xff]   ;;  %v1827_v36 = vld [vmem:[%s2189_s30] ss:$16 sps:$4 sm:$0xff]   ;;  %v1830_v37 = vld [vmem:[%s2189_s30 + $0x8] ss:$16 sps:$4 sm:$0xff]  }
  0x4c   : > { %v1835_v38 = vld [vmem:[%s2189_s30 + $0x24] ss:$16 sps:$4 sm:$0xff]   ;;  %v1838_v39 = vld [vmem:[%s2189_s30 + $0x2c] ss:$16 sps:$4 sm:$0xff]   ;;  %v1833_v40 = vld [vmem:[%s2189_s30 + $0x20] ss:$16 sps:$4 sm:$0xff]  }
  0x4d   : > { %v1836_v41 = vld [vmem:[%s2189_s30 + $0x28] ss:$16 sps:$4 sm:$0xff]   ;;  %v1842_v42 = vld [vmem:[%s2189_s30 + $0x44] ss:$16 sps:$4 sm:$0xff]   ;;  %v1845_v43 = vld [vmem:[%s2189_s30 + $0x4c] ss:$16 sps:$4 sm:$0xff]  }
  0x4e   : > { %756 = vmatpush1.bf16.msra.mxu0 %v1800_v15  ;;  %829 = vmatpush1.bf16.msra.mxu1 %v1801_v16  ;;  %v1840_v45 = vld [vmem:[%s2189_s30 + $0x40] ss:$16 sps:$4 sm:$0xff]   ;;  %v1843_v46 = vld [vmem:[%s2189_s30 + $0x48] ss:$16 sps:$4 sm:$0xff]   ;;  %v1848_v47 = vld [vmem:[%s2189_s30 + $0x64] ss:$16 sps:$4 sm:$0xff]  }
  0x4f   : > { %757 = vmatprep.subr.bf16.mxu0 %v1802_v17  ;;  %830 = vmatprep.subr.bf16.mxu1 %v1804_v18  ;;  %v1851_v48 = vld [vmem:[%s2189_s30 + $0x6c] ss:$16 sps:$4 sm:$0xff]   ;;  %v1846_v49 = vld [vmem:[%s2189_s30 + $0x60] ss:$16 sps:$4 sm:$0xff]   ;;  %v1849_v50 = vld [vmem:[%s2189_s30 + $0x68] ss:$16 sps:$4 sm:$0xff]  }
  0x50   : > { %v1855_v51 = vld [vmem:[%s2189_s30 + $0x84] ss:$16 sps:$4 sm:$0xff]   ;;  %v1858_v52 = vld [vmem:[%s2189_s30 + $0x8c] ss:$16 sps:$4 sm:$0xff]   ;;  %v1853_v54 = vld [vmem:[%s2189_s30 + $0x80] ss:$16 sps:$4 sm:$0xff]  }
  0x51   : > { %v1856_v55 = vld [vmem:[%s2189_s30 + $0x88] ss:$16 sps:$4 sm:$0xff]   ;;  %v1861_v56 = vld [vmem:[%s2189_s30 + $0xa4] ss:$16 sps:$4 sm:$0xff]   ;;  %v1864_v57 = vld [vmem:[%s2189_s30 + $0xac] ss:$16 sps:$4 sm:$0xff]  }
  0x52   : > { %758 = vmatpush1.bf16.msra.mxu0 %v1806_v19  ;;  %831 = vmatpush1.bf16.msra.mxu1 %v1807_v20  ;;  %v1859_v58 = vld [vmem:[%s2189_s30 + $0xa0] ss:$16 sps:$4 sm:$0xff]   ;;  %v1862_v59 = vld [vmem:[%s2189_s30 + $0xa8] ss:$16 sps:$4 sm:$0xff]   ;;  %v1868_v60 = vld [vmem:[%s2189_s30 + $0xc4] ss:$16 sps:$4 sm:$0xff]  }
  0x53   : > { %759 = vmatprep.subr.bf16.mxu0 %v1808_v21  ;;  %832 = vmatprep.subr.bf16.mxu1 %v1810_v22  ;;  %v1871_v61 = vld [vmem:[%s2189_s30 + $0xcc] ss:$16 sps:$4 sm:$0xff]   ;;  %v1866_v63 = vld [vmem:[%s2189_s30 + $0xc0] ss:$16 sps:$4 sm:$0xff]   ;;  %v1869_v1 = vld [vmem:[%s2189_s30 + $0xc8] ss:$16 sps:$4 sm:$0xff]  }
  0x54   : > { %v1874_v2 = vld [vmem:[%s2189_s30 + $0xe4] ss:$16 sps:$4 sm:$0xff]   ;;  %v1877_v3 = vld [vmem:[%s2189_s30 + $0xec] ss:$16 sps:$4 sm:$0xff]   ;;  %v1872_v4 = vld [vmem:[%s2189_s30 + $0xe0] ss:$16 sps:$4 sm:$0xff]  }
  0x55   : > { %v1875_v5 = vld [vmem:[%s2189_s30 + $0xe8] ss:$16 sps:$4 sm:$0xff]   ;;  %v1878_v6 = vld [vmem:[%s2368_s0] sm:$0xff]   ;;  %v1880_v8 = vld [vmem:[%s2368_s0 + $0x10] sm:$0xff]   ;;  %p478_p11 = scmp.lt.s32.totalorder %s1592_s6, 7  ;;  %v1228_v11 = vshrl.u32 %v1227_v10, 7 }
  0x56   : > { %760 = vmatpush1.bf16.msra.mxu0 %v1812_v23  ;;  %833 = vmatpush1.bf16.msra.mxu1 %v1813_v24  ;;  %v1879_v7 = vld [vmem:[%s2368_s0 + $0x8] sm:$0xff]   ;;  %v1881_v9 = vld [vmem:[%s2368_s0 + $0x18] sm:$0xff]   ;;  %s1591_s10 = sshll.u32 %s412_s25, 7  ;;  %s1704_s25 = sshll.u32 (%p1992_p6), %s1912_s20, 4 }
  0x57   : > { %761 = vmatprep.subr.bf16.mxu0 %v1814_v25  ;;  %834 = vmatprep.subr.bf16.mxu1 %v1816_v26  ;;  %s2383_s6 = smov (!%p478_p11, %s1592_s6), 7  ;;  %v1229_v12 = vsub.s32 0, %v1228_v11  ;;  %v1237_v13 = vsub.s32 2, %v1228_v11  ;;  %v1241_v15 = vsub.s32 3, %v1228_v11  ;;  %s2289_s18 = scalar_lea.vmem [#allocation4], %s1591_s10 }
  0x58   : > { %s480_s9 = scalar_lea.vmem %s2372_s4, %s2383_s6  ;;  %s1403_s13 = scalar_lea.vmem (%p1992_p6), %s2373_s5, %s1704_s25 }
  0x59   : > { %v1225_v14 = vld [vmem:[%s480_s9] sm:$0xf] }
  0x5a   : > { %762 = vmatpush1.bf16.msra.mxu0 %v1818_v27  ;;  %835 = vmatpush1.bf16.msra.mxu1 %v1819_v28  ;;  %v2271_v16 = vrot.slane %v1225_v14, %v1229_v12  ;;  %v2273_v17 = vrot.slane %v1225_v14, %v1237_v13  ;;  %v2277_v19 = vrot.slane %v1225_v14, %v1241_v15 }
  0x5b   : > { %763 = vmatprep.subr.bf16.mxu0 %v1820_v29  ;;  %836 = vmatprep.subr.bf16.mxu1 %v1822_v30 }
  0x5e   : > { %764 = vmatpush1.bf16.msra.mxu0 %v1824_v31  ;;  %837 = vmatpush1.bf16.msra.mxu1 %v1825_v32 }
  0x5f   : > { %1079 = vmatprep.subr.bf16.mxu0 %v1829_v33  ;;  %1152 = vmatprep.subr.bf16.mxu1 %v1832_v34 }
  0x61   : > { %782 = vmatmul.mubr.bf16.vlgmr.msra.gmra.mrb[0].mxu0 %v1826_v35  ;;  %855 = vmatmul.mubr.bf16.vlgmr.msra.gmra.mrb[0].mxu1 %v1826_v35 }
  0x62   : > { %1080 = vmatpush1.bf16.msra.mxu0 %v1827_v36  ;;  %1153 = vmatpush1.bf16.msra.mxu1 %v1830_v37 }
  0x63   : > { %1081 = vmatprep.subr.bf16.mxu0 %v1835_v38  ;;  %1154 = vmatprep.subr.bf16.mxu1 %v1838_v39 }
  0x64   : > { %791 = vmatprep.mubr.bf16.mxu0 %v1922_v0  ;;  %864 = vmatprep.mubr.bf16.mxu1 %v1922_v0 }
  0x66   : > { %1082 = vmatpush1.bf16.msra.mxu0 %v1833_v40  ;;  %1155 = vmatpush1.bf16.msra.mxu1 %v1836_v41 }
  0x67   : > { %1083 = vmatprep.subr.bf16.mxu0 %v1842_v42  ;;  %1156 = vmatprep.subr.bf16.mxu1 %v1845_v43 }
  0x69   : > { %792 = vmatmul.mubr.bf16.gmra.mrb[4].mxu0 %v1839_v44  ;;  %865 = vmatmul.mubr.bf16.gmra.mrb[4].mxu1 %v1839_v44 }
  0x6a   : > { %1084 = vmatpush1.bf16.msra.mxu0 %v1840_v45  ;;  %1157 = vmatpush1.bf16.msra.mxu1 %v1843_v46 }
  0x6b   : > { %1085 = vmatprep.subr.bf16.mxu0 %v1848_v47  ;;  %1158 = vmatprep.subr.bf16.mxu1 %v1851_v48 }
  0x6c   : > { %801 = vmatprep.mubr.bf16.mxu0 %v1922_v0  ;;  %874 = vmatprep.mubr.bf16.mxu1 %v1922_v0 }
  0x6e   : > { %1086 = vmatpush1.bf16.msra.mxu0 %v1846_v49  ;;  %1159 = vmatpush1.bf16.msra.mxu1 %v1849_v50 }
  0x6f   : > { %1087 = vmatprep.subr.bf16.mxu0 %v1855_v51  ;;  %1160 = vmatprep.subr.bf16.mxu1 %v1858_v52 }
  0x71   : > { %802 = vmatmul.mubr.bf16.gmra.mrb[8].mxu0 %v1852_v53  ;;  %875 = vmatmul.mubr.bf16.gmra.mrb[8].mxu1 %v1852_v53 }
  0x72   : > { %1088 = vmatpush1.bf16.msra.mxu0 %v1853_v54  ;;  %1161 = vmatpush1.bf16.msra.mxu1 %v1856_v55 }
  0x73   : > { %1089 = vmatprep.subr.bf16.mxu0 %v1861_v56  ;;  %1162 = vmatprep.subr.bf16.mxu1 %v1864_v57 }
  0x74   : > { %811 = vmatprep.mubr.bf16.mxu0 %v1922_v0  ;;  %884 = vmatprep.mubr.bf16.mxu1 %v1922_v0 }
  0x76   : > { %1090 = vmatpush1.bf16.msra.mxu0 %v1859_v58  ;;  %1163 = vmatpush1.bf16.msra.mxu1 %v1862_v59 }
  0x77   : > { %1091 = vmatprep.subr.bf16.mxu0 %v1868_v60  ;;  %1164 = vmatprep.subr.bf16.mxu1 %v1871_v61 }
  0x79   : > { %812 = vmatmul.mubr.bf16.gmra.mrb[12].mxu0 %v1865_v62  ;;  %885 = vmatmul.mubr.bf16.gmra.mrb[12].mxu1 %v1865_v62 }
  0x7a   : > { %1092 = vmatpush1.bf16.msra.mxu0 %v1866_v63  ;;  %1165 = vmatpush1.bf16.msra.mxu1 %v1869_v1 }
  0x7b   : > { %1093 = vmatprep.subr.bf16.mxu0 %v1874_v2  ;;  %1166 = vmatprep.subr.bf16.mxu1 %v1877_v3 }
  0x7c   : > { %1111 = vmatprep.mubr.bf16.mxu0 %v1922_v0  ;;  %1184 = vmatprep.mubr.bf16.mxu1 %v1922_v0 }
  0x7e   : > { %1094 = vmatpush1.bf16.msra.mxu0 %v1872_v4  ;;  %1167 = vmatpush1.bf16.msra.mxu1 %v1875_v5 }
  0x81   : > { %1112 = vmatmul.mubr.bf16.vlgmr.msra.gmra.mrb[0].mxu0 %v1878_v6  ;;  %1185 = vmatmul.mubr.bf16.vlgmr.msra.gmra.mrb[0].mxu1 %v1878_v6 }
  0x82   : > { %1121 = vmatprep.mubr.bf16.mxu0 %v1922_v0  ;;  %1194 = vmatprep.mubr.bf16.mxu1 %v1922_v0 }
  0x89   : > { %1122 = vmatmul.mubr.bf16.gmra.mrb[4].mxu0 %v1879_v7  ;;  %1195 = vmatmul.mubr.bf16.gmra.mrb[4].mxu1 %v1879_v7 }
  0x8a   : > { %1131 = vmatprep.mubr.bf16.mxu0 %v1922_v0  ;;  %1204 = vmatprep.mubr.bf16.mxu1 %v1922_v0 }
  0x91   : > { %1132 = vmatmul.mubr.bf16.gmra.mrb[8].mxu0 %v1880_v8  ;;  %1205 = vmatmul.mubr.bf16.gmra.mrb[8].mxu1 %v1880_v8 }
  0x92   : > { %1141 = vmatprep.mubr.bf16.mxu0 %v1922_v0  ;;  %1214 = vmatprep.mubr.bf16.mxu1 %v1922_v0  ;;  %v1233_v0 = vsub.s32 1, %v1228_v11 }
  0x94   : > { %v2275_v18 = vrot.slane %v1225_v14, %v1233_v0 }
  0x99   : > { %1142 = vmatmul.mubr.bf16.gmra.mrb[12].mxu0 %v1881_v9  ;;  %1215 = vmatmul.mubr.bf16.gmra.mrb[12].mxu1 %v1881_v9 }
 0x154   : > { %v1113_v20 = vpop.f32.mrb[0].mxu0  ;;  %v1186_v21 = vpop.f32.mrb[0].mxu1 }
 0x155   : > { %v1247_v22 = vadd.f32 %v2271_v16, %v1113_v20  ;;  %v1249_v23 = vadd.f32 %v2273_v17, %v1186_v21  ;;  %v1115_v24 = vpop.f32.mrb[1].mxu0  ;;  %v1188_v25 = vpop.f32.mrb[1].mxu1 }
 0x156   : > { %v1248_v26 = vadd.f32 %v2275_v18, %v1115_v24  ;;  %v1250_v27 = vadd.f32 %v2277_v19, %v1188_v25  ;;  %v1117_v28 = vpop.f32.mrb[2].mxu0  ;;  %v1190_v29 = vpop.f32.mrb[2].mxu1 }
 0x157   : > { %v1251_v30 = vadd.f32 %v2271_v16, %v1117_v28  ;;  %v1253_v31 = vadd.f32 %v2273_v17, %v1190_v29  ;;  %v1119_v32 = vpop.f32.mrb[3].mxu0  ;;  %v1192_v33 = vpop.f32.mrb[3].mxu1 }
 0x158   : > { %v1688_v34 = vpack.c.bf16 %v1248_v26, %v1247_v22  ;;  %v1689_v35 = vpack.c.bf16 %v1250_v27, %v1249_v23  ;;  %v1252_v36 = vadd.f32 %v2275_v18, %v1119_v32  ;;  %v1254_v37 = vadd.f32 %v2277_v19, %v1192_v33 }
 0x15a   : > { %1375 = vst [vmem:[%s2289_s18] sm:$0xff] %v1688_v34  ;;  %1376 = vst [vmem:[%s2289_s18 + $0x8] sm:$0xff] %v1689_v35  ;;  %v1690_v38 = vpack.c.bf16 %v1252_v36, %v1251_v30  ;;  %v1691_v39 = vpack.c.bf16 %v1254_v37, %v1253_v31 }
 0x15c   : > { %1377 = vst [vmem:[%s2289_s18 + $0x10] sm:$0xff] %v1690_v38  ;;  %1378 = vst [vmem:[%s2289_s18 + $0x18] sm:$0xff] %v1691_v39  ;;  %v1123_v40 = vpop.f32.mrb[4].mxu0  ;;  %v1196_v41 = vpop.f32.mrb[4].mxu1 }
 0x15d   : > { %v1255_v42 = vadd.f32 %v2271_v16, %v1123_v40  ;;  %v1257_v43 = vadd.f32 %v2273_v17, %v1196_v41  ;;  %v1125_v44 = vpop.f32.mrb[5].mxu0  ;;  %v1198_v45 = vpop.f32.mrb[5].mxu1 }
 0x15e   : > { %v1256_v46 = vadd.f32 %v2275_v18, %v1125_v44  ;;  %v1258_v47 = vadd.f32 %v2277_v19, %v1198_v45  ;;  %v1127_v48 = vpop.f32.mrb[6].mxu0  ;;  %v1200_v49 = vpop.f32.mrb[6].mxu1 }
 0x15f   : > { %v1259_v50 = vadd.f32 %v2271_v16, %v1127_v48  ;;  %v1261_v51 = vadd.f32 %v2273_v17, %v1200_v49  ;;  %v1129_v52 = vpop.f32.mrb[7].mxu0  ;;  %v1202_v53 = vpop.f32.mrb[7].mxu1 }
 0x160   : > { %v1692_v54 = vpack.c.bf16 %v1256_v46, %v1255_v42  ;;  %v1693_v55 = vpack.c.bf16 %v1258_v47, %v1257_v43  ;;  %v1260_v56 = vadd.f32 %v2275_v18, %v1129_v52  ;;  %v1262_v57 = vadd.f32 %v2277_v19, %v1202_v53 }
 0x162   : > { %1379 = vst [vmem:[%s2289_s18 + $0x20] sm:$0xff] %v1692_v54  ;;  %1380 = vst [vmem:[%s2289_s18 + $0x28] sm:$0xff] %v1693_v55  ;;  %v1694_v58 = vpack.c.bf16 %v1260_v56, %v1259_v50  ;;  %v1695_v59 = vpack.c.bf16 %v1262_v57, %v1261_v51 }
 0x164   : > { %1381 = vst [vmem:[%s2289_s18 + $0x30] sm:$0xff] %v1694_v58  ;;  %1382 = vst [vmem:[%s2289_s18 + $0x38] sm:$0xff] %v1695_v59  ;;  %v1133_v60 = vpop.f32.mrb[8].mxu0  ;;  %v1206_v61 = vpop.f32.mrb[8].mxu1 }
 0x165   : > { %v1263_v62 = vadd.f32 %v2271_v16, %v1133_v60  ;;  %v1265_v63 = vadd.f32 %v2273_v17, %v1206_v61  ;;  %v1135_v1 = vpop.f32.mrb[9].mxu0  ;;  %v1208_v2 = vpop.f32.mrb[9].mxu1 }
 0x166   : > { %v1264_v3 = vadd.f32 %v2275_v18, %v1135_v1  ;;  %v1266_v4 = vadd.f32 %v2277_v19, %v1208_v2  ;;  %v1137_v5 = vpop.f32.mrb[10].mxu0  ;;  %v1210_v6 = vpop.f32.mrb[10].mxu1 }
 0x167   : > { %v1267_v7 = vadd.f32 %v2271_v16, %v1137_v5  ;;  %v1269_v8 = vadd.f32 %v2273_v17, %v1210_v6  ;;  %v1139_v9 = vpop.f32.mrb[11].mxu0  ;;  %v1212_v10 = vpop.f32.mrb[11].mxu1 }
 0x168   : > { %v1696_v11 = vpack.c.bf16 %v1264_v3, %v1263_v62  ;;  %v1697_v12 = vpack.c.bf16 %v1266_v4, %v1265_v63  ;;  %v1268_v13 = vadd.f32 %v2275_v18, %v1139_v9  ;;  %v1270_v14 = vadd.f32 %v2277_v19, %v1212_v10 }
 0x169   : > { %v1424_v40 = vld [vmem:[%s2289_s18 + $0x20] sm:$0xff] (%p1992_p6)  ;;  %v1426_v41 = vld [vmem:[%s2289_s18 + $0x28] sm:$0xff] (%p1992_p6) }
 0x16a   : > { %1383 = vst [vmem:[%s2289_s18 + $0x40] sm:$0xff] %v1696_v11  ;;  %1384 = vst [vmem:[%s2289_s18 + $0x48] sm:$0xff] %v1697_v12  ;;  %v1698_v0 = vpack.c.bf16 %v1268_v13, %v1267_v7  ;;  %v1699_v15 = vpack.c.bf16 %v1270_v14, %v1269_v8 }
 0x16b   : > { %1425 = vst [vmem:[%s1403_s13 + $0x40] sm:$0xff] (%p1992_p6), %v1424_v40  ;;  %1427 = vst [vmem:[%s1403_s13 + $0x48] sm:$0xff] (%p1992_p6), %v1426_v41  ;;  %v1428_v42 = vld [vmem:[%s2289_s18 + $0x30] sm:$0xff] (%p1992_p6)  ;;  %v1430_v43 = vld [vmem:[%s2289_s18 + $0x38] sm:$0xff] (%p1992_p6) }
 0x16c   : > { %1385 = vst [vmem:[%s2289_s18 + $0x50] sm:$0xff] %v1698_v0  ;;  %1386 = vst [vmem:[%s2289_s18 + $0x58] sm:$0xff] %v1699_v15  ;;  %v1143_v20 = vpop.f32.mrb[12].mxu0  ;;  %v1216_v21 = vpop.f32.mrb[12].mxu1 }
 0x16d   : > { %v1271_v22 = vadd.f32 %v2271_v16, %v1143_v20  ;;  %v1273_v23 = vadd.f32 %v2273_v17, %v1216_v21  ;;  %v1145_v24 = vpop.f32.mrb[13].mxu0  ;;  %v1218_v25 = vpop.f32.mrb[13].mxu1  ;;  %1429 = vst [vmem:[%s1403_s13 + $0x60] sm:$0xff] (%p1992_p6), %v1428_v42  ;;  %1431 = vst [vmem:[%s1403_s13 + $0x68] sm:$0xff] (%p1992_p6), %v1430_v43 }
 0x16e   : > { %v1272_v26 = vadd.f32 %v2275_v18, %v1145_v24  ;;  %v1274_v27 = vadd.f32 %v2277_v19, %v1218_v25  ;;  %v1147_v28 = vpop.f32.mrb[14].mxu0  ;;  %v1220_v29 = vpop.f32.mrb[14].mxu1  ;;  %1397 = sbr.rel (!%p1992_p6) target bundleno = 381 (0x17d), region = 90 }
 0x16f   : > { %v1275_v30 = vadd.f32 %v2271_v16, %v1147_v28  ;;  %v1277_v31 = vadd.f32 %v2273_v17, %v1220_v29  ;;  %v1149_v32 = vpop.f32.mrb[15].mxu0  ;;  %v1222_v33 = vpop.f32.mrb[15].mxu1  ;;  %v1416_v16 = vld [vmem:[%s2289_s18] sm:$0xff] (%p1992_p6)  ;;  %v1418_v17 = vld [vmem:[%s2289_s18 + $0x8] sm:$0xff] (%p1992_p6) }
 0x170   : > { %v1700_v34 = vpack.c.bf16 %v1272_v26, %v1271_v22  ;;  %v1701_v35 = vpack.c.bf16 %v1274_v27, %v1273_v23  ;;  %v1276_v36 = vadd.f32 %v2275_v18, %v1149_v32  ;;  %v1278_v37 = vadd.f32 %v2277_v19, %v1222_v33  ;;  %v1420_v18 = vld [vmem:[%s2289_s18 + $0x10] sm:$0xff] (%p1992_p6)  ;;  %v1422_v19 = vld [vmem:[%s2289_s18 + $0x18] sm:$0xff] (%p1992_p6)  ;;  %1417 = vst [vmem:[%s1403_s13] sm:$0xff] (%p1992_p6), %v1416_v16 }
 0x171   : > { %1419 = vst [vmem:[%s1403_s13 + $0x8] sm:$0xff] (%p1992_p6), %v1418_v17  ;;  %1421 = vst [vmem:[%s1403_s13 + $0x20] sm:$0xff] (%p1992_p6), %v1420_v18  ;;  %v1432_v44 = vld [vmem:[%s2289_s18 + $0x40] sm:$0xff] (%p1992_p6)  ;;  %v1434_v45 = vld [vmem:[%s2289_s18 + $0x48] sm:$0xff] (%p1992_p6) }
 0x172   : > { %1387 = vst [vmem:[%s2289_s18 + $0x60] sm:$0xff] %v1700_v34  ;;  %1388 = vst [vmem:[%s2289_s18 + $0x68] sm:$0xff] %v1701_v35  ;;  %v1702_v38 = vpack.c.bf16 %v1276_v36, %v1275_v30  ;;  %v1703_v39 = vpack.c.bf16 %v1278_v37, %v1277_v31 }
 0x173   : > { %1423 = vst [vmem:[%s1403_s13 + $0x28] sm:$0xff] (%p1992_p6), %v1422_v19  ;;  %1433 = vst [vmem:[%s1403_s13 + $0x80] sm:$0xff] (%p1992_p6), %v1432_v44  ;;  %v1436_v46 = vld [vmem:[%s2289_s18 + $0x50] sm:$0xff] (%p1992_p6)  ;;  %v1438_v47 = vld [vmem:[%s2289_s18 + $0x58] sm:$0xff] (%p1992_p6) }
 0x174   : > { %1389 = vst [vmem:[%s2289_s18 + $0x70] sm:$0xff] %v1702_v38  ;;  %1390 = vst [vmem:[%s2289_s18 + $0x78] sm:$0xff] %v1703_v39 }
 0x175   : > { %1435 = vst [vmem:[%s1403_s13 + $0x88] sm:$0xff] %v1434_v45  ;;  %1437 = vst [vmem:[%s1403_s13 + $0xa0] sm:$0xff] %v1436_v46 }
 0x176   : > { %1439 = vst [vmem:[%s1403_s13 + $0xa8] sm:$0xff] %v1438_v47 }
 0x179   : > { %v1440_v48 = vld [vmem:[%s2289_s18 + $0x60] sm:$0xff]  ;;  %v1442_v49 = vld [vmem:[%s2289_s18 + $0x68] sm:$0xff] }
 0x17a   : > { %1441 = vst [vmem:[%s1403_s13 + $0xc0] sm:$0xff] %v1440_v48  ;;  %1443 = vst [vmem:[%s1403_s13 + $0xc8] sm:$0xff] %v1442_v49 }
 0x17b   : > { %v1444_v50 = vld [vmem:[%s2289_s18 + $0x70] sm:$0xff]  ;;  %v1446_v51 = vld [vmem:[%s2289_s18 + $0x78] sm:$0xff] }
 0x17c   : > { %1445 = vst [vmem:[%s1403_s13 + $0xe0] sm:$0xff] %v1444_v50  ;;  %1447 = vst [vmem:[%s1403_s13 + $0xe8] sm:$0xff] %v1446_v51 }
 0x17d PF: > { %s15_s22 = sadd.s32 1, %s1920_s22   ;;  %s2376_s18 = smov %s1908_s19 }
 0x17e   : > { %p12_p12 = scmp.ge.s32.totalorder %s15_s22, 4   ;;  %s2377_s19 = smov %s1997_s29 }
 0x17f   : > { %s2378_s20 = smov %s1916_s21  ;;  %s2379_s21 = smov %s2381_s23 }
 0x180   :  { %14 = sbr.rel (!%p12_p12) target bundleno = 3 (0x3), region = 161 }

// kernel: _lambda_.9
= control target key start
LH: loop header
LB: loop body
LE: loop exit
PB: predicated region body
PF: predicated region fallthrough
CT: control target
= control target key end

     0   :  { %s624_s1 = inlined_call_operand.vmem [shape: bf16[512,128], index: 1, kind: input, shape index: {}]   ;;  %s625_s0 = inlined_call_operand.vmem [shape: bf16[8,512], index: 0, kind: input, shape index: {}]   ;;  %s626_s2 = inlined_call_operand.vmem [shape: f32[1,128], index: 2, kind: input, shape index: {}]   ;;  %s627_s3 = inlined_call_operand.vmem [shape: f32[8,128], index: 3, kind: output, shape index: {}]  }
   0x1   :  { %v460_v0 = vld [vmem:[%s624_s1 + $0x40] sm:$0xff]   ;;  %v464_v4 = vld [vmem:[%s624_s1 + $0x48] sm:$0xff]   ;;  %v468_v8 = vld [vmem:[%s624_s1 + $0x50] sm:$0xff]  }
   0x2   :  { %v461_v1 = vld [vmem:[%s624_s1 + $0xc0] sm:$0xff]   ;;  %416 = vmatprep.subr.bf16.mxu0 %v460_v0  ;;  %v465_v5 = vld [vmem:[%s624_s1 + $0xc8] sm:$0xff]   ;;  %v469_v9 = vld [vmem:[%s624_s1 + $0xd0] sm:$0xff]  }
   0x3   :  { %v462_v2 = vld [vmem:[%s624_s1] sm:$0xff]   ;;  %438 = vmatprep.subr.bf16.mxu1 %v461_v1  ;;  %v466_v6 = vld [vmem:[%s624_s1 + $0x8] sm:$0xff]   ;;  %v470_v10 = vld [vmem:[%s624_s1 + $0x10] sm:$0xff]  }
   0x4   :  { %v463_v3 = vld [vmem:[%s624_s1 + $0x80] sm:$0xff]   ;;  %417 = vmatpush3.bf16.msra.mxu0 %v462_v2  ;;  %v467_v7 = vld [vmem:[%s624_s1 + $0x88] sm:$0xff]   ;;  %v471_v11 = vld [vmem:[%s624_s1 + $0x90] sm:$0xff]  }
   0x5   :  { %439 = vmatpush3.bf16.msra.mxu1 %v463_v3  ;;  %418 = vmatprep.subr.bf16.mxu0 %v464_v4  ;;  %v472_v12 = vld [vmem:[%s624_s1 + $0x58] sm:$0xff]   ;;  %v476_v16 = vld [vmem:[%s624_s1 + $0x60] sm:$0xff]   ;;  %v480_v20 = vld [vmem:[%s624_s1 + $0x68] sm:$0xff]  }
   0x6   :  { %440 = vmatprep.subr.bf16.mxu1 %v465_v5  ;;  %v473_v13 = vld [vmem:[%s624_s1 + $0xd8] sm:$0xff]   ;;  %v477_v17 = vld [vmem:[%s624_s1 + $0xe0] sm:$0xff]   ;;  %v481_v21 = vld [vmem:[%s624_s1 + $0xe8] sm:$0xff]  }
   0x7   :  { %v474_v14 = vld [vmem:[%s624_s1 + $0x18] sm:$0xff]   ;;  %v478_v18 = vld [vmem:[%s624_s1 + $0x20] sm:$0xff]   ;;  %v482_v22 = vld [vmem:[%s624_s1 + $0x28] sm:$0xff]  }
   0x8   :  { %419 = vmatpush3.bf16.msra.mxu0 %v466_v6  ;;  %v475_v15 = vld [vmem:[%s624_s1 + $0x98] sm:$0xff]   ;;  %v479_v19 = vld [vmem:[%s624_s1 + $0xa0] sm:$0xff]   ;;  %v483_v23 = vld [vmem:[%s624_s1 + $0xa8] sm:$0xff]  }
   0x9   :  { %441 = vmatpush3.bf16.msra.mxu1 %v467_v7  ;;  %420 = vmatprep.subr.bf16.mxu0 %v468_v8  ;;  %v484_v24 = vld [vmem:[%s624_s1 + $0x70] sm:$0xff]   ;;  %v488_v28 = vld [vmem:[%s624_s1 + $0x78] sm:$0xff]   ;;  %v15_v32 = vld [vmem:[%s625_s0] sm:$0xff] }
   0xa   :  { %442 = vmatprep.subr.bf16.mxu1 %v469_v9  ;;  %v485_v25 = vld [vmem:[%s624_s1 + $0xf0] sm:$0xff]   ;;  %v489_v29 = vld [vmem:[%s624_s1 + $0xf8] sm:$0xff]   ;;  %v16_v33 = vld [vmem:[%s625_s0 + $0x8] sm:$0xff]  ;;  %v380_v34 = vcombine.low %v15_v32, %v15_v32  ;;  %v381_v35 = vcombine.high %v15_v32, %v15_v32 }
   0xb   :  { %v486_v26 = vld [vmem:[%s624_s1 + $0x30] sm:$0xff]   ;;  %v490_v30 = vld [vmem:[%s624_s1 + $0x38] sm:$0xff]   ;;  %v382_v36 = vcombine.low %v16_v33, %v16_v33  ;;  %v383_v37 = vcombine.high %v16_v33, %v16_v33  ;;  %v379_v40 = vld [vmem:[%s626_s2] ss:$0 sm:$0xff] }
   0xc   :  { %421 = vmatpush3.bf16.msra.mxu0 %v470_v10  ;;  %v487_v27 = vld [vmem:[%s624_s1 + $0xb0] sm:$0xff]   ;;  %v491_v31 = vld [vmem:[%s624_s1 + $0xb8] sm:$0xff]   ;;  %326 = vmatprep.mubr.bf16.mxu0 %v381_v35 }
   0xd   :  { %443 = vmatpush3.bf16.msra.mxu1 %v471_v11  ;;  %422 = vmatprep.subr.bf16.mxu0 %v472_v12 }
   0xe   :  { %444 = vmatprep.subr.bf16.mxu1 %v473_v13  ;;  %366 = vmatprep.mubr.bf16.mxu1 %v383_v37 }
  0x10   :  { %423 = vmatpush3.bf16.msra.mxu0 %v474_v14 }
  0x11   :  { %445 = vmatpush3.bf16.msra.mxu1 %v475_v15  ;;  %424 = vmatprep.subr.bf16.mxu0 %v476_v16 }
  0x12   :  { %446 = vmatprep.subr.bf16.mxu1 %v477_v17 }
  0x14   :  { %425 = vmatpush3.bf16.msra.mxu0 %v478_v18 }
  0x15   :  { %447 = vmatpush3.bf16.msra.mxu1 %v479_v19  ;;  %426 = vmatprep.subr.bf16.mxu0 %v480_v20 }
  0x16   :  { %448 = vmatprep.subr.bf16.mxu1 %v481_v21 }
  0x18   :  { %427 = vmatpush3.bf16.msra.mxu0 %v482_v22 }
  0x19   :  { %449 = vmatpush3.bf16.msra.mxu1 %v483_v23  ;;  %428 = vmatprep.subr.bf16.mxu0 %v484_v24 }
  0x1a   :  { %450 = vmatprep.subr.bf16.mxu1 %v485_v25 }
  0x1c   :  { %429 = vmatpush3.bf16.msra.mxu0 %v486_v26 }
  0x1d   :  { %451 = vmatpush3.bf16.msra.mxu1 %v487_v27  ;;  %430 = vmatprep.subr.bf16.mxu0 %v488_v28 }
  0x1e   :  { %452 = vmatprep.subr.bf16.mxu1 %v489_v29 }
  0x20   :  { %431 = vmatpush3.bf16.msra.mxu0 %v490_v30 }
  0x21   :  { %453 = vmatpush3.bf16.msra.mxu1 %v491_v31 }
  0x23   :  { %327 = vmatmul.mubr.bf16.vlgmr.msra.gmra.mrb[0].mxu0 %v380_v34 }
  0x24   :  { %367 = vmatmul.mubr.bf16.vlgmr.msra.gmra.mrb[0].mxu1 %v382_v36 }
  0xf6   :  { %v432_v38 = vpop.f32.mrb[0].mxu0 }
  0xf7   :  { %v454_v39 = vpop.f32.mrb[0].mxu1  ;;  %v433_v41 = vpop.f32.mrb[1].mxu0 }
  0xf8   :  { %v455_v42 = vpop.f32.mrb[1].mxu1  ;;  %v434_v43 = vadd.f32 %v433_v41, %v432_v38  ;;  %v435_v45 = vpop.f32.mrb[2].mxu0 }
  0xf9   :  { %v456_v44 = vadd.f32 %v455_v42, %v454_v39  ;;  %v457_v46 = vpop.f32.mrb[2].mxu1  ;;  %v436_v47 = vpop.f32.mrb[3].mxu0 }
  0xfa   :  { %v458_v48 = vpop.f32.mrb[3].mxu1  ;;  %v329_v49 = vadd.f32 %v434_v43, %v379_v40 }
  0xfc   :  { %v369_v50 = vadd.f32 %v456_v44, %v329_v49 }
  0xfe   :  { %374 = vst [vmem:[%s627_s3] sm:$0xff] %v369_v50 }

// kernel: _lambda_.6
= control target key start
LH: loop header
LB: loop body
LE: loop exit
PB: predicated region body
PF: predicated region fallthrough
CT: control target
= control target key end

     0   :  { %v5295_v6 = vmov 0.0|0.0   ;;  %s5290_s0 = inlined_call_operand.vmem [shape: bf16[8,8,1024], index: 0, kind: input, shape index: {}, may-alias: {0,1}]   ;;  %s5291_s1 = inlined_call_operand.vmem [shape: bf16[8,8,1024], index: 1, kind: input, shape index: {}, may-alias: {0,1}]   ;;  %s5292_s2 = inlined_call_operand.vmem [shape: bf16[256,1024], index: 2, kind: input, shape index: {}]   ;;  %s5293_s3 = inlined_call_operand.vmem [shape: bf16[8,8,128], index: 3, kind: output, shape index: {0}]   ;;  %s5294_s4 = inlined_call_operand.vmem [shape: bf16[8,8,128], index: 4, kind: output, shape index: {1}]  }
   0x1   :  { %v144_v0 = vld [vmem:[%s5292_s2] sm:$0xff]  ;;  %950 = vmatprep.mubr.bf16.mxu0 %v5295_v6  ;;  %991 = vmatprep.mubr.bf16.mxu1 %v5295_v6  ;;  %v145_v10 = vld [vmem:[%s5292_s2 + $0x8] sm:$0xff] }
   0x2   :  { %v148_v1 = vld [vmem:[%s5292_s2 + $0x20] sm:$0xff]  ;;  %v149_v11 = vld [vmem:[%s5292_s2 + $0x28] sm:$0xff] }
   0x3   :  { %v152_v2 = vld [vmem:[%s5292_s2 + $0x40] sm:$0xff]  ;;  %v3378_v3 = vcombine.high %v144_v0, %v148_v1  ;;  %v3380_v4 = vcombine.low %v144_v0, %v148_v1  ;;  %v3405_v13 = vcombine.high %v145_v10, %v149_v11  ;;  %v3407_v14 = vcombine.low %v145_v10, %v149_v11  ;;  %v153_v15 = vld [vmem:[%s5292_s2 + $0x48] sm:$0xff] }
   0x4   :  { %v156_v5 = vld [vmem:[%s5292_s2 + $0x60] sm:$0xff]  ;;  %v157_v16 = vld [vmem:[%s5292_s2 + $0x68] sm:$0xff] }
   0x5   :  { %5571 = vst [vmem:[#allocation6_spill] sm:$0xff] %v3378_v3  ;;  %5572 = vst [vmem:[#allocation7_spill] sm:$0xff] %v3380_v4  ;;  %v3387_v7 = vcombine.high %v152_v2, %v156_v5  ;;  %v160_v8 = vld [vmem:[%s5292_s2 + $0x80] sm:$0xff]  ;;  %918 = vmatprep.subr.bf16.mxu0 %v3378_v3  ;;  %v3403_v12 = vcombine.low %v152_v2, %v156_v5  ;;  %v3418_v18 = vcombine.high %v153_v15, %v157_v16  ;;  %v161_v19 = vld [vmem:[%s5292_s2 + $0x88] sm:$0xff] }
   0x6   :  { %v164_v9 = vld [vmem:[%s5292_s2 + $0xa0] sm:$0xff]  ;;  %919 = vmatpush1.bf16.msra.mxu0 %v3380_v4  ;;  %5575 = vst [vmem:[#allocation10_spill] sm:$0xff] %v3405_v13  ;;  %5576 = vst [vmem:[#allocation11_spill] sm:$0xff] %v3407_v14  ;;  %v165_v20 = vld [vmem:[%s5292_s2 + $0xa8] sm:$0xff]  ;;  %959 = vmatprep.subr.bf16.mxu1 %v3405_v13  ;;  %v3434_v23 = vcombine.low %v153_v15, %v157_v16 }
   0x7   :  { %5573 = vst [vmem:[#allocation8_spill] sm:$0xff] %v3387_v7  ;;  %5574 = vst [vmem:[#allocation9_spill] sm:$0xff] %v3403_v12  ;;  %920 = vmatprep.subr.bf16.mxu0 %v3387_v7  ;;  %v3416_v17 = vcombine.high %v160_v8, %v164_v9  ;;  %v168_v21 = vld [vmem:[%s5292_s2 + $0xc0] sm:$0xff]  ;;  %960 = vmatpush1.bf16.msra.mxu1 %v3407_v14  ;;  %v3437_v24 = vcombine.low %v160_v8, %v164_v9  ;;  %v169_v27 = vld [vmem:[%s5292_s2 + $0xc8] sm:$0xff] }
   0x8   :  { %5578 = vst [vmem:[#allocation13_spill] sm:$0xff] %v3418_v18  ;;  %v172_v22 = vld [vmem:[%s5292_s2 + $0xe0] sm:$0xff]  ;;  %5579 = vst [vmem:[#allocation14_spill] sm:$0xff] %v3434_v23  ;;  %961 = vmatprep.subr.bf16.mxu1 %v3418_v18  ;;  %v3440_v25 = vcombine.high %v161_v19, %v165_v20  ;;  %v173_v28 = vld [vmem:[%s5292_s2 + $0xe8] sm:$0xff]  ;;  %v3458_v31 = vcombine.low %v161_v19, %v165_v20 }
   0x9   :  { %5577 = vst [vmem:[#allocation12_spill] sm:$0xff] %v3416_v17  ;;  %5580 = vst [vmem:[#allocation15_spill] sm:$0xff] %v3437_v24  ;;  %v3443_v26 = vcombine.high %v168_v21, %v172_v22  ;;  %v176_v29 = vld [vmem:[%s5292_s2 + $0x100] sm:$0xff]  ;;  %v3461_v32 = vcombine.low %v168_v21, %v172_v22  ;;  %v3464_v33 = vcombine.high %v169_v27, %v173_v28  ;;  %v177_v35 = vld [vmem:[%s5292_s2 + $0x108] sm:$0xff] }
   0xa   :  { %921 = vmatpush1.bf16.msra.mxu0 %v3403_v12  ;;  %5581 = vst [vmem:[#allocation16_spill] sm:$0xff] %v3440_v25  ;;  %v180_v30 = vld [vmem:[%s5292_s2 + $0x120] sm:$0xff]  ;;  %5583 = vst [vmem:[#allocation18_spill] sm:$0xff] %v3458_v31  ;;  %v181_v36 = vld [vmem:[%s5292_s2 + $0x128] sm:$0xff]  ;;  %v3482_v39 = vcombine.low %v169_v27, %v173_v28 }
   0xb   :  { %922 = vmatprep.subr.bf16.mxu0 %v3416_v17  ;;  %5582 = vst [vmem:[#allocation17_spill] sm:$0xff] %v3443_v26  ;;  %962 = vmatpush1.bf16.msra.mxu1 %v3434_v23  ;;  %5584 = vst [vmem:[#allocation19_spill] sm:$0xff] %v3461_v32  ;;  %v3467_v34 = vcombine.high %v176_v29, %v180_v30  ;;  %v184_v37 = vld [vmem:[%s5292_s2 + $0x140] sm:$0xff]  ;;  %v3485_v40 = vcombine.low %v176_v29, %v180_v30  ;;  %v185_v43 = vld [vmem:[%s5292_s2 + $0x148] sm:$0xff] }
   0xc   :  { %963 = vmatprep.subr.bf16.mxu1 %v3440_v25  ;;  %5585 = vst [vmem:[#allocation20_spill] sm:$0xff] %v3464_v33  ;;  %v188_v38 = vld [vmem:[%s5292_s2 + $0x160] sm:$0xff]  ;;  %5587 = vst [vmem:[#allocation22_spill] sm:$0xff] %v3482_v39  ;;  %v3488_v41 = vcombine.high %v177_v35, %v181_v36  ;;  %v189_v44 = vld [vmem:[%s5292_s2 + $0x168] sm:$0xff]  ;;  %v3506_v47 = vcombine.low %v177_v35, %v181_v36 }
   0xd   :  { %5586 = vst [vmem:[#allocation21_spill] sm:$0xff] %v3467_v34  ;;  %5588 = vst [vmem:[#allocation23_spill] sm:$0xff] %v3485_v40  ;;  %v3491_v42 = vcombine.high %v184_v37, %v188_v38  ;;  %v192_v45 = vld [vmem:[%s5292_s2 + $0x180] sm:$0xff]  ;;  %v3509_v48 = vcombine.low %v184_v37, %v188_v38  ;;  %v3512_v49 = vcombine.high %v185_v43, %v189_v44  ;;  %v193_v51 = vld [vmem:[%s5292_s2 + $0x188] sm:$0xff] }
   0xe   :  { %923 = vmatpush1.bf16.msra.mxu0 %v3437_v24  ;;  %5589 = vst [vmem:[#allocation24_spill] sm:$0xff] %v3488_v41  ;;  %v196_v46 = vld [vmem:[%s5292_s2 + $0x1a0] sm:$0xff]  ;;  %5591 = vst [vmem:[#allocation26_spill] sm:$0xff] %v3506_v47  ;;  %v197_v52 = vld [vmem:[%s5292_s2 + $0x1a8] sm:$0xff]  ;;  %v3530_v55 = vcombine.low %v185_v43, %v189_v44 }
   0xf   :  { %924 = vmatprep.subr.bf16.mxu0 %v3443_v26  ;;  %964 = vmatpush1.bf16.msra.mxu1 %v3458_v31  ;;  %5590 = vst [vmem:[#allocation25_spill] sm:$0xff] %v3491_v42  ;;  %5592 = vst [vmem:[#allocation27_spill] sm:$0xff] %v3509_v48  ;;  %v3515_v50 = vcombine.high %v192_v45, %v196_v46  ;;  %v200_v53 = vld [vmem:[%s5292_s2 + $0x1c0] sm:$0xff]  ;;  %v3533_v56 = vcombine.low %v192_v45, %v196_v46  ;;  %v201_v59 = vld [vmem:[%s5292_s2 + $0x1c8] sm:$0xff] }
  0x10   :  { %965 = vmatprep.subr.bf16.mxu1 %v3464_v33  ;;  %5593 = vst [vmem:[#allocation28_spill] sm:$0xff] %v3512_v49  ;;  %v204_v54 = vld [vmem:[%s5292_s2 + $0x1e0] sm:$0xff]  ;;  %5595 = vst [vmem:[#allocation30_spill] sm:$0xff] %v3530_v55  ;;  %v3536_v57 = vcombine.high %v193_v51, %v197_v52  ;;  %v205_v60 = vld [vmem:[%s5292_s2 + $0x1e8] sm:$0xff]  ;;  %v3554_v63 = vcombine.low %v193_v51, %v197_v52 }
  0x11   :  { %5594 = vst [vmem:[#allocation29_spill] sm:$0xff] %v3515_v50  ;;  %5596 = vst [vmem:[#allocation31_spill] sm:$0xff] %v3533_v56  ;;  %v3539_v58 = vcombine.high %v200_v53, %v204_v54  ;;  %v208_v61 = vld [vmem:[%s5292_s2 + $0x200] sm:$0xff]  ;;  %v3557_v0 = vcombine.low %v200_v53, %v204_v54  ;;  %v3560_v1 = vcombine.high %v201_v59, %v205_v60  ;;  %v209_v5 = vld [vmem:[%s5292_s2 + $0x208] sm:$0xff] }
  0x12   :  { %925 = vmatpush1.bf16.msra.mxu0 %v3461_v32  ;;  %5597 = vst [vmem:[#allocation32_spill] sm:$0xff] %v3536_v57  ;;  %v212_v62 = vld [vmem:[%s5292_s2 + $0x220] sm:$0xff]  ;;  %5599 = vst [vmem:[#allocation34_spill] sm:$0xff] %v3554_v63  ;;  %v213_v8 = vld [vmem:[%s5292_s2 + $0x228] sm:$0xff]  ;;  %v3578_v11 = vcombine.low %v201_v59, %v205_v60 }
  0x13   :  { %926 = vmatprep.subr.bf16.mxu0 %v3467_v34  ;;  %966 = vmatpush1.bf16.msra.mxu1 %v3482_v39  ;;  %5598 = vst [vmem:[#allocation33_spill] sm:$0xff] %v3539_v58  ;;  %5600 = vst [vmem:[#allocation35_spill] sm:$0xff] %v3557_v0  ;;  %v3563_v2 = vcombine.high %v208_v61, %v212_v62  ;;  %v216_v9 = vld [vmem:[%s5292_s2 + $0x240] sm:$0xff]  ;;  %v3581_v15 = vcombine.low %v208_v61, %v212_v62  ;;  %v217_v20 = vld [vmem:[%s5292_s2 + $0x248] sm:$0xff] }
  0x14   :  { %967 = vmatprep.subr.bf16.mxu1 %v3488_v41  ;;  %5601 = vst [vmem:[#allocation36_spill] sm:$0xff] %v3560_v1  ;;  %v220_v10 = vld [vmem:[%s5292_s2 + $0x260] sm:$0xff]  ;;  %5603 = vst [vmem:[#allocation38_spill] sm:$0xff] %v3578_v11  ;;  %v3584_v16 = vcombine.high %v209_v5, %v213_v8  ;;  %v221_v21 = vld [vmem:[%s5292_s2 + $0x268] sm:$0xff]  ;;  %v3602_v28 = vcombine.low %v209_v5, %v213_v8 }
  0x15   :  { %5602 = vst [vmem:[#allocation37_spill] sm:$0xff] %v3563_v2  ;;  %5604 = vst [vmem:[#allocation39_spill] sm:$0xff] %v3581_v15  ;;  %v3587_v19 = vcombine.high %v216_v9, %v220_v10  ;;  %v224_v22 = vld [vmem:[%s5292_s2 + $0x280] sm:$0xff]  ;;  %v3605_v29 = vcombine.low %v216_v9, %v220_v10  ;;  %v3608_v30 = vcombine.high %v217_v20, %v221_v21  ;;  %v225_v36 = vld [vmem:[%s5292_s2 + $0x288] sm:$0xff] }
  0x16   :  { %927 = vmatpush1.bf16.msra.mxu0 %v3485_v40  ;;  %5605 = vst [vmem:[#allocation40_spill] sm:$0xff] %v3584_v16  ;;  %v228_v27 = vld [vmem:[%s5292_s2 + $0x2a0] sm:$0xff]  ;;  %5607 = vst [vmem:[#allocation42_spill] sm:$0xff] %v3602_v28  ;;  %v229_v37 = vld [vmem:[%s5292_s2 + $0x2a8] sm:$0xff]  ;;  %v3626_v44 = vcombine.low %v217_v20, %v221_v21 }
  0x17   :  { %928 = vmatprep.subr.bf16.mxu0 %v3491_v42  ;;  %968 = vmatpush1.bf16.msra.mxu1 %v3506_v47  ;;  %5606 = vst [vmem:[#allocation41_spill] sm:$0xff] %v3587_v19  ;;  %5608 = vst [vmem:[#allocation43_spill] sm:$0xff] %v3605_v29  ;;  %v3611_v35 = vcombine.high %v224_v22, %v228_v27  ;;  %v232_v38 = vld [vmem:[%s5292_s2 + $0x2c0] sm:$0xff]  ;;  %v3629_v45 = vcombine.low %v224_v22, %v228_v27  ;;  %v233_v52 = vld [vmem:[%s5292_s2 + $0x2c8] sm:$0xff] }
  0x18   :  { %969 = vmatprep.subr.bf16.mxu1 %v3512_v49  ;;  %5609 = vst [vmem:[#allocation44_spill] sm:$0xff] %v3608_v30  ;;  %v236_v43 = vld [vmem:[%s5292_s2 + $0x2e0] sm:$0xff]  ;;  %5611 = vst [vmem:[#allocation46_spill] sm:$0xff] %v3626_v44  ;;  %v3632_v46 = vcombine.high %v225_v36, %v229_v37  ;;  %v237_v53 = vld [vmem:[%s5292_s2 + $0x2e8] sm:$0xff]  ;;  %v3650_v60 = vcombine.low %v225_v36, %v229_v37 }
  0x19   :  { %5610 = vst [vmem:[#allocation45_spill] sm:$0xff] %v3611_v35  ;;  %5612 = vst [vmem:[#allocation47_spill] sm:$0xff] %v3629_v45  ;;  %v3635_v51 = vcombine.high %v232_v38, %v236_v43  ;;  %v240_v54 = vld [vmem:[%s5292_s2 + $0x300] sm:$0xff]  ;;  %v3653_v61 = vcombine.low %v232_v38, %v236_v43  ;;  %v3656_v62 = vcombine.high %v233_v52, %v237_v53  ;;  %v241_v8 = vld [vmem:[%s5292_s2 + $0x308] sm:$0xff] }
  0x1a   :  { %929 = vmatpush1.bf16.msra.mxu0 %v3509_v48  ;;  %5613 = vst [vmem:[#allocation48_spill] sm:$0xff] %v3632_v46  ;;  %v244_v59 = vld [vmem:[%s5292_s2 + $0x320] sm:$0xff]  ;;  %5615 = vst [vmem:[#allocation50_spill] sm:$0xff] %v3650_v60  ;;  %v245_v9 = vld [vmem:[%s5292_s2 + $0x328] sm:$0xff]  ;;  %v3674_v21 = vcombine.low %v233_v52, %v237_v53 }
  0x1b   :  { %930 = vmatprep.subr.bf16.mxu0 %v3515_v50  ;;  %970 = vmatpush1.bf16.msra.mxu1 %v3530_v55  ;;  %5614 = vst [vmem:[#allocation49_spill] sm:$0xff] %v3635_v51  ;;  %5616 = vst [vmem:[#allocation51_spill] sm:$0xff] %v3653_v61  ;;  %v3659_v5 = vcombine.high %v240_v54, %v244_v59  ;;  %v248_v10 = vld [vmem:[%s5292_s2 + $0x340] sm:$0xff]  ;;  %v3677_v22 = vcombine.low %v240_v54, %v244_v59  ;;  %v249_v37 = vld [vmem:[%s5292_s2 + $0x348] sm:$0xff] }
  0x1c   :  { %971 = vmatprep.subr.bf16.mxu1 %v3536_v57  ;;  %5617 = vst [vmem:[#allocation52_spill] sm:$0xff] %v3656_v62  ;;  %v252_v20 = vld [vmem:[%s5292_s2 + $0x360] sm:$0xff]  ;;  %5619 = vst [vmem:[#allocation54_spill] sm:$0xff] %v3674_v21  ;;  %v3680_v27 = vcombine.high %v241_v8, %v245_v9  ;;  %v253_v38 = vld [vmem:[%s5292_s2 + $0x368] sm:$0xff]  ;;  %v3698_v53 = vcombine.low %v241_v8, %v245_v9 }
  0x1d   :  { %5618 = vst [vmem:[#allocation53_spill] sm:$0xff] %v3659_v5  ;;  %5620 = vst [vmem:[#allocation55_spill] sm:$0xff] %v3677_v22  ;;  %v3683_v36 = vcombine.high %v248_v10, %v252_v20  ;;  %v256_v43 = vld [vmem:[%s5292_s2 + $0x380] sm:$0xff]  ;;  %v3701_v54 = vcombine.low %v248_v10, %v252_v20  ;;  %v3704_v59 = vcombine.high %v249_v37, %v253_v38  ;;  %v261_v8 = vld [vmem:[%s5292_s2 + $0x3a8] sm:$0xff] }
  0x1e   :  { %931 = vmatpush1.bf16.msra.mxu0 %v3533_v56  ;;  %5621 = vst [vmem:[#allocation56_spill] sm:$0xff] %v3680_v27  ;;  %v260_v52 = vld [vmem:[%s5292_s2 + $0x3a0] sm:$0xff]  ;;  %5623 = vst [vmem:[#allocation58_spill] sm:$0xff] %v3698_v53  ;;  %v3722_v20 = vcombine.low %v249_v37, %v253_v38  ;;  %v269_v37 = vld [vmem:[%s5292_s2 + $0x3e8] sm:$0xff] }
  0x1f   :  { %932 = vmatprep.subr.bf16.mxu0 %v3539_v58  ;;  %972 = vmatpush1.bf16.msra.mxu1 %v3554_v63  ;;  %5622 = vst [vmem:[#allocation57_spill] sm:$0xff] %v3683_v36  ;;  %5624 = vst [vmem:[#allocation59_spill] sm:$0xff] %v3701_v54  ;;  %v3707_v6 = vcombine.high %v256_v43, %v260_v52  ;;  %v264_v9 = vld [vmem:[%s5292_s2 + $0x3c0] sm:$0xff]  ;;  %v146_v38 = vld [vmem:[%s5292_s2 + $0x10] sm:$0xff] }
  0x20   :  { %973 = vmatprep.subr.bf16.mxu1 %v3560_v1  ;;  %5625 = vst [vmem:[#allocation60_spill] sm:$0xff] %v3704_v59  ;;  %v268_v10 = vld [vmem:[%s5292_s2 + $0x3e0] sm:$0xff]  ;;  %5627 = vst [vmem:[#allocation62_spill] sm:$0xff] %v3722_v20 }
  0x21   :  { %5626 = vst [vmem:[#allocation61_spill] sm:$0xff] %v3707_v6 }
  0x22   :  { %933 = vmatpush1.bf16.msra.mxu0 %v3557_v0 }
  0x23   :  { %934 = vmatprep.subr.bf16.mxu0 %v3563_v2  ;;  %974 = vmatpush1.bf16.msra.mxu1 %v3578_v11 }
  0x24   :  { %975 = vmatprep.subr.bf16.mxu1 %v3584_v16 }
  0x26   :  { %935 = vmatpush1.bf16.msra.mxu0 %v3581_v15 }
  0x27   :  { %936 = vmatprep.subr.bf16.mxu0 %v3587_v19  ;;  %976 = vmatpush1.bf16.msra.mxu1 %v3602_v28 }
  0x28   :  { %977 = vmatprep.subr.bf16.mxu1 %v3608_v30 }
  0x2a   :  { %937 = vmatpush1.bf16.msra.mxu0 %v3605_v29 }
  0x2b   :  { %938 = vmatprep.subr.bf16.mxu0 %v3611_v35  ;;  %978 = vmatpush1.bf16.msra.mxu1 %v3626_v44 }
  0x2c   :  { %979 = vmatprep.subr.bf16.mxu1 %v3632_v46 }
  0x2e   :  { %939 = vmatpush1.bf16.msra.mxu0 %v3629_v45 }
  0x2f   :  { %940 = vmatprep.subr.bf16.mxu0 %v3635_v51  ;;  %980 = vmatpush1.bf16.msra.mxu1 %v3650_v60 }
  0x30   :  { %981 = vmatprep.subr.bf16.mxu1 %v3656_v62 }
  0x32   :  { %941 = vmatpush1.bf16.msra.mxu0 %v3653_v61  ;;  %v163_v61 = vld [vmem:[%s5292_s2 + $0x98] sm:$0xff] }
  0x33   :  { %942 = vmatprep.subr.bf16.mxu0 %v3659_v5  ;;  %982 = vmatpush1.bf16.msra.mxu1 %v3674_v21  ;;  %v257_v5 = vld [vmem:[%s5292_s2 + $0x388] sm:$0xff] }
  0x34   :  { %983 = vmatprep.subr.bf16.mxu1 %v3680_v27  ;;  %v3731_v27 = vcombine.high %v264_v9, %v268_v10  ;;  %v265_v21 = vld [vmem:[%s5292_s2 + $0x3c8] sm:$0xff] }
  0x36   :  { %943 = vmatpush1.bf16.msra.mxu0 %v3677_v22  ;;  %v3728_v22 = vcombine.high %v257_v5, %v261_v8  ;;  %5630 = vst [vmem:[#allocation65_spill] sm:$0xff] %v3731_v27 }
  0x37   :  { %944 = vmatprep.subr.bf16.mxu0 %v3683_v36  ;;  %984 = vmatpush1.bf16.msra.mxu1 %v3698_v53  ;;  %v3725_v36 = vcombine.low %v256_v43, %v260_v52  ;;  %v150_v43 = vld [vmem:[%s5292_s2 + $0x30] sm:$0xff]  ;;  %v3746_v52 = vcombine.low %v257_v5, %v261_v8  ;;  %v147_v53 = vld [vmem:[%s5292_s2 + $0x18] sm:$0xff] }
  0x38   :  { %985 = vmatprep.subr.bf16.mxu1 %v3704_v59  ;;  %5629 = vst [vmem:[#allocation64_spill] sm:$0xff] %v3728_v22  ;;  %v3755_v59 = vcombine.high %v146_v38, %v150_v43  ;;  %v151_v5 = vld [vmem:[%s5292_s2 + $0x38] sm:$0xff]  ;;  %v154_v8 = vld [vmem:[%s5292_s2 + $0x50] sm:$0xff] }
  0x39   :  { %5628 = vst [vmem:[#allocation63_spill] sm:$0xff] %v3725_v36  ;;  %5631 = vst [vmem:[#allocation66_spill] sm:$0xff] %v3746_v52 }
  0x3a   :  { %945 = vmatpush1.bf16.msra.mxu0 %v3701_v54  ;;  %v3752_v54 = vcombine.high %v265_v21, %v269_v37  ;;  %5634 = vst [vmem:[#allocation69_spill] sm:$0xff] %v3755_v59 }
  0x3b   :  { %946 = vmatprep.subr.bf16.mxu0 %v3707_v6  ;;  %986 = vmatpush1.bf16.msra.mxu1 %v3722_v20  ;;  %v3749_v6 = vcombine.low %v264_v9, %v268_v10  ;;  %v158_v9 = vld [vmem:[%s5292_s2 + $0x70] sm:$0xff]  ;;  %v3770_v10 = vcombine.low %v265_v21, %v269_v37  ;;  %v155_v20 = vld [vmem:[%s5292_s2 + $0x58] sm:$0xff] }
  0x3c   :  { %987 = vmatprep.subr.bf16.mxu1 %v3728_v22  ;;  %5633 = vst [vmem:[#allocation68_spill] sm:$0xff] %v3752_v54  ;;  %v3779_v22 = vcombine.high %v154_v8, %v158_v9  ;;  %v159_v21 = vld [vmem:[%s5292_s2 + $0x78] sm:$0xff]  ;;  %v162_v37 = vld [vmem:[%s5292_s2 + $0x90] sm:$0xff] }
  0x3d   :  { %5632 = vst [vmem:[#allocation67_spill] sm:$0xff] %v3749_v6  ;;  %5635 = vst [vmem:[#allocation70_spill] sm:$0xff] %v3770_v10 }
  0x3e   :  { %947 = vmatpush1.bf16.msra.mxu0 %v3725_v36  ;;  %v3776_v36 = vcombine.high %v147_v53, %v151_v5  ;;  %5638 = vst [vmem:[#allocation73_spill] sm:$0xff] %v3779_v22 }
  0x3f   :  { %948 = vmatprep.subr.bf16.mxu0 %v3731_v27  ;;  %988 = vmatpush1.bf16.msra.mxu1 %v3746_v52  ;;  %v3773_v27 = vcombine.low %v146_v38, %v150_v43  ;;  %v166_v38 = vld [vmem:[%s5292_s2 + $0xb0] sm:$0xff]  ;;  %v5639_v43 = vmov 0.0|0.0  }
  0x40   :  { %989 = vmatprep.subr.bf16.mxu1 %v3752_v54  ;;  %5637 = vst [vmem:[#allocation72_spill] sm:$0xff] %v3776_v36  ;;  %v3801_v54 = vcombine.high %v155_v20, %v159_v21  ;;  %v3804_v52 = vcombine.high %v162_v37, %v166_v38 }
  0x41   :  { %5636 = vst [vmem:[#allocation71_spill] sm:$0xff] %v3773_v27 }
  0x42   :  { %949 = vmatpush1.bf16.msra.mxu0 %v3749_v6  ;;  %v3798_v6 = vcombine.low %v154_v8, %v158_v9  ;;  %5642 = vst [vmem:[#allocation76_spill] sm:$0xff] %v3801_v54  ;;  %5643 = vst [vmem:[#allocation77_spill] sm:$0xff] %v3804_v52  ;;  %v174_v8 = vld [vmem:[%s5292_s2 + $0xf0] sm:$0xff]  ;;  %v3821_v9 = vcombine.low %v155_v20, %v159_v21  ;;  %v175_v20 = vld [vmem:[%s5292_s2 + $0xf8] sm:$0xff] }
  0x43   :  { %1000 = vmatprep.subr.bf16.mxu0 %v3755_v59  ;;  %990 = vmatpush1.bf16.msra.mxu1 %v3770_v10  ;;  %v3795_v59 = vcombine.low %v147_v53, %v151_v5  ;;  %v167_v53 = vld [vmem:[%s5292_s2 + $0xb8] sm:$0xff]  ;;  %v170_v5 = vld [vmem:[%s5292_s2 + $0xd0] sm:$0xff] }
  0x44   :  { %5641 = vst [vmem:[#allocation75_spill] sm:$0xff] %v3798_v6  ;;  %1041 = vmatprep.subr.bf16.mxu1 %v3776_v36  ;;  %5644 = vst [vmem:[#allocation78_spill] sm:$0xff] %v3821_v9  ;;  %v3831_v36 = vcombine.high %v170_v5, %v174_v8  ;;  %v178_v21 = vld [vmem:[%s5292_s2 + $0x110] sm:$0xff]  ;;  %v179_v10 = vld [vmem:[%s5292_s2 + $0x118] sm:$0xff] }
  0x45   :  { %951 = vmatmul.mubr.bf16.vlgmr.msra.gmra.mrb[0].mxu0 %v5639_v43  ;;  %5640 = vst [vmem:[#allocation74_spill] sm:$0xff] %v3795_v59 }
  0x46   :  { %1001 = vmatpush1.bf16.msra.mxu0 %v3773_v27  ;;  %1032 = vmatprep.mubr.bf16.mxu0 %v5639_v43  ;;  %v3828_v27 = vcombine.high %v163_v61, %v167_v53  ;;  %5647 = vst [vmem:[#allocation81_spill] sm:$0xff] %v3831_v36 }
  0x47   :  { %1002 = vmatprep.subr.bf16.mxu0 %v3779_v22  ;;  %992 = vmatmul.mubr.bf16.vlgmr.msra.gmra.mrb[0].mxu1 %v5639_v43  ;;  %v3825_v22 = vcombine.low %v162_v37, %v166_v38  ;;  %v182_v37 = vld [vmem:[%s5292_s2 + $0x130] sm:$0xff]  ;;  %v3846_v38 = vcombine.low %v163_v61, %v167_v53  ;;  %v183_v61 = vld [vmem:[%s5292_s2 + $0x138] sm:$0xff] }
  0x48   :  { %1042 = vmatpush1.bf16.msra.mxu1 %v3795_v59  ;;  %1073 = vmatprep.mubr.bf16.mxu1 %v5639_v43  ;;  %5646 = vst [vmem:[#allocation80_spill] sm:$0xff] %v3828_v27  ;;  %v171_v59 = vld [vmem:[%s5292_s2 + $0xd8] sm:$0xff]  ;;  %v186_v53 = vld [vmem:[%s5292_s2 + $0x150] sm:$0xff] }
  0x49   :  { %5645 = vst [vmem:[#allocation79_spill] sm:$0xff] %v3825_v22  ;;  %1043 = vmatprep.subr.bf16.mxu1 %v3801_v54  ;;  %5648 = vst [vmem:[#allocation82_spill] sm:$0xff] %v3846_v38  ;;  %v3855_v54 = vcombine.high %v178_v21, %v182_v37 }
  0x4a   :  { %1003 = vmatpush1.bf16.msra.mxu0 %v3798_v6  ;;  %v3852_v6 = vcombine.high %v171_v59, %v175_v20 }
  0x4b   :  { %1004 = vmatprep.subr.bf16.mxu0 %v3804_v52  ;;  %v3849_v52 = vcombine.low %v170_v5, %v174_v8  ;;  %5651 = vst [vmem:[#allocation85_spill] sm:$0xff] %v3855_v54  ;;  %v190_v5 = vld [vmem:[%s5292_s2 + $0x170] sm:$0xff]  ;;  %v3870_v8 = vcombine.low %v171_v59, %v175_v20  ;;  %v191_v59 = vld [vmem:[%s5292_s2 + $0x178] sm:$0xff] }
  0x4c   :  { %1044 = vmatpush1.bf16.msra.mxu1 %v3821_v9  ;;  %5650 = vst [vmem:[#allocation84_spill] sm:$0xff] %v3852_v6  ;;  %v187_v9 = vld [vmem:[%s5292_s2 + $0x158] sm:$0xff]  ;;  %v194_v20 = vld [vmem:[%s5292_s2 + $0x190] sm:$0xff] }
  0x4d   :  { %5649 = vst [vmem:[#allocation83_spill] sm:$0xff] %v3849_v52  ;;  %1045 = vmatprep.subr.bf16.mxu1 %v3828_v27  ;;  %5652 = vst [vmem:[#allocation86_spill] sm:$0xff] %v3870_v8  ;;  %v3879_v27 = vcombine.high %v186_v53, %v190_v5 }
  0x4e   :  { %1005 = vmatpush1.bf16.msra.mxu0 %v3825_v22  ;;  %v3876_v22 = vcombine.high %v179_v10, %v183_v61 }
  0x4f   :  { %1006 = vmatprep.subr.bf16.mxu0 %v3831_v36  ;;  %v3873_v36 = vcombine.low %v178_v21, %v182_v37  ;;  %5655 = vst [vmem:[#allocation89_spill] sm:$0xff] %v3879_v27  ;;  %v198_v21 = vld [vmem:[%s5292_s2 + $0x1b0] sm:$0xff]  ;;  %v3894_v37 = vcombine.low %v179_v10, %v183_v61  ;;  %v199_v10 = vld [vmem:[%s5292_s2 + $0x1b8] sm:$0xff] }
  0x50   :  { %1046 = vmatpush1.bf16.msra.mxu1 %v3846_v38  ;;  %5654 = vst [vmem:[#allocation88_spill] sm:$0xff] %v3876_v22  ;;  %v195_v38 = vld [vmem:[%s5292_s2 + $0x198] sm:$0xff]  ;;  %v202_v61 = vld [vmem:[%s5292_s2 + $0x1d0] sm:$0xff] }
  0x51   :  { %5653 = vst [vmem:[#allocation87_spill] sm:$0xff] %v3873_v36  ;;  %1047 = vmatprep.subr.bf16.mxu1 %v3852_v6  ;;  %5656 = vst [vmem:[#allocation90_spill] sm:$0xff] %v3894_v37  ;;  %v3903_v6 = vcombine.high %v194_v20, %v198_v21 }
  0x52   :  { %1007 = vmatpush1.bf16.msra.mxu0 %v3849_v52  ;;  %v3900_v52 = vcombine.high %v187_v9, %v191_v59 }
  0x53   :  { %1008 = vmatprep.subr.bf16.mxu0 %v3855_v54  ;;  %v3897_v54 = vcombine.low %v186_v53, %v190_v5  ;;  %5659 = vst [vmem:[#allocation93_spill] sm:$0xff] %v3903_v6  ;;  %v206_v53 = vld [vmem:[%s5292_s2 + $0x1f0] sm:$0xff]  ;;  %v3918_v5 = vcombine.low %v187_v9, %v191_v59  ;;  %v207_v9 = vld [vmem:[%s5292_s2 + $0x1f8] sm:$0xff] }
  0x54   :  { %1048 = vmatpush1.bf16.msra.mxu1 %v3870_v8  ;;  %5658 = vst [vmem:[#allocation92_spill] sm:$0xff] %v3900_v52  ;;  %v203_v8 = vld [vmem:[%s5292_s2 + $0x1d8] sm:$0xff]  ;;  %v210_v59 = vld [vmem:[%s5292_s2 + $0x210] sm:$0xff] }
  0x55   :  { %5657 = vst [vmem:[#allocation91_spill] sm:$0xff] %v3897_v54  ;;  %1049 = vmatprep.subr.bf16.mxu1 %v3876_v22  ;;  %5660 = vst [vmem:[#allocation94_spill] sm:$0xff] %v3918_v5  ;;  %v3927_v22 = vcombine.high %v202_v61, %v206_v53 }
  0x56   :  { %1009 = vmatpush1.bf16.msra.mxu0 %v3873_v36  ;;  %v3924_v36 = vcombine.high %v195_v38, %v199_v10 }
  0x57   :  { %1010 = vmatprep.subr.bf16.mxu0 %v3879_v27  ;;  %v3921_v27 = vcombine.low %v194_v20, %v198_v21  ;;  %5663 = vst [vmem:[#allocation97_spill] sm:$0xff] %v3927_v22  ;;  %v214_v20 = vld [vmem:[%s5292_s2 + $0x230] sm:$0xff]  ;;  %v3942_v21 = vcombine.low %v195_v38, %v199_v10  ;;  %v215_v38 = vld [vmem:[%s5292_s2 + $0x238] sm:$0xff] }
  0x58   :  { %1050 = vmatpush1.bf16.msra.mxu1 %v3894_v37  ;;  %5662 = vst [vmem:[#allocation96_spill] sm:$0xff] %v3924_v36  ;;  %v211_v37 = vld [vmem:[%s5292_s2 + $0x218] sm:$0xff]  ;;  %v218_v10 = vld [vmem:[%s5292_s2 + $0x250] sm:$0xff] }
  0x59   :  { %5661 = vst [vmem:[#allocation95_spill] sm:$0xff] %v3921_v27  ;;  %1051 = vmatprep.subr.bf16.mxu1 %v3900_v52  ;;  %5664 = vst [vmem:[#allocation98_spill] sm:$0xff] %v3942_v21  ;;  %v3951_v52 = vcombine.high %v210_v59, %v214_v20 }
  0x5a   :  { %1011 = vmatpush1.bf16.msra.mxu0 %v3897_v54  ;;  %v3948_v54 = vcombine.high %v203_v8, %v207_v9 }
  0x5b   :  { %1012 = vmatprep.subr.bf16.mxu0 %v3903_v6  ;;  %v3945_v6 = vcombine.low %v202_v61, %v206_v53  ;;  %5667 = vst [vmem:[#allocation101_spill] sm:$0xff] %v3951_v52  ;;  %v222_v61 = vld [vmem:[%s5292_s2 + $0x270] sm:$0xff]  ;;  %v3966_v53 = vcombine.low %v203_v8, %v207_v9  ;;  %v223_v8 = vld [vmem:[%s5292_s2 + $0x278] sm:$0xff] }
  0x5c   :  { %1052 = vmatpush1.bf16.msra.mxu1 %v3918_v5  ;;  %5666 = vst [vmem:[#allocation100_spill] sm:$0xff] %v3948_v54  ;;  %v219_v5 = vld [vmem:[%s5292_s2 + $0x258] sm:$0xff]  ;;  %v226_v9 = vld [vmem:[%s5292_s2 + $0x290] sm:$0xff] }
  0x5d   :  { %5665 = vst [vmem:[#allocation99_spill] sm:$0xff] %v3945_v6  ;;  %1053 = vmatprep.subr.bf16.mxu1 %v3924_v36  ;;  %5668 = vst [vmem:[#allocation102_spill] sm:$0xff] %v3966_v53  ;;  %v3975_v36 = vcombine.high %v218_v10, %v222_v61 }
  0x5e   :  { %1013 = vmatpush1.bf16.msra.mxu0 %v3921_v27  ;;  %v3972_v27 = vcombine.high %v211_v37, %v215_v38 }
  0x5f   :  { %1014 = vmatprep.subr.bf16.mxu0 %v3927_v22  ;;  %v3969_v22 = vcombine.low %v210_v59, %v214_v20  ;;  %5671 = vst [vmem:[#allocation105_spill] sm:$0xff] %v3975_v36  ;;  %v230_v59 = vld [vmem:[%s5292_s2 + $0x2b0] sm:$0xff]  ;;  %v3990_v20 = vcombine.low %v211_v37, %v215_v38  ;;  %v231_v37 = vld [vmem:[%s5292_s2 + $0x2b8] sm:$0xff] }
  0x60   :  { %1054 = vmatpush1.bf16.msra.mxu1 %v3942_v21  ;;  %5670 = vst [vmem:[#allocation104_spill] sm:$0xff] %v3972_v27  ;;  %v227_v21 = vld [vmem:[%s5292_s2 + $0x298] sm:$0xff]  ;;  %v234_v38 = vld [vmem:[%s5292_s2 + $0x2d0] sm:$0xff] }
  0x61   :  { %5669 = vst [vmem:[#allocation103_spill] sm:$0xff] %v3969_v22  ;;  %1055 = vmatprep.subr.bf16.mxu1 %v3948_v54  ;;  %5672 = vst [vmem:[#allocation106_spill] sm:$0xff] %v3990_v20  ;;  %v3999_v54 = vcombine.high %v226_v9, %v230_v59 }
  0x62   :  { %1015 = vmatpush1.bf16.msra.mxu0 %v3945_v6  ;;  %v3996_v6 = vcombine.high %v219_v5, %v223_v8 }
  0x63   :  { %1016 = vmatprep.subr.bf16.mxu0 %v3951_v52  ;;  %v3993_v52 = vcombine.low %v218_v10, %v222_v61  ;;  %5675 = vst [vmem:[#allocation109_spill] sm:$0xff] %v3999_v54  ;;  %v238_v10 = vld [vmem:[%s5292_s2 + $0x2f0] sm:$0xff]  ;;  %v4014_v61 = vcombine.low %v219_v5, %v223_v8  ;;  %v239_v5 = vld [vmem:[%s5292_s2 + $0x2f8] sm:$0xff] }
  0x64   :  { %1056 = vmatpush1.bf16.msra.mxu1 %v3966_v53  ;;  %5674 = vst [vmem:[#allocation108_spill] sm:$0xff] %v3996_v6  ;;  %v235_v53 = vld [vmem:[%s5292_s2 + $0x2d8] sm:$0xff]  ;;  %v242_v8 = vld [vmem:[%s5292_s2 + $0x310] sm:$0xff] }
  0x65   :  { %5673 = vst [vmem:[#allocation107_spill] sm:$0xff] %v3993_v52  ;;  %1057 = vmatprep.subr.bf16.mxu1 %v3972_v27  ;;  %5676 = vst [vmem:[#allocation110_spill] sm:$0xff] %v4014_v61  ;;  %v4023_v27 = vcombine.high %v234_v38, %v238_v10 }
  0x66   :  { %1017 = vmatpush1.bf16.msra.mxu0 %v3969_v22  ;;  %v4020_v22 = vcombine.high %v227_v21, %v231_v37 }
  0x67   :  { %1018 = vmatprep.subr.bf16.mxu0 %v3975_v36  ;;  %v4017_v36 = vcombine.low %v226_v9, %v230_v59  ;;  %5679 = vst [vmem:[#allocation113_spill] sm:$0xff] %v4023_v27  ;;  %v246_v9 = vld [vmem:[%s5292_s2 + $0x330] sm:$0xff]  ;;  %v4038_v59 = vcombine.low %v227_v21, %v231_v37  ;;  %v247_v21 = vld [vmem:[%s5292_s2 + $0x338] sm:$0xff] }
  0x68   :  { %1058 = vmatpush1.bf16.msra.mxu1 %v3990_v20  ;;  %5678 = vst [vmem:[#allocation112_spill] sm:$0xff] %v4020_v22  ;;  %v243_v20 = vld [vmem:[%s5292_s2 + $0x318] sm:$0xff]  ;;  %v250_v37 = vld [vmem:[%s5292_s2 + $0x350] sm:$0xff] }
  0x69   :  { %5677 = vst [vmem:[#allocation111_spill] sm:$0xff] %v4017_v36  ;;  %1059 = vmatprep.subr.bf16.mxu1 %v3996_v6  ;;  %5680 = vst [vmem:[#allocation114_spill] sm:$0xff] %v4038_v59  ;;  %v4047_v6 = vcombine.high %v242_v8, %v246_v9 }
  0x6a   :  { %1019 = vmatpush1.bf16.msra.mxu0 %v3993_v52  ;;  %v4044_v52 = vcombine.high %v235_v53, %v239_v5 }
  0x6b   :  { %1020 = vmatprep.subr.bf16.mxu0 %v3999_v54  ;;  %v4041_v54 = vcombine.low %v234_v38, %v238_v10  ;;  %5683 = vst [vmem:[#allocation117_spill] sm:$0xff] %v4047_v6  ;;  %v254_v38 = vld [vmem:[%s5292_s2 + $0x370] sm:$0xff]  ;;  %v4062_v10 = vcombine.low %v235_v53, %v239_v5  ;;  %v255_v53 = vld [vmem:[%s5292_s2 + $0x378] sm:$0xff] }
  0x6c   :  { %1060 = vmatpush1.bf16.msra.mxu1 %v4014_v61  ;;  %5682 = vst [vmem:[#allocation116_spill] sm:$0xff] %v4044_v52  ;;  %v251_v61 = vld [vmem:[%s5292_s2 + $0x358] sm:$0xff]  ;;  %v258_v5 = vld [vmem:[%s5292_s2 + $0x390] sm:$0xff] }
  0x6d   :  { %5681 = vst [vmem:[#allocation115_spill] sm:$0xff] %v4041_v54  ;;  %1061 = vmatprep.subr.bf16.mxu1 %v4020_v22  ;;  %5684 = vst [vmem:[#allocation118_spill] sm:$0xff] %v4062_v10  ;;  %v4071_v22 = vcombine.high %v250_v37, %v254_v38 }
  0x6e   :  { %1021 = vmatpush1.bf16.msra.mxu0 %v4017_v36  ;;  %v4068_v36 = vcombine.high %v243_v20, %v247_v21 }
  0x6f   :  { %1022 = vmatprep.subr.bf16.mxu0 %v4023_v27  ;;  %v4065_v27 = vcombine.low %v242_v8, %v246_v9  ;;  %5687 = vst [vmem:[#allocation121_spill] sm:$0xff] %v4071_v22  ;;  %v262_v8 = vld [vmem:[%s5292_s2 + $0x3b0] sm:$0xff]  ;;  %v4086_v9 = vcombine.low %v243_v20, %v247_v21  ;;  %v263_v20 = vld [vmem:[%s5292_s2 + $0x3b8] sm:$0xff] }
  0x70   :  { %1062 = vmatpush1.bf16.msra.mxu1 %v4038_v59  ;;  %5686 = vst [vmem:[#allocation120_spill] sm:$0xff] %v4068_v36  ;;  %v259_v59 = vld [vmem:[%s5292_s2 + $0x398] sm:$0xff]  ;;  %v266_v21 = vld [vmem:[%s5292_s2 + $0x3d0] sm:$0xff] }
  0x71   :  { %5685 = vst [vmem:[#allocation119_spill] sm:$0xff] %v4065_v27  ;;  %1063 = vmatprep.subr.bf16.mxu1 %v4044_v52  ;;  %5688 = vst [vmem:[#allocation122_spill] sm:$0xff] %v4086_v9  ;;  %v4095_v52 = vcombine.high %v258_v5, %v262_v8 }
  0x72   :  { %1023 = vmatpush1.bf16.msra.mxu0 %v4041_v54  ;;  %v4092_v54 = vcombine.high %v251_v61, %v255_v53 }
  0x73   :  { %1024 = vmatprep.subr.bf16.mxu0 %v4047_v6  ;;  %v4089_v6 = vcombine.low %v250_v37, %v254_v38  ;;  %5691 = vst [vmem:[#allocation125_spill] sm:$0xff] %v4095_v52  ;;  %v270_v37 = vld [vmem:[%s5292_s2 + $0x3f0] sm:$0xff]  ;;  %v4110_v38 = vcombine.low %v251_v61, %v255_v53  ;;  %v271_v61 = vld [vmem:[%s5292_s2 + $0x3f8] sm:$0xff]  ;;  %v4128_v53 = vcombine.low %v259_v59, %v263_v20 }
  0x74   :  { %1064 = vmatpush1.bf16.msra.mxu1 %v4062_v10  ;;  %5690 = vst [vmem:[#allocation124_spill] sm:$0xff] %v4092_v54  ;;  %v267_v10 = vld [vmem:[%s5292_s2 + $0x3d8] sm:$0xff] }
  0x75   :  { %5689 = vst [vmem:[#allocation123_spill] sm:$0xff] %v4089_v6  ;;  %1065 = vmatprep.subr.bf16.mxu1 %v4068_v36  ;;  %5692 = vst [vmem:[#allocation126_spill] sm:$0xff] %v4110_v38  ;;  %v4119_v36 = vcombine.high %v266_v21, %v270_v37 }
  0x76   :  { %1025 = vmatpush1.bf16.msra.mxu0 %v4065_v27  ;;  %v4116_v27 = vcombine.high %v259_v59, %v263_v20  ;;  %5696 = vst [vmem:[#allocation130_spill] sm:$0xff] %v4128_v53  ;;  %v5701_v59 = vld [vmem:[#allocation53_spill] sm:$0xff]  ;;  %v5703_v20 = vld [vmem:[#allocation56_spill] sm:$0xff] }
  0x77   :  { %1026 = vmatprep.subr.bf16.mxu0 %v4071_v22  ;;  %v4113_v22 = vcombine.low %v258_v5, %v262_v8  ;;  %5695 = vst [vmem:[#allocation129_spill] sm:$0xff] %v4119_v36  ;;  %v4131_v5 = vcombine.low %v266_v21, %v270_v37  ;;  %v4134_v8 = vcombine.high %v267_v10, %v271_v61  ;;  %v5704_v21 = vld [vmem:[#allocation55_spill] sm:$0xff]  ;;  %v5705_v37 = vld [vmem:[#allocation57_spill] sm:$0xff] }
  0x78   :  { %1066 = vmatpush1.bf16.msra.mxu1 %v4086_v9  ;;  %5694 = vst [vmem:[#allocation128_spill] sm:$0xff] %v4116_v27 }
  0x79   :  { %5693 = vst [vmem:[#allocation127_spill] sm:$0xff] %v4113_v22  ;;  %1067 = vmatprep.subr.bf16.mxu1 %v4092_v54  ;;  %5697 = vst [vmem:[#allocation131_spill] sm:$0xff] %v4131_v5 }
  0x7a   :  { %1027 = vmatpush1.bf16.msra.mxu0 %v4089_v6  ;;  %5698 = vst [vmem:[#allocation132_spill] sm:$0xff] %v4134_v8 }
  0x7b   :  { %1028 = vmatprep.subr.bf16.mxu0 %v4095_v52  ;;  %v4138_v52 = vcombine.low %v267_v10, %v271_v61  ;;  %v5702_v10 = vld [vmem:[#allocation54_spill] sm:$0xff] }
  0x7c   :  { %1068 = vmatpush1.bf16.msra.mxu1 %v4110_v38  ;;  %v5706_v61 = vld [vmem:[#allocation58_spill] sm:$0xff] }
  0x7d   :  { %1069 = vmatprep.subr.bf16.mxu1 %v4116_v27  ;;  %5699 = vst [vmem:[#allocation133_spill] sm:$0xff] %v4138_v52 }
  0x7e   :  { %1029 = vmatpush1.bf16.msra.mxu0 %v4113_v22 }
  0x7f   :  { %1030 = vmatprep.subr.bf16.mxu0 %v4119_v36 }
  0x80   :  { %1070 = vmatpush1.bf16.msra.mxu1 %v4128_v53 }
  0x81   :  { %1071 = vmatprep.subr.bf16.mxu1 %v4134_v8 }
  0x82   :  { %1031 = vmatpush1.bf16.msra.mxu0 %v4131_v5 }
  0x83   :  { %1156 = vmatprep.subr.bf16.mxu0 %v3378_v3 }
  0x84   :  { %1072 = vmatpush1.bf16.msra.mxu1 %v4138_v52 }
  0x85   :  { %1033 = vmatmul.mubr.bf16.vlgmr.msra.gmra.mrb[4].mxu0 %v5639_v43  ;;  %1197 = vmatprep.subr.bf16.mxu1 %v3405_v13 }
  0x86   :  { %1157 = vmatpush1.bf16.msra.mxu0 %v3380_v4 }
  0x87   :  { %1158 = vmatprep.subr.bf16.mxu0 %v3387_v7  ;;  %1074 = vmatmul.mubr.bf16.vlgmr.msra.gmra.mrb[4].mxu1 %v5639_v43  ;;  %v5700_v43 = vld [vmem:[#allocation51_spill] sm:$0xff] }
  0x88   :  { %1198 = vmatpush1.bf16.msra.mxu1 %v3407_v14 }
  0x89   :  { %1199 = vmatprep.subr.bf16.mxu1 %v3418_v18 }
  0x8a   :  { %1159 = vmatpush1.bf16.msra.mxu0 %v3403_v12 }
  0x8b   :  { %1160 = vmatprep.subr.bf16.mxu0 %v3416_v17 }
  0x8c   :  { %1200 = vmatpush1.bf16.msra.mxu1 %v3434_v23 }
  0x8d   :  { %1201 = vmatprep.subr.bf16.mxu1 %v3440_v25 }
  0x8e   :  { %1161 = vmatpush1.bf16.msra.mxu0 %v3437_v24 }
  0x8f   :  { %1162 = vmatprep.subr.bf16.mxu0 %v3443_v26 }
  0x90   :  { %1202 = vmatpush1.bf16.msra.mxu1 %v3458_v31 }
  0x91   :  { %1203 = vmatprep.subr.bf16.mxu1 %v3464_v33 }
  0x92   :  { %1163 = vmatpush1.bf16.msra.mxu0 %v3461_v32 }
  0x93   :  { %1164 = vmatprep.subr.bf16.mxu0 %v3467_v34 }
  0x94   :  { %1204 = vmatpush1.bf16.msra.mxu1 %v3482_v39 }
  0x95   :  { %1205 = vmatprep.subr.bf16.mxu1 %v3488_v41 }
  0x96   :  { %1165 = vmatpush1.bf16.msra.mxu0 %v3485_v40 }
  0x97   :  { %1166 = vmatprep.subr.bf16.mxu0 %v3491_v42 }
  0x98   :  { %1206 = vmatpush1.bf16.msra.mxu1 %v3506_v47 }
  0x99   :  { %1207 = vmatprep.subr.bf16.mxu1 %v3512_v49 }
  0x9a   :  { %1167 = vmatpush1.bf16.msra.mxu0 %v3509_v48 }
  0x9b   :  { %1168 = vmatprep.subr.bf16.mxu0 %v3515_v50 }
  0x9c   :  { %1208 = vmatpush1.bf16.msra.mxu1 %v3530_v55 }
  0x9d   :  { %1209 = vmatprep.subr.bf16.mxu1 %v3536_v57 }
  0x9e   :  { %1169 = vmatpush1.bf16.msra.mxu0 %v3533_v56 }
  0x9f   :  { %1170 = vmatprep.subr.bf16.mxu0 %v3539_v58 }
  0xa0   :  { %1210 = vmatpush1.bf16.msra.mxu1 %v3554_v63 }
  0xa1   :  { %1211 = vmatprep.subr.bf16.mxu1 %v3560_v1 }
  0xa2   :  { %1171 = vmatpush1.bf16.msra.mxu0 %v3557_v0 }
  0xa3   :  { %1172 = vmatprep.subr.bf16.mxu0 %v3563_v2 }
  0xa4   :  { %1212 = vmatpush1.bf16.msra.mxu1 %v3578_v11 }
  0xa5   :  { %1213 = vmatprep.subr.bf16.mxu1 %v3584_v16 }
  0xa6   :  { %1173 = vmatpush1.bf16.msra.mxu0 %v3581_v15 }
  0xa7   :  { %1174 = vmatprep.subr.bf16.mxu0 %v3587_v19 }
  0xa8   :  { %1214 = vmatpush1.bf16.msra.mxu1 %v3602_v28 }
  0xa9   :  { %1215 = vmatprep.subr.bf16.mxu1 %v3608_v30 }
  0xaa   :  { %1175 = vmatpush1.bf16.msra.mxu0 %v3605_v29 }
  0xab   :  { %1176 = vmatprep.subr.bf16.mxu0 %v3611_v35 }
  0xac   :  { %1216 = vmatpush1.bf16.msra.mxu1 %v3626_v44 }
  0xad   :  { %1217 = vmatprep.subr.bf16.mxu1 %v3632_v46 }
  0xae   :  { %1177 = vmatpush1.bf16.msra.mxu0 %v3629_v45  ;;  %v5707_v45 = vld [vmem:[#allocation60_spill] sm:$0xff] }
  0xaf   :  { %1178 = vmatprep.subr.bf16.mxu0 %v3635_v51  ;;  %v5708_v51 = vld [vmem:[#allocation59_spill] sm:$0xff] }
  0xb0   :  { %1218 = vmatpush1.bf16.msra.mxu1 %v3650_v60  ;;  %v5709_v60 = vld [vmem:[#allocation61_spill] sm:$0xff] }
  0xb1   :  { %1219 = vmatprep.subr.bf16.mxu1 %v3656_v62  ;;  %v5710_v62 = vld [vmem:[#allocation62_spill] sm:$0xff] }
  0xb2   :  { %1179 = vmatpush1.bf16.msra.mxu0 %v5700_v43  ;;  %v5711_v43 = vld [vmem:[#allocation64_spill] sm:$0xff] }
  0xb3   :  { %1180 = vmatprep.subr.bf16.mxu0 %v5701_v59  ;;  %v5712_v59 = vld [vmem:[#allocation63_spill] sm:$0xff] }
  0xb4   :  { %1220 = vmatpush1.bf16.msra.mxu1 %v5702_v10  ;;  %v5713_v10 = vld [vmem:[#allocation65_spill] sm:$0xff] }
  0xb5   :  { %1221 = vmatprep.subr.bf16.mxu1 %v5703_v20  ;;  %v5714_v20 = vld [vmem:[#allocation66_spill] sm:$0xff] }
  0xb6   :  { %1181 = vmatpush1.bf16.msra.mxu0 %v5704_v21  ;;  %v5715_v21 = vld [vmem:[#allocation68_spill] sm:$0xff] }
  0xb7   :  { %1182 = vmatprep.subr.bf16.mxu0 %v5705_v37  ;;  %v5716_v37 = vld [vmem:[#allocation67_spill] sm:$0xff] }
  0xb8   :  { %1222 = vmatpush1.bf16.msra.mxu1 %v5706_v61  ;;  %v5717_v61 = vld [vmem:[#allocation69_spill] sm:$0xff] }
  0xb9   :  { %1223 = vmatprep.subr.bf16.mxu1 %v5707_v45  ;;  %v5718_v45 = vld [vmem:[#allocation70_spill] sm:$0xff] }
  0xba   :  { %1183 = vmatpush1.bf16.msra.mxu0 %v5708_v51  ;;  %v5719_v51 = vld [vmem:[#allocation72_spill] sm:$0xff] }
  0xbb   :  { %1184 = vmatprep.subr.bf16.mxu0 %v5709_v60 }
  0xbc   :  { %1224 = vmatpush1.bf16.msra.mxu1 %v5710_v62 }
  0xbd   :  { %1225 = vmatprep.subr.bf16.mxu1 %v5711_v43  ;;  %v24_v43 = vld [vmem:[%s5290_s0] sm:$0xff] }
  0xbe   :  { %1185 = vmatpush1.bf16.msra.mxu0 %v5712_v59  ;;  %v1084_v60 = vunpack.c.l.bf16 %v24_v43  ;;  %v1085_v59 = vunpack.c.h.bf16 %v24_v43 }
  0xbf   :  { %1186 = vmatprep.subr.bf16.mxu0 %v5713_v10  ;;  %v26_v10 = vld [vmem:[%s5290_s0 + $0x8] sm:$0xff] }
  0xc0   :  { %1226 = vmatpush1.bf16.msra.mxu1 %v5714_v20  ;;  %v1087_v44 = vunpack.c.h.bf16 %v26_v10  ;;  %v1086_v28 = vunpack.c.l.bf16 %v26_v10 }
  0xc1   :  { %1227 = vmatprep.subr.bf16.mxu1 %v5715_v21 }
  0xc2   :  { %1187 = vmatpush1.bf16.msra.mxu0 %v5716_v37 }
  0xc3   :  { %1238 = vmatprep.subr.bf16.mxu0 %v5717_v61 }
  0xc4   :  { %1228 = vmatpush1.bf16.msra.mxu1 %v5718_v45 }
  0xc5   :  { %1279 = vmatprep.subr.bf16.mxu1 %v5719_v51 }
 0x118   :  { %v952_v62 = vpop.f32.mrb[0].mxu0 }
 0x119   :  { %v1088_v21 = vadd.f32 %v1084_v60, %v952_v62  ;;  %v954_v20 = vpop.f32.mrb[1].mxu0 }
 0x11a   :  { %v1089_v37 = vadd.f32 %v1085_v59, %v954_v20  ;;  %v956_v46 = vpop.f32.mrb[2].mxu0  ;;  %v993_v45 = vpop.f32.mrb[0].mxu1 }
 0x11b   :  { %v3024_v61 = vmul.f32 -1.442695, %v1088_v21  ;;  %v957_v35 = vpop.f32.mrb[3].mxu0  ;;  %v995_v29 = vpop.f32.mrb[1].mxu1  ;;  %v1090_v16 = vadd.f32 %v1086_v28, %v993_v45 }
 0x11c   :  { %v3025_v51 = vmul.f32 -1.442695, %v1089_v37  ;;  %v997_v30 = vpop.f32.mrb[2].mxu1  ;;  %v1091_v43 = vadd.f32 %v1087_v44, %v995_v29 }
 0x11d   :  { %3087 = vpow2.f32 %v3024_v61  ;;  %v998_v19 = vpop.f32.mrb[3].mxu1  ;;  %v2895_v61 = vld [vmem:[%s5291_s1 + $0xf8] sm:$0xff] }
 0x11e   :  { %3089 = vpow2.f32 %v3025_v51  ;;  %v3026_v15 = vmul.f32 -1.442695, %v1091_v43 }
 0x120   :  { %3091 = vpow2.f32 %v3026_v15 }
 0x121   :  { %3093 = vtanh.f32 %v1090_v16  ;;  %v2894_v16 = vld [vmem:[%s5291_s1 + $0xf0] sm:$0xff] }
 0x122   :  { %v1121_v44 = vunpack.c.l.bf16 %v2894_v16  ;;  %v1122_v45 = vunpack.c.h.bf16 %v2894_v16 }
 0x127   :  { %v3088_v2 = vpop.eup %3087 }
 0x128   :  { %v3090_v60 = vpop.eup %3089  ;;  %v1095_v62 = vadd.f32 1.0, %v3088_v2 }
 0x129   :  { %v1101_v46 = vadd.f32 1.0, %v3090_v60 }
 0x12a   :  { %3095 = vrcp.f32 %v1095_v62  ;;  %v3092_v35 = vpop.eup %3091 }
 0x12b   :  { %3097 = vrcp.f32 %v1101_v46  ;;  %v3094_v59 = vpop.eup %3093  ;;  %v1108_v21 = vadd.f32 1.0, %v3092_v35 }
 0x12d   :  { %3099 = vrcp.f32 %v1108_v21  ;;  %v1124_v21 = vunpack.c.h.bf16 %v2895_v61 }
 0x134   :  { %v3096_v20 = vpop.eup %3095 }
 0x135   :  { %v3098_v37 = vpop.eup %3097  ;;  %v1112_v30 = vmul.f32 %v3096_v20, %v3094_v59 }
 0x136   :  { %v1111_v51 = vmul.f32 0.0, %v3098_v37 }
 0x137   :  { %v3100_v28 = vpop.eup %3099 }
 0x138   :  { %v4217_v19 = vadd.f32 %v1112_v30, %v1111_v51 }
 0x13a   :  { %5720 = vst [vmem:[#allocation134_spill] sm:$0xff] %v4217_v19  ;;  %3101 = vtanh.f32 %v4217_v19 }
 0x144   :  { %v3102_v15 = vpop.eup %3101 }
 0x145   :  { %v1115_v29 = vmul.f32 %v3102_v15, %v3100_v28 }
 0x147   :  { %v4220_v2 = vpack.c.bf16 %v1115_v29, %v1115_v29  ;;  %v1123_v29 = vunpack.c.l.bf16 %v2895_v61 }
 0x149   :  { %1117 = vst [vmem:[%s5293_s3] sm:$0xf] %v4220_v2 }
 0x158   :  { %v1034_v10 = vpop.f32.mrb[4].mxu0 }
 0x159   :  { %v1125_v43 = vadd.f32 %v1121_v44, %v1034_v10  ;;  %v1036_v60 = vpop.f32.mrb[5].mxu0 }
 0x15a   :  { %v1126_v62 = vadd.f32 %v1122_v45, %v1036_v60  ;;  %v1038_v46 = vpop.f32.mrb[6].mxu0  ;;  %v1075_v20 = vpop.f32.mrb[4].mxu1 }
 0x15b   :  { %v3027_v35 = vmul.f32 -1.442695, %v1125_v43  ;;  %v1039_v59 = vpop.f32.mrb[7].mxu0  ;;  %v1077_v30 = vpop.f32.mrb[5].mxu1  ;;  %v1127_v19 = vadd.f32 %v1123_v29, %v1075_v20  ;;  %v5725_v29 = vld [vmem:[#allocation75_spill] sm:$0xff] }
 0x15c   :  { %v3028_v37 = vmul.f32 -1.442695, %v1126_v62  ;;  %v1079_v51 = vpop.f32.mrb[6].mxu1  ;;  %v1128_v15 = vadd.f32 %v1124_v21, %v1077_v30  ;;  %v5722_v30 = vld [vmem:[#allocation74_spill] sm:$0xff] }
 0x15d   :  { %3103 = vpow2.f32 %v3027_v35  ;;  %v1080_v28 = vpop.f32.mrb[7].mxu1 }
 0x15e   :  { %3105 = vpow2.f32 %v3028_v37  ;;  %v3029_v16 = vmul.f32 -1.442695, %v1128_v15  ;;  %v5723_v28 = vld [vmem:[#allocation73_spill] sm:$0xff]  ;;  %v5724_v15 = vld [vmem:[#allocation76_spill] sm:$0xff] }
 0x160   :  { %3107 = vpow2.f32 %v3029_v16  ;;  %v5726_v16 = vld [vmem:[#allocation78_spill] sm:$0xff] }
 0x161   :  { %3109 = vtanh.f32 %v1127_v19  ;;  %v5721_v19 = vld [vmem:[#allocation71_spill] sm:$0xff] }
 0x167   :  { %v3104_v11 = vpop.eup %3103 }
 0x168   :  { %v3106_v44 = vpop.eup %3105  ;;  %v1132_v10 = vadd.f32 1.0, %v3104_v11 }
 0x169   :  { %v1138_v45 = vadd.f32 1.0, %v3106_v44  ;;  %v5727_v44 = vld [vmem:[#allocation77_spill] sm:$0xff] }
 0x16a   :  { %3111 = vrcp.f32 %v1132_v10  ;;  %v3108_v43 = vpop.eup %3107  ;;  %v5728_v10 = vld [vmem:[#allocation80_spill] sm:$0xff] }
 0x16b   :  { %3113 = vrcp.f32 %v1138_v45  ;;  %v3110_v60 = vpop.eup %3109  ;;  %v1145_v46 = vadd.f32 1.0, %v3108_v43  ;;  %v5729_v45 = vld [vmem:[#allocation79_spill] sm:$0xff]  ;;  %v5730_v43 = vld [vmem:[#allocation82_spill] sm:$0xff] }
 0x16d   :  { %3115 = vrcp.f32 %v1145_v46  ;;  %v5733_v46 = vld [vmem:[#allocation83_spill] sm:$0xff] }
 0x174   :  { %v3112_v62 = vpop.eup %3111 }
 0x175   :  { %v3114_v35 = vpop.eup %3113  ;;  %v1149_v59 = vmul.f32 %v3112_v62, %v3110_v60  ;;  %v5731_v60 = vld [vmem:[#allocation81_spill] sm:$0xff]  ;;  %v5732_v62 = vld [vmem:[#allocation84_spill] sm:$0xff] }
 0x176   :  { %v1148_v37 = vmul.f32 0.0, %v3114_v35  ;;  %v5734_v35 = vld [vmem:[#allocation86_spill] sm:$0xff] }
 0x177   :  { %v3116_v61 = vpop.eup %3115 }
 0x178   :  { %v4232_v51 = vadd.f32 %v1149_v59, %v1148_v37  ;;  %v5735_v59 = vld [vmem:[#allocation85_spill] sm:$0xff]  ;;  %v5736_v37 = vld [vmem:[#allocation88_spill] sm:$0xff] }
 0x17a   :  { %3117 = vtanh.f32 %v4232_v51 }
 0x184   :  { %v3118_v20 = vpop.eup %3117 }
 0x185   :  { %v1152_v21 = vmul.f32 %v3118_v20, %v3116_v61  ;;  %v5737_v61 = vld [vmem:[#allocation87_spill] sm:$0xff]  ;;  %v5738_v20 = vld [vmem:[#allocation90_spill] sm:$0xff] }
 0x187   :  { %v1153_v11 = vpack.c.bf16 %v1152_v21, %v1152_v21  ;;  %v5739_v21 = vld [vmem:[#allocation89_spill] sm:$0xff] }
 0x189   :  { %3030 = vst [vmem:[%s5294_s4 + $0x1c] sm:$0xf] %v1153_v11  ;;  %1188 = vmatprep.mubr.bf16.mxu0 %v1153_v11  ;;  %1229 = vmatprep.mubr.bf16.mxu1 %v1153_v11 }
 0x18a   :  { %1189 = vmatmul.mubr.bf16.vlgmr.msra.gmra.mrb[8].mxu0 %v4220_v2  ;;  %1230 = vmatmul.mubr.bf16.vlgmr.msra.gmra.mrb[8].mxu1 %v4220_v2 }
 0x18b   :  { %1239 = vmatpush1.bf16.msra.mxu0 %v5721_v19  ;;  %1280 = vmatpush1.bf16.msra.mxu1 %v5722_v30 }
 0x18c   :  { %1270 = vmatprep.mubr.bf16.mxu0 %v1153_v11  ;;  %1311 = vmatprep.mubr.bf16.mxu1 %v1153_v11  ;;  %v5740_v11 = vld [vmem:[#allocation92_spill] sm:$0xff] }
 0x18d   :  { %1240 = vmatprep.subr.bf16.mxu0 %v5723_v28  ;;  %1281 = vmatprep.subr.bf16.mxu1 %v5724_v15 }
 0x18f   :  { %1241 = vmatpush1.bf16.msra.mxu0 %v5725_v29  ;;  %1282 = vmatpush1.bf16.msra.mxu1 %v5726_v16 }
 0x190   :  { %1242 = vmatprep.subr.bf16.mxu0 %v5727_v44  ;;  %1283 = vmatprep.subr.bf16.mxu1 %v5728_v10 }
 0x193   :  { %1243 = vmatpush1.bf16.msra.mxu0 %v5729_v45  ;;  %1284 = vmatpush1.bf16.msra.mxu1 %v5730_v43  ;;  %v5741_v43 = vld [vmem:[#allocation91_spill] sm:$0xff] }
 0x194   :  { %1244 = vmatprep.subr.bf16.mxu0 %v5731_v60  ;;  %1285 = vmatprep.subr.bf16.mxu1 %v5732_v62  ;;  %v5742_v60 = vld [vmem:[#allocation94_spill] sm:$0xff]  ;;  %v5743_v62 = vld [vmem:[#allocation93_spill] sm:$0xff] }
 0x197   :  { %1245 = vmatpush1.bf16.msra.mxu0 %v5733_v46  ;;  %1286 = vmatpush1.bf16.msra.mxu1 %v5734_v35  ;;  %v5744_v46 = vld [vmem:[#allocation96_spill] sm:$0xff]  ;;  %v5745_v35 = vld [vmem:[#allocation95_spill] sm:$0xff] }
 0x198   :  { %1246 = vmatprep.subr.bf16.mxu0 %v5735_v59  ;;  %1287 = vmatprep.subr.bf16.mxu1 %v5736_v37  ;;  %v5746_v59 = vld [vmem:[#allocation98_spill] sm:$0xff]  ;;  %v5747_v37 = vld [vmem:[#allocation97_spill] sm:$0xff] }
 0x19b   :  { %1247 = vmatpush1.bf16.msra.mxu0 %v5737_v61  ;;  %1288 = vmatpush1.bf16.msra.mxu1 %v5738_v20  ;;  %v5748_v61 = vld [vmem:[#allocation100_spill] sm:$0xff]  ;;  %v5749_v20 = vld [vmem:[#allocation99_spill] sm:$0xff] }
 0x19c   :  { %1248 = vmatprep.subr.bf16.mxu0 %v5739_v21  ;;  %1289 = vmatprep.subr.bf16.mxu1 %v5740_v11  ;;  %v5750_v21 = vld [vmem:[#allocation102_spill] sm:$0xff]  ;;  %v5751_v11 = vld [vmem:[#allocation101_spill] sm:$0xff] }
 0x19f   :  { %1249 = vmatpush1.bf16.msra.mxu0 %v5741_v43  ;;  %1290 = vmatpush1.bf16.msra.mxu1 %v5742_v60  ;;  %v5752_v43 = vld [vmem:[#allocation104_spill] sm:$0xff]  ;;  %v5753_v60 = vld [vmem:[#allocation103_spill] sm:$0xff] }
 0x1a0   :  { %1250 = vmatprep.subr.bf16.mxu0 %v5743_v62  ;;  %1291 = vmatprep.subr.bf16.mxu1 %v5744_v46  ;;  %v5754_v62 = vld [vmem:[#allocation106_spill] sm:$0xff]  ;;  %v5755_v46 = vld [vmem:[#allocation105_spill] sm:$0xff] }
 0x1a3   :  { %1251 = vmatpush1.bf16.msra.mxu0 %v5745_v35  ;;  %1292 = vmatpush1.bf16.msra.mxu1 %v5746_v59  ;;  %v5756_v35 = vld [vmem:[#allocation108_spill] sm:$0xff]  ;;  %v5757_v59 = vld [vmem:[#allocation107_spill] sm:$0xff] }
 0x1a4   :  { %1252 = vmatprep.subr.bf16.mxu0 %v5747_v37  ;;  %1293 = vmatprep.subr.bf16.mxu1 %v5748_v61  ;;  %v5758_v37 = vld [vmem:[#allocation110_spill] sm:$0xff]  ;;  %v5759_v61 = vld [vmem:[#allocation109_spill] sm:$0xff] }
 0x1a7   :  { %1253 = vmatpush1.bf16.msra.mxu0 %v5749_v20  ;;  %1294 = vmatpush1.bf16.msra.mxu1 %v5750_v21  ;;  %v5760_v20 = vld [vmem:[#allocation112_spill] sm:$0xff]  ;;  %v5761_v21 = vld [vmem:[#allocation111_spill] sm:$0xff] }
 0x1a8   :  { %1254 = vmatprep.subr.bf16.mxu0 %v5751_v11  ;;  %1295 = vmatprep.subr.bf16.mxu1 %v5752_v43  ;;  %v5762_v11 = vld [vmem:[#allocation114_spill] sm:$0xff]  ;;  %v5763_v43 = vld [vmem:[#allocation113_spill] sm:$0xff] }
 0x1ab   :  { %1255 = vmatpush1.bf16.msra.mxu0 %v5753_v60  ;;  %1296 = vmatpush1.bf16.msra.mxu1 %v5754_v62  ;;  %v5764_v60 = vld [vmem:[#allocation116_spill] sm:$0xff]  ;;  %v5765_v62 = vld [vmem:[#allocation115_spill] sm:$0xff] }
 0x1ac   :  { %1256 = vmatprep.subr.bf16.mxu0 %v5755_v46  ;;  %1297 = vmatprep.subr.bf16.mxu1 %v5756_v35  ;;  %v5766_v46 = vld [vmem:[#allocation118_spill] sm:$0xff]  ;;  %v5767_v35 = vld [vmem:[#allocation117_spill] sm:$0xff] }
 0x1af   :  { %1257 = vmatpush1.bf16.msra.mxu0 %v5757_v59  ;;  %1298 = vmatpush1.bf16.msra.mxu1 %v5758_v37  ;;  %v5768_v59 = vld [vmem:[#allocation120_spill] sm:$0xff]  ;;  %v5769_v37 = vld [vmem:[#allocation119_spill] sm:$0xff] }
 0x1b0   :  { %1258 = vmatprep.subr.bf16.mxu0 %v5759_v61  ;;  %1299 = vmatprep.subr.bf16.mxu1 %v5760_v20  ;;  %v5770_v20 = vld [vmem:[#allocation121_spill] sm:$0xff] }
 0x1b3   :  { %1259 = vmatpush1.bf16.msra.mxu0 %v5761_v21  ;;  %1300 = vmatpush1.bf16.msra.mxu1 %v5762_v11 }
 0x1b4   :  { %1260 = vmatprep.subr.bf16.mxu0 %v5763_v43  ;;  %1301 = vmatprep.subr.bf16.mxu1 %v5764_v60  ;;  %v5771_v60 = vld [vmem:[#allocation125_spill] sm:$0xff] }
 0x1b7   :  { %1261 = vmatpush1.bf16.msra.mxu0 %v5765_v62  ;;  %1302 = vmatpush1.bf16.msra.mxu1 %v5766_v46 }
 0x1b8   :  { %1262 = vmatprep.subr.bf16.mxu0 %v5767_v35  ;;  %1303 = vmatprep.subr.bf16.mxu1 %v5768_v59 }
 0x1bb   :  { %1263 = vmatpush1.bf16.msra.mxu0 %v5769_v37  ;;  %1304 = vmatpush1.bf16.msra.mxu1 %v4086_v9 }
 0x1bc   :  { %1264 = vmatprep.subr.bf16.mxu0 %v5770_v20  ;;  %1305 = vmatprep.subr.bf16.mxu1 %v4092_v54 }
 0x1bf   :  { %1265 = vmatpush1.bf16.msra.mxu0 %v4089_v6  ;;  %1306 = vmatpush1.bf16.msra.mxu1 %v4110_v38 }
 0x1c0   :  { %1266 = vmatprep.subr.bf16.mxu0 %v5771_v60  ;;  %1307 = vmatprep.subr.bf16.mxu1 %v4116_v27 }
 0x1c3   :  { %1267 = vmatpush1.bf16.msra.mxu0 %v4113_v22  ;;  %1308 = vmatpush1.bf16.msra.mxu1 %v4128_v53 }
 0x1c4   :  { %1268 = vmatprep.subr.bf16.mxu0 %v4119_v36  ;;  %1309 = vmatprep.subr.bf16.mxu1 %v4134_v8 }
 0x1c7   :  { %1269 = vmatpush1.bf16.msra.mxu0 %v4131_v5  ;;  %1310 = vmatpush1.bf16.msra.mxu1 %v4138_v52 }
 0x1c8   :  { %1396 = vmatprep.subr.bf16.mxu0 %v3378_v3  ;;  %1437 = vmatprep.subr.bf16.mxu1 %v3405_v13 }
 0x1ca   :  { %1271 = vmatmul.mubr.bf16.vlgmr.msra.gmra.mrb[12].mxu0 %v4220_v2  ;;  %1312 = vmatmul.mubr.bf16.vlgmr.msra.gmra.mrb[12].mxu1 %v4220_v2  ;;  %v5772_v2 = vld [vmem:[#allocation38_spill] sm:$0xff] }
 0x1cb   :  { %1397 = vmatpush1.bf16.msra.mxu0 %v3380_v4  ;;  %1438 = vmatpush1.bf16.msra.mxu1 %v3407_v14 }
 0x1cc   :  { %1398 = vmatprep.subr.bf16.mxu0 %v3387_v7  ;;  %1439 = vmatprep.subr.bf16.mxu1 %v3418_v18 }
 0x1cf   :  { %1399 = vmatpush1.bf16.msra.mxu0 %v3403_v12  ;;  %1440 = vmatpush1.bf16.msra.mxu1 %v3434_v23 }
 0x1d0   :  { %1400 = vmatprep.subr.bf16.mxu0 %v3416_v17  ;;  %1441 = vmatprep.subr.bf16.mxu1 %v3440_v25 }
 0x1d3   :  { %1401 = vmatpush1.bf16.msra.mxu0 %v3437_v24  ;;  %1442 = vmatpush1.bf16.msra.mxu1 %v3458_v31 }
 0x1d4   :  { %1402 = vmatprep.subr.bf16.mxu0 %v3443_v26  ;;  %1443 = vmatprep.subr.bf16.mxu1 %v3464_v33 }
 0x1d7   :  { %1403 = vmatpush1.bf16.msra.mxu0 %v3461_v32  ;;  %1444 = vmatpush1.bf16.msra.mxu1 %v3482_v39 }
 0x1d8   :  { %1404 = vmatprep.subr.bf16.mxu0 %v3467_v34  ;;  %1445 = vmatprep.subr.bf16.mxu1 %v3488_v41 }
 0x1db   :  { %1405 = vmatpush1.bf16.msra.mxu0 %v3485_v40  ;;  %1446 = vmatpush1.bf16.msra.mxu1 %v3506_v47 }
 0x1dc   :  { %1406 = vmatprep.subr.bf16.mxu0 %v3491_v42  ;;  %1447 = vmatprep.subr.bf16.mxu1 %v3512_v49  ;;  %v5773_v49 = vld [vmem:[#allocation37_spill] sm:$0xff] }
 0x1df   :  { %1407 = vmatpush1.bf16.msra.mxu0 %v3509_v48  ;;  %1448 = vmatpush1.bf16.msra.mxu1 %v3530_v55  ;;  %v5774_v48 = vld [vmem:[#allocation40_spill] sm:$0xff]  ;;  %v5775_v55 = vld [vmem:[#allocation39_spill] sm:$0xff] }
 0x1e0   :  { %1408 = vmatprep.subr.bf16.mxu0 %v3515_v50  ;;  %1449 = vmatprep.subr.bf16.mxu1 %v3536_v57  ;;  %v5776_v50 = vld [vmem:[#allocation42_spill] sm:$0xff]  ;;  %v5777_v57 = vld [vmem:[#allocation41_spill] sm:$0xff] }
 0x1e3   :  { %1409 = vmatpush1.bf16.msra.mxu0 %v3533_v56  ;;  %1450 = vmatpush1.bf16.msra.mxu1 %v3554_v63  ;;  %v5778_v56 = vld [vmem:[#allocation44_spill] sm:$0xff]  ;;  %v5779_v63 = vld [vmem:[#allocation43_spill] sm:$0xff] }
 0x1e4   :  { %1410 = vmatprep.subr.bf16.mxu0 %v3539_v58  ;;  %1451 = vmatprep.subr.bf16.mxu1 %v3560_v1  ;;  %v5780_v58 = vld [vmem:[#allocation46_spill] sm:$0xff]  ;;  %v5781_v1 = vld [vmem:[#allocation45_spill] sm:$0xff] }
 0x1e7   :  { %1411 = vmatpush1.bf16.msra.mxu0 %v3557_v0  ;;  %1452 = vmatpush1.bf16.msra.mxu1 %v5772_v2  ;;  %v5782_v0 = vld [vmem:[#allocation48_spill] sm:$0xff]  ;;  %v5783_v2 = vld [vmem:[#allocation47_spill] sm:$0xff] }
 0x1e8   :  { %1412 = vmatprep.subr.bf16.mxu0 %v5773_v49  ;;  %1453 = vmatprep.subr.bf16.mxu1 %v5774_v48  ;;  %v5784_v49 = vld [vmem:[#allocation50_spill] sm:$0xff]  ;;  %v5785_v48 = vld [vmem:[#allocation49_spill] sm:$0xff] }
 0x1eb   :  { %1413 = vmatpush1.bf16.msra.mxu0 %v5775_v55  ;;  %1454 = vmatpush1.bf16.msra.mxu1 %v5776_v50  ;;  %v5786_v55 = vld [vmem:[#allocation52_spill] sm:$0xff]  ;;  %v5787_v50 = vld [vmem:[#allocation51_spill] sm:$0xff] }
 0x1ec   :  { %1414 = vmatprep.subr.bf16.mxu0 %v5777_v57  ;;  %1455 = vmatprep.subr.bf16.mxu1 %v5778_v56  ;;  %v5788_v57 = vld [vmem:[#allocation54_spill] sm:$0xff]  ;;  %v5789_v56 = vld [vmem:[#allocation53_spill] sm:$0xff] }
 0x1ef   :  { %1415 = vmatpush1.bf16.msra.mxu0 %v5779_v63  ;;  %1456 = vmatpush1.bf16.msra.mxu1 %v5780_v58  ;;  %v5790_v63 = vld [vmem:[#allocation56_spill] sm:$0xff]  ;;  %v5791_v58 = vld [vmem:[#allocation55_spill] sm:$0xff] }
 0x1f0   :  { %1416 = vmatprep.subr.bf16.mxu0 %v5781_v1  ;;  %1457 = vmatprep.subr.bf16.mxu1 %v5782_v0  ;;  %v5792_v1 = vld [vmem:[#allocation58_spill] sm:$0xff]  ;;  %v5793_v0 = vld [vmem:[#allocation57_spill] sm:$0xff] }
 0x1f3   :  { %1417 = vmatpush1.bf16.msra.mxu0 %v5783_v2  ;;  %1458 = vmatpush1.bf16.msra.mxu1 %v5784_v49  ;;  %v5794_v2 = vld [vmem:[#allocation60_spill] sm:$0xff]  ;;  %v5795_v49 = vld [vmem:[#allocation59_spill] sm:$0xff] }
 0x1f4   :  { %1418 = vmatprep.subr.bf16.mxu0 %v5785_v48  ;;  %1459 = vmatprep.subr.bf16.mxu1 %v5786_v55  ;;  %v5796_v48 = vld [vmem:[#allocation62_spill] sm:$0xff]  ;;  %v5797_v55 = vld [vmem:[#allocation61_spill] sm:$0xff] }
 0x1f7   :  { %1419 = vmatpush1.bf16.msra.mxu0 %v5787_v50  ;;  %1460 = vmatpush1.bf16.msra.mxu1 %v5788_v57  ;;  %v5798_v50 = vld [vmem:[#allocation64_spill] sm:$0xff]  ;;  %v5799_v57 = vld [vmem:[#allocation63_spill] sm:$0xff] }
 0x1f8   :  { %1420 = vmatprep.subr.bf16.mxu0 %v5789_v56  ;;  %1461 = vmatprep.subr.bf16.mxu1 %v5790_v63  ;;  %v5800_v56 = vld [vmem:[#allocation66_spill] sm:$0xff]  ;;  %v5801_v63 = vld [vmem:[#allocation65_spill] sm:$0xff] }
 0x1fb   :  { %1421 = vmatpush1.bf16.msra.mxu0 %v5791_v58  ;;  %1462 = vmatpush1.bf16.msra.mxu1 %v5792_v1  ;;  %v5802_v58 = vld [vmem:[#allocation68_spill] sm:$0xff]  ;;  %v5803_v1 = vld [vmem:[#allocation67_spill] sm:$0xff] }
 0x1fc   :  { %1422 = vmatprep.subr.bf16.mxu0 %v5793_v0  ;;  %1463 = vmatprep.subr.bf16.mxu1 %v5794_v2  ;;  %v5804_v0 = vld [vmem:[#allocation70_spill] sm:$0xff]  ;;  %v5805_v2 = vld [vmem:[#allocation69_spill] sm:$0xff] }
 0x1ff   :  { %1423 = vmatpush1.bf16.msra.mxu0 %v5795_v49  ;;  %1464 = vmatpush1.bf16.msra.mxu1 %v5796_v48  ;;  %v5806_v49 = vld [vmem:[#allocation72_spill] sm:$0xff] }
 0x200   :  { %1424 = vmatprep.subr.bf16.mxu0 %v5797_v55  ;;  %1465 = vmatprep.subr.bf16.mxu1 %v5798_v50  ;;  %v28_v50 = vld [vmem:[%s5290_s0 + $0x20] sm:$0xff] }
 0x201   :  { %v1323_v55 = vunpack.c.l.bf16 %v28_v50 }
 0x203   :  { %1425 = vmatpush1.bf16.msra.mxu0 %v5799_v57  ;;  %1466 = vmatpush1.bf16.msra.mxu1 %v5800_v56  ;;  %v1324_v57 = vunpack.c.h.bf16 %v28_v50 }
 0x204   :  { %1426 = vmatprep.subr.bf16.mxu0 %v5801_v63  ;;  %1467 = vmatprep.subr.bf16.mxu1 %v5802_v58  ;;  %v30_v58 = vld [vmem:[%s5290_s0 + $0x28] sm:$0xff] }
 0x205   :  { %v1326_v39 = vunpack.c.h.bf16 %v30_v58  ;;  %v1325_v32 = vunpack.c.l.bf16 %v30_v58 }
 0x207   :  { %1427 = vmatpush1.bf16.msra.mxu0 %v5803_v1  ;;  %1468 = vmatpush1.bf16.msra.mxu1 %v5804_v0 }
 0x208   :  { %1478 = vmatprep.subr.bf16.mxu0 %v5805_v2  ;;  %1519 = vmatprep.subr.bf16.mxu1 %v5806_v49 }
 0x25d   :  { %v1190_v48 = vpop.f32.mrb[8].mxu0  ;;  %v1231_v56 = vpop.f32.mrb[8].mxu1 }
 0x25e   :  { %v1327_v42 = vadd.f32 %v1323_v55, %v1190_v48  ;;  %v1192_v1 = vpop.f32.mrb[9].mxu0  ;;  %v1233_v63 = vpop.f32.mrb[9].mxu1  ;;  %v1329_v48 = vadd.f32 %v1325_v32, %v1231_v56 }
 0x25f   :  { %v1328_v0 = vadd.f32 %v1324_v57, %v1192_v1  ;;  %v1194_v47 = vpop.f32.mrb[10].mxu0  ;;  %v1235_v2 = vpop.f32.mrb[10].mxu1  ;;  %v1330_v50 = vadd.f32 %v1326_v39, %v1233_v63 }
 0x260   :  { %v3031_v40 = vmul.f32 -1.442695, %v1327_v42  ;;  %v1195_v49 = vpop.f32.mrb[11].mxu0  ;;  %v1236_v41 = vpop.f32.mrb[11].mxu1 }
 0x261   :  { %v3032_v34 = vmul.f32 -1.442695, %v1328_v0  ;;  %v3033_v33 = vmul.f32 -1.442695, %v1330_v50  ;;  %v2893_v50 = vld [vmem:[%s5291_s1 + $0xd8] sm:$0xff] }
 0x262   :  { %3119 = vpow2.f32 %v3031_v40  ;;  %v5807_v40 = vld [vmem:[#allocation134_spill] sm:$0xff] }
 0x263   :  { %3121 = vpow2.f32 %v3032_v34 }
 0x264   :  { %3123 = vpow2.f32 %v3033_v33 }
 0x265   :  { %3125 = vtanh.f32 %v1329_v48 }
 0x26c   :  { %v3120_v55 = vpop.eup %3119 }
 0x26d   :  { %v3122_v26 = vpop.eup %3121  ;;  %v1334_v31 = vadd.f32 1.0, %v3120_v55 }
 0x26e   :  { %v1340_v24 = vadd.f32 1.0, %v3122_v26  ;;  %v3124_v47 = vpop.eup %3123 }
 0x26f   :  { %3127 = vrcp.f32 %v1334_v31  ;;  %v3126_v42 = vpop.eup %3125  ;;  %v1347_v0 = vadd.f32 1.0, %v3124_v47 }
 0x270   :  { %3129 = vrcp.f32 %v1340_v24  ;;  %v2892_v24 = vld [vmem:[%s5291_s1 + $0xd0] sm:$0xff] }
 0x271   :  { %3131 = vrcp.f32 %v1347_v0  ;;  %v1361_v26 = vunpack.c.l.bf16 %v2892_v24  ;;  %v1362_v31 = vunpack.c.h.bf16 %v2892_v24 }
 0x279   :  { %v3128_v49 = vpop.eup %3127 }
 0x27a   :  { %v3130_v41 = vpop.eup %3129  ;;  %v1351_v57 = vmul.f32 %v3128_v49, %v3126_v42 }
 0x27b   :  { %v1350_v34 = vmul.f32 %v3130_v41, %v5807_v40  ;;  %v3132_v32 = vpop.eup %3131 }
 0x27d   :  { %v4377_v39 = vadd.f32 %v1351_v57, %v1350_v34  ;;  %v1364_v34 = vunpack.c.h.bf16 %v2893_v50 }
 0x27f   :  { %5808 = vst [vmem:[#allocation71_spill] sm:$0xff] %v4377_v39  ;;  %3133 = vtanh.f32 %v4377_v39 }
 0x289   :  { %v3134_v56 = vpop.eup %3133 }
 0x28a   :  { %v1354_v33 = vmul.f32 %v3134_v56, %v3132_v32  ;;  %v1363_v56 = vunpack.c.l.bf16 %v2893_v50 }
 0x28c   :  { %v4380_v58 = vpack.c.bf16 %v1354_v33, %v1354_v33 }
 0x28e   :  { %3034 = vst [vmem:[%s5293_s3 + $0x4] sm:$0xf] %v4380_v58 }
 0x29d   :  { %v1272_v63 = vpop.f32.mrb[12].mxu0  ;;  %v1313_v1 = vpop.f32.mrb[12].mxu1 }
 0x29e   :  { %v1365_v2 = vadd.f32 %v1361_v26, %v1272_v63  ;;  %v1274_v48 = vpop.f32.mrb[13].mxu0  ;;  %v1315_v55 = vpop.f32.mrb[13].mxu1  ;;  %v1367_v24 = vadd.f32 %v1363_v56, %v1313_v1  ;;  %v5815_v56 = vld [vmem:[#allocation88_spill] sm:$0xff] }
 0x29f   :  { %v1366_v47 = vadd.f32 %v1362_v31, %v1274_v48  ;;  %v1276_v42 = vpop.f32.mrb[14].mxu0  ;;  %v1317_v49 = vpop.f32.mrb[14].mxu1  ;;  %v1368_v32 = vadd.f32 %v1364_v34, %v1315_v55  ;;  %v5813_v34 = vld [vmem:[#allocation86_spill] sm:$0xff] }
 0x2a0   :  { %v3035_v41 = vmul.f32 -1.442695, %v1365_v2  ;;  %v1277_v57 = vpop.f32.mrb[15].mxu0  ;;  %v1318_v0 = vpop.f32.mrb[15].mxu1 }
 0x2a1   :  { %v3036_v40 = vmul.f32 -1.442695, %v1366_v47  ;;  %v3037_v33 = vmul.f32 -1.442695, %v1368_v32  ;;  %v5814_v32 = vld [vmem:[#allocation85_spill] sm:$0xff] }
 0x2a2   :  { %3135 = vpow2.f32 %v3035_v41 }
 0x2a3   :  { %3137 = vpow2.f32 %v3036_v40  ;;  %v5812_v40 = vld [vmem:[#allocation83_spill] sm:$0xff] }
 0x2a4   :  { %3139 = vpow2.f32 %v3037_v33  ;;  %v5816_v33 = vld [vmem:[#allocation87_spill] sm:$0xff] }
 0x2a5   :  { %3141 = vtanh.f32 %v1367_v24  ;;  %v5817_v24 = vld [vmem:[#allocation90_spill] sm:$0xff] }
 0x2ac   :  { %v3136_v26 = vpop.eup %3135 }
 0x2ad   :  { %v3138_v63 = vpop.eup %3137  ;;  %v1372_v39 = vadd.f32 1.0, %v3136_v26  ;;  %v5818_v26 = vld [vmem:[#allocation89_spill] sm:$0xff] }
 0x2ae   :  { %v1378_v25 = vadd.f32 1.0, %v3138_v63  ;;  %v3140_v31 = vpop.eup %3139  ;;  %v5819_v63 = vld [vmem:[#allocation92_spill] sm:$0xff] }
 0x2af   :  { %3143 = vrcp.f32 %v1372_v39  ;;  %v3142_v2 = vpop.eup %3141  ;;  %v1385_v49 = vadd.f32 1.0, %v3140_v31  ;;  %v5811_v39 = vld [vmem:[#allocation84_spill] sm:$0xff]  ;;  %v5820_v31 = vld [vmem:[#allocation91_spill] sm:$0xff] }
 0x2b0   :  { %3145 = vrcp.f32 %v1378_v25  ;;  %v5809_v25 = vld [vmem:[#allocation82_spill] sm:$0xff] }
 0x2b1   :  { %3147 = vrcp.f32 %v1385_v49  ;;  %v5825_v49 = vld [vmem:[#allocation98_spill] sm:$0xff] }
 0x2b9   :  { %v3144_v48 = vpop.eup %3143 }
 0x2ba   :  { %v3146_v42 = vpop.eup %3145  ;;  %v1389_v47 = vmul.f32 %v3144_v48, %v3142_v2  ;;  %v5821_v2 = vld [vmem:[#allocation94_spill] sm:$0xff]  ;;  %v5822_v48 = vld [vmem:[#allocation93_spill] sm:$0xff] }
 0x2bb   :  { %v1388_v41 = vmul.f32 %v3146_v42, %v4232_v51  ;;  %v3148_v1 = vpop.eup %3147  ;;  %v5810_v51 = vld [vmem:[#allocation81_spill] sm:$0xff]  ;;  %v5823_v42 = vld [vmem:[#allocation96_spill] sm:$0xff] }
 0x2bd   :  { %v4393_v55 = vadd.f32 %v1389_v47, %v1388_v41  ;;  %v5824_v47 = vld [vmem:[#allocation95_spill] sm:$0xff]  ;;  %v5826_v41 = vld [vmem:[#allocation97_spill] sm:$0xff] }
 0x2bf   :  { %3149 = vtanh.f32 %v4393_v55 }
 0x2c9   :  { %v3150_v50 = vpop.eup %3149 }
 0x2ca   :  { %v1392_v57 = vmul.f32 %v3150_v50, %v3148_v1  ;;  %v5827_v1 = vld [vmem:[#allocation100_spill] sm:$0xff]  ;;  %v5828_v50 = vld [vmem:[#allocation99_spill] sm:$0xff] }
 0x2cc   :  { %v1393_v0 = vpack.c.bf16 %v1392_v57, %v1392_v57  ;;  %v5829_v57 = vld [vmem:[#allocation102_spill] sm:$0xff] }
 0x2ce   :  { %3038 = vst [vmem:[%s5294_s4 + $0x18] sm:$0xf] %v1393_v0  ;;  %1428 = vmatprep.mubr.bf16.mxu0 %v1393_v0  ;;  %1469 = vmatprep.mubr.bf16.mxu1 %v1393_v0 }
 0x2cf   :  { %1429 = vmatmul.mubr.bf16.vlgmr.msra.gmra.mrb[16].mxu0 %v4380_v58  ;;  %1470 = vmatmul.mubr.bf16.vlgmr.msra.gmra.mrb[16].mxu1 %v4380_v58 }
 0x2d0   :  { %1479 = vmatpush1.bf16.msra.mxu0 %v5721_v19  ;;  %1520 = vmatpush1.bf16.msra.mxu1 %v5722_v30 }
 0x2d1   :  { %1510 = vmatprep.mubr.bf16.mxu0 %v1393_v0  ;;  %1551 = vmatprep.mubr.bf16.mxu1 %v1393_v0  ;;  %v5830_v0 = vld [vmem:[#allocation101_spill] sm:$0xff] }
 0x2d2   :  { %1480 = vmatprep.subr.bf16.mxu0 %v5723_v28  ;;  %1521 = vmatprep.subr.bf16.mxu1 %v5724_v15 }
 0x2d4   :  { %1481 = vmatpush1.bf16.msra.mxu0 %v5725_v29  ;;  %1522 = vmatpush1.bf16.msra.mxu1 %v5726_v16 }
 0x2d5   :  { %1482 = vmatprep.subr.bf16.mxu0 %v5727_v44  ;;  %1523 = vmatprep.subr.bf16.mxu1 %v5728_v10 }
 0x2d8   :  { %1483 = vmatpush1.bf16.msra.mxu0 %v5729_v45  ;;  %1524 = vmatpush1.bf16.msra.mxu1 %v5809_v25 }
 0x2d9   :  { %1484 = vmatprep.subr.bf16.mxu0 %v5810_v51  ;;  %1525 = vmatprep.subr.bf16.mxu1 %v5811_v39 }
 0x2dc   :  { %1485 = vmatpush1.bf16.msra.mxu0 %v5812_v40  ;;  %1526 = vmatpush1.bf16.msra.mxu1 %v5813_v34 }
 0x2dd   :  { %1486 = vmatprep.subr.bf16.mxu0 %v5814_v32  ;;  %1527 = vmatprep.subr.bf16.mxu1 %v5815_v56 }
 0x2e0   :  { %1487 = vmatpush1.bf16.msra.mxu0 %v5816_v33  ;;  %1528 = vmatpush1.bf16.msra.mxu1 %v5817_v24 }
 0x2e1   :  { %1488 = vmatprep.subr.bf16.mxu0 %v5818_v26  ;;  %1529 = vmatprep.subr.bf16.mxu1 %v5819_v63 }
 0x2e4   :  { %1489 = vmatpush1.bf16.msra.mxu0 %v5820_v31  ;;  %1530 = vmatpush1.bf16.msra.mxu1 %v5821_v2  ;;  %v5831_v31 = vld [vmem:[#allocation104_spill] sm:$0xff]  ;;  %v5832_v2 = vld [vmem:[#allocation103_spill] sm:$0xff] }
 0x2e5   :  { %1490 = vmatprep.subr.bf16.mxu0 %v5822_v48  ;;  %1531 = vmatprep.subr.bf16.mxu1 %v5823_v42  ;;  %v5833_v48 = vld [vmem:[#allocation106_spill] sm:$0xff]  ;;  %v5834_v42 = vld [vmem:[#allocation105_spill] sm:$0xff] }
 0x2e8   :  { %1491 = vmatpush1.bf16.msra.mxu0 %v5824_v47  ;;  %1532 = vmatpush1.bf16.msra.mxu1 %v5825_v49  ;;  %v5835_v47 = vld [vmem:[#allocation108_spill] sm:$0xff]  ;;  %v5836_v49 = vld [vmem:[#allocation107_spill] sm:$0xff] }
 0x2e9   :  { %1492 = vmatprep.subr.bf16.mxu0 %v5826_v41  ;;  %1533 = vmatprep.subr.bf16.mxu1 %v5827_v1  ;;  %v5837_v41 = vld [vmem:[#allocation110_spill] sm:$0xff] }
 0x2ec   :  { %1493 = vmatpush1.bf16.msra.mxu0 %v5828_v50  ;;  %1534 = vmatpush1.bf16.msra.mxu1 %v5829_v57  ;;  %v5838_v50 = vld [vmem:[#allocation112_spill] sm:$0xff] }
 0x2ed   :  { %1494 = vmatprep.subr.bf16.mxu0 %v5830_v0  ;;  %1535 = vmatprep.subr.bf16.mxu1 %v5831_v31 }
 0x2f0   :  { %1495 = vmatpush1.bf16.msra.mxu0 %v5832_v2  ;;  %1536 = vmatpush1.bf16.msra.mxu1 %v5833_v48  ;;  %v5839_v2 = vld [vmem:[#allocation116_spill] sm:$0xff] }
 0x2f1   :  { %1496 = vmatprep.subr.bf16.mxu0 %v5834_v42  ;;  %1537 = vmatprep.subr.bf16.mxu1 %v5835_v47 }
 0x2f4   :  { %1497 = vmatpush1.bf16.msra.mxu0 %v5836_v49  ;;  %1538 = vmatpush1.bf16.msra.mxu1 %v5837_v41 }
 0x2f5   :  { %1498 = vmatprep.subr.bf16.mxu0 %v5759_v61  ;;  %1539 = vmatprep.subr.bf16.mxu1 %v5838_v50 }
 0x2f8   :  { %1499 = vmatpush1.bf16.msra.mxu0 %v5761_v21  ;;  %1540 = vmatpush1.bf16.msra.mxu1 %v5762_v11 }
 0x2f9   :  { %1500 = vmatprep.subr.bf16.mxu0 %v5763_v43  ;;  %1541 = vmatprep.subr.bf16.mxu1 %v5839_v2 }
 0x2fc   :  { %1501 = vmatpush1.bf16.msra.mxu0 %v5765_v62  ;;  %1542 = vmatpush1.bf16.msra.mxu1 %v5766_v46 }
 0x2fd   :  { %1502 = vmatprep.subr.bf16.mxu0 %v5767_v35  ;;  %1543 = vmatprep.subr.bf16.mxu1 %v5768_v59 }
 0x300   :  { %1503 = vmatpush1.bf16.msra.mxu0 %v5769_v37  ;;  %1544 = vmatpush1.bf16.msra.mxu1 %v4086_v9 }
 0x301   :  { %1504 = vmatprep.subr.bf16.mxu0 %v5770_v20  ;;  %1545 = vmatprep.subr.bf16.mxu1 %v4092_v54 }
 0x304   :  { %1505 = vmatpush1.bf16.msra.mxu0 %v4089_v6  ;;  %1546 = vmatpush1.bf16.msra.mxu1 %v4110_v38 }
 0x305   :  { %1506 = vmatprep.subr.bf16.mxu0 %v5771_v60  ;;  %1547 = vmatprep.subr.bf16.mxu1 %v4116_v27 }
 0x308   :  { %1507 = vmatpush1.bf16.msra.mxu0 %v4113_v22  ;;  %1548 = vmatpush1.bf16.msra.mxu1 %v4128_v53 }
 0x309   :  { %1508 = vmatprep.subr.bf16.mxu0 %v4119_v36  ;;  %1549 = vmatprep.subr.bf16.mxu1 %v4134_v8 }
 0x30c   :  { %1509 = vmatpush1.bf16.msra.mxu0 %v4131_v5  ;;  %1550 = vmatpush1.bf16.msra.mxu1 %v4138_v52  ;;  %v5842_v52 = vld [vmem:[#allocation18_spill] sm:$0xff] }
 0x30d   :  { %1636 = vmatprep.subr.bf16.mxu0 %v3378_v3  ;;  %1677 = vmatprep.subr.bf16.mxu1 %v3405_v13  ;;  %v5840_v3 = vld [vmem:[#allocation16_spill] sm:$0xff]  ;;  %v5841_v13 = vld [vmem:[#allocation15_spill] sm:$0xff] }
 0x30f   :  { %1511 = vmatmul.mubr.bf16.vlgmr.msra.gmra.mrb[20].mxu0 %v4380_v58  ;;  %1552 = vmatmul.mubr.bf16.vlgmr.msra.gmra.mrb[20].mxu1 %v4380_v58  ;;  %v5843_v58 = vld [vmem:[#allocation17_spill] sm:$0xff] }
 0x310   :  { %1637 = vmatpush1.bf16.msra.mxu0 %v3380_v4  ;;  %1678 = vmatpush1.bf16.msra.mxu1 %v3407_v14  ;;  %v5844_v4 = vld [vmem:[#allocation20_spill] sm:$0xff]  ;;  %v5845_v14 = vld [vmem:[#allocation19_spill] sm:$0xff] }
 0x311   :  { %1638 = vmatprep.subr.bf16.mxu0 %v3387_v7  ;;  %1679 = vmatprep.subr.bf16.mxu1 %v3418_v18  ;;  %v5846_v7 = vld [vmem:[#allocation22_spill] sm:$0xff]  ;;  %v5847_v18 = vld [vmem:[#allocation21_spill] sm:$0xff] }
 0x314   :  { %1639 = vmatpush1.bf16.msra.mxu0 %v3403_v12  ;;  %1680 = vmatpush1.bf16.msra.mxu1 %v3434_v23  ;;  %v5848_v12 = vld [vmem:[#allocation24_spill] sm:$0xff]  ;;  %v5849_v23 = vld [vmem:[#allocation23_spill] sm:$0xff] }
 0x315   :  { %1640 = vmatprep.subr.bf16.mxu0 %v3416_v17  ;;  %1681 = vmatprep.subr.bf16.mxu1 %v5840_v3  ;;  %v5850_v17 = vld [vmem:[#allocation26_spill] sm:$0xff]  ;;  %v5851_v3 = vld [vmem:[#allocation25_spill] sm:$0xff] }
 0x318   :  { %1641 = vmatpush1.bf16.msra.mxu0 %v5841_v13  ;;  %1682 = vmatpush1.bf16.msra.mxu1 %v5842_v52  ;;  %v5852_v13 = vld [vmem:[#allocation28_spill] sm:$0xff]  ;;  %v5853_v52 = vld [vmem:[#allocation27_spill] sm:$0xff] }
 0x319   :  { %1642 = vmatprep.subr.bf16.mxu0 %v5843_v58  ;;  %1683 = vmatprep.subr.bf16.mxu1 %v5844_v4  ;;  %v5854_v58 = vld [vmem:[#allocation30_spill] sm:$0xff]  ;;  %v5855_v4 = vld [vmem:[#allocation29_spill] sm:$0xff] }
 0x31c   :  { %1643 = vmatpush1.bf16.msra.mxu0 %v5845_v14  ;;  %1684 = vmatpush1.bf16.msra.mxu1 %v5846_v7  ;;  %v5856_v14 = vld [vmem:[#allocation32_spill] sm:$0xff]  ;;  %v5857_v7 = vld [vmem:[#allocation31_spill] sm:$0xff] }
 0x31d   :  { %1644 = vmatprep.subr.bf16.mxu0 %v5847_v18  ;;  %1685 = vmatprep.subr.bf16.mxu1 %v5848_v12  ;;  %v5858_v18 = vld [vmem:[#allocation34_spill] sm:$0xff]  ;;  %v5859_v12 = vld [vmem:[#allocation33_spill] sm:$0xff] }
 0x320   :  { %1645 = vmatpush1.bf16.msra.mxu0 %v5849_v23  ;;  %1686 = vmatpush1.bf16.msra.mxu1 %v5850_v17  ;;  %v5860_v23 = vld [vmem:[#allocation36_spill] sm:$0xff]  ;;  %v5861_v17 = vld [vmem:[#allocation35_spill] sm:$0xff] }
 0x321   :  { %1646 = vmatprep.subr.bf16.mxu0 %v5851_v3  ;;  %1687 = vmatprep.subr.bf16.mxu1 %v5852_v13  ;;  %v5862_v3 = vld [vmem:[#allocation38_spill] sm:$0xff]  ;;  %v5863_v13 = vld [vmem:[#allocation37_spill] sm:$0xff] }
 0x324   :  { %1647 = vmatpush1.bf16.msra.mxu0 %v5853_v52  ;;  %1688 = vmatpush1.bf16.msra.mxu1 %v5854_v58  ;;  %v5864_v52 = vld [vmem:[#allocation40_spill] sm:$0xff]  ;;  %v5865_v58 = vld [vmem:[#allocation39_spill] sm:$0xff] }
 0x325   :  { %1648 = vmatprep.subr.bf16.mxu0 %v5855_v4  ;;  %1689 = vmatprep.subr.bf16.mxu1 %v5856_v14  ;;  %v5866_v4 = vld [vmem:[#allocation42_spill] sm:$0xff]  ;;  %v5867_v14 = vld [vmem:[#allocation41_spill] sm:$0xff] }
 0x328   :  { %1649 = vmatpush1.bf16.msra.mxu0 %v5857_v7  ;;  %1690 = vmatpush1.bf16.msra.mxu1 %v5858_v18  ;;  %v5868_v7 = vld [vmem:[#allocation44_spill] sm:$0xff]  ;;  %v5869_v18 = vld [vmem:[#allocation43_spill] sm:$0xff] }
 0x329   :  { %1650 = vmatprep.subr.bf16.mxu0 %v5859_v12  ;;  %1691 = vmatprep.subr.bf16.mxu1 %v5860_v23  ;;  %v5870_v12 = vld [vmem:[#allocation46_spill] sm:$0xff]  ;;  %v5871_v23 = vld [vmem:[#allocation45_spill] sm:$0xff] }
 0x32c   :  { %1651 = vmatpush1.bf16.msra.mxu0 %v5861_v17  ;;  %1692 = vmatpush1.bf16.msra.mxu1 %v5862_v3  ;;  %v5872_v17 = vld [vmem:[#allocation48_spill] sm:$0xff]  ;;  %v5873_v3 = vld [vmem:[#allocation47_spill] sm:$0xff] }
 0x32d   :  { %1652 = vmatprep.subr.bf16.mxu0 %v5863_v13  ;;  %1693 = vmatprep.subr.bf16.mxu1 %v5864_v52  ;;  %v5874_v13 = vld [vmem:[#allocation50_spill] sm:$0xff]  ;;  %v5875_v52 = vld [vmem:[#allocation49_spill] sm:$0xff] }
 0x330   :  { %1653 = vmatpush1.bf16.msra.mxu0 %v5865_v58  ;;  %1694 = vmatpush1.bf16.msra.mxu1 %v5866_v4  ;;  %v5876_v58 = vld [vmem:[#allocation52_spill] sm:$0xff]  ;;  %v5877_v4 = vld [vmem:[#allocation51_spill] sm:$0xff] }
 0x331   :  { %1654 = vmatprep.subr.bf16.mxu0 %v5867_v14  ;;  %1695 = vmatprep.subr.bf16.mxu1 %v5868_v7  ;;  %v5878_v14 = vld [vmem:[#allocation54_spill] sm:$0xff]  ;;  %v5879_v7 = vld [vmem:[#allocation53_spill] sm:$0xff] }
 0x334   :  { %1655 = vmatpush1.bf16.msra.mxu0 %v5869_v18  ;;  %1696 = vmatpush1.bf16.msra.mxu1 %v5870_v12  ;;  %v5880_v18 = vld [vmem:[#allocation56_spill] sm:$0xff]  ;;  %v5881_v12 = vld [vmem:[#allocation55_spill] sm:$0xff] }
 0x335   :  { %1656 = vmatprep.subr.bf16.mxu0 %v5871_v23  ;;  %1697 = vmatprep.subr.bf16.mxu1 %v5872_v17  ;;  %v5882_v23 = vld [vmem:[#allocation58_spill] sm:$0xff]  ;;  %v5883_v17 = vld [vmem:[#allocation57_spill] sm:$0xff] }
 0x338   :  { %1657 = vmatpush1.bf16.msra.mxu0 %v5873_v3  ;;  %1698 = vmatpush1.bf16.msra.mxu1 %v5874_v13  ;;  %v5884_v3 = vld [vmem:[#allocation60_spill] sm:$0xff]  ;;  %v5885_v13 = vld [vmem:[#allocation59_spill] sm:$0xff] }
 0x339   :  { %1658 = vmatprep.subr.bf16.mxu0 %v5875_v52  ;;  %1699 = vmatprep.subr.bf16.mxu1 %v5876_v58  ;;  %v5886_v52 = vld [vmem:[#allocation62_spill] sm:$0xff]  ;;  %v5887_v58 = vld [vmem:[#allocation61_spill] sm:$0xff] }
 0x33c   :  { %1659 = vmatpush1.bf16.msra.mxu0 %v5877_v4  ;;  %1700 = vmatpush1.bf16.msra.mxu1 %v5878_v14  ;;  %v5888_v4 = vld [vmem:[#allocation64_spill] sm:$0xff]  ;;  %v5889_v14 = vld [vmem:[#allocation63_spill] sm:$0xff] }
 0x33d   :  { %1660 = vmatprep.subr.bf16.mxu0 %v5879_v7  ;;  %1701 = vmatprep.subr.bf16.mxu1 %v5880_v18  ;;  %v5890_v7 = vld [vmem:[#allocation66_spill] sm:$0xff]  ;;  %v5891_v18 = vld [vmem:[#allocation65_spill] sm:$0xff] }
 0x340   :  { %1661 = vmatpush1.bf16.msra.mxu0 %v5881_v12  ;;  %1702 = vmatpush1.bf16.msra.mxu1 %v5882_v23  ;;  %v5892_v12 = vld [vmem:[#allocation68_spill] sm:$0xff]  ;;  %v5893_v23 = vld [vmem:[#allocation67_spill] sm:$0xff] }
 0x341   :  { %1662 = vmatprep.subr.bf16.mxu0 %v5883_v17  ;;  %1703 = vmatprep.subr.bf16.mxu1 %v5884_v3  ;;  %v5894_v17 = vld [vmem:[#allocation70_spill] sm:$0xff]  ;;  %v5895_v3 = vld [vmem:[#allocation69_spill] sm:$0xff] }
 0x344   :  { %1663 = vmatpush1.bf16.msra.mxu0 %v5885_v13  ;;  %1704 = vmatpush1.bf16.msra.mxu1 %v5886_v52  ;;  %v5896_v13 = vld [vmem:[#allocation72_spill] sm:$0xff] }
 0x345   :  { %1664 = vmatprep.subr.bf16.mxu0 %v5887_v58  ;;  %1705 = vmatprep.subr.bf16.mxu1 %v5888_v4  ;;  %v32_v4 = vld [vmem:[%s5290_s0 + $0x40] sm:$0xff] }
 0x346   :  { %v1563_v58 = vunpack.c.l.bf16 %v32_v4 }
 0x348   :  { %1665 = vmatpush1.bf16.msra.mxu0 %v5889_v14  ;;  %1706 = vmatpush1.bf16.msra.mxu1 %v5890_v7  ;;  %v1564_v14 = vunpack.c.h.bf16 %v32_v4 }
 0x349   :  { %1666 = vmatprep.subr.bf16.mxu0 %v5891_v18  ;;  %1707 = vmatprep.subr.bf16.mxu1 %v5892_v12  ;;  %v34_v12 = vld [vmem:[%s5290_s0 + $0x48] sm:$0xff] }
 0x34a   :  { %v1566_v27 = vunpack.c.h.bf16 %v34_v12  ;;  %v1565_v60 = vunpack.c.l.bf16 %v34_v12 }
 0x34c   :  { %1667 = vmatpush1.bf16.msra.mxu0 %v5893_v23  ;;  %1708 = vmatpush1.bf16.msra.mxu1 %v5894_v17 }
 0x34d   :  { %1718 = vmatprep.subr.bf16.mxu0 %v5895_v3  ;;  %1759 = vmatprep.subr.bf16.mxu1 %v5896_v13 }
 0x3a2   :  { %v1430_v52 = vpop.f32.mrb[16].mxu0  ;;  %v1471_v7 = vpop.f32.mrb[16].mxu1 }
 0x3a3   :  { %v1567_v5 = vadd.f32 %v1563_v58, %v1430_v52  ;;  %v1432_v23 = vpop.f32.mrb[17].mxu0  ;;  %v1473_v18 = vpop.f32.mrb[17].mxu1  ;;  %v1569_v52 = vadd.f32 %v1565_v60, %v1471_v7 }
 0x3a4   :  { %v1568_v17 = vadd.f32 %v1564_v14, %v1432_v23  ;;  %v1434_v8 = vpop.f32.mrb[18].mxu0  ;;  %v1475_v3 = vpop.f32.mrb[18].mxu1  ;;  %v1570_v4 = vadd.f32 %v1566_v27, %v1473_v18 }
 0x3a5   :  { %v3039_v36 = vmul.f32 -1.442695, %v1567_v5  ;;  %v1435_v13 = vpop.f32.mrb[19].mxu0  ;;  %v1476_v53 = vpop.f32.mrb[19].mxu1 }
 0x3a6   :  { %v3040_v22 = vmul.f32 -1.442695, %v1568_v17  ;;  %v3041_v38 = vmul.f32 -1.442695, %v1570_v4  ;;  %v2891_v4 = vld [vmem:[%s5291_s1 + $0xb8] sm:$0xff] }
 0x3a7   :  { %3151 = vpow2.f32 %v3039_v36  ;;  %v5897_v36 = vld [vmem:[#allocation71_spill] sm:$0xff] }
 0x3a8   :  { %3153 = vpow2.f32 %v3040_v22 }
 0x3a9   :  { %3155 = vpow2.f32 %v3041_v38 }
 0x3aa   :  { %3157 = vtanh.f32 %v1569_v52 }
 0x3b1   :  { %v3152_v58 = vpop.eup %3151 }
 0x3b2   :  { %v3154_v6 = vpop.eup %3153  ;;  %v1574_v54 = vadd.f32 1.0, %v3152_v58 }
 0x3b3   :  { %v1580_v20 = vadd.f32 1.0, %v3154_v6  ;;  %v3156_v3 = vpop.eup %3155  ;;  %v2890_v6 = vld [vmem:[%s5291_s1 + $0xb0] sm:$0xff] }
 0x3b4   :  { %3159 = vrcp.f32 %v1574_v54  ;;  %v3158_v14 = vpop.eup %3157  ;;  %v1587_v53 = vadd.f32 1.0, %v3156_v3  ;;  %v1601_v54 = vunpack.c.l.bf16 %v2890_v6  ;;  %v1602_v5 = vunpack.c.h.bf16 %v2890_v6 }
 0x3b5   :  { %3161 = vrcp.f32 %v1580_v20 }
 0x3b6   :  { %3163 = vrcp.f32 %v1587_v53 }
 0x3be   :  { %v3160_v13 = vpop.eup %3159 }
 0x3bf   :  { %v3162_v23 = vpop.eup %3161  ;;  %v1591_v17 = vmul.f32 %v3160_v13, %v3158_v14 }
 0x3c0   :  { %v1590_v22 = vmul.f32 %v3162_v23, %v5897_v36  ;;  %v3164_v7 = vpop.eup %3163 }
 0x3c2   :  { %v4538_v18 = vadd.f32 %v1591_v17, %v1590_v22  ;;  %v1604_v22 = vunpack.c.h.bf16 %v2891_v4 }
 0x3c4   :  { %5898 = vst [vmem:[#allocation74_spill] sm:$0xff] %v4538_v18  ;;  %3165 = vtanh.f32 %v4538_v18 }
 0x3ce   :  { %v3166_v12 = vpop.eup %3165 }
 0x3cf   :  { %v1594_v27 = vmul.f32 %v3166_v12, %v3164_v7  ;;  %v1603_v12 = vunpack.c.l.bf16 %v2891_v4 }
 0x3d1   :  { %v4541_v38 = vpack.c.bf16 %v1594_v27, %v1594_v27 }
 0x3d3   :  { %3042 = vst [vmem:[%s5293_s3 + $0x8] sm:$0xf] %v4541_v38 }
 0x3e2   :  { %v1512_v8 = vpop.f32.mrb[20].mxu0  ;;  %v1553_v60 = vpop.f32.mrb[20].mxu1 }
 0x3e3   :  { %v1605_v20 = vadd.f32 %v1601_v54, %v1512_v8  ;;  %v1514_v52 = vpop.f32.mrb[21].mxu0  ;;  %v1555_v58 = vpop.f32.mrb[21].mxu1  ;;  %v1607_v6 = vadd.f32 %v1603_v12, %v1553_v60  ;;  %v5905_v12 = vld [vmem:[#allocation97_spill] sm:$0xff] }
 0x3e4   :  { %v1606_v3 = vadd.f32 %v1602_v5, %v1514_v52  ;;  %v1516_v14 = vpop.f32.mrb[22].mxu0  ;;  %v1557_v13 = vpop.f32.mrb[22].mxu1  ;;  %v1608_v7 = vadd.f32 %v1604_v22, %v1555_v58  ;;  %v5903_v22 = vld [vmem:[#allocation95_spill] sm:$0xff] }
 0x3e5   :  { %v3043_v23 = vmul.f32 -1.442695, %v1605_v20  ;;  %v1517_v17 = vpop.f32.mrb[23].mxu0  ;;  %v1558_v53 = vpop.f32.mrb[23].mxu1 }
 0x3e6   :  { %v3044_v36 = vmul.f32 -1.442695, %v1606_v3  ;;  %v3045_v27 = vmul.f32 -1.442695, %v1608_v7  ;;  %v5904_v7 = vld [vmem:[#allocation98_spill] sm:$0xff] }
 0x3e7   :  { %3167 = vpow2.f32 %v3043_v23 }
 0x3e8   :  { %3169 = vpow2.f32 %v3044_v36  ;;  %v5902_v36 = vld [vmem:[#allocation96_spill] sm:$0xff] }
 0x3e9   :  { %3171 = vpow2.f32 %v3045_v27  ;;  %v5906_v27 = vld [vmem:[#allocation99_spill] sm:$0xff] }
 0x3ea   :  { %3173 = vtanh.f32 %v1607_v6  ;;  %v5907_v6 = vld [vmem:[#allocation103_spill] sm:$0xff] }
 0x3f1   :  { %v3168_v54 = vpop.eup %3167 }
 0x3f2   :  { %v3170_v8 = vpop.eup %3169  ;;  %v1612_v18 = vadd.f32 1.0, %v3168_v54  ;;  %v5908_v54 = vld [vmem:[#allocation122_spill] sm:$0xff] }
 0x3f3   :  { %v1618_v9 = vadd.f32 1.0, %v3170_v8  ;;  %v3172_v5 = vpop.eup %3171  ;;  %v5909_v8 = vld [vmem:[#allocation121_spill] sm:$0xff] }
 0x3f4   :  { %3175 = vrcp.f32 %v1612_v18  ;;  %v3174_v20 = vpop.eup %3173  ;;  %v1625_v13 = vadd.f32 1.0, %v3172_v5  ;;  %v5901_v18 = vld [vmem:[#allocation93_spill] sm:$0xff]  ;;  %v5910_v5 = vld [vmem:[#allocation124_spill] sm:$0xff] }
 0x3f5   :  { %3177 = vrcp.f32 %v1618_v9  ;;  %v5899_v9 = vld [vmem:[#allocation91_spill] sm:$0xff] }
 0x3f6   :  { %3179 = vrcp.f32 %v1625_v13  ;;  %v5915_v13 = vld [vmem:[#allocation127_spill] sm:$0xff] }
 0x3fe   :  { %v3176_v52 = vpop.eup %3175 }
 0x3ff   :  { %v3178_v14 = vpop.eup %3177  ;;  %v1629_v3 = vmul.f32 %v3176_v52, %v3174_v20  ;;  %v5911_v20 = vld [vmem:[#allocation123_spill] sm:$0xff]  ;;  %v5912_v52 = vld [vmem:[#allocation126_spill] sm:$0xff] }
 0x400   :  { %v1628_v23 = vmul.f32 %v3178_v14, %v4393_v55  ;;  %v3180_v60 = vpop.eup %3179  ;;  %v5900_v55 = vld [vmem:[#allocation94_spill] sm:$0xff]  ;;  %v5913_v14 = vld [vmem:[#allocation125_spill] sm:$0xff] }
 0x402   :  { %v4554_v58 = vadd.f32 %v1629_v3, %v1628_v23  ;;  %v5914_v3 = vld [vmem:[#allocation128_spill] sm:$0xff]  ;;  %v5916_v23 = vld [vmem:[#allocation130_spill] sm:$0xff] }
 0x404   :  { %3181 = vtanh.f32 %v4554_v58 }
 0x40e   :  { %v3182_v4 = vpop.eup %3181 }
 0x40f   :  { %v1632_v17 = vmul.f32 %v3182_v4, %v3180_v60  ;;  %v5917_v60 = vld [vmem:[#allocation129_spill] sm:$0xff]  ;;  %v5918_v4 = vld [vmem:[#allocation132_spill] sm:$0xff] }
 0x411   :  { %v1633_v53 = vpack.c.bf16 %v1632_v17, %v1632_v17  ;;  %v5919_v17 = vld [vmem:[#allocation131_spill] sm:$0xff] }
 0x413   :  { %3046 = vst [vmem:[%s5294_s4 + $0x14] sm:$0xf] %v1633_v53  ;;  %1668 = vmatprep.mubr.bf16.mxu0 %v1633_v53  ;;  %1709 = vmatprep.mubr.bf16.mxu1 %v1633_v53 }
 0x414   :  { %1669 = vmatmul.mubr.bf16.vlgmr.msra.gmra.mrb[24].mxu0 %v4541_v38  ;;  %1710 = vmatmul.mubr.bf16.vlgmr.msra.gmra.mrb[24].mxu1 %v4541_v38 }
 0x415   :  { %1719 = vmatpush1.bf16.msra.mxu0 %v5721_v19  ;;  %1760 = vmatpush1.bf16.msra.mxu1 %v5722_v30 }
 0x416   :  { %1750 = vmatprep.mubr.bf16.mxu0 %v1633_v53  ;;  %1791 = vmatprep.mubr.bf16.mxu1 %v1633_v53  ;;  %v5920_v53 = vld [vmem:[#allocation133_spill] sm:$0xff] }
 0x417   :  { %1720 = vmatprep.subr.bf16.mxu0 %v5723_v28  ;;  %1761 = vmatprep.subr.bf16.mxu1 %v5724_v15 }
 0x419   :  { %1721 = vmatpush1.bf16.msra.mxu0 %v5725_v29  ;;  %1762 = vmatpush1.bf16.msra.mxu1 %v5726_v16 }
 0x41a   :  { %1722 = vmatprep.subr.bf16.mxu0 %v5727_v44  ;;  %1763 = vmatprep.subr.bf16.mxu1 %v5728_v10 }
 0x41d   :  { %1723 = vmatpush1.bf16.msra.mxu0 %v5729_v45  ;;  %1764 = vmatpush1.bf16.msra.mxu1 %v5809_v25 }
 0x41e   :  { %1724 = vmatprep.subr.bf16.mxu0 %v5810_v51  ;;  %1765 = vmatprep.subr.bf16.mxu1 %v5811_v39 }
 0x421   :  { %1725 = vmatpush1.bf16.msra.mxu0 %v5812_v40  ;;  %1766 = vmatpush1.bf16.msra.mxu1 %v5813_v34 }
 0x422   :  { %1726 = vmatprep.subr.bf16.mxu0 %v5814_v32  ;;  %1767 = vmatprep.subr.bf16.mxu1 %v5815_v56 }
 0x425   :  { %1727 = vmatpush1.bf16.msra.mxu0 %v5816_v33  ;;  %1768 = vmatpush1.bf16.msra.mxu1 %v5817_v24 }
 0x426   :  { %1728 = vmatprep.subr.bf16.mxu0 %v5818_v26  ;;  %1769 = vmatprep.subr.bf16.mxu1 %v5819_v63 }
 0x429   :  { %1729 = vmatpush1.bf16.msra.mxu0 %v5899_v9  ;;  %1770 = vmatpush1.bf16.msra.mxu1 %v5900_v55 }
 0x42a   :  { %1730 = vmatprep.subr.bf16.mxu0 %v5901_v18  ;;  %1771 = vmatprep.subr.bf16.mxu1 %v5902_v36 }
 0x42d   :  { %1731 = vmatpush1.bf16.msra.mxu0 %v5903_v22  ;;  %1772 = vmatpush1.bf16.msra.mxu1 %v5904_v7 }
 0x42e   :  { %1732 = vmatprep.subr.bf16.mxu0 %v5905_v12  ;;  %1773 = vmatprep.subr.bf16.mxu1 %v5827_v1 }
 0x431   :  { %1733 = vmatpush1.bf16.msra.mxu0 %v5906_v27  ;;  %1774 = vmatpush1.bf16.msra.mxu1 %v5829_v57 }
 0x432   :  { %1734 = vmatprep.subr.bf16.mxu0 %v5830_v0  ;;  %1775 = vmatprep.subr.bf16.mxu1 %v5831_v31 }
 0x435   :  { %1735 = vmatpush1.bf16.msra.mxu0 %v5907_v6  ;;  %1776 = vmatpush1.bf16.msra.mxu1 %v5833_v48 }
 0x436   :  { %1736 = vmatprep.subr.bf16.mxu0 %v5834_v42  ;;  %1777 = vmatprep.subr.bf16.mxu1 %v5835_v47 }
 0x439   :  { %1737 = vmatpush1.bf16.msra.mxu0 %v5836_v49  ;;  %1778 = vmatpush1.bf16.msra.mxu1 %v5837_v41 }
 0x43a   :  { %1738 = vmatprep.subr.bf16.mxu0 %v5759_v61  ;;  %1779 = vmatprep.subr.bf16.mxu1 %v5838_v50 }
 0x43d   :  { %1739 = vmatpush1.bf16.msra.mxu0 %v5761_v21  ;;  %1780 = vmatpush1.bf16.msra.mxu1 %v5762_v11 }
 0x43e   :  { %1740 = vmatprep.subr.bf16.mxu0 %v5763_v43  ;;  %1781 = vmatprep.subr.bf16.mxu1 %v5839_v2 }
 0x441   :  { %1741 = vmatpush1.bf16.msra.mxu0 %v5765_v62  ;;  %1782 = vmatpush1.bf16.msra.mxu1 %v5766_v46 }
 0x442   :  { %1742 = vmatprep.subr.bf16.mxu0 %v5767_v35  ;;  %1783 = vmatprep.subr.bf16.mxu1 %v5768_v59 }
 0x445   :  { %1743 = vmatpush1.bf16.msra.mxu0 %v5769_v37  ;;  %1784 = vmatpush1.bf16.msra.mxu1 %v5908_v54 }
 0x446   :  { %1744 = vmatprep.subr.bf16.mxu0 %v5909_v8  ;;  %1785 = vmatprep.subr.bf16.mxu1 %v5910_v5  ;;  %v5921_v5 = vld [vmem:[#allocation6_spill] sm:$0xff] }
 0x449   :  { %1745 = vmatpush1.bf16.msra.mxu0 %v5911_v20  ;;  %1786 = vmatpush1.bf16.msra.mxu1 %v5912_v52  ;;  %v5922_v20 = vld [vmem:[#allocation10_spill] sm:$0xff] }
 0x44a   :  { %1746 = vmatprep.subr.bf16.mxu0 %v5913_v14  ;;  %1787 = vmatprep.subr.bf16.mxu1 %v5914_v3  ;;  %v5923_v3 = vld [vmem:[#allocation7_spill] sm:$0xff]  ;;  %v5932_v14 = vld [vmem:[#allocation18_spill] sm:$0xff] }
 0x44d   :  { %1747 = vmatpush1.bf16.msra.mxu0 %v5915_v13  ;;  %1788 = vmatpush1.bf16.msra.mxu1 %v5916_v23  ;;  %v5924_v13 = vld [vmem:[#allocation11_spill] sm:$0xff]  ;;  %v5925_v23 = vld [vmem:[#allocation8_spill] sm:$0xff] }
 0x44e   :  { %1748 = vmatprep.subr.bf16.mxu0 %v5917_v60  ;;  %1789 = vmatprep.subr.bf16.mxu1 %v5918_v4  ;;  %v5926_v60 = vld [vmem:[#allocation13_spill] sm:$0xff] }
 0x44f   :  { %v5927_v4 = vld [vmem:[#allocation9_spill] sm:$0xff] }
 0x451   :  { %1749 = vmatpush1.bf16.msra.mxu0 %v5919_v17  ;;  %1790 = vmatpush1.bf16.msra.mxu1 %v5920_v53  ;;  %v5928_v17 = vld [vmem:[#allocation14_spill] sm:$0xff]  ;;  %v5929_v53 = vld [vmem:[#allocation12_spill] sm:$0xff] }
 0x452   :  { %1876 = vmatprep.subr.bf16.mxu0 %v5921_v5  ;;  %1917 = vmatprep.subr.bf16.mxu1 %v5922_v20  ;;  %v5930_v5 = vld [vmem:[#allocation16_spill] sm:$0xff]  ;;  %v5931_v20 = vld [vmem:[#allocation15_spill] sm:$0xff] }
 0x454   :  { %1751 = vmatmul.mubr.bf16.vlgmr.msra.gmra.mrb[28].mxu0 %v4541_v38  ;;  %1792 = vmatmul.mubr.bf16.vlgmr.msra.gmra.mrb[28].mxu1 %v4541_v38  ;;  %v5933_v38 = vld [vmem:[#allocation17_spill] sm:$0xff] }
 0x455   :  { %1877 = vmatpush1.bf16.msra.mxu0 %v5923_v3  ;;  %1918 = vmatpush1.bf16.msra.mxu1 %v5924_v13  ;;  %v5934_v3 = vld [vmem:[#allocation20_spill] sm:$0xff]  ;;  %v5935_v13 = vld [vmem:[#allocation19_spill] sm:$0xff] }
 0x456   :  { %1878 = vmatprep.subr.bf16.mxu0 %v5925_v23  ;;  %1919 = vmatprep.subr.bf16.mxu1 %v5926_v60  ;;  %v5936_v23 = vld [vmem:[#allocation22_spill] sm:$0xff]  ;;  %v5937_v60 = vld [vmem:[#allocation21_spill] sm:$0xff] }
 0x459   :  { %1879 = vmatpush1.bf16.msra.mxu0 %v5927_v4  ;;  %1920 = vmatpush1.bf16.msra.mxu1 %v5928_v17  ;;  %v5938_v4 = vld [vmem:[#allocation24_spill] sm:$0xff]  ;;  %v5939_v17 = vld [vmem:[#allocation23_spill] sm:$0xff] }
 0x45a   :  { %1880 = vmatprep.subr.bf16.mxu0 %v5929_v53  ;;  %1921 = vmatprep.subr.bf16.mxu1 %v5930_v5  ;;  %v5940_v53 = vld [vmem:[#allocation26_spill] sm:$0xff]  ;;  %v5941_v5 = vld [vmem:[#allocation25_spill] sm:$0xff] }
 0x45d   :  { %1881 = vmatpush1.bf16.msra.mxu0 %v5931_v20  ;;  %1922 = vmatpush1.bf16.msra.mxu1 %v5932_v14  ;;  %v5942_v20 = vld [vmem:[#allocation28_spill] sm:$0xff]  ;;  %v5943_v14 = vld [vmem:[#allocation27_spill] sm:$0xff] }
 0x45e   :  { %1882 = vmatprep.subr.bf16.mxu0 %v5933_v38  ;;  %1923 = vmatprep.subr.bf16.mxu1 %v5934_v3  ;;  %v5944_v38 = vld [vmem:[#allocation30_spill] sm:$0xff]  ;;  %v5945_v3 = vld [vmem:[#allocation29_spill] sm:$0xff] }
 0x461   :  { %1883 = vmatpush1.bf16.msra.mxu0 %v5935_v13  ;;  %1924 = vmatpush1.bf16.msra.mxu1 %v5936_v23  ;;  %v5946_v13 = vld [vmem:[#allocation32_spill] sm:$0xff]  ;;  %v5947_v23 = vld [vmem:[#allocation31_spill] sm:$0xff] }
 0x462   :  { %1884 = vmatprep.subr.bf16.mxu0 %v5937_v60  ;;  %1925 = vmatprep.subr.bf16.mxu1 %v5938_v4  ;;  %v5948_v60 = vld [vmem:[#allocation34_spill] sm:$0xff]  ;;  %v5949_v4 = vld [vmem:[#allocation33_spill] sm:$0xff] }
 0x465   :  { %1885 = vmatpush1.bf16.msra.mxu0 %v5939_v17  ;;  %1926 = vmatpush1.bf16.msra.mxu1 %v5940_v53  ;;  %v5950_v17 = vld [vmem:[#allocation36_spill] sm:$0xff]  ;;  %v5951_v53 = vld [vmem:[#allocation35_spill] sm:$0xff] }
 0x466   :  { %1886 = vmatprep.subr.bf16.mxu0 %v5941_v5  ;;  %1927 = vmatprep.subr.bf16.mxu1 %v5942_v20  ;;  %v5952_v5 = vld [vmem:[#allocation38_spill] sm:$0xff]  ;;  %v5953_v20 = vld [vmem:[#allocation37_spill] sm:$0xff] }
 0x469   :  { %1887 = vmatpush1.bf16.msra.mxu0 %v5943_v14  ;;  %1928 = vmatpush1.bf16.msra.mxu1 %v5944_v38  ;;  %v5954_v14 = vld [vmem:[#allocation40_spill] sm:$0xff]  ;;  %v5955_v38 = vld [vmem:[#allocation39_spill] sm:$0xff] }
 0x46a   :  { %1888 = vmatprep.subr.bf16.mxu0 %v5945_v3  ;;  %1929 = vmatprep.subr.bf16.mxu1 %v5946_v13  ;;  %v5956_v3 = vld [vmem:[#allocation42_spill] sm:$0xff]  ;;  %v5957_v13 = vld [vmem:[#allocation41_spill] sm:$0xff] }
 0x46d   :  { %1889 = vmatpush1.bf16.msra.mxu0 %v5947_v23  ;;  %1930 = vmatpush1.bf16.msra.mxu1 %v5948_v60  ;;  %v5958_v23 = vld [vmem:[#allocation44_spill] sm:$0xff]  ;;  %v5959_v60 = vld [vmem:[#allocation43_spill] sm:$0xff] }
 0x46e   :  { %1890 = vmatprep.subr.bf16.mxu0 %v5949_v4  ;;  %1931 = vmatprep.subr.bf16.mxu1 %v5950_v17  ;;  %v5960_v4 = vld [vmem:[#allocation46_spill] sm:$0xff]  ;;  %v5961_v17 = vld [vmem:[#allocation45_spill] sm:$0xff] }
 0x471   :  { %1891 = vmatpush1.bf16.msra.mxu0 %v5951_v53  ;;  %1932 = vmatpush1.bf16.msra.mxu1 %v5952_v5  ;;  %v5962_v53 = vld [vmem:[#allocation48_spill] sm:$0xff]  ;;  %v5963_v5 = vld [vmem:[#allocation47_spill] sm:$0xff] }
 0x472   :  { %1892 = vmatprep.subr.bf16.mxu0 %v5953_v20  ;;  %1933 = vmatprep.subr.bf16.mxu1 %v5954_v14  ;;  %v5964_v20 = vld [vmem:[#allocation50_spill] sm:$0xff]  ;;  %v5965_v14 = vld [vmem:[#allocation49_spill] sm:$0xff] }
 0x475   :  { %1893 = vmatpush1.bf16.msra.mxu0 %v5955_v38  ;;  %1934 = vmatpush1.bf16.msra.mxu1 %v5956_v3  ;;  %v5966_v38 = vld [vmem:[#allocation52_spill] sm:$0xff]  ;;  %v5967_v3 = vld [vmem:[#allocation51_spill] sm:$0xff] }
 0x476   :  { %1894 = vmatprep.subr.bf16.mxu0 %v5957_v13  ;;  %1935 = vmatprep.subr.bf16.mxu1 %v5958_v23  ;;  %v5968_v13 = vld [vmem:[#allocation54_spill] sm:$0xff]  ;;  %v5969_v23 = vld [vmem:[#allocation53_spill] sm:$0xff] }
 0x479   :  { %1895 = vmatpush1.bf16.msra.mxu0 %v5959_v60  ;;  %1936 = vmatpush1.bf16.msra.mxu1 %v5960_v4  ;;  %v5970_v60 = vld [vmem:[#allocation56_spill] sm:$0xff]  ;;  %v5971_v4 = vld [vmem:[#allocation55_spill] sm:$0xff] }
 0x47a   :  { %1896 = vmatprep.subr.bf16.mxu0 %v5961_v17  ;;  %1937 = vmatprep.subr.bf16.mxu1 %v5962_v53  ;;  %v5972_v17 = vld [vmem:[#allocation58_spill] sm:$0xff]  ;;  %v5973_v53 = vld [vmem:[#allocation57_spill] sm:$0xff] }
 0x47d   :  { %1897 = vmatpush1.bf16.msra.mxu0 %v5963_v5  ;;  %1938 = vmatpush1.bf16.msra.mxu1 %v5964_v20  ;;  %v5974_v5 = vld [vmem:[#allocation60_spill] sm:$0xff]  ;;  %v5975_v20 = vld [vmem:[#allocation59_spill] sm:$0xff] }
 0x47e   :  { %1898 = vmatprep.subr.bf16.mxu0 %v5965_v14  ;;  %1939 = vmatprep.subr.bf16.mxu1 %v5966_v38  ;;  %v5976_v14 = vld [vmem:[#allocation62_spill] sm:$0xff]  ;;  %v5977_v38 = vld [vmem:[#allocation61_spill] sm:$0xff] }
 0x481   :  { %1899 = vmatpush1.bf16.msra.mxu0 %v5967_v3  ;;  %1940 = vmatpush1.bf16.msra.mxu1 %v5968_v13  ;;  %v5978_v3 = vld [vmem:[#allocation64_spill] sm:$0xff]  ;;  %v5979_v13 = vld [vmem:[#allocation63_spill] sm:$0xff] }
 0x482   :  { %1900 = vmatprep.subr.bf16.mxu0 %v5969_v23  ;;  %1941 = vmatprep.subr.bf16.mxu1 %v5970_v60  ;;  %v5980_v23 = vld [vmem:[#allocation66_spill] sm:$0xff]  ;;  %v5981_v60 = vld [vmem:[#allocation65_spill] sm:$0xff] }
 0x485   :  { %1901 = vmatpush1.bf16.msra.mxu0 %v5971_v4  ;;  %1942 = vmatpush1.bf16.msra.mxu1 %v5972_v17  ;;  %v5982_v4 = vld [vmem:[#allocation68_spill] sm:$0xff]  ;;  %v5983_v17 = vld [vmem:[#allocation67_spill] sm:$0xff] }
 0x486   :  { %1902 = vmatprep.subr.bf16.mxu0 %v5973_v53  ;;  %1943 = vmatprep.subr.bf16.mxu1 %v5974_v5  ;;  %v5984_v53 = vld [vmem:[#allocation70_spill] sm:$0xff]  ;;  %v5985_v5 = vld [vmem:[#allocation69_spill] sm:$0xff] }
 0x489   :  { %1903 = vmatpush1.bf16.msra.mxu0 %v5975_v20  ;;  %1944 = vmatpush1.bf16.msra.mxu1 %v5976_v14  ;;  %v5986_v20 = vld [vmem:[#allocation72_spill] sm:$0xff] }
 0x48a   :  { %1904 = vmatprep.subr.bf16.mxu0 %v5977_v38  ;;  %1945 = vmatprep.subr.bf16.mxu1 %v5978_v3  ;;  %v36_v3 = vld [vmem:[%s5290_s0 + $0x60] sm:$0xff] }
 0x48b   :  { %v1803_v38 = vunpack.c.l.bf16 %v36_v3 }
 0x48d   :  { %1905 = vmatpush1.bf16.msra.mxu0 %v5979_v13  ;;  %1946 = vmatpush1.bf16.msra.mxu1 %v5980_v23  ;;  %v1804_v13 = vunpack.c.h.bf16 %v36_v3 }
 0x48e   :  { %1906 = vmatprep.subr.bf16.mxu0 %v5981_v60  ;;  %1947 = vmatprep.subr.bf16.mxu1 %v5982_v4  ;;  %v38_v4 = vld [vmem:[%s5290_s0 + $0x68] sm:$0xff] }
 0x48f   :  { %v1806_v35 = vunpack.c.h.bf16 %v38_v4  ;;  %v1805_v46 = vunpack.c.l.bf16 %v38_v4 }
 0x491   :  { %1907 = vmatpush1.bf16.msra.mxu0 %v5983_v17  ;;  %1948 = vmatpush1.bf16.msra.mxu1 %v5984_v53 }
 0x492   :  { %1958 = vmatprep.subr.bf16.mxu0 %v5985_v5  ;;  %1999 = vmatprep.subr.bf16.mxu1 %v5986_v20 }
 0x4e7   :  { %v1670_v14 = vpop.f32.mrb[24].mxu0  ;;  %v1711_v23 = vpop.f32.mrb[24].mxu1 }
 0x4e8   :  { %v1807_v52 = vadd.f32 %v1803_v38, %v1670_v14  ;;  %v1672_v17 = vpop.f32.mrb[25].mxu0  ;;  %v1713_v60 = vpop.f32.mrb[25].mxu1  ;;  %v1809_v14 = vadd.f32 %v1805_v46, %v1711_v23 }
 0x4e9   :  { %v1808_v53 = vadd.f32 %v1804_v13, %v1672_v17  ;;  %v1674_v8 = vpop.f32.mrb[26].mxu0  ;;  %v1715_v5 = vpop.f32.mrb[26].mxu1  ;;  %v1810_v3 = vadd.f32 %v1806_v35, %v1713_v60 }
 0x4ea   :  { %v3047_v54 = vmul.f32 -1.442695, %v1807_v52  ;;  %v1675_v20 = vpop.f32.mrb[27].mxu0  ;;  %v1716_v37 = vpop.f32.mrb[27].mxu1 }
 0x4eb   :  { %v3048_v59 = vmul.f32 -1.442695, %v1808_v53  ;;  %v3049_v62 = vmul.f32 -1.442695, %v1810_v3  ;;  %v2889_v3 = vld [vmem:[%s5291_s1 + $0x98] sm:$0xff] }
 0x4ec   :  { %3183 = vpow2.f32 %v3047_v54  ;;  %v5987_v54 = vld [vmem:[#allocation74_spill] sm:$0xff] }
 0x4ed   :  { %3185 = vpow2.f32 %v3048_v59 }
 0x4ee   :  { %3187 = vpow2.f32 %v3049_v62 }
 0x4ef   :  { %3189 = vtanh.f32 %v1809_v14 }
 0x4f6   :  { %v3184_v38 = vpop.eup %3183 }
 0x4f7   :  { %v3186_v2 = vpop.eup %3185  ;;  %v1814_v43 = vadd.f32 1.0, %v3184_v38 }
 0x4f8   :  { %v1820_v11 = vadd.f32 1.0, %v3186_v2  ;;  %v3188_v8 = vpop.eup %3187 }
 0x4f9   :  { %3191 = vrcp.f32 %v1814_v43  ;;  %v3190_v5 = vpop.eup %3189  ;;  %v1827_v13 = vadd.f32 1.0, %v3188_v8  ;;  %v2888_v43 = vld [vmem:[%s5291_s1 + $0x90] sm:$0xff] }
 0x4fa   :  { %3193 = vrcp.f32 %v1820_v11  ;;  %v1841_v11 = vunpack.c.l.bf16 %v2888_v43  ;;  %v1842_v2 = vunpack.c.h.bf16 %v2888_v43 }
 0x4fb   :  { %3195 = vrcp.f32 %v1827_v13 }
 0x503   :  { %v3192_v20 = vpop.eup %3191 }
 0x504   :  { %v3194_v37 = vpop.eup %3193  ;;  %v1831_v52 = vmul.f32 %v3192_v20, %v3190_v5 }
 0x505   :  { %v1830_v59 = vmul.f32 %v3194_v37, %v5987_v54  ;;  %v3196_v46 = vpop.eup %3195 }
 0x507   :  { %v4699_v35 = vadd.f32 %v1831_v52, %v1830_v59  ;;  %v1844_v59 = vunpack.c.h.bf16 %v2889_v3 }
 0x509   :  { %5988 = vst [vmem:[#allocation73_spill] sm:$0xff] %v4699_v35  ;;  %3197 = vtanh.f32 %v4699_v35 }
 0x513   :  { %v3198_v23 = vpop.eup %3197 }
 0x514   :  { %v1834_v62 = vmul.f32 %v3198_v23, %v3196_v46  ;;  %v1843_v23 = vunpack.c.l.bf16 %v2889_v3 }
 0x516   :  { %v4702_v60 = vpack.c.bf16 %v1834_v62, %v1834_v62 }
 0x518   :  { %3050 = vst [vmem:[%s5293_s3 + $0xc] sm:$0xf] %v4702_v60 }
 0x527   :  { %v1752_v4 = vpop.f32.mrb[28].mxu0  ;;  %v1793_v17 = vpop.f32.mrb[28].mxu1 }
 0x528   :  { %v1845_v53 = vadd.f32 %v1841_v11, %v1752_v4  ;;  %v1754_v14 = vpop.f32.mrb[29].mxu0  ;;  %v1795_v38 = vpop.f32.mrb[29].mxu1  ;;  %v1847_v43 = vadd.f32 %v1843_v23, %v1793_v17  ;;  %v5995_v23 = vld [vmem:[#allocation117_spill] sm:$0xff] }
 0x529   :  { %v1846_v8 = vadd.f32 %v1842_v2, %v1754_v14  ;;  %v1756_v5 = vpop.f32.mrb[30].mxu0  ;;  %v1797_v20 = vpop.f32.mrb[30].mxu1  ;;  %v1848_v46 = vadd.f32 %v1844_v59, %v1795_v38  ;;  %v5993_v59 = vld [vmem:[#allocation115_spill] sm:$0xff] }
 0x52a   :  { %v3051_v37 = vmul.f32 -1.442695, %v1845_v53  ;;  %v1757_v52 = vpop.f32.mrb[31].mxu0  ;;  %v1798_v13 = vpop.f32.mrb[31].mxu1 }
 0x52b   :  { %v3052_v54 = vmul.f32 -1.442695, %v1846_v8  ;;  %v3053_v62 = vmul.f32 -1.442695, %v1848_v46  ;;  %v5994_v46 = vld [vmem:[#allocation118_spill] sm:$0xff] }
 0x52c   :  { %3199 = vpow2.f32 %v3051_v37 }
 0x52d   :  { %3201 = vpow2.f32 %v3052_v54  ;;  %v5992_v54 = vld [vmem:[#allocation116_spill] sm:$0xff] }
 0x52e   :  { %3203 = vpow2.f32 %v3053_v62  ;;  %v5996_v62 = vld [vmem:[#allocation120_spill] sm:$0xff] }
 0x52f   :  { %3205 = vtanh.f32 %v1847_v43  ;;  %v5997_v43 = vld [vmem:[#allocation119_spill] sm:$0xff] }
 0x536   :  { %v3200_v11 = vpop.eup %3199 }
 0x537   :  { %v3202_v4 = vpop.eup %3201  ;;  %v1852_v35 = vadd.f32 1.0, %v3200_v11  ;;  %v5998_v11 = vld [vmem:[#allocation122_spill] sm:$0xff] }
 0x538   :  { %v1858_v21 = vadd.f32 1.0, %v3202_v4  ;;  %v3204_v2 = vpop.eup %3203  ;;  %v5999_v4 = vld [vmem:[#allocation121_spill] sm:$0xff] }
 0x539   :  { %3207 = vrcp.f32 %v1852_v35  ;;  %v3206_v53 = vpop.eup %3205  ;;  %v1865_v20 = vadd.f32 1.0, %v3204_v2  ;;  %v5991_v35 = vld [vmem:[#allocation113_spill] sm:$0xff]  ;;  %v6000_v2 = vld [vmem:[#allocation124_spill] sm:$0xff] }
 0x53a   :  { %3209 = vrcp.f32 %v1858_v21  ;;  %v5989_v21 = vld [vmem:[#allocation111_spill] sm:$0xff] }
 0x53b   :  { %3211 = vrcp.f32 %v1865_v20  ;;  %v6005_v20 = vld [vmem:[#allocation127_spill] sm:$0xff] }
 0x543   :  { %v3208_v14 = vpop.eup %3207 }
 0x544   :  { %v3210_v5 = vpop.eup %3209  ;;  %v1869_v8 = vmul.f32 %v3208_v14, %v3206_v53  ;;  %v6001_v53 = vld [vmem:[#allocation123_spill] sm:$0xff]  ;;  %v6002_v14 = vld [vmem:[#allocation126_spill] sm:$0xff] }
 0x545   :  { %v1868_v37 = vmul.f32 %v3210_v5, %v4554_v58  ;;  %v3212_v17 = vpop.eup %3211  ;;  %v5990_v58 = vld [vmem:[#allocation114_spill] sm:$0xff]  ;;  %v6003_v5 = vld [vmem:[#allocation125_spill] sm:$0xff] }
 0x547   :  { %v4715_v38 = vadd.f32 %v1869_v8, %v1868_v37  ;;  %v6004_v8 = vld [vmem:[#allocation128_spill] sm:$0xff]  ;;  %v6006_v37 = vld [vmem:[#allocation130_spill] sm:$0xff] }
 0x549   :  { %3213 = vtanh.f32 %v4715_v38 }
 0x553   :  { %v3214_v3 = vpop.eup %3213 }
 0x554   :  { %v1872_v52 = vmul.f32 %v3214_v3, %v3212_v17  ;;  %v6007_v17 = vld [vmem:[#allocation129_spill] sm:$0xff]  ;;  %v6008_v3 = vld [vmem:[#allocation132_spill] sm:$0xff] }
 0x556   :  { %v1873_v13 = vpack.c.bf16 %v1872_v52, %v1872_v52  ;;  %v6009_v52 = vld [vmem:[#allocation131_spill] sm:$0xff] }
 0x558   :  { %3054 = vst [vmem:[%s5294_s4 + $0x10] sm:$0xf] %v1873_v13  ;;  %1908 = vmatprep.mubr.bf16.mxu0 %v1873_v13  ;;  %1949 = vmatprep.mubr.bf16.mxu1 %v1873_v13 }
 0x559   :  { %1909 = vmatmul.mubr.bf16.vlgmr.msra.gmra.mrb[32].mxu0 %v4702_v60  ;;  %1950 = vmatmul.mubr.bf16.vlgmr.msra.gmra.mrb[32].mxu1 %v4702_v60 }
 0x55a   :  { %1959 = vmatpush1.bf16.msra.mxu0 %v5721_v19  ;;  %2000 = vmatpush1.bf16.msra.mxu1 %v5722_v30 }
 0x55b   :  { %1990 = vmatprep.mubr.bf16.mxu0 %v1873_v13  ;;  %2031 = vmatprep.mubr.bf16.mxu1 %v1873_v13  ;;  %v6010_v13 = vld [vmem:[#allocation133_spill] sm:$0xff] }
 0x55c   :  { %1960 = vmatprep.subr.bf16.mxu0 %v5723_v28  ;;  %2001 = vmatprep.subr.bf16.mxu1 %v5724_v15 }
 0x55e   :  { %1961 = vmatpush1.bf16.msra.mxu0 %v5725_v29  ;;  %2002 = vmatpush1.bf16.msra.mxu1 %v5726_v16 }
 0x55f   :  { %1962 = vmatprep.subr.bf16.mxu0 %v5727_v44  ;;  %2003 = vmatprep.subr.bf16.mxu1 %v5728_v10 }
 0x562   :  { %1963 = vmatpush1.bf16.msra.mxu0 %v5729_v45  ;;  %2004 = vmatpush1.bf16.msra.mxu1 %v5809_v25 }
 0x563   :  { %1964 = vmatprep.subr.bf16.mxu0 %v5810_v51  ;;  %2005 = vmatprep.subr.bf16.mxu1 %v5811_v39 }
 0x566   :  { %1965 = vmatpush1.bf16.msra.mxu0 %v5812_v40  ;;  %2006 = vmatpush1.bf16.msra.mxu1 %v5813_v34 }
 0x567   :  { %1966 = vmatprep.subr.bf16.mxu0 %v5814_v32  ;;  %2007 = vmatprep.subr.bf16.mxu1 %v5815_v56 }
 0x56a   :  { %1967 = vmatpush1.bf16.msra.mxu0 %v5816_v33  ;;  %2008 = vmatpush1.bf16.msra.mxu1 %v5817_v24 }
 0x56b   :  { %1968 = vmatprep.subr.bf16.mxu0 %v5818_v26  ;;  %2009 = vmatprep.subr.bf16.mxu1 %v5819_v63 }
 0x56e   :  { %1969 = vmatpush1.bf16.msra.mxu0 %v5899_v9  ;;  %2010 = vmatpush1.bf16.msra.mxu1 %v5900_v55 }
 0x56f   :  { %1970 = vmatprep.subr.bf16.mxu0 %v5901_v18  ;;  %2011 = vmatprep.subr.bf16.mxu1 %v5902_v36 }
 0x572   :  { %1971 = vmatpush1.bf16.msra.mxu0 %v5903_v22  ;;  %2012 = vmatpush1.bf16.msra.mxu1 %v5904_v7 }
 0x573   :  { %1972 = vmatprep.subr.bf16.mxu0 %v5905_v12  ;;  %2013 = vmatprep.subr.bf16.mxu1 %v5827_v1 }
 0x576   :  { %1973 = vmatpush1.bf16.msra.mxu0 %v5906_v27  ;;  %2014 = vmatpush1.bf16.msra.mxu1 %v5829_v57 }
 0x577   :  { %1974 = vmatprep.subr.bf16.mxu0 %v5830_v0  ;;  %2015 = vmatprep.subr.bf16.mxu1 %v5831_v31 }
 0x57a   :  { %1975 = vmatpush1.bf16.msra.mxu0 %v5907_v6  ;;  %2016 = vmatpush1.bf16.msra.mxu1 %v5833_v48 }
 0x57b   :  { %1976 = vmatprep.subr.bf16.mxu0 %v5834_v42  ;;  %2017 = vmatprep.subr.bf16.mxu1 %v5835_v47 }
 0x57e   :  { %1977 = vmatpush1.bf16.msra.mxu0 %v5836_v49  ;;  %2018 = vmatpush1.bf16.msra.mxu1 %v5837_v41 }
 0x57f   :  { %1978 = vmatprep.subr.bf16.mxu0 %v5759_v61  ;;  %2019 = vmatprep.subr.bf16.mxu1 %v5838_v50 }
 0x582   :  { %1979 = vmatpush1.bf16.msra.mxu0 %v5989_v21  ;;  %2020 = vmatpush1.bf16.msra.mxu1 %v5990_v58 }
 0x583   :  { %1980 = vmatprep.subr.bf16.mxu0 %v5991_v35  ;;  %2021 = vmatprep.subr.bf16.mxu1 %v5992_v54 }
 0x586   :  { %1981 = vmatpush1.bf16.msra.mxu0 %v5993_v59  ;;  %2022 = vmatpush1.bf16.msra.mxu1 %v5994_v46 }
 0x587   :  { %1982 = vmatprep.subr.bf16.mxu0 %v5995_v23  ;;  %2023 = vmatprep.subr.bf16.mxu1 %v5996_v62 }
 0x58a   :  { %1983 = vmatpush1.bf16.msra.mxu0 %v5997_v43  ;;  %2024 = vmatpush1.bf16.msra.mxu1 %v5998_v11 }
 0x58b   :  { %1984 = vmatprep.subr.bf16.mxu0 %v5999_v4  ;;  %2025 = vmatprep.subr.bf16.mxu1 %v6000_v2  ;;  %v6011_v2 = vld [vmem:[#allocation6_spill] sm:$0xff] }
 0x58e   :  { %1985 = vmatpush1.bf16.msra.mxu0 %v6001_v53  ;;  %2026 = vmatpush1.bf16.msra.mxu1 %v6002_v14  ;;  %v6012_v53 = vld [vmem:[#allocation10_spill] sm:$0xff] }
 0x58f   :  { %1986 = vmatprep.subr.bf16.mxu0 %v6003_v5  ;;  %2027 = vmatprep.subr.bf16.mxu1 %v6004_v8  ;;  %v6013_v8 = vld [vmem:[#allocation7_spill] sm:$0xff]  ;;  %v6022_v5 = vld [vmem:[#allocation18_spill] sm:$0xff] }
 0x592   :  { %1987 = vmatpush1.bf16.msra.mxu0 %v6005_v20  ;;  %2028 = vmatpush1.bf16.msra.mxu1 %v6006_v37  ;;  %v6014_v20 = vld [vmem:[#allocation11_spill] sm:$0xff]  ;;  %v6015_v37 = vld [vmem:[#allocation8_spill] sm:$0xff] }
 0x593   :  { %1988 = vmatprep.subr.bf16.mxu0 %v6007_v17  ;;  %2029 = vmatprep.subr.bf16.mxu1 %v6008_v3  ;;  %v6016_v17 = vld [vmem:[#allocation13_spill] sm:$0xff] }
 0x594   :  { %v6017_v3 = vld [vmem:[#allocation9_spill] sm:$0xff] }
 0x596   :  { %1989 = vmatpush1.bf16.msra.mxu0 %v6009_v52  ;;  %2030 = vmatpush1.bf16.msra.mxu1 %v6010_v13  ;;  %v6018_v52 = vld [vmem:[#allocation14_spill] sm:$0xff]  ;;  %v6019_v13 = vld [vmem:[#allocation12_spill] sm:$0xff] }
 0x597   :  { %2116 = vmatprep.subr.bf16.mxu0 %v6011_v2  ;;  %2157 = vmatprep.subr.bf16.mxu1 %v6012_v53  ;;  %v6020_v2 = vld [vmem:[#allocation16_spill] sm:$0xff]  ;;  %v6021_v53 = vld [vmem:[#allocation15_spill] sm:$0xff] }
 0x599   :  { %1991 = vmatmul.mubr.bf16.vlgmr.msra.gmra.mrb[36].mxu0 %v4702_v60  ;;  %2032 = vmatmul.mubr.bf16.vlgmr.msra.gmra.mrb[36].mxu1 %v4702_v60  ;;  %v6023_v60 = vld [vmem:[#allocation17_spill] sm:$0xff] }
 0x59a   :  { %2117 = vmatpush1.bf16.msra.mxu0 %v6013_v8  ;;  %2158 = vmatpush1.bf16.msra.mxu1 %v6014_v20  ;;  %v6024_v8 = vld [vmem:[#allocation20_spill] sm:$0xff]  ;;  %v6025_v20 = vld [vmem:[#allocation19_spill] sm:$0xff] }
 0x59b   :  { %2118 = vmatprep.subr.bf16.mxu0 %v6015_v37  ;;  %2159 = vmatprep.subr.bf16.mxu1 %v6016_v17  ;;  %v6026_v37 = vld [vmem:[#allocation22_spill] sm:$0xff]  ;;  %v6027_v17 = vld [vmem:[#allocation21_spill] sm:$0xff] }
 0x59e   :  { %2119 = vmatpush1.bf16.msra.mxu0 %v6017_v3  ;;  %2160 = vmatpush1.bf16.msra.mxu1 %v6018_v52  ;;  %v6028_v3 = vld [vmem:[#allocation24_spill] sm:$0xff]  ;;  %v6029_v52 = vld [vmem:[#allocation23_spill] sm:$0xff] }
 0x59f   :  { %2120 = vmatprep.subr.bf16.mxu0 %v6019_v13  ;;  %2161 = vmatprep.subr.bf16.mxu1 %v6020_v2  ;;  %v6030_v13 = vld [vmem:[#allocation26_spill] sm:$0xff]  ;;  %v6031_v2 = vld [vmem:[#allocation25_spill] sm:$0xff] }
 0x5a2   :  { %2121 = vmatpush1.bf16.msra.mxu0 %v6021_v53  ;;  %2162 = vmatpush1.bf16.msra.mxu1 %v6022_v5  ;;  %v6032_v53 = vld [vmem:[#allocation28_spill] sm:$0xff]  ;;  %v6033_v5 = vld [vmem:[#allocation27_spill] sm:$0xff] }
 0x5a3   :  { %2122 = vmatprep.subr.bf16.mxu0 %v6023_v60  ;;  %2163 = vmatprep.subr.bf16.mxu1 %v6024_v8  ;;  %v6034_v60 = vld [vmem:[#allocation30_spill] sm:$0xff]  ;;  %v6035_v8 = vld [vmem:[#allocation29_spill] sm:$0xff] }
 0x5a6   :  { %2123 = vmatpush1.bf16.msra.mxu0 %v6025_v20  ;;  %2164 = vmatpush1.bf16.msra.mxu1 %v6026_v37  ;;  %v6036_v20 = vld [vmem:[#allocation32_spill] sm:$0xff]  ;;  %v6037_v37 = vld [vmem:[#allocation31_spill] sm:$0xff] }
 0x5a7   :  { %2124 = vmatprep.subr.bf16.mxu0 %v6027_v17  ;;  %2165 = vmatprep.subr.bf16.mxu1 %v6028_v3  ;;  %v6038_v17 = vld [vmem:[#allocation34_spill] sm:$0xff]  ;;  %v6039_v3 = vld [vmem:[#allocation33_spill] sm:$0xff] }
 0x5aa   :  { %2125 = vmatpush1.bf16.msra.mxu0 %v6029_v52  ;;  %2166 = vmatpush1.bf16.msra.mxu1 %v6030_v13  ;;  %v6040_v52 = vld [vmem:[#allocation36_spill] sm:$0xff]  ;;  %v6041_v13 = vld [vmem:[#allocation35_spill] sm:$0xff] }
 0x5ab   :  { %2126 = vmatprep.subr.bf16.mxu0 %v6031_v2  ;;  %2167 = vmatprep.subr.bf16.mxu1 %v6032_v53  ;;  %v6042_v2 = vld [vmem:[#allocation38_spill] sm:$0xff]  ;;  %v6043_v53 = vld [vmem:[#allocation37_spill] sm:$0xff] }
 0x5ae   :  { %2127 = vmatpush1.bf16.msra.mxu0 %v6033_v5  ;;  %2168 = vmatpush1.bf16.msra.mxu1 %v6034_v60  ;;  %v6044_v5 = vld [vmem:[#allocation40_spill] sm:$0xff]  ;;  %v6045_v60 = vld [vmem:[#allocation39_spill] sm:$0xff] }
 0x5af   :  { %2128 = vmatprep.subr.bf16.mxu0 %v6035_v8  ;;  %2169 = vmatprep.subr.bf16.mxu1 %v6036_v20  ;;  %v6046_v8 = vld [vmem:[#allocation42_spill] sm:$0xff]  ;;  %v6047_v20 = vld [vmem:[#allocation41_spill] sm:$0xff] }
 0x5b2   :  { %2129 = vmatpush1.bf16.msra.mxu0 %v6037_v37  ;;  %2170 = vmatpush1.bf16.msra.mxu1 %v6038_v17  ;;  %v6048_v37 = vld [vmem:[#allocation44_spill] sm:$0xff]  ;;  %v6049_v17 = vld [vmem:[#allocation43_spill] sm:$0xff] }
 0x5b3   :  { %2130 = vmatprep.subr.bf16.mxu0 %v6039_v3  ;;  %2171 = vmatprep.subr.bf16.mxu1 %v6040_v52  ;;  %v6050_v3 = vld [vmem:[#allocation46_spill] sm:$0xff]  ;;  %v6051_v52 = vld [vmem:[#allocation45_spill] sm:$0xff] }
 0x5b6   :  { %2131 = vmatpush1.bf16.msra.mxu0 %v6041_v13  ;;  %2172 = vmatpush1.bf16.msra.mxu1 %v6042_v2  ;;  %v6052_v13 = vld [vmem:[#allocation48_spill] sm:$0xff]  ;;  %v6053_v2 = vld [vmem:[#allocation47_spill] sm:$0xff] }
 0x5b7   :  { %2132 = vmatprep.subr.bf16.mxu0 %v6043_v53  ;;  %2173 = vmatprep.subr.bf16.mxu1 %v6044_v5  ;;  %v6054_v53 = vld [vmem:[#allocation50_spill] sm:$0xff]  ;;  %v6055_v5 = vld [vmem:[#allocation49_spill] sm:$0xff] }
 0x5ba   :  { %2133 = vmatpush1.bf16.msra.mxu0 %v6045_v60  ;;  %2174 = vmatpush1.bf16.msra.mxu1 %v6046_v8  ;;  %v6056_v60 = vld [vmem:[#allocation52_spill] sm:$0xff]  ;;  %v6057_v8 = vld [vmem:[#allocation51_spill] sm:$0xff] }
 0x5bb   :  { %2134 = vmatprep.subr.bf16.mxu0 %v6047_v20  ;;  %2175 = vmatprep.subr.bf16.mxu1 %v6048_v37  ;;  %v6058_v20 = vld [vmem:[#allocation54_spill] sm:$0xff]  ;;  %v6059_v37 = vld [vmem:[#allocation53_spill] sm:$0xff] }
 0x5be   :  { %2135 = vmatpush1.bf16.msra.mxu0 %v6049_v17  ;;  %2176 = vmatpush1.bf16.msra.mxu1 %v6050_v3  ;;  %v6060_v17 = vld [vmem:[#allocation56_spill] sm:$0xff]  ;;  %v6061_v3 = vld [vmem:[#allocation55_spill] sm:$0xff] }
 0x5bf   :  { %2136 = vmatprep.subr.bf16.mxu0 %v6051_v52  ;;  %2177 = vmatprep.subr.bf16.mxu1 %v6052_v13  ;;  %v6062_v52 = vld [vmem:[#allocation58_spill] sm:$0xff]  ;;  %v6063_v13 = vld [vmem:[#allocation57_spill] sm:$0xff] }
 0x5c2   :  { %2137 = vmatpush1.bf16.msra.mxu0 %v6053_v2  ;;  %2178 = vmatpush1.bf16.msra.mxu1 %v6054_v53  ;;  %v6064_v2 = vld [vmem:[#allocation60_spill] sm:$0xff]  ;;  %v6065_v53 = vld [vmem:[#allocation59_spill] sm:$0xff] }
 0x5c3   :  { %2138 = vmatprep.subr.bf16.mxu0 %v6055_v5  ;;  %2179 = vmatprep.subr.bf16.mxu1 %v6056_v60  ;;  %v6066_v5 = vld [vmem:[#allocation62_spill] sm:$0xff]  ;;  %v6067_v60 = vld [vmem:[#allocation61_spill] sm:$0xff] }
 0x5c6   :  { %2139 = vmatpush1.bf16.msra.mxu0 %v6057_v8  ;;  %2180 = vmatpush1.bf16.msra.mxu1 %v6058_v20  ;;  %v6068_v8 = vld [vmem:[#allocation64_spill] sm:$0xff]  ;;  %v6069_v20 = vld [vmem:[#allocation63_spill] sm:$0xff] }
 0x5c7   :  { %2140 = vmatprep.subr.bf16.mxu0 %v6059_v37  ;;  %2181 = vmatprep.subr.bf16.mxu1 %v6060_v17  ;;  %v6070_v37 = vld [vmem:[#allocation66_spill] sm:$0xff]  ;;  %v6071_v17 = vld [vmem:[#allocation65_spill] sm:$0xff] }
 0x5ca   :  { %2141 = vmatpush1.bf16.msra.mxu0 %v6061_v3  ;;  %2182 = vmatpush1.bf16.msra.mxu1 %v6062_v52  ;;  %v6072_v3 = vld [vmem:[#allocation68_spill] sm:$0xff]  ;;  %v6073_v52 = vld [vmem:[#allocation67_spill] sm:$0xff] }
 0x5cb   :  { %2142 = vmatprep.subr.bf16.mxu0 %v6063_v13  ;;  %2183 = vmatprep.subr.bf16.mxu1 %v6064_v2  ;;  %v6074_v13 = vld [vmem:[#allocation70_spill] sm:$0xff]  ;;  %v6075_v2 = vld [vmem:[#allocation69_spill] sm:$0xff] }
 0x5ce   :  { %2143 = vmatpush1.bf16.msra.mxu0 %v6065_v53  ;;  %2184 = vmatpush1.bf16.msra.mxu1 %v6066_v5  ;;  %v6076_v53 = vld [vmem:[#allocation72_spill] sm:$0xff] }
 0x5cf   :  { %2144 = vmatprep.subr.bf16.mxu0 %v6067_v60  ;;  %2185 = vmatprep.subr.bf16.mxu1 %v6068_v8  ;;  %v40_v8 = vld [vmem:[%s5290_s0 + $0x80] sm:$0xff] }
 0x5d0   :  { %v2043_v60 = vunpack.c.l.bf16 %v40_v8 }
 0x5d2   :  { %2145 = vmatpush1.bf16.msra.mxu0 %v6069_v20  ;;  %2186 = vmatpush1.bf16.msra.mxu1 %v6070_v37  ;;  %v2044_v20 = vunpack.c.h.bf16 %v40_v8 }
 0x5d3   :  { %2146 = vmatprep.subr.bf16.mxu0 %v6071_v17  ;;  %2187 = vmatprep.subr.bf16.mxu1 %v6072_v3  ;;  %v42_v3 = vld [vmem:[%s5290_s0 + $0x88] sm:$0xff] }
 0x5d4   :  { %v2046_v23 = vunpack.c.h.bf16 %v42_v3  ;;  %v2045_v46 = vunpack.c.l.bf16 %v42_v3 }
 0x5d6   :  { %2147 = vmatpush1.bf16.msra.mxu0 %v6073_v52  ;;  %2188 = vmatpush1.bf16.msra.mxu1 %v6074_v13 }
 0x5d7   :  { %2198 = vmatprep.subr.bf16.mxu0 %v6075_v2  ;;  %2239 = vmatprep.subr.bf16.mxu1 %v6076_v53 }
 0x62c   :  { %v1910_v5 = vpop.f32.mrb[32].mxu0  ;;  %v1951_v37 = vpop.f32.mrb[32].mxu1 }
 0x62d   :  { %v2047_v14 = vadd.f32 %v2043_v60, %v1910_v5  ;;  %v1912_v52 = vpop.f32.mrb[33].mxu0  ;;  %v1953_v17 = vpop.f32.mrb[33].mxu1  ;;  %v2049_v5 = vadd.f32 %v2045_v46, %v1951_v37 }
 0x62e   :  { %v2048_v13 = vadd.f32 %v2044_v20, %v1912_v52  ;;  %v1914_v4 = vpop.f32.mrb[34].mxu0  ;;  %v1955_v2 = vpop.f32.mrb[34].mxu1  ;;  %v2050_v8 = vadd.f32 %v2046_v23, %v1953_v17 }
 0x62f   :  { %v3055_v11 = vmul.f32 -1.442695, %v2047_v14  ;;  %v1915_v53 = vpop.f32.mrb[35].mxu0  ;;  %v1956_v43 = vpop.f32.mrb[35].mxu1 }
 0x630   :  { %v3056_v62 = vmul.f32 -1.442695, %v2048_v13  ;;  %v3057_v59 = vmul.f32 -1.442695, %v2050_v8  ;;  %v2887_v8 = vld [vmem:[%s5291_s1 + $0x78] sm:$0xff] }
 0x631   :  { %3215 = vpow2.f32 %v3055_v11  ;;  %v6077_v11 = vld [vmem:[#allocation73_spill] sm:$0xff] }
 0x632   :  { %3217 = vpow2.f32 %v3056_v62 }
 0x633   :  { %3219 = vpow2.f32 %v3057_v59 }
 0x634   :  { %3221 = vtanh.f32 %v2049_v5 }
 0x63b   :  { %v3216_v60 = vpop.eup %3215 }
 0x63c   :  { %v3218_v54 = vpop.eup %3217  ;;  %v2054_v35 = vadd.f32 1.0, %v3216_v60 }
 0x63d   :  { %v2060_v58 = vadd.f32 1.0, %v3218_v54  ;;  %v3220_v4 = vpop.eup %3219 }
 0x63e   :  { %3223 = vrcp.f32 %v2054_v35  ;;  %v3222_v2 = vpop.eup %3221  ;;  %v2067_v20 = vadd.f32 1.0, %v3220_v4 }
 0x63f   :  { %3225 = vrcp.f32 %v2060_v58  ;;  %v2886_v58 = vld [vmem:[%s5291_s1 + $0x70] sm:$0xff] }
 0x640   :  { %3227 = vrcp.f32 %v2067_v20  ;;  %v2081_v35 = vunpack.c.l.bf16 %v2886_v58  ;;  %v2082_v54 = vunpack.c.h.bf16 %v2886_v58 }
 0x648   :  { %v3224_v53 = vpop.eup %3223 }
 0x649   :  { %v3226_v43 = vpop.eup %3225  ;;  %v2071_v14 = vmul.f32 %v3224_v53, %v3222_v2 }
 0x64a   :  { %v2070_v62 = vmul.f32 %v3226_v43, %v6077_v11  ;;  %v3228_v46 = vpop.eup %3227 }
 0x64c   :  { %v4860_v23 = vadd.f32 %v2071_v14, %v2070_v62  ;;  %v2084_v62 = vunpack.c.h.bf16 %v2887_v8 }
 0x64e   :  { %6078 = vst [vmem:[#allocation76_spill] sm:$0xff] %v4860_v23  ;;  %3229 = vtanh.f32 %v4860_v23 }
 0x658   :  { %v3230_v37 = vpop.eup %3229 }
 0x659   :  { %v2074_v59 = vmul.f32 %v3230_v37, %v3228_v46  ;;  %v2083_v37 = vunpack.c.l.bf16 %v2887_v8 }
 0x65b   :  { %v4863_v17 = vpack.c.bf16 %v2074_v59, %v2074_v59 }
 0x65d   :  { %3058 = vst [vmem:[%s5293_s3 + $0x10] sm:$0xf] %v4863_v17 }
 0x66c   :  { %v1992_v3 = vpop.f32.mrb[36].mxu0  ;;  %v2033_v52 = vpop.f32.mrb[36].mxu1 }
 0x66d   :  { %v2085_v13 = vadd.f32 %v2081_v35, %v1992_v3  ;;  %v1994_v5 = vpop.f32.mrb[37].mxu0  ;;  %v2035_v60 = vpop.f32.mrb[37].mxu1  ;;  %v2087_v58 = vadd.f32 %v2083_v37, %v2033_v52  ;;  %v6085_v37 = vld [vmem:[#allocation117_spill] sm:$0xff] }
 0x66e   :  { %v2086_v4 = vadd.f32 %v2082_v54, %v1994_v5  ;;  %v1996_v2 = vpop.f32.mrb[38].mxu0  ;;  %v2037_v53 = vpop.f32.mrb[38].mxu1  ;;  %v2088_v46 = vadd.f32 %v2084_v62, %v2035_v60  ;;  %v6083_v62 = vld [vmem:[#allocation115_spill] sm:$0xff] }
 0x66f   :  { %v3059_v43 = vmul.f32 -1.442695, %v2085_v13  ;;  %v1997_v14 = vpop.f32.mrb[39].mxu0  ;;  %v2038_v20 = vpop.f32.mrb[39].mxu1 }
 0x670   :  { %v3060_v11 = vmul.f32 -1.442695, %v2086_v4  ;;  %v3061_v59 = vmul.f32 -1.442695, %v2088_v46  ;;  %v6084_v46 = vld [vmem:[#allocation118_spill] sm:$0xff] }
 0x671   :  { %3231 = vpow2.f32 %v3059_v43 }
 0x672   :  { %3233 = vpow2.f32 %v3060_v11  ;;  %v6082_v11 = vld [vmem:[#allocation116_spill] sm:$0xff] }
 0x673   :  { %3235 = vpow2.f32 %v3061_v59  ;;  %v6086_v59 = vld [vmem:[#allocation120_spill] sm:$0xff] }
 0x674   :  { %3237 = vtanh.f32 %v2087_v58  ;;  %v6087_v58 = vld [vmem:[#allocation119_spill] sm:$0xff] }
 0x67b   :  { %v3232_v35 = vpop.eup %3231 }
 0x67c   :  { %v3234_v3 = vpop.eup %3233  ;;  %v2092_v23 = vadd.f32 1.0, %v3232_v35  ;;  %v6088_v35 = vld [vmem:[#allocation122_spill] sm:$0xff] }
 0x67d   :  { %v2098_v21 = vadd.f32 1.0, %v3234_v3  ;;  %v3236_v54 = vpop.eup %3235  ;;  %v6089_v3 = vld [vmem:[#allocation121_spill] sm:$0xff] }
 0x67e   :  { %3239 = vrcp.f32 %v2092_v23  ;;  %v3238_v13 = vpop.eup %3237  ;;  %v2105_v53 = vadd.f32 1.0, %v3236_v54  ;;  %v6081_v23 = vld [vmem:[#allocation113_spill] sm:$0xff]  ;;  %v6090_v54 = vld [vmem:[#allocation124_spill] sm:$0xff] }
 0x67f   :  { %3241 = vrcp.f32 %v2098_v21  ;;  %v6080_v21 = vld [vmem:[#allocation114_spill] sm:$0xff] }
 0x680   :  { %3243 = vrcp.f32 %v2105_v53  ;;  %v6095_v53 = vld [vmem:[#allocation127_spill] sm:$0xff] }
 0x688   :  { %v3240_v5 = vpop.eup %3239 }
 0x689   :  { %v3242_v2 = vpop.eup %3241  ;;  %v2109_v4 = vmul.f32 %v3240_v5, %v3238_v13  ;;  %v6091_v13 = vld [vmem:[#allocation123_spill] sm:$0xff]  ;;  %v6092_v5 = vld [vmem:[#allocation126_spill] sm:$0xff] }
 0x68a   :  { %v2108_v43 = vmul.f32 %v3242_v2, %v4715_v38  ;;  %v3244_v52 = vpop.eup %3243  ;;  %v6079_v38 = vld [vmem:[#allocation111_spill] sm:$0xff]  ;;  %v6093_v2 = vld [vmem:[#allocation125_spill] sm:$0xff] }
 0x68c   :  { %v4876_v60 = vadd.f32 %v2109_v4, %v2108_v43  ;;  %v6094_v4 = vld [vmem:[#allocation128_spill] sm:$0xff]  ;;  %v6096_v43 = vld [vmem:[#allocation130_spill] sm:$0xff] }
 0x68e   :  { %3245 = vtanh.f32 %v4876_v60 }
 0x698   :  { %v3246_v8 = vpop.eup %3245 }
 0x699   :  { %v2112_v14 = vmul.f32 %v3246_v8, %v3244_v52  ;;  %v6097_v52 = vld [vmem:[#allocation129_spill] sm:$0xff]  ;;  %v6098_v8 = vld [vmem:[#allocation132_spill] sm:$0xff] }
 0x69b   :  { %v2113_v20 = vpack.c.bf16 %v2112_v14, %v2112_v14  ;;  %v6099_v14 = vld [vmem:[#allocation131_spill] sm:$0xff] }
 0x69d   :  { %3062 = vst [vmem:[%s5294_s4 + $0xc] sm:$0xf] %v2113_v20  ;;  %2148 = vmatprep.mubr.bf16.mxu0 %v2113_v20  ;;  %2189 = vmatprep.mubr.bf16.mxu1 %v2113_v20 }
 0x69e   :  { %2149 = vmatmul.mubr.bf16.vlgmr.msra.gmra.mrb[40].mxu0 %v4863_v17  ;;  %2190 = vmatmul.mubr.bf16.vlgmr.msra.gmra.mrb[40].mxu1 %v4863_v17 }
 0x69f   :  { %2199 = vmatpush1.bf16.msra.mxu0 %v5721_v19  ;;  %2240 = vmatpush1.bf16.msra.mxu1 %v5722_v30 }
 0x6a0   :  { %2230 = vmatprep.mubr.bf16.mxu0 %v2113_v20  ;;  %2271 = vmatprep.mubr.bf16.mxu1 %v2113_v20  ;;  %v6100_v20 = vld [vmem:[#allocation133_spill] sm:$0xff] }
 0x6a1   :  { %2200 = vmatprep.subr.bf16.mxu0 %v5723_v28  ;;  %2241 = vmatprep.subr.bf16.mxu1 %v5724_v15 }
 0x6a3   :  { %2201 = vmatpush1.bf16.msra.mxu0 %v5725_v29  ;;  %2242 = vmatpush1.bf16.msra.mxu1 %v5726_v16 }
 0x6a4   :  { %2202 = vmatprep.subr.bf16.mxu0 %v5727_v44  ;;  %2243 = vmatprep.subr.bf16.mxu1 %v5728_v10 }
 0x6a7   :  { %2203 = vmatpush1.bf16.msra.mxu0 %v5729_v45  ;;  %2244 = vmatpush1.bf16.msra.mxu1 %v5809_v25 }
 0x6a8   :  { %2204 = vmatprep.subr.bf16.mxu0 %v5810_v51  ;;  %2245 = vmatprep.subr.bf16.mxu1 %v5811_v39 }
 0x6ab   :  { %2205 = vmatpush1.bf16.msra.mxu0 %v5812_v40  ;;  %2246 = vmatpush1.bf16.msra.mxu1 %v5813_v34 }
 0x6ac   :  { %2206 = vmatprep.subr.bf16.mxu0 %v5814_v32  ;;  %2247 = vmatprep.subr.bf16.mxu1 %v5815_v56 }
 0x6af   :  { %2207 = vmatpush1.bf16.msra.mxu0 %v5816_v33  ;;  %2248 = vmatpush1.bf16.msra.mxu1 %v5817_v24 }
 0x6b0   :  { %2208 = vmatprep.subr.bf16.mxu0 %v5818_v26  ;;  %2249 = vmatprep.subr.bf16.mxu1 %v5819_v63 }
 0x6b3   :  { %2209 = vmatpush1.bf16.msra.mxu0 %v5899_v9  ;;  %2250 = vmatpush1.bf16.msra.mxu1 %v5900_v55 }
 0x6b4   :  { %2210 = vmatprep.subr.bf16.mxu0 %v5901_v18  ;;  %2251 = vmatprep.subr.bf16.mxu1 %v5902_v36 }
 0x6b7   :  { %2211 = vmatpush1.bf16.msra.mxu0 %v5903_v22  ;;  %2252 = vmatpush1.bf16.msra.mxu1 %v5904_v7 }
 0x6b8   :  { %2212 = vmatprep.subr.bf16.mxu0 %v5905_v12  ;;  %2253 = vmatprep.subr.bf16.mxu1 %v5827_v1 }
 0x6bb   :  { %2213 = vmatpush1.bf16.msra.mxu0 %v5906_v27  ;;  %2254 = vmatpush1.bf16.msra.mxu1 %v5829_v57 }
 0x6bc   :  { %2214 = vmatprep.subr.bf16.mxu0 %v5830_v0  ;;  %2255 = vmatprep.subr.bf16.mxu1 %v5831_v31 }
 0x6bf   :  { %2215 = vmatpush1.bf16.msra.mxu0 %v5907_v6  ;;  %2256 = vmatpush1.bf16.msra.mxu1 %v5833_v48 }
 0x6c0   :  { %2216 = vmatprep.subr.bf16.mxu0 %v5834_v42  ;;  %2257 = vmatprep.subr.bf16.mxu1 %v5835_v47 }
 0x6c3   :  { %2217 = vmatpush1.bf16.msra.mxu0 %v5836_v49  ;;  %2258 = vmatpush1.bf16.msra.mxu1 %v5837_v41 }
 0x6c4   :  { %2218 = vmatprep.subr.bf16.mxu0 %v5759_v61  ;;  %2259 = vmatprep.subr.bf16.mxu1 %v5838_v50 }
 0x6c7   :  { %2219 = vmatpush1.bf16.msra.mxu0 %v6079_v38  ;;  %2260 = vmatpush1.bf16.msra.mxu1 %v6080_v21 }
 0x6c8   :  { %2220 = vmatprep.subr.bf16.mxu0 %v6081_v23  ;;  %2261 = vmatprep.subr.bf16.mxu1 %v6082_v11 }
 0x6cb   :  { %2221 = vmatpush1.bf16.msra.mxu0 %v6083_v62  ;;  %2262 = vmatpush1.bf16.msra.mxu1 %v6084_v46 }
 0x6cc   :  { %2222 = vmatprep.subr.bf16.mxu0 %v6085_v37  ;;  %2263 = vmatprep.subr.bf16.mxu1 %v6086_v59 }
 0x6cf   :  { %2223 = vmatpush1.bf16.msra.mxu0 %v6087_v58  ;;  %2264 = vmatpush1.bf16.msra.mxu1 %v6088_v35 }
 0x6d0   :  { %2224 = vmatprep.subr.bf16.mxu0 %v6089_v3  ;;  %2265 = vmatprep.subr.bf16.mxu1 %v6090_v54  ;;  %v6101_v54 = vld [vmem:[#allocation6_spill] sm:$0xff] }
 0x6d3   :  { %2225 = vmatpush1.bf16.msra.mxu0 %v6091_v13  ;;  %2266 = vmatpush1.bf16.msra.mxu1 %v6092_v5  ;;  %v6102_v13 = vld [vmem:[#allocation10_spill] sm:$0xff] }
 0x6d4   :  { %2226 = vmatprep.subr.bf16.mxu0 %v6093_v2  ;;  %2267 = vmatprep.subr.bf16.mxu1 %v6094_v4  ;;  %v6103_v4 = vld [vmem:[#allocation7_spill] sm:$0xff]  ;;  %v6112_v2 = vld [vmem:[#allocation18_spill] sm:$0xff] }
 0x6d7   :  { %2227 = vmatpush1.bf16.msra.mxu0 %v6095_v53  ;;  %2268 = vmatpush1.bf16.msra.mxu1 %v6096_v43  ;;  %v6104_v53 = vld [vmem:[#allocation11_spill] sm:$0xff]  ;;  %v6105_v43 = vld [vmem:[#allocation8_spill] sm:$0xff] }
 0x6d8   :  { %2228 = vmatprep.subr.bf16.mxu0 %v6097_v52  ;;  %2269 = vmatprep.subr.bf16.mxu1 %v6098_v8  ;;  %v6106_v52 = vld [vmem:[#allocation13_spill] sm:$0xff] }
 0x6d9   :  { %v6107_v8 = vld [vmem:[#allocation9_spill] sm:$0xff] }
 0x6db   :  { %2229 = vmatpush1.bf16.msra.mxu0 %v6099_v14  ;;  %2270 = vmatpush1.bf16.msra.mxu1 %v6100_v20  ;;  %v6108_v14 = vld [vmem:[#allocation14_spill] sm:$0xff]  ;;  %v6109_v20 = vld [vmem:[#allocation12_spill] sm:$0xff] }
 0x6dc   :  { %2356 = vmatprep.subr.bf16.mxu0 %v6101_v54  ;;  %2397 = vmatprep.subr.bf16.mxu1 %v6102_v13  ;;  %v6110_v54 = vld [vmem:[#allocation16_spill] sm:$0xff]  ;;  %v6111_v13 = vld [vmem:[#allocation15_spill] sm:$0xff] }
 0x6de   :  { %2231 = vmatmul.mubr.bf16.vlgmr.msra.gmra.mrb[44].mxu0 %v4863_v17  ;;  %2272 = vmatmul.mubr.bf16.vlgmr.msra.gmra.mrb[44].mxu1 %v4863_v17  ;;  %v6113_v17 = vld [vmem:[#allocation17_spill] sm:$0xff] }
 0x6df   :  { %2357 = vmatpush1.bf16.msra.mxu0 %v6103_v4  ;;  %2398 = vmatpush1.bf16.msra.mxu1 %v6104_v53  ;;  %v6114_v4 = vld [vmem:[#allocation20_spill] sm:$0xff]  ;;  %v6115_v53 = vld [vmem:[#allocation19_spill] sm:$0xff] }
 0x6e0   :  { %2358 = vmatprep.subr.bf16.mxu0 %v6105_v43  ;;  %2399 = vmatprep.subr.bf16.mxu1 %v6106_v52  ;;  %v6116_v43 = vld [vmem:[#allocation22_spill] sm:$0xff]  ;;  %v6117_v52 = vld [vmem:[#allocation21_spill] sm:$0xff] }
 0x6e3   :  { %2359 = vmatpush1.bf16.msra.mxu0 %v6107_v8  ;;  %2400 = vmatpush1.bf16.msra.mxu1 %v6108_v14  ;;  %v6118_v8 = vld [vmem:[#allocation24_spill] sm:$0xff]  ;;  %v6119_v14 = vld [vmem:[#allocation23_spill] sm:$0xff] }
 0x6e4   :  { %2360 = vmatprep.subr.bf16.mxu0 %v6109_v20  ;;  %2401 = vmatprep.subr.bf16.mxu1 %v6110_v54  ;;  %v6120_v20 = vld [vmem:[#allocation26_spill] sm:$0xff]  ;;  %v6121_v54 = vld [vmem:[#allocation25_spill] sm:$0xff] }
 0x6e7   :  { %2361 = vmatpush1.bf16.msra.mxu0 %v6111_v13  ;;  %2402 = vmatpush1.bf16.msra.mxu1 %v6112_v2  ;;  %v6122_v13 = vld [vmem:[#allocation28_spill] sm:$0xff]  ;;  %v6123_v2 = vld [vmem:[#allocation27_spill] sm:$0xff] }
 0x6e8   :  { %2362 = vmatprep.subr.bf16.mxu0 %v6113_v17  ;;  %2403 = vmatprep.subr.bf16.mxu1 %v6114_v4  ;;  %v6124_v17 = vld [vmem:[#allocation30_spill] sm:$0xff]  ;;  %v6125_v4 = vld [vmem:[#allocation29_spill] sm:$0xff] }
 0x6eb   :  { %2363 = vmatpush1.bf16.msra.mxu0 %v6115_v53  ;;  %2404 = vmatpush1.bf16.msra.mxu1 %v6116_v43  ;;  %v6126_v53 = vld [vmem:[#allocation32_spill] sm:$0xff]  ;;  %v6127_v43 = vld [vmem:[#allocation31_spill] sm:$0xff] }
 0x6ec   :  { %2364 = vmatprep.subr.bf16.mxu0 %v6117_v52  ;;  %2405 = vmatprep.subr.bf16.mxu1 %v6118_v8  ;;  %v6128_v52 = vld [vmem:[#allocation34_spill] sm:$0xff]  ;;  %v6129_v8 = vld [vmem:[#allocation33_spill] sm:$0xff] }
 0x6ef   :  { %2365 = vmatpush1.bf16.msra.mxu0 %v6119_v14  ;;  %2406 = vmatpush1.bf16.msra.mxu1 %v6120_v20  ;;  %v6130_v14 = vld [vmem:[#allocation36_spill] sm:$0xff]  ;;  %v6131_v20 = vld [vmem:[#allocation35_spill] sm:$0xff] }
 0x6f0   :  { %2366 = vmatprep.subr.bf16.mxu0 %v6121_v54  ;;  %2407 = vmatprep.subr.bf16.mxu1 %v6122_v13  ;;  %v6132_v54 = vld [vmem:[#allocation38_spill] sm:$0xff]  ;;  %v6133_v13 = vld [vmem:[#allocation37_spill] sm:$0xff] }
 0x6f3   :  { %2367 = vmatpush1.bf16.msra.mxu0 %v6123_v2  ;;  %2408 = vmatpush1.bf16.msra.mxu1 %v6124_v17  ;;  %v6134_v2 = vld [vmem:[#allocation40_spill] sm:$0xff]  ;;  %v6135_v17 = vld [vmem:[#allocation39_spill] sm:$0xff] }
 0x6f4   :  { %2368 = vmatprep.subr.bf16.mxu0 %v6125_v4  ;;  %2409 = vmatprep.subr.bf16.mxu1 %v6126_v53  ;;  %v6136_v4 = vld [vmem:[#allocation42_spill] sm:$0xff]  ;;  %v6137_v53 = vld [vmem:[#allocation41_spill] sm:$0xff] }
 0x6f7   :  { %2369 = vmatpush1.bf16.msra.mxu0 %v6127_v43  ;;  %2410 = vmatpush1.bf16.msra.mxu1 %v6128_v52  ;;  %v6138_v43 = vld [vmem:[#allocation44_spill] sm:$0xff]  ;;  %v6139_v52 = vld [vmem:[#allocation43_spill] sm:$0xff] }
 0x6f8   :  { %2370 = vmatprep.subr.bf16.mxu0 %v6129_v8  ;;  %2411 = vmatprep.subr.bf16.mxu1 %v6130_v14  ;;  %v6140_v8 = vld [vmem:[#allocation46_spill] sm:$0xff]  ;;  %v6141_v14 = vld [vmem:[#allocation45_spill] sm:$0xff] }
 0x6fb   :  { %2371 = vmatpush1.bf16.msra.mxu0 %v6131_v20  ;;  %2412 = vmatpush1.bf16.msra.mxu1 %v6132_v54  ;;  %v6142_v20 = vld [vmem:[#allocation48_spill] sm:$0xff]  ;;  %v6143_v54 = vld [vmem:[#allocation47_spill] sm:$0xff] }
 0x6fc   :  { %2372 = vmatprep.subr.bf16.mxu0 %v6133_v13  ;;  %2413 = vmatprep.subr.bf16.mxu1 %v6134_v2  ;;  %v6144_v13 = vld [vmem:[#allocation50_spill] sm:$0xff]  ;;  %v6145_v2 = vld [vmem:[#allocation49_spill] sm:$0xff] }
 0x6ff   :  { %2373 = vmatpush1.bf16.msra.mxu0 %v6135_v17  ;;  %2414 = vmatpush1.bf16.msra.mxu1 %v6136_v4  ;;  %v6146_v17 = vld [vmem:[#allocation52_spill] sm:$0xff]  ;;  %v6147_v4 = vld [vmem:[#allocation51_spill] sm:$0xff] }
 0x700   :  { %2374 = vmatprep.subr.bf16.mxu0 %v6137_v53  ;;  %2415 = vmatprep.subr.bf16.mxu1 %v6138_v43  ;;  %v6148_v53 = vld [vmem:[#allocation54_spill] sm:$0xff]  ;;  %v6149_v43 = vld [vmem:[#allocation53_spill] sm:$0xff] }
 0x703   :  { %2375 = vmatpush1.bf16.msra.mxu0 %v6139_v52  ;;  %2416 = vmatpush1.bf16.msra.mxu1 %v6140_v8  ;;  %v6150_v52 = vld [vmem:[#allocation56_spill] sm:$0xff]  ;;  %v6151_v8 = vld [vmem:[#allocation55_spill] sm:$0xff] }
 0x704   :  { %2376 = vmatprep.subr.bf16.mxu0 %v6141_v14  ;;  %2417 = vmatprep.subr.bf16.mxu1 %v6142_v20  ;;  %v6152_v14 = vld [vmem:[#allocation58_spill] sm:$0xff]  ;;  %v6153_v20 = vld [vmem:[#allocation57_spill] sm:$0xff] }
 0x707   :  { %2377 = vmatpush1.bf16.msra.mxu0 %v6143_v54  ;;  %2418 = vmatpush1.bf16.msra.mxu1 %v6144_v13  ;;  %v6154_v54 = vld [vmem:[#allocation60_spill] sm:$0xff]  ;;  %v6155_v13 = vld [vmem:[#allocation59_spill] sm:$0xff] }
 0x708   :  { %2378 = vmatprep.subr.bf16.mxu0 %v6145_v2  ;;  %2419 = vmatprep.subr.bf16.mxu1 %v6146_v17  ;;  %v6156_v2 = vld [vmem:[#allocation62_spill] sm:$0xff]  ;;  %v6157_v17 = vld [vmem:[#allocation61_spill] sm:$0xff] }
 0x70b   :  { %2379 = vmatpush1.bf16.msra.mxu0 %v6147_v4  ;;  %2420 = vmatpush1.bf16.msra.mxu1 %v6148_v53  ;;  %v6158_v4 = vld [vmem:[#allocation64_spill] sm:$0xff]  ;;  %v6159_v53 = vld [vmem:[#allocation63_spill] sm:$0xff] }
 0x70c   :  { %2380 = vmatprep.subr.bf16.mxu0 %v6149_v43  ;;  %2421 = vmatprep.subr.bf16.mxu1 %v6150_v52  ;;  %v6160_v43 = vld [vmem:[#allocation66_spill] sm:$0xff]  ;;  %v6161_v52 = vld [vmem:[#allocation65_spill] sm:$0xff] }
 0x70f   :  { %2381 = vmatpush1.bf16.msra.mxu0 %v6151_v8  ;;  %2422 = vmatpush1.bf16.msra.mxu1 %v6152_v14  ;;  %v6162_v8 = vld [vmem:[#allocation68_spill] sm:$0xff]  ;;  %v6163_v14 = vld [vmem:[#allocation67_spill] sm:$0xff] }
 0x710   :  { %2382 = vmatprep.subr.bf16.mxu0 %v6153_v20  ;;  %2423 = vmatprep.subr.bf16.mxu1 %v6154_v54  ;;  %v6164_v20 = vld [vmem:[#allocation70_spill] sm:$0xff]  ;;  %v6165_v54 = vld [vmem:[#allocation69_spill] sm:$0xff] }
 0x713   :  { %2383 = vmatpush1.bf16.msra.mxu0 %v6155_v13  ;;  %2424 = vmatpush1.bf16.msra.mxu1 %v6156_v2  ;;  %v6166_v13 = vld [vmem:[#allocation72_spill] sm:$0xff] }
 0x714   :  { %2384 = vmatprep.subr.bf16.mxu0 %v6157_v17  ;;  %2425 = vmatprep.subr.bf16.mxu1 %v6158_v4  ;;  %v44_v4 = vld [vmem:[%s5290_s0 + $0xa0] sm:$0xff] }
 0x715   :  { %v2283_v17 = vunpack.c.l.bf16 %v44_v4 }
 0x717   :  { %2385 = vmatpush1.bf16.msra.mxu0 %v6159_v53  ;;  %2426 = vmatpush1.bf16.msra.mxu1 %v6160_v43  ;;  %v2284_v53 = vunpack.c.h.bf16 %v44_v4 }
 0x718   :  { %2386 = vmatprep.subr.bf16.mxu0 %v6161_v52  ;;  %2427 = vmatprep.subr.bf16.mxu1 %v6162_v8  ;;  %v46_v8 = vld [vmem:[%s5290_s0 + $0xa8] sm:$0xff] }
 0x719   :  { %v2286_v37 = vunpack.c.h.bf16 %v46_v8  ;;  %v2285_v46 = vunpack.c.l.bf16 %v46_v8 }
 0x71b   :  { %2387 = vmatpush1.bf16.msra.mxu0 %v6163_v14  ;;  %2428 = vmatpush1.bf16.msra.mxu1 %v6164_v20 }
 0x71c   :  { %2438 = vmatprep.subr.bf16.mxu0 %v6165_v54  ;;  %2479 = vmatprep.subr.bf16.mxu1 %v6166_v13 }
 0x771   :  { %v2150_v2 = vpop.f32.mrb[40].mxu0  ;;  %v2191_v43 = vpop.f32.mrb[40].mxu1 }
 0x772   :  { %v2287_v5 = vadd.f32 %v2283_v17, %v2150_v2  ;;  %v2152_v14 = vpop.f32.mrb[41].mxu0  ;;  %v2193_v52 = vpop.f32.mrb[41].mxu1  ;;  %v2289_v2 = vadd.f32 %v2285_v46, %v2191_v43 }
 0x773   :  { %v2288_v20 = vadd.f32 %v2284_v53, %v2152_v14  ;;  %v2154_v3 = vpop.f32.mrb[42].mxu0  ;;  %v2195_v54 = vpop.f32.mrb[42].mxu1  ;;  %v2290_v4 = vadd.f32 %v2286_v37, %v2193_v52 }
 0x774   :  { %v3063_v35 = vmul.f32 -1.442695, %v2287_v5  ;;  %v2155_v13 = vpop.f32.mrb[43].mxu0  ;;  %v2196_v58 = vpop.f32.mrb[43].mxu1 }
 0x775   :  { %v3064_v59 = vmul.f32 -1.442695, %v2288_v20  ;;  %v3065_v62 = vmul.f32 -1.442695, %v2290_v4  ;;  %v2885_v4 = vld [vmem:[%s5291_s1 + $0x58] sm:$0xff] }
 0x776   :  { %3247 = vpow2.f32 %v3063_v35  ;;  %v6167_v35 = vld [vmem:[#allocation76_spill] sm:$0xff] }
 0x777   :  { %3249 = vpow2.f32 %v3064_v59 }
 0x778   :  { %3251 = vpow2.f32 %v3065_v62 }
 0x779   :  { %3253 = vtanh.f32 %v2289_v2 }
 0x780   :  { %v3248_v17 = vpop.eup %3247 }
 0x781   :  { %v3250_v11 = vpop.eup %3249  ;;  %v2294_v23 = vadd.f32 1.0, %v3248_v17 }
 0x782   :  { %v2300_v21 = vadd.f32 1.0, %v3250_v11  ;;  %v3252_v3 = vpop.eup %3251 }
 0x783   :  { %3255 = vrcp.f32 %v2294_v23  ;;  %v3254_v54 = vpop.eup %3253  ;;  %v2307_v53 = vadd.f32 1.0, %v3252_v3 }
 0x784   :  { %3257 = vrcp.f32 %v2300_v21  ;;  %v2884_v21 = vld [vmem:[%s5291_s1 + $0x50] sm:$0xff] }
 0x785   :  { %3259 = vrcp.f32 %v2307_v53  ;;  %v2321_v23 = vunpack.c.l.bf16 %v2884_v21  ;;  %v2322_v11 = vunpack.c.h.bf16 %v2884_v21 }
 0x78d   :  { %v3256_v13 = vpop.eup %3255 }
 0x78e   :  { %v3258_v58 = vpop.eup %3257  ;;  %v2311_v5 = vmul.f32 %v3256_v13, %v3254_v54 }
 0x78f   :  { %v2310_v59 = vmul.f32 %v3258_v58, %v6167_v35  ;;  %v3260_v46 = vpop.eup %3259 }
 0x791   :  { %v5021_v37 = vadd.f32 %v2311_v5, %v2310_v59  ;;  %v2324_v59 = vunpack.c.h.bf16 %v2885_v4 }
 0x793   :  { %6168 = vst [vmem:[#allocation75_spill] sm:$0xff] %v5021_v37  ;;  %3261 = vtanh.f32 %v5021_v37 }
 0x79d   :  { %v3262_v43 = vpop.eup %3261 }
 0x79e   :  { %v2314_v62 = vmul.f32 %v3262_v43, %v3260_v46  ;;  %v2323_v43 = vunpack.c.l.bf16 %v2885_v4 }
 0x7a0   :  { %v5024_v52 = vpack.c.bf16 %v2314_v62, %v2314_v62 }
 0x7a2   :  { %3066 = vst [vmem:[%s5293_s3 + $0x14] sm:$0xf] %v5024_v52 }
 0x7b1   :  { %v2232_v8 = vpop.f32.mrb[44].mxu0  ;;  %v2273_v14 = vpop.f32.mrb[44].mxu1 }
 0x7b2   :  { %v2325_v20 = vadd.f32 %v2321_v23, %v2232_v8  ;;  %v2234_v2 = vpop.f32.mrb[45].mxu0  ;;  %v2275_v17 = vpop.f32.mrb[45].mxu1  ;;  %v2327_v21 = vadd.f32 %v2323_v43, %v2273_v14  ;;  %v6175_v43 = vld [vmem:[#allocation117_spill] sm:$0xff] }
 0x7b3   :  { %v2326_v3 = vadd.f32 %v2322_v11, %v2234_v2  ;;  %v2236_v54 = vpop.f32.mrb[46].mxu0  ;;  %v2277_v13 = vpop.f32.mrb[46].mxu1  ;;  %v2328_v46 = vadd.f32 %v2324_v59, %v2275_v17  ;;  %v6173_v59 = vld [vmem:[#allocation115_spill] sm:$0xff] }
 0x7b4   :  { %v3067_v58 = vmul.f32 -1.442695, %v2325_v20  ;;  %v2237_v5 = vpop.f32.mrb[47].mxu0  ;;  %v2278_v53 = vpop.f32.mrb[47].mxu1 }
 0x7b5   :  { %v3068_v35 = vmul.f32 -1.442695, %v2326_v3  ;;  %v3069_v62 = vmul.f32 -1.442695, %v2328_v46  ;;  %v6174_v46 = vld [vmem:[#allocation118_spill] sm:$0xff] }
 0x7b6   :  { %3263 = vpow2.f32 %v3067_v58 }
 0x7b7   :  { %3265 = vpow2.f32 %v3068_v35  ;;  %v6172_v35 = vld [vmem:[#allocation116_spill] sm:$0xff] }
 0x7b8   :  { %3267 = vpow2.f32 %v3069_v62  ;;  %v6176_v62 = vld [vmem:[#allocation120_spill] sm:$0xff] }
 0x7b9   :  { %3269 = vtanh.f32 %v2327_v21  ;;  %v6177_v21 = vld [vmem:[#allocation119_spill] sm:$0xff] }
 0x7c0   :  { %v3264_v23 = vpop.eup %3263 }
 0x7c1   :  { %v3266_v8 = vpop.eup %3265  ;;  %v2332_v37 = vadd.f32 1.0, %v3264_v23  ;;  %v6178_v23 = vld [vmem:[#allocation122_spill] sm:$0xff] }
 0x7c2   :  { %v2338_v38 = vadd.f32 1.0, %v3266_v8  ;;  %v3268_v11 = vpop.eup %3267  ;;  %v6179_v8 = vld [vmem:[#allocation121_spill] sm:$0xff] }
 0x7c3   :  { %3271 = vrcp.f32 %v2332_v37  ;;  %v3270_v20 = vpop.eup %3269  ;;  %v2345_v13 = vadd.f32 1.0, %v3268_v11  ;;  %v6171_v37 = vld [vmem:[#allocation113_spill] sm:$0xff]  ;;  %v6180_v11 = vld [vmem:[#allocation124_spill] sm:$0xff] }
 0x7c4   :  { %3273 = vrcp.f32 %v2338_v38  ;;  %v6170_v38 = vld [vmem:[#allocation114_spill] sm:$0xff] }
 0x7c5   :  { %3275 = vrcp.f32 %v2345_v13  ;;  %v6185_v13 = vld [vmem:[#allocation127_spill] sm:$0xff] }
 0x7cd   :  { %v3272_v2 = vpop.eup %3271 }
 0x7ce   :  { %v3274_v54 = vpop.eup %3273  ;;  %v2349_v3 = vmul.f32 %v3272_v2, %v3270_v20  ;;  %v6181_v20 = vld [vmem:[#allocation123_spill] sm:$0xff]  ;;  %v6182_v2 = vld [vmem:[#allocation126_spill] sm:$0xff] }
 0x7cf   :  { %v2348_v58 = vmul.f32 %v3274_v54, %v4876_v60  ;;  %v3276_v14 = vpop.eup %3275  ;;  %v6169_v60 = vld [vmem:[#allocation111_spill] sm:$0xff]  ;;  %v6183_v54 = vld [vmem:[#allocation125_spill] sm:$0xff] }
 0x7d1   :  { %v5037_v17 = vadd.f32 %v2349_v3, %v2348_v58  ;;  %v6184_v3 = vld [vmem:[#allocation128_spill] sm:$0xff]  ;;  %v6186_v58 = vld [vmem:[#allocation130_spill] sm:$0xff] }
 0x7d3   :  { %3277 = vtanh.f32 %v5037_v17 }
 0x7dd   :  { %v3278_v4 = vpop.eup %3277 }
 0x7de   :  { %v2352_v5 = vmul.f32 %v3278_v4, %v3276_v14  ;;  %v6187_v14 = vld [vmem:[#allocation129_spill] sm:$0xff]  ;;  %v6188_v4 = vld [vmem:[#allocation132_spill] sm:$0xff] }
 0x7e0   :  { %v2353_v53 = vpack.c.bf16 %v2352_v5, %v2352_v5  ;;  %v6189_v5 = vld [vmem:[#allocation131_spill] sm:$0xff] }
 0x7e2   :  { %3070 = vst [vmem:[%s5294_s4 + $0x8] sm:$0xf] %v2353_v53  ;;  %2388 = vmatprep.mubr.bf16.mxu0 %v2353_v53  ;;  %2429 = vmatprep.mubr.bf16.mxu1 %v2353_v53 }
 0x7e3   :  { %2389 = vmatmul.mubr.bf16.vlgmr.msra.gmra.mrb[48].mxu0 %v5024_v52  ;;  %2430 = vmatmul.mubr.bf16.vlgmr.msra.gmra.mrb[48].mxu1 %v5024_v52 }
 0x7e4   :  { %2439 = vmatpush1.bf16.msra.mxu0 %v5721_v19  ;;  %2480 = vmatpush1.bf16.msra.mxu1 %v5722_v30 }
 0x7e5   :  { %2470 = vmatprep.mubr.bf16.mxu0 %v2353_v53  ;;  %2511 = vmatprep.mubr.bf16.mxu1 %v2353_v53  ;;  %v6190_v53 = vld [vmem:[#allocation133_spill] sm:$0xff] }
 0x7e6   :  { %2440 = vmatprep.subr.bf16.mxu0 %v5723_v28  ;;  %2481 = vmatprep.subr.bf16.mxu1 %v5724_v15 }
 0x7e8   :  { %2441 = vmatpush1.bf16.msra.mxu0 %v5725_v29  ;;  %2482 = vmatpush1.bf16.msra.mxu1 %v5726_v16 }
 0x7e9   :  { %2442 = vmatprep.subr.bf16.mxu0 %v5727_v44  ;;  %2483 = vmatprep.subr.bf16.mxu1 %v5728_v10 }
 0x7ec   :  { %2443 = vmatpush1.bf16.msra.mxu0 %v5729_v45  ;;  %2484 = vmatpush1.bf16.msra.mxu1 %v5809_v25 }
 0x7ed   :  { %2444 = vmatprep.subr.bf16.mxu0 %v5810_v51  ;;  %2485 = vmatprep.subr.bf16.mxu1 %v5811_v39 }
 0x7f0   :  { %2445 = vmatpush1.bf16.msra.mxu0 %v5812_v40  ;;  %2486 = vmatpush1.bf16.msra.mxu1 %v5813_v34 }
 0x7f1   :  { %2446 = vmatprep.subr.bf16.mxu0 %v5814_v32  ;;  %2487 = vmatprep.subr.bf16.mxu1 %v5815_v56 }
 0x7f4   :  { %2447 = vmatpush1.bf16.msra.mxu0 %v5816_v33  ;;  %2488 = vmatpush1.bf16.msra.mxu1 %v5817_v24 }
 0x7f5   :  { %2448 = vmatprep.subr.bf16.mxu0 %v5818_v26  ;;  %2489 = vmatprep.subr.bf16.mxu1 %v5819_v63 }
 0x7f8   :  { %2449 = vmatpush1.bf16.msra.mxu0 %v5899_v9  ;;  %2490 = vmatpush1.bf16.msra.mxu1 %v5900_v55 }
 0x7f9   :  { %2450 = vmatprep.subr.bf16.mxu0 %v5901_v18  ;;  %2491 = vmatprep.subr.bf16.mxu1 %v5902_v36 }
 0x7fc   :  { %2451 = vmatpush1.bf16.msra.mxu0 %v5903_v22  ;;  %2492 = vmatpush1.bf16.msra.mxu1 %v5904_v7 }
 0x7fd   :  { %2452 = vmatprep.subr.bf16.mxu0 %v5905_v12  ;;  %2493 = vmatprep.subr.bf16.mxu1 %v5827_v1 }
 0x800   :  { %2453 = vmatpush1.bf16.msra.mxu0 %v5906_v27  ;;  %2494 = vmatpush1.bf16.msra.mxu1 %v5829_v57 }
 0x801   :  { %2454 = vmatprep.subr.bf16.mxu0 %v5830_v0  ;;  %2495 = vmatprep.subr.bf16.mxu1 %v5831_v31 }
 0x804   :  { %2455 = vmatpush1.bf16.msra.mxu0 %v5907_v6  ;;  %2496 = vmatpush1.bf16.msra.mxu1 %v5833_v48 }
 0x805   :  { %2456 = vmatprep.subr.bf16.mxu0 %v5834_v42  ;;  %2497 = vmatprep.subr.bf16.mxu1 %v5835_v47 }
 0x808   :  { %2457 = vmatpush1.bf16.msra.mxu0 %v5836_v49  ;;  %2498 = vmatpush1.bf16.msra.mxu1 %v5837_v41 }
 0x809   :  { %2458 = vmatprep.subr.bf16.mxu0 %v5759_v61  ;;  %2499 = vmatprep.subr.bf16.mxu1 %v5838_v50 }
 0x80c   :  { %2459 = vmatpush1.bf16.msra.mxu0 %v6169_v60  ;;  %2500 = vmatpush1.bf16.msra.mxu1 %v6170_v38 }
 0x80d   :  { %2460 = vmatprep.subr.bf16.mxu0 %v6171_v37  ;;  %2501 = vmatprep.subr.bf16.mxu1 %v6172_v35 }
 0x810   :  { %2461 = vmatpush1.bf16.msra.mxu0 %v6173_v59  ;;  %2502 = vmatpush1.bf16.msra.mxu1 %v6174_v46 }
 0x811   :  { %2462 = vmatprep.subr.bf16.mxu0 %v6175_v43  ;;  %2503 = vmatprep.subr.bf16.mxu1 %v6176_v62 }
 0x814   :  { %2463 = vmatpush1.bf16.msra.mxu0 %v6177_v21  ;;  %2504 = vmatpush1.bf16.msra.mxu1 %v6178_v23 }
 0x815   :  { %2464 = vmatprep.subr.bf16.mxu0 %v6179_v8  ;;  %2505 = vmatprep.subr.bf16.mxu1 %v6180_v11  ;;  %v6191_v11 = vld [vmem:[#allocation6_spill] sm:$0xff] }
 0x818   :  { %2465 = vmatpush1.bf16.msra.mxu0 %v6181_v20  ;;  %2506 = vmatpush1.bf16.msra.mxu1 %v6182_v2  ;;  %v6192_v20 = vld [vmem:[#allocation10_spill] sm:$0xff] }
 0x819   :  { %2466 = vmatprep.subr.bf16.mxu0 %v6183_v54  ;;  %2507 = vmatprep.subr.bf16.mxu1 %v6184_v3  ;;  %v6193_v3 = vld [vmem:[#allocation7_spill] sm:$0xff]  ;;  %v6202_v54 = vld [vmem:[#allocation18_spill] sm:$0xff] }
 0x81c   :  { %2467 = vmatpush1.bf16.msra.mxu0 %v6185_v13  ;;  %2508 = vmatpush1.bf16.msra.mxu1 %v6186_v58  ;;  %v6194_v13 = vld [vmem:[#allocation11_spill] sm:$0xff]  ;;  %v6195_v58 = vld [vmem:[#allocation8_spill] sm:$0xff] }
 0x81d   :  { %2468 = vmatprep.subr.bf16.mxu0 %v6187_v14  ;;  %2509 = vmatprep.subr.bf16.mxu1 %v6188_v4  ;;  %v6196_v14 = vld [vmem:[#allocation13_spill] sm:$0xff] }
 0x81e   :  { %v6197_v4 = vld [vmem:[#allocation9_spill] sm:$0xff] }
 0x820   :  { %2469 = vmatpush1.bf16.msra.mxu0 %v6189_v5  ;;  %2510 = vmatpush1.bf16.msra.mxu1 %v6190_v53  ;;  %v6198_v5 = vld [vmem:[#allocation14_spill] sm:$0xff]  ;;  %v6199_v53 = vld [vmem:[#allocation12_spill] sm:$0xff] }
 0x821   :  { %2596 = vmatprep.subr.bf16.mxu0 %v6191_v11  ;;  %2637 = vmatprep.subr.bf16.mxu1 %v6192_v20  ;;  %v6200_v11 = vld [vmem:[#allocation16_spill] sm:$0xff]  ;;  %v6201_v20 = vld [vmem:[#allocation15_spill] sm:$0xff] }
 0x823   :  { %2471 = vmatmul.mubr.bf16.vlgmr.msra.gmra.mrb[52].mxu0 %v5024_v52  ;;  %2512 = vmatmul.mubr.bf16.vlgmr.msra.gmra.mrb[52].mxu1 %v5024_v52  ;;  %v6203_v52 = vld [vmem:[#allocation17_spill] sm:$0xff] }
 0x824   :  { %2597 = vmatpush1.bf16.msra.mxu0 %v6193_v3  ;;  %2638 = vmatpush1.bf16.msra.mxu1 %v6194_v13  ;;  %v6204_v3 = vld [vmem:[#allocation20_spill] sm:$0xff]  ;;  %v6205_v13 = vld [vmem:[#allocation19_spill] sm:$0xff] }
 0x825   :  { %2598 = vmatprep.subr.bf16.mxu0 %v6195_v58  ;;  %2639 = vmatprep.subr.bf16.mxu1 %v6196_v14  ;;  %v6206_v58 = vld [vmem:[#allocation22_spill] sm:$0xff]  ;;  %v6207_v14 = vld [vmem:[#allocation21_spill] sm:$0xff] }
 0x828   :  { %2599 = vmatpush1.bf16.msra.mxu0 %v6197_v4  ;;  %2640 = vmatpush1.bf16.msra.mxu1 %v6198_v5  ;;  %v6208_v4 = vld [vmem:[#allocation24_spill] sm:$0xff]  ;;  %v6209_v5 = vld [vmem:[#allocation23_spill] sm:$0xff] }
 0x829   :  { %2600 = vmatprep.subr.bf16.mxu0 %v6199_v53  ;;  %2641 = vmatprep.subr.bf16.mxu1 %v6200_v11  ;;  %v6210_v53 = vld [vmem:[#allocation26_spill] sm:$0xff]  ;;  %v6211_v11 = vld [vmem:[#allocation25_spill] sm:$0xff] }
 0x82c   :  { %2601 = vmatpush1.bf16.msra.mxu0 %v6201_v20  ;;  %2642 = vmatpush1.bf16.msra.mxu1 %v6202_v54  ;;  %v6212_v20 = vld [vmem:[#allocation28_spill] sm:$0xff]  ;;  %v6213_v54 = vld [vmem:[#allocation27_spill] sm:$0xff] }
 0x82d   :  { %2602 = vmatprep.subr.bf16.mxu0 %v6203_v52  ;;  %2643 = vmatprep.subr.bf16.mxu1 %v6204_v3  ;;  %v6214_v52 = vld [vmem:[#allocation30_spill] sm:$0xff]  ;;  %v6215_v3 = vld [vmem:[#allocation29_spill] sm:$0xff] }
 0x830   :  { %2603 = vmatpush1.bf16.msra.mxu0 %v6205_v13  ;;  %2644 = vmatpush1.bf16.msra.mxu1 %v6206_v58  ;;  %v6216_v13 = vld [vmem:[#allocation32_spill] sm:$0xff]  ;;  %v6217_v58 = vld [vmem:[#allocation31_spill] sm:$0xff] }
 0x831   :  { %2604 = vmatprep.subr.bf16.mxu0 %v6207_v14  ;;  %2645 = vmatprep.subr.bf16.mxu1 %v6208_v4  ;;  %v6218_v14 = vld [vmem:[#allocation34_spill] sm:$0xff]  ;;  %v6219_v4 = vld [vmem:[#allocation33_spill] sm:$0xff] }
 0x834   :  { %2605 = vmatpush1.bf16.msra.mxu0 %v6209_v5  ;;  %2646 = vmatpush1.bf16.msra.mxu1 %v6210_v53  ;;  %v6220_v5 = vld [vmem:[#allocation36_spill] sm:$0xff]  ;;  %v6221_v53 = vld [vmem:[#allocation35_spill] sm:$0xff] }
 0x835   :  { %2606 = vmatprep.subr.bf16.mxu0 %v6211_v11  ;;  %2647 = vmatprep.subr.bf16.mxu1 %v6212_v20  ;;  %v6222_v11 = vld [vmem:[#allocation38_spill] sm:$0xff]  ;;  %v6223_v20 = vld [vmem:[#allocation37_spill] sm:$0xff] }
 0x838   :  { %2607 = vmatpush1.bf16.msra.mxu0 %v6213_v54  ;;  %2648 = vmatpush1.bf16.msra.mxu1 %v6214_v52  ;;  %v6224_v54 = vld [vmem:[#allocation40_spill] sm:$0xff]  ;;  %v6225_v52 = vld [vmem:[#allocation39_spill] sm:$0xff] }
 0x839   :  { %2608 = vmatprep.subr.bf16.mxu0 %v6215_v3  ;;  %2649 = vmatprep.subr.bf16.mxu1 %v6216_v13  ;;  %v6226_v3 = vld [vmem:[#allocation42_spill] sm:$0xff]  ;;  %v6227_v13 = vld [vmem:[#allocation41_spill] sm:$0xff] }
 0x83c   :  { %2609 = vmatpush1.bf16.msra.mxu0 %v6217_v58  ;;  %2650 = vmatpush1.bf16.msra.mxu1 %v6218_v14  ;;  %v6228_v58 = vld [vmem:[#allocation44_spill] sm:$0xff]  ;;  %v6229_v14 = vld [vmem:[#allocation43_spill] sm:$0xff] }
 0x83d   :  { %2610 = vmatprep.subr.bf16.mxu0 %v6219_v4  ;;  %2651 = vmatprep.subr.bf16.mxu1 %v6220_v5  ;;  %v6230_v4 = vld [vmem:[#allocation46_spill] sm:$0xff]  ;;  %v6231_v5 = vld [vmem:[#allocation45_spill] sm:$0xff] }
 0x840   :  { %2611 = vmatpush1.bf16.msra.mxu0 %v6221_v53  ;;  %2652 = vmatpush1.bf16.msra.mxu1 %v6222_v11  ;;  %v6232_v53 = vld [vmem:[#allocation48_spill] sm:$0xff]  ;;  %v6233_v11 = vld [vmem:[#allocation47_spill] sm:$0xff] }
 0x841   :  { %2612 = vmatprep.subr.bf16.mxu0 %v6223_v20  ;;  %2653 = vmatprep.subr.bf16.mxu1 %v6224_v54  ;;  %v6234_v20 = vld [vmem:[#allocation50_spill] sm:$0xff]  ;;  %v6235_v54 = vld [vmem:[#allocation49_spill] sm:$0xff] }
 0x844   :  { %2613 = vmatpush1.bf16.msra.mxu0 %v6225_v52  ;;  %2654 = vmatpush1.bf16.msra.mxu1 %v6226_v3  ;;  %v6236_v52 = vld [vmem:[#allocation52_spill] sm:$0xff]  ;;  %v6237_v3 = vld [vmem:[#allocation51_spill] sm:$0xff] }
 0x845   :  { %2614 = vmatprep.subr.bf16.mxu0 %v6227_v13  ;;  %2655 = vmatprep.subr.bf16.mxu1 %v6228_v58  ;;  %v6238_v13 = vld [vmem:[#allocation54_spill] sm:$0xff]  ;;  %v6239_v58 = vld [vmem:[#allocation53_spill] sm:$0xff] }
 0x848   :  { %2615 = vmatpush1.bf16.msra.mxu0 %v6229_v14  ;;  %2656 = vmatpush1.bf16.msra.mxu1 %v6230_v4  ;;  %v6240_v14 = vld [vmem:[#allocation56_spill] sm:$0xff]  ;;  %v6241_v4 = vld [vmem:[#allocation55_spill] sm:$0xff] }
 0x849   :  { %2616 = vmatprep.subr.bf16.mxu0 %v6231_v5  ;;  %2657 = vmatprep.subr.bf16.mxu1 %v6232_v53  ;;  %v6242_v5 = vld [vmem:[#allocation58_spill] sm:$0xff]  ;;  %v6243_v53 = vld [vmem:[#allocation57_spill] sm:$0xff] }
 0x84c   :  { %2617 = vmatpush1.bf16.msra.mxu0 %v6233_v11  ;;  %2658 = vmatpush1.bf16.msra.mxu1 %v6234_v20  ;;  %v6244_v11 = vld [vmem:[#allocation60_spill] sm:$0xff]  ;;  %v6245_v20 = vld [vmem:[#allocation59_spill] sm:$0xff] }
 0x84d   :  { %2618 = vmatprep.subr.bf16.mxu0 %v6235_v54  ;;  %2659 = vmatprep.subr.bf16.mxu1 %v6236_v52  ;;  %v6246_v54 = vld [vmem:[#allocation62_spill] sm:$0xff]  ;;  %v6247_v52 = vld [vmem:[#allocation61_spill] sm:$0xff] }
 0x850   :  { %2619 = vmatpush1.bf16.msra.mxu0 %v6237_v3  ;;  %2660 = vmatpush1.bf16.msra.mxu1 %v6238_v13  ;;  %v6248_v3 = vld [vmem:[#allocation64_spill] sm:$0xff]  ;;  %v6249_v13 = vld [vmem:[#allocation63_spill] sm:$0xff] }
 0x851   :  { %2620 = vmatprep.subr.bf16.mxu0 %v6239_v58  ;;  %2661 = vmatprep.subr.bf16.mxu1 %v6240_v14  ;;  %v6250_v58 = vld [vmem:[#allocation66_spill] sm:$0xff]  ;;  %v6251_v14 = vld [vmem:[#allocation65_spill] sm:$0xff] }
 0x854   :  { %2621 = vmatpush1.bf16.msra.mxu0 %v6241_v4  ;;  %2662 = vmatpush1.bf16.msra.mxu1 %v6242_v5  ;;  %v6252_v4 = vld [vmem:[#allocation68_spill] sm:$0xff]  ;;  %v6253_v5 = vld [vmem:[#allocation67_spill] sm:$0xff] }
 0x855   :  { %2622 = vmatprep.subr.bf16.mxu0 %v6243_v53  ;;  %2663 = vmatprep.subr.bf16.mxu1 %v6244_v11  ;;  %v6254_v53 = vld [vmem:[#allocation70_spill] sm:$0xff]  ;;  %v6255_v11 = vld [vmem:[#allocation69_spill] sm:$0xff] }
 0x858   :  { %2623 = vmatpush1.bf16.msra.mxu0 %v6245_v20  ;;  %2664 = vmatpush1.bf16.msra.mxu1 %v6246_v54  ;;  %v6256_v20 = vld [vmem:[#allocation72_spill] sm:$0xff]  ;;  %v48_v54 = vld [vmem:[%s5290_s0 + $0xc0] sm:$0xff] }
 0x859   :  { %2624 = vmatprep.subr.bf16.mxu0 %v6247_v52  ;;  %2665 = vmatprep.subr.bf16.mxu1 %v6248_v3  ;;  %v2523_v52 = vunpack.c.l.bf16 %v48_v54  ;;  %v2524_v3 = vunpack.c.h.bf16 %v48_v54 }
 0x85c   :  { %2625 = vmatpush1.bf16.msra.mxu0 %v6249_v13  ;;  %2666 = vmatpush1.bf16.msra.mxu1 %v6250_v58 }
 0x85d   :  { %2626 = vmatprep.subr.bf16.mxu0 %v6251_v14  ;;  %2667 = vmatprep.subr.bf16.mxu1 %v6252_v4  ;;  %v50_v14 = vld [vmem:[%s5290_s0 + $0xc8] sm:$0xff] }
 0x85e   :  { %v2526_v43 = vunpack.c.h.bf16 %v50_v14  ;;  %v2525_v46 = vunpack.c.l.bf16 %v50_v14 }
 0x860   :  { %2627 = vmatpush1.bf16.msra.mxu0 %v6253_v5  ;;  %2668 = vmatpush1.bf16.msra.mxu1 %v6254_v53 }
 0x861   :  { %2678 = vmatprep.subr.bf16.mxu0 %v6255_v11  ;;  %2719 = vmatprep.subr.bf16.mxu1 %v6256_v20 }
 0x8b6   :  { %v2390_v13 = vpop.f32.mrb[48].mxu0  ;;  %v2431_v58 = vpop.f32.mrb[48].mxu1 }
 0x8b7   :  { %v2527_v2 = vadd.f32 %v2523_v52, %v2390_v13  ;;  %v2392_v4 = vpop.f32.mrb[49].mxu0  ;;  %v2433_v5 = vpop.f32.mrb[49].mxu1  ;;  %v2529_v52 = vadd.f32 %v2525_v46, %v2431_v58 }
 0x8b8   :  { %v2528_v53 = vadd.f32 %v2524_v3, %v2392_v4  ;;  %v2394_v8 = vpop.f32.mrb[50].mxu0  ;;  %v2435_v11 = vpop.f32.mrb[50].mxu1  ;;  %v2530_v54 = vadd.f32 %v2526_v43, %v2433_v5 }
 0x8b9   :  { %v3071_v23 = vmul.f32 -1.442695, %v2527_v2  ;;  %v2395_v20 = vpop.f32.mrb[51].mxu0  ;;  %v2436_v21 = vpop.f32.mrb[51].mxu1 }
 0x8ba   :  { %v3072_v62 = vmul.f32 -1.442695, %v2528_v53  ;;  %v3073_v59 = vmul.f32 -1.442695, %v2530_v54  ;;  %v2883_v54 = vld [vmem:[%s5291_s1 + $0x38] sm:$0xff] }
 0x8bb   :  { %3279 = vpow2.f32 %v3071_v23  ;;  %v6257_v23 = vld [vmem:[#allocation75_spill] sm:$0xff] }
 0x8bc   :  { %3281 = vpow2.f32 %v3072_v62 }
 0x8bd   :  { %3283 = vpow2.f32 %v3073_v59 }
 0x8be   :  { %3285 = vtanh.f32 %v2529_v52 }
 0x8c5   :  { %v3280_v13 = vpop.eup %3279 }
 0x8c6   :  { %v3282_v35 = vpop.eup %3281  ;;  %v2534_v37 = vadd.f32 1.0, %v3280_v13 }
 0x8c7   :  { %v2540_v38 = vadd.f32 1.0, %v3282_v35  ;;  %v3284_v8 = vpop.eup %3283 }
 0x8c8   :  { %3287 = vrcp.f32 %v2534_v37  ;;  %v3286_v2 = vpop.eup %3285  ;;  %v2547_v53 = vadd.f32 1.0, %v3284_v8 }
 0x8c9   :  { %3289 = vrcp.f32 %v2540_v38  ;;  %v2882_v38 = vld [vmem:[%s5291_s1 + $0x30] sm:$0xff] }
 0x8ca   :  { %3291 = vrcp.f32 %v2547_v53  ;;  %v2561_v37 = vunpack.c.l.bf16 %v2882_v38  ;;  %v2562_v35 = vunpack.c.h.bf16 %v2882_v38 }
 0x8d2   :  { %v3288_v3 = vpop.eup %3287 }
 0x8d3   :  { %v3290_v21 = vpop.eup %3289  ;;  %v2551_v4 = vmul.f32 %v3288_v3, %v3286_v2 }
 0x8d4   :  { %v2550_v62 = vmul.f32 %v3290_v21, %v6257_v23  ;;  %v3292_v46 = vpop.eup %3291 }
 0x8d6   :  { %v5182_v43 = vadd.f32 %v2551_v4, %v2550_v62  ;;  %v2564_v62 = vunpack.c.h.bf16 %v2883_v54 }
 0x8d8   :  { %6258 = vst [vmem:[#allocation78_spill] sm:$0xff] %v5182_v43  ;;  %3293 = vtanh.f32 %v5182_v43 }
 0x8e2   :  { %v3294_v58 = vpop.eup %3293 }
 0x8e3   :  { %v2554_v59 = vmul.f32 %v3294_v58, %v3292_v46  ;;  %v2563_v58 = vunpack.c.l.bf16 %v2883_v54 }
 0x8e5   :  { %v5185_v14 = vpack.c.bf16 %v2554_v59, %v2554_v59 }
 0x8e7   :  { %3074 = vst [vmem:[%s5293_s3 + $0x18] sm:$0xf] %v5185_v14 }
 0x8f6   :  { %v2472_v5 = vpop.f32.mrb[52].mxu0  ;;  %v2513_v11 = vpop.f32.mrb[52].mxu1 }
 0x8f7   :  { %v2565_v20 = vadd.f32 %v2561_v37, %v2472_v5  ;;  %v2474_v52 = vpop.f32.mrb[53].mxu0  ;;  %v2515_v13 = vpop.f32.mrb[53].mxu1  ;;  %v2567_v38 = vadd.f32 %v2563_v58, %v2513_v11 }
 0x8f8   :  { %v2566_v8 = vadd.f32 %v2562_v35, %v2474_v52  ;;  %v2476_v2 = vpop.f32.mrb[54].mxu0  ;;  %v2517_v3 = vpop.f32.mrb[54].mxu1  ;;  %v2568_v46 = vadd.f32 %v2564_v62, %v2515_v13 }
 0x8f9   :  { %v3075_v21 = vmul.f32 -1.442695, %v2565_v20  ;;  %v2477_v4 = vpop.f32.mrb[55].mxu0  ;;  %v2518_v53 = vpop.f32.mrb[55].mxu1 }
 0x8fa   :  { %v3076_v23 = vmul.f32 -1.442695, %v2566_v8  ;;  %v3077_v59 = vmul.f32 -1.442695, %v2568_v46 }
 0x8fb   :  { %3295 = vpow2.f32 %v3075_v21 }
 0x8fc   :  { %3297 = vpow2.f32 %v3076_v23 }
 0x8fd   :  { %3299 = vpow2.f32 %v3077_v59 }
 0x8fe   :  { %3301 = vtanh.f32 %v2567_v38 }
 0x905   :  { %v3296_v37 = vpop.eup %3295 }
 0x906   :  { %v3298_v5 = vpop.eup %3297  ;;  %v2572_v43 = vadd.f32 1.0, %v3296_v37 }
 0x907   :  { %v2578_v60 = vadd.f32 1.0, %v3298_v5  ;;  %v3300_v35 = vpop.eup %3299 }
 0x908   :  { %3303 = vrcp.f32 %v2572_v43  ;;  %v3302_v20 = vpop.eup %3301  ;;  %v2585_v3 = vadd.f32 1.0, %v3300_v35 }
 0x909   :  { %3305 = vrcp.f32 %v2578_v60 }
 0x90a   :  { %3307 = vrcp.f32 %v2585_v3 }
 0x912   :  { %v3304_v52 = vpop.eup %3303 }
 0x913   :  { %v3306_v2 = vpop.eup %3305  ;;  %v2589_v8 = vmul.f32 %v3304_v52, %v3302_v20  ;;  %v6281_v20 = vld [vmem:[#allocation78_spill] sm:$0xff] }
 0x914   :  { %v2588_v21 = vmul.f32 %v3306_v2, %v5037_v17  ;;  %v3308_v11 = vpop.eup %3307 }
 0x916   :  { %v5198_v13 = vadd.f32 %v2589_v8, %v2588_v21 }
 0x918   :  { %3309 = vtanh.f32 %v5198_v13 }
 0x922   :  { %v3310_v54 = vpop.eup %3309 }
 0x923   :  { %v2592_v4 = vmul.f32 %v3310_v54, %v3308_v11  ;;  %v2880_v54 = vld [vmem:[%s5291_s1 + $0x10] sm:$0xff] }
 0x925   :  { %v2593_v53 = vpack.c.bf16 %v2592_v4, %v2592_v4  ;;  %v2800_v4 = vunpack.c.l.bf16 %v2880_v54 }
 0x927   :  { %3078 = vst [vmem:[%s5294_s4 + $0x4] sm:$0xf] %v2593_v53  ;;  %2628 = vmatprep.mubr.bf16.mxu0 %v2593_v53  ;;  %2669 = vmatprep.mubr.bf16.mxu1 %v2593_v53 }
 0x928   :  { %2629 = vmatmul.mubr.bf16.vlgmr.msra.gmra.mrb[56].mxu0 %v5185_v14  ;;  %2670 = vmatmul.mubr.bf16.vlgmr.msra.gmra.mrb[56].mxu1 %v5185_v14 }
 0x929   :  { %2679 = vmatpush1.bf16.msra.mxu0 %v5721_v19  ;;  %2720 = vmatpush1.bf16.msra.mxu1 %v5722_v30  ;;  %v6259_v19 = vld [vmem:[#allocation111_spill] sm:$0xff]  ;;  %v6260_v30 = vld [vmem:[#allocation114_spill] sm:$0xff] }
 0x92a   :  { %2710 = vmatprep.mubr.bf16.mxu0 %v2593_v53  ;;  %2751 = vmatprep.mubr.bf16.mxu1 %v2593_v53  ;;  %v2801_v53 = vunpack.c.h.bf16 %v2880_v54 }
 0x92b   :  { %2680 = vmatprep.subr.bf16.mxu0 %v5723_v28  ;;  %2721 = vmatprep.subr.bf16.mxu1 %v5724_v15  ;;  %v6261_v28 = vld [vmem:[#allocation113_spill] sm:$0xff]  ;;  %v6262_v15 = vld [vmem:[#allocation116_spill] sm:$0xff] }
 0x92d   :  { %2681 = vmatpush1.bf16.msra.mxu0 %v5725_v29  ;;  %2722 = vmatpush1.bf16.msra.mxu1 %v5726_v16  ;;  %v6263_v29 = vld [vmem:[#allocation115_spill] sm:$0xff]  ;;  %v6264_v16 = vld [vmem:[#allocation118_spill] sm:$0xff] }
 0x92e   :  { %2682 = vmatprep.subr.bf16.mxu0 %v5727_v44  ;;  %2723 = vmatprep.subr.bf16.mxu1 %v5728_v10  ;;  %v6265_v44 = vld [vmem:[#allocation117_spill] sm:$0xff]  ;;  %v6266_v10 = vld [vmem:[#allocation120_spill] sm:$0xff] }
 0x931   :  { %2683 = vmatpush1.bf16.msra.mxu0 %v5729_v45  ;;  %2724 = vmatpush1.bf16.msra.mxu1 %v5809_v25  ;;  %v6267_v45 = vld [vmem:[#allocation119_spill] sm:$0xff]  ;;  %v6269_v25 = vld [vmem:[#allocation121_spill] sm:$0xff] }
 0x932   :  { %2684 = vmatprep.subr.bf16.mxu0 %v5810_v51  ;;  %2725 = vmatprep.subr.bf16.mxu1 %v5811_v39  ;;  %v6270_v51 = vld [vmem:[#allocation124_spill] sm:$0xff]  ;;  %v6271_v39 = vld [vmem:[#allocation123_spill] sm:$0xff] }
 0x935   :  { %2685 = vmatpush1.bf16.msra.mxu0 %v5812_v40  ;;  %2726 = vmatpush1.bf16.msra.mxu1 %v5813_v34  ;;  %v6272_v40 = vld [vmem:[#allocation126_spill] sm:$0xff]  ;;  %v6273_v34 = vld [vmem:[#allocation125_spill] sm:$0xff] }
 0x936   :  { %2686 = vmatprep.subr.bf16.mxu0 %v5814_v32  ;;  %2727 = vmatprep.subr.bf16.mxu1 %v5815_v56  ;;  %v6274_v32 = vld [vmem:[#allocation128_spill] sm:$0xff]  ;;  %v6275_v56 = vld [vmem:[#allocation127_spill] sm:$0xff] }
 0x939   :  { %2687 = vmatpush1.bf16.msra.mxu0 %v5816_v33  ;;  %2728 = vmatpush1.bf16.msra.mxu1 %v5817_v24  ;;  %v6276_v33 = vld [vmem:[#allocation130_spill] sm:$0xff]  ;;  %v6277_v24 = vld [vmem:[#allocation129_spill] sm:$0xff] }
 0x93a   :  { %2688 = vmatprep.subr.bf16.mxu0 %v5818_v26  ;;  %2729 = vmatprep.subr.bf16.mxu1 %v5819_v63  ;;  %v6278_v26 = vld [vmem:[#allocation132_spill] sm:$0xff]  ;;  %v6279_v63 = vld [vmem:[#allocation131_spill] sm:$0xff] }
 0x93d   :  { %2689 = vmatpush1.bf16.msra.mxu0 %v5899_v9  ;;  %2730 = vmatpush1.bf16.msra.mxu1 %v5900_v55 }
 0x93e   :  { %2690 = vmatprep.subr.bf16.mxu0 %v5901_v18  ;;  %2731 = vmatprep.subr.bf16.mxu1 %v5902_v36 }
 0x941   :  { %2691 = vmatpush1.bf16.msra.mxu0 %v5903_v22  ;;  %2732 = vmatpush1.bf16.msra.mxu1 %v5904_v7 }
 0x942   :  { %2692 = vmatprep.subr.bf16.mxu0 %v5905_v12  ;;  %2733 = vmatprep.subr.bf16.mxu1 %v5827_v1 }
 0x945   :  { %2693 = vmatpush1.bf16.msra.mxu0 %v5906_v27  ;;  %2734 = vmatpush1.bf16.msra.mxu1 %v5829_v57 }
 0x946   :  { %2694 = vmatprep.subr.bf16.mxu0 %v5830_v0  ;;  %2735 = vmatprep.subr.bf16.mxu1 %v5831_v31  ;;  %v6280_v31 = vld [vmem:[#allocation133_spill] sm:$0xff] }
 0x949   :  { %2695 = vmatpush1.bf16.msra.mxu0 %v5907_v6  ;;  %2736 = vmatpush1.bf16.msra.mxu1 %v5833_v48  ;;  %v52_v48 = vld [vmem:[%s5290_s0 + $0xe0] sm:$0xff] }
 0x94a   :  { %2696 = vmatprep.subr.bf16.mxu0 %v5834_v42  ;;  %2737 = vmatprep.subr.bf16.mxu1 %v5835_v47  ;;  %v2763_v42 = vunpack.c.l.bf16 %v52_v48  ;;  %v2764_v47 = vunpack.c.h.bf16 %v52_v48 }
 0x94d   :  { %2697 = vmatpush1.bf16.msra.mxu0 %v5836_v49  ;;  %2738 = vmatpush1.bf16.msra.mxu1 %v5837_v41 }
 0x94e   :  { %2698 = vmatprep.subr.bf16.mxu0 %v5759_v61  ;;  %2739 = vmatprep.subr.bf16.mxu1 %v5838_v50  ;;  %v6268_v61 = vld [vmem:[#allocation122_spill] sm:$0xff]  ;;  %v54_v50 = vld [vmem:[%s5290_s0 + $0xe8] sm:$0xff] }
 0x94f   :  { %v2766_v27 = vunpack.c.h.bf16 %v54_v50  ;;  %v2765_v17 = vunpack.c.l.bf16 %v54_v50 }
 0x951   :  { %2699 = vmatpush1.bf16.msra.mxu0 %v6259_v19  ;;  %2740 = vmatpush1.bf16.msra.mxu1 %v6260_v30 }
 0x952   :  { %2700 = vmatprep.subr.bf16.mxu0 %v6261_v28  ;;  %2741 = vmatprep.subr.bf16.mxu1 %v6262_v15  ;;  %v2881_v15 = vld [vmem:[%s5291_s1 + $0x18] sm:$0xff] }
 0x955   :  { %2701 = vmatpush1.bf16.msra.mxu0 %v6263_v29  ;;  %2742 = vmatpush1.bf16.msra.mxu1 %v6264_v16 }
 0x956   :  { %2702 = vmatprep.subr.bf16.mxu0 %v6265_v44  ;;  %2743 = vmatprep.subr.bf16.mxu1 %v6266_v10 }
 0x959   :  { %2703 = vmatpush1.bf16.msra.mxu0 %v6267_v45  ;;  %2744 = vmatpush1.bf16.msra.mxu1 %v6268_v61 }
 0x95a   :  { %2704 = vmatprep.subr.bf16.mxu0 %v6269_v25  ;;  %2745 = vmatprep.subr.bf16.mxu1 %v6270_v51 }
 0x95d   :  { %2705 = vmatpush1.bf16.msra.mxu0 %v6271_v39  ;;  %2746 = vmatpush1.bf16.msra.mxu1 %v6272_v40  ;;  %v2803_v40 = vunpack.c.h.bf16 %v2881_v15 }
 0x95e   :  { %2706 = vmatprep.subr.bf16.mxu0 %v6273_v34  ;;  %2747 = vmatprep.subr.bf16.mxu1 %v6274_v32  ;;  %v2802_v32 = vunpack.c.l.bf16 %v2881_v15 }
 0x961   :  { %2707 = vmatpush1.bf16.msra.mxu0 %v6275_v56  ;;  %2748 = vmatpush1.bf16.msra.mxu1 %v6276_v33 }
 0x962   :  { %2708 = vmatprep.subr.bf16.mxu0 %v6277_v24  ;;  %2749 = vmatprep.subr.bf16.mxu1 %v6278_v26 }
 0x965   :  { %2709 = vmatpush1.bf16.msra.mxu0 %v6279_v63  ;;  %2750 = vmatpush1.bf16.msra.mxu1 %v6280_v31 }
 0x968   :  { %2711 = vmatmul.mubr.bf16.vlgmr.msra.gmra.mrb[60].mxu0 %v5185_v14  ;;  %2752 = vmatmul.mubr.bf16.vlgmr.msra.gmra.mrb[60].mxu1 %v5185_v14 }
 0x9fb   :  { %v2630_v49 = vpop.f32.mrb[56].mxu0  ;;  %v2671_v41 = vpop.f32.mrb[56].mxu1 }
 0x9fc   :  { %v2767_v1 = vadd.f32 %v2763_v42, %v2630_v49  ;;  %v2632_v57 = vpop.f32.mrb[57].mxu0  ;;  %v2673_v0 = vpop.f32.mrb[57].mxu1  ;;  %v2769_v43 = vadd.f32 %v2765_v17, %v2671_v41 }
 0x9fd   :  { %v2768_v9 = vadd.f32 %v2764_v47, %v2632_v57  ;;  %v2634_v55 = vpop.f32.mrb[58].mxu0  ;;  %v2675_v18 = vpop.f32.mrb[58].mxu1  ;;  %v2770_v6 = vadd.f32 %v2766_v27, %v2673_v0 }
 0x9fe   :  { %v3079_v36 = vmul.f32 -1.442695, %v2767_v1  ;;  %v2635_v22 = vpop.f32.mrb[59].mxu0  ;;  %v2676_v7 = vpop.f32.mrb[59].mxu1 }
 0x9ff   :  { %v3080_v12 = vmul.f32 -1.442695, %v2768_v9  ;;  %v3081_v60 = vmul.f32 -1.442695, %v2770_v6 }
 0xa00   :  { %3311 = vpow2.f32 %v3079_v36 }
 0xa01   :  { %3313 = vpow2.f32 %v3080_v12 }
 0xa02   :  { %3315 = vpow2.f32 %v3081_v60 }
 0xa03   :  { %3317 = vtanh.f32 %v2769_v43 }
 0xa0a   :  { %v3312_v14 = vpop.eup %3311 }
 0xa0b   :  { %v3314_v23 = vpop.eup %3313  ;;  %v2774_v62 = vadd.f32 1.0, %v3312_v14 }
 0xa0c   :  { %v2780_v46 = vadd.f32 1.0, %v3314_v23  ;;  %v3316_v58 = vpop.eup %3315 }
 0xa0d   :  { %3319 = vrcp.f32 %v2774_v62  ;;  %v3318_v59 = vpop.eup %3317  ;;  %v2787_v35 = vadd.f32 1.0, %v3316_v58 }
 0xa0e   :  { %3321 = vrcp.f32 %v2780_v46 }
 0xa0f   :  { %3323 = vrcp.f32 %v2787_v35 }
 0xa17   :  { %v3320_v38 = vpop.eup %3319 }
 0xa18   :  { %v3322_v37 = vpop.eup %3321  ;;  %v2791_v5 = vmul.f32 %v3320_v38, %v3318_v59 }
 0xa19   :  { %v2790_v52 = vmul.f32 %v3322_v37, %v6281_v20  ;;  %v3324_v8 = vpop.eup %3323 }
 0xa1b   :  { %v2792_v2 = vadd.f32 %v2791_v5, %v2790_v52 }
 0xa1d   :  { %3325 = vtanh.f32 %v2792_v2 }
 0xa27   :  { %v3326_v3 = vpop.eup %3325 }
 0xa28   :  { %v2794_v21 = vmul.f32 %v3326_v3, %v3324_v8 }
 0xa2a   :  { %v2795_v11 = vpack.c.bf16 %v2794_v21, %v2794_v21 }
 0xa2c   :  { %3082 = vst [vmem:[%s5293_s3 + $0x1c] sm:$0xf] %v2795_v11 }
 0xa3b   :  { %v2712_v19 = vpop.f32.mrb[60].mxu0  ;;  %v2753_v30 = vpop.f32.mrb[60].mxu1 }
 0xa3c   :  { %v2804_v28 = vadd.f32 %v2800_v4, %v2712_v19  ;;  %v2714_v29 = vpop.f32.mrb[61].mxu0  ;;  %v2755_v16 = vpop.f32.mrb[61].mxu1  ;;  %v2806_v33 = vadd.f32 %v2802_v32, %v2753_v30 }
 0xa3d   :  { %v2805_v44 = vadd.f32 %v2801_v53, %v2714_v29  ;;  %v2716_v10 = vpop.f32.mrb[62].mxu0  ;;  %v2757_v45 = vpop.f32.mrb[62].mxu1  ;;  %v2807_v34 = vadd.f32 %v2803_v40, %v2755_v16 }
 0xa3e   :  { %v3083_v61 = vmul.f32 -1.442695, %v2804_v28  ;;  %v2717_v25 = vpop.f32.mrb[63].mxu0  ;;  %v2758_v51 = vpop.f32.mrb[63].mxu1 }
 0xa3f   :  { %v3084_v39 = vmul.f32 -1.442695, %v2805_v44  ;;  %v3085_v56 = vmul.f32 -1.442695, %v2807_v34 }
 0xa40   :  { %3327 = vpow2.f32 %v3083_v61 }
 0xa41   :  { %3329 = vpow2.f32 %v3084_v39 }
 0xa42   :  { %3331 = vpow2.f32 %v3085_v56 }
 0xa43   :  { %3333 = vtanh.f32 %v2806_v33 }
 0xa4a   :  { %v3328_v24 = vpop.eup %3327 }
 0xa4b   :  { %v3330_v26 = vpop.eup %3329  ;;  %v2811_v63 = vadd.f32 1.0, %v3328_v24 }
 0xa4c   :  { %v2817_v31 = vadd.f32 1.0, %v3330_v26  ;;  %v3332_v48 = vpop.eup %3331 }
 0xa4d   :  { %3335 = vrcp.f32 %v2811_v63  ;;  %v3334_v42 = vpop.eup %3333  ;;  %v2824_v1 = vadd.f32 1.0, %v3332_v48 }
 0xa4e   :  { %3337 = vrcp.f32 %v2817_v31 }
 0xa4f   :  { %3339 = vrcp.f32 %v2824_v1 }
 0xa57   :  { %v3336_v47 = vpop.eup %3335 }
 0xa58   :  { %v3338_v49 = vpop.eup %3337  ;;  %v2828_v41 = vmul.f32 %v3336_v47, %v3334_v42 }
 0xa59   :  { %v2827_v50 = vmul.f32 %v3338_v49, %v5198_v13  ;;  %v3340_v0 = vpop.eup %3339 }
 0xa5b   :  { %v2829_v57 = vadd.f32 %v2828_v41, %v2827_v50 }
 0xa5d   :  { %3341 = vtanh.f32 %v2829_v57 }
 0xa67   :  { %v3342_v9 = vpop.eup %3341 }
 0xa68   :  { %v2831_v55 = vmul.f32 %v3342_v9, %v3340_v0 }
 0xa6a   :  { %v2832_v18 = vpack.c.bf16 %v2831_v55, %v2831_v55 }
 0xa6c   :  { %2833 = vst [vmem:[%s5294_s4] sm:$0xf] %v2832_v18 }

</bundles_post_ra>
